<compile_context>
chip_gen: v6e
topology: v6e:2x2x1
jax: 0.10.0
libtpu: 0.0.40
codegen_flags: <defaults>
</compile_context>

<pallas_src>
import functools

import jax
import jax.numpy as jnp
from jax.experimental import pallas as pl
from jax.experimental.pallas import tpu as pltpu

EPS = 1e-5


def _round_up(x, m):
    return (x + m - 1) // m * m


def _pick_tile(m, target=512):
    for t in (target, 256, 128, 64, 32, 16, 8):
        if t <= m and m % t == 0:
            return t
    return m


# ---------------------------------------------------------------------------
# Kernel A: 1x1 conv (pixel-row tiled matmul), optionally fused with the
# affine form of the PREVIOUS BatchNorm + ReLU, emitting per-tile partial
# (sum, sum-of-squares) of its raw output for the NEXT BatchNorm.
# ---------------------------------------------------------------------------
def _pw_conv_kernel(x_ref, scale_ref, bias_ref, w_ref, out_ref, stats_ref,
                    *, prenorm_relu):
    x = x_ref[...]                                            # (TM, Ci) f32
    if prenorm_relu:
        x = jnp.maximum(x * scale_ref[...] + bias_ref[...], 0.0)
    y = jnp.dot(x.astype(jnp.bfloat16), w_ref[...],
                preferred_element_type=jnp.float32)           # (TM, Co) f32
    out_ref[...] = y
    stats_ref[0, 0:1, :] = jnp.sum(y, axis=0, keepdims=True)
    stats_ref[0, 1:2, :] = jnp.sum(y * y, axis=0, keepdims=True)


def _pw_conv(x, scale, bias, w, tm, *, prenorm_relu, cparams):
    m, ci = x.shape
    co = w.shape[1]
    t = m // tm
    return pl.pallas_call(
        functools.partial(_pw_conv_kernel, prenorm_relu=prenorm_relu),
        out_shape=(jax.ShapeDtypeStruct((m, co), jnp.float32),
                   jax.ShapeDtypeStruct((t, 2, co), jnp.float32)),
        grid=(t,),
        in_specs=[pl.BlockSpec((tm, ci), lambda i: (i, 0)),
                  pl.BlockSpec((1, ci), lambda i: (0, 0)),
                  pl.BlockSpec((1, ci), lambda i: (0, 0)),
                  pl.BlockSpec((ci, co), lambda i: (0, 0))],
        out_specs=(pl.BlockSpec((tm, co), lambda i: (i, 0)),
                   pl.BlockSpec((1, 2, co), lambda i: (i, 0, 0))),
        compiler_params=cparams,
    )(x, scale, bias, w)


# ---------------------------------------------------------------------------
# Kernel B: bn1(affine) + ReLU + 3x3 conv (pad 1, stride 1) per image,
# emitting per-image partial (sum, sum-of-squares) for bn2.
# ---------------------------------------------------------------------------
def _conv3x3_kernel(h_ref, scale_ref, bias_ref, w_ref, out_ref, stats_ref,
                    pad_ref, *, H, W):
    C = pad_ref.shape[1]
    ZW = W + 2
    LOUT = H * ZW
    PADROWS = pad_ref.shape[0]

    # BN1 (affine form) + ReLU on this image.
    h = jnp.maximum(h_ref[0] * scale_ref[...] + bias_ref[...], 0.0)  # (H*W, C)

    # Build the flattened zero-padded image in VMEM scratch.  Only the 1-pixel
    # halo strips are zeroed (top row + first left-pad, the contiguous 2-cell
    # right/left pad pair between consecutive rows, bottom tail); interior rows
    # are copied from `h` (contiguous per-row stores).
    pad_ref[0:ZW + 1, :] = jnp.zeros((ZW + 1, C), jnp.float32)
    zeros2 = jnp.zeros((2, C), jnp.float32)
    for r in range(1, H):
        pad_ref[r * ZW + W + 1:r * ZW + W + 3, :] = zeros2
    tail = H * ZW + W + 1
    pad_ref[tail:PADROWS, :] = jnp.zeros((PADROWS - tail, C), jnp.float32)
    for r in range(1, H + 1):
        pad_ref[r * ZW + 1:r * ZW + 1 + W, :] = h[(r - 1) * W:r * W, :]

    # 3x3 conv as 9 MXU matmuls over CONTIGUOUS slices of the flat padded
    # buffer.  The accumulator spans an oversized (H, W+2) output; the last two
    # columns of each row are garbage and dropped during compaction below.
    acc = None
    for dy in range(3):
        for dx in range(3):
            off = dy * ZW + dx
            tap = pad_ref[off:off + LOUT, :].astype(jnp.bfloat16)
            c = jnp.dot(tap, w_ref[dy * 3 + dx],
                        preferred_element_type=jnp.float32)
            acc = c if acc is None else acc + c

    # Compact the valid W columns of each row into the (H*W, C) output block.
    for r in range(H):
        out_ref[0, r * W:(r + 1) * W, :] = acc[r * ZW:r * ZW + W, :]

    # Partial BN2 stats over this image's valid pixels (re-read the compacted
    # output block from VMEM so no masking of the garbage columns is needed).
    y = out_ref[0]
    stats_ref[0, 0:1, :] = jnp.sum(y, axis=0, keepdims=True)
    stats_ref[0, 1:2, :] = jnp.sum(y * y, axis=0, keepdims=True)


def _conv3x3(h, scale, bias, w_flat, H, W, cparams):
    n, hw, c = h.shape
    padrows = _round_up((H + 2) * (W + 2) + 2, 8)
    return pl.pallas_call(
        functools.partial(_conv3x3_kernel, H=H, W=W),
        out_shape=(jax.ShapeDtypeStruct((n, hw, c), jnp.float32),
                   jax.ShapeDtypeStruct((n, 2, c), jnp.float32)),
        grid=(n,),
        in_specs=[pl.BlockSpec((1, hw, c), lambda i: (i, 0, 0)),
                  pl.BlockSpec((1, c), lambda i: (0, 0)),
                  pl.BlockSpec((1, c), lambda i: (0, 0)),
                  pl.BlockSpec((9, c, c), lambda i: (0, 0, 0))],
        out_specs=(pl.BlockSpec((1, hw, c), lambda i: (i, 0, 0)),
                   pl.BlockSpec((1, 2, c), lambda i: (i, 0, 0))),
        scratch_shapes=[pltpu.VMEM((padrows, c), jnp.float32)],
        compiler_params=cparams,
    )(h, scale, bias, w_flat)


# ---------------------------------------------------------------------------
# Kernel C: bn3 (affine) + residual add.  No final ReLU (see header note).
# ---------------------------------------------------------------------------
def _bn_residual_kernel(h_ref, scale_ref, bias_ref, id_ref, out_ref):
    out_ref[...] = h_ref[...] * scale_ref[...] + bias_ref[...] + id_ref[...]


def _bn_residual(h, scale, bias, identity, tm, cparams):
    m, c = h.shape
    return pl.pallas_call(
        _bn_residual_kernel,
        out_shape=jax.ShapeDtypeStruct((m, c), jnp.float32),
        grid=(m // tm,),
        in_specs=[pl.BlockSpec((tm, c), lambda i: (i, 0)),
                  pl.BlockSpec((1, c), lambda i: (0, 0)),
                  pl.BlockSpec((1, c), lambda i: (0, 0)),
                  pl.BlockSpec((tm, c), lambda i: (i, 0))],
        out_specs=pl.BlockSpec((tm, c), lambda i: (i, 0)),
        compiler_params=cparams,
    )(h, scale, bias, identity)


# ---------------------------------------------------------------------------
# Host-side glue: fold per-tile (sum, sumsq) partials into per-channel affine
# (scale, bias) implementing training-mode BatchNorm.
# ---------------------------------------------------------------------------
def _bn_affine(stats, count, gamma, beta):
    s = jnp.sum(stats[:, 0, :], axis=0)
    ss = jnp.sum(stats[:, 1, :], axis=0)
    mean = s / count
    var = jnp.maximum(ss / count - mean * mean, 0.0)
    scale = gamma.reshape(-1) * jax.lax.rsqrt(var + EPS)
    bias = beta.reshape(-1) - mean * scale
    return scale.reshape(1, -1), bias.reshape(1, -1)


def block_forward_nchw(x_nchw, params, *, stride=1):
    """Bottleneck Block forward.  x_nchw: (N, Cin, H, W) float32 (NCHW)."""
    w1, w2, w3, g1, b1, g2, b2, g3, b3 = params
    assert stride == 1, "identity_downsample is None => stride must be 1"

    x = jnp.transpose(x_nchw, (0, 2, 3, 1)).astype(jnp.float32)   # NHWC
    n, h, w, cin = x.shape
    cmid = w1.shape[1]
    cout = w3.shape[1]
    assert cout == cin, "residual add requires in_channels == inter*expansion"

    m = n * h * w
    tm = _pick_tile(m)
    x_flat = x.reshape(m, cin)
    cparams = pltpu.CompilerParams(
        dimension_semantics=("parallel",),
        vmem_limit_bytes=32 * 1024 * 1024,
    )

    one = jnp.ones((1, cin), jnp.float32)
    zero = jnp.zeros((1, cin), jnp.float32)

    # Pass 1: conv1 (1x1) + partial BN1 stats.
    h1_raw, st1 = _pw_conv(x_flat, one, zero, w1, tm,
                           prenorm_relu=False, cparams=cparams)
    scale1, bias1 = _bn_affine(st1, m, g1, b1)

    # Pass 2: bn1 + relu + conv2 (3x3, pad 1) + partial BN2 stats.
    h2_raw, st2 = _conv3x3(h1_raw.reshape(n, h * w, cmid), scale1, bias1,
                           w2.reshape(9, cmid, cmid), h, w, cparams)
    scale2, bias2 = _bn_affine(st2, m, g2, b2)

    # Pass 3: bn2 + relu + conv3 (1x1) + partial BN3 stats.
    h3_raw, st3 = _pw_conv(h2_raw.reshape(m, cmid), scale2, bias2, w3, tm,
                           prenorm_relu=True, cparams=cparams)
    scale3, bias3 = _bn_affine(st3, m, g3, b3)

    # Pass 4: bn3 + identity add (no final ReLU, matching the reference).
    y = _bn_residual(h3_raw, scale3, bias3, x_flat, tm, cparams)
    return jnp.transpose(y.reshape(n, h, w, cout), (0, 3, 1, 2))


# ----------------------- pure-JAX reference (verification) -----------------
def _ref_forward_nchw(x_nchw, params):
    """Reference with the same bf16-on-MXU / f32-accumulate policy."""
    w1, w2, w3, g1, b1, g2, b2, g3, b3 = params
    x = jnp.transpose(x_nchw, (0, 2, 3, 1)).astype(jnp.float32)

    def bn(t, g, b, relu):
        mean = t.mean(axis=(0, 1, 2), keepdims=True)
        var = jnp.square(t - mean).mean(axis=(0, 1, 2), keepdims=True)
        y = (t - mean) * jax.lax.rsqrt(var + EPS) * g.reshape(1, 1, 1, -1) \
            + b.reshape(1, 1, 1, -1)
        return jnp.maximum(y, 0.0) if relu else y

    t = jnp.einsum('nhwc,cd->nhwd', x.astype(jnp.bfloat16), w1,
                   preferred_element_type=jnp.float32)
    t = bn(t, g1, b1, True)
    t = jax.lax.conv_general_dilated(
        t.astype(jnp.bfloat16), w2, window_strides=(1, 1),
        padding=((1, 1), (1, 1)),
        dimension_numbers=('NHWC', 'HWIO', 'NHWC'),
        preferred_element_type=jnp.float32)
    t = bn(t, g2, b2, True)
    t = jnp.einsum('nhwc,cd->nhwd', t.astype(jnp.bfloat16), w3,
                   preferred_element_type=jnp.float32)
    t = bn(t, g3, b3, False)
    y = t + x                                                  # no final ReLU
    return jnp.transpose(y, (0, 3, 1, 2))


def make_params(key, in_channels, inter_channels, expansion=4):
    out_channels = inter_channels * expansion
    ks = jax.random.split(key, 9)
    # Weights stored in bf16 (MXU operands); BN affine params stay f32.
    w1 = (0.1 * jax.random.normal(ks[0], (in_channels, inter_channels))).astype(jnp.bfloat16)
    w2 = (0.1 * jax.random.normal(ks[1], (3, 3, inter_channels, inter_channels))).astype(jnp.bfloat16)
    w3 = (0.1 * jax.random.normal(ks[2], (inter_channels, out_channels))).astype(jnp.bfloat16)
    g1 = 1.0 + 0.1 * jax.random.normal(ks[3], (1, inter_channels))
    b1 = 0.1 * jax.random.normal(ks[4], (1, inter_channels))
    g2 = 1.0 + 0.1 * jax.random.normal(ks[5], (1, inter_channels))
    b2 = 0.1 * jax.random.normal(ks[6], (1, inter_channels))
    g3 = 1.0 + 0.1 * jax.random.normal(ks[7], (1, out_channels))
    b3 = 0.1 * jax.random.normal(ks[8], (1, out_channels))
    return (w1, w2, w3, g1, b1, g2, b2, g3, b3)


if __name__ == "__main__":
    key = jax.random.PRNGKey(0)
    k_x, k_p = jax.random.split(key)

    # Small but lane-friendly shapes; the identity add requires
    # in_channels == inter_channels * expansion (expansion = 4).
    N, H, W = 4, 16, 16
    inter = 64
    Cin = inter * 4                                # = 256 (== output channels)

    x = jax.random.normal(k_x, (N, Cin, H, W), jnp.float32)     # NCHW
    params = make_params(k_p, Cin, inter)

    fwd = jax.jit(block_forward_nchw)
    y = jax.block_until_ready(fwd(x, params))

    y_ref = _ref_forward_nchw(x, params)
    assert y.shape == (N, Cin, H, W)
    err = float(jnp.max(jnp.abs(y - y_ref)))
    assert jnp.allclose(y, y_ref, rtol=1e-2, atol=1e-2), f"max err {err}"

    print("KERNEL_OK")
</pallas_src>

<mosaic_0001>
module attributes {stable_mosaic.version = 11 : i64} {
  func.func @_pw_conv_kernel(%arg0: i32, %arg1: memref<512x256xf32, #tpu.memory_space<vmem>>, %arg2: memref<1x256xf32, #tpu.memory_space<vmem>>, %arg3: memref<1x256xf32, #tpu.memory_space<vmem>>, %arg4: memref<256x64xbf16, #tpu.memory_space<vmem>>, %arg5: memref<512x64xf32, #tpu.memory_space<vmem>>, %arg6: memref<1x2x64xf32, #tpu.memory_space<vmem>>) attributes {dimension_semantics = [#tpu.dimension_semantics<parallel>], iteration_bounds = array<i64: 2>, scalar_prefetch = 0 : i64, scratch_operands = 0 : i64, tpu.core_type = #tpu.core_type<tc>, window_params = [{transform_indices = @transform_0, window_bounds = array<i64: 512, 256>}, {pipeline_mode = #tpu.pipeline_mode<synchronous>, transform_indices = @transform_1, window_bounds = array<i64: 1, 256>}, {pipeline_mode = #tpu.pipeline_mode<synchronous>, transform_indices = @transform_2, window_bounds = array<i64: 1, 256>}, {pipeline_mode = #tpu.pipeline_mode<synchronous>, transform_indices = @transform_3, window_bounds = array<i64: 256, 64>}, {transform_indices = @transform_4, window_bounds = array<i64: 512, 64>}, {transform_indices = @transform_5, window_bounds = array<i64: 1, 2, 64>}]} {
    %c0 = arith.constant 0 : index
    %c0_0 = arith.constant 0 : index
    %0 = vector.load %arg1[%c0, %c0_0] : memref<512x256xf32, #tpu.memory_space<vmem>>, vector<512x256xf32>
    %1 = arith.truncf %0 : vector<512x256xf32> to vector<512x256xbf16>
    %c0_1 = arith.constant 0 : index
    %c0_2 = arith.constant 0 : index
    %2 = vector.load %arg4[%c0_1, %c0_2] : memref<256x64xbf16, #tpu.memory_space<vmem>>, vector<256x64xbf16>
    %cst = arith.constant dense<0.000000e+00> : vector<512x64xf32>
    %3 = tpu.matmul %1, %2, %cst {dimension_numbers = #tpu.dot_dimension_numbers<[1], [0], [0], [1], [0, 0, 1, 1], [], []>} : vector<512x256xbf16>, vector<256x64xbf16>, vector<512x64xf32> -> vector<512x64xf32>
    %c0_3 = arith.constant 0 : index
    %c0_4 = arith.constant 0 : index
    %4 = vector.load %arg5[%c0_3, %c0_4] : memref<512x64xf32, #tpu.memory_space<vmem>>, vector<512x64xf32>
    tpu.vector_store %arg5[%c0_3, %c0_4], %3 {strides = array<i32>} : memref<512x64xf32, #tpu.memory_space<vmem>>, vector<512x64xf32>,
    %cst_5 = arith.constant dense<0.000000e+00> : vector<64xf32>
    %5 = vector.multi_reduction <add>, %3, %cst_5 [0] : vector<512x64xf32> to vector<64xf32>
    %6 = vector.shape_cast %5 : vector<64xf32> to vector<1x64xf32>
    %c0_6 = arith.constant 0 : index
    %c0_7 = arith.constant 0 : index
    %c0_8 = arith.constant 0 : index
    %7 = vector.load %arg6[%c0_6, %c0_7, %c0_8] : memref<1x2x64xf32, #tpu.memory_space<vmem>>, vector<1x1x64xf32>
    %8 = vector.shape_cast %7 : vector<1x1x64xf32> to vector<1x64xf32>
    %9 = vector.shape_cast %6 : vector<1x64xf32> to vector<1x1x64xf32>
    tpu.vector_store %arg6[%c0_6, %c0_7, %c0_8], %9 {strides = array<i32>} : memref<1x2x64xf32, #tpu.memory_space<vmem>>, vector<1x1x64xf32>,
    %10 = arith.mulf %3, %3 : vector<512x64xf32>
    %cst_9 = arith.constant dense<0.000000e+00> : vector<64xf32>
    %11 = vector.multi_reduction <add>, %10, %cst_9 [0] : vector<512x64xf32> to vector<64xf32>
    %12 = vector.shape_cast %11 : vector<64xf32> to vector<1x64xf32>
    %c0_10 = arith.constant 0 : index
    %c1 = arith.constant 1 : index
    %c0_11 = arith.constant 0 : index
    %13 = vector.load %arg6[%c0_10, %c1, %c0_11] : memref<1x2x64xf32, #tpu.memory_space<vmem>>, vector<1x1x64xf32>
    %14 = vector.shape_cast %13 : vector<1x1x64xf32> to vector<1x64xf32>
    %15 = vector.shape_cast %12 : vector<1x64xf32> to vector<1x1x64xf32>
    tpu.vector_store %arg6[%c0_10, %c1, %c0_11], %15 {strides = array<i32>} : memref<1x2x64xf32, #tpu.memory_space<vmem>>, vector<1x1x64xf32>,
    return
  }
  func.func @transform_0(%arg0: i32) -> (i32, i32) {
    %c0_i32 = arith.constant 0 : i32
    %c0_i32_0 = arith.constant 0 : i32
    return %arg0, %c0_i32 : i32, i32
  }
  func.func @transform_1(%arg0: i32) -> (i32, i32) {
    %c0_i32 = arith.constant 0 : i32
    %c0_i32_0 = arith.constant 0 : i32
    %c0_i32_1 = arith.constant 0 : i32
    return %c0_i32, %c0_i32_0 : i32, i32
  }
  func.func @transform_2(%arg0: i32) -> (i32, i32) {
    %c0_i32 = arith.constant 0 : i32
    %c0_i32_0 = arith.constant 0 : i32
    %c0_i32_1 = arith.constant 0 : i32
    return %c0_i32, %c0_i32_0 : i32, i32
  }
  func.func @transform_3(%arg0: i32) -> (i32, i32) {
    %c0_i32 = arith.constant 0 : i32
    %c0_i32_0 = arith.constant 0 : i32
    %c0_i32_1 = arith.constant 0 : i32
    return %c0_i32, %c0_i32_0 : i32, i32
  }
  func.func @transform_4(%arg0: i32) -> (i32, i32) {
    %c0_i32 = arith.constant 0 : i32
    %c0_i32_0 = arith.constant 0 : i32
    return %arg0, %c0_i32 : i32, i32
  }
  func.func @transform_5(%arg0: i32) -> (i32, i32, i32) {
    %c0_i32 = arith.constant 0 : i32
    %c0_i32_0 = arith.constant 0 : i32
    %c0_i32_1 = arith.constant 0 : i32
    return %arg0, %c0_i32, %c0_i32_0 : i32, i32, i32
  }
}

module attributes {stable_mosaic.version = 11 : i64} {
  func.func @_pw_conv_kernel(%arg0: i32, %arg1: memref<512x64xf32, #tpu.memory_space<vmem>>, %arg2: memref<1x64xf32, #tpu.memory_space<vmem>>, %arg3: memref<1x64xf32, #tpu.memory_space<vmem>>, %arg4: memref<64x256xbf16, #tpu.memory_space<vmem>>, %arg5: memref<512x256xf32, #tpu.memory_space<vmem>>, %arg6: memref<1x2x256xf32, #tpu.memory_space<vmem>>) attributes {dimension_semantics = [#tpu.dimension_semantics<parallel>], iteration_bounds = array<i64: 2>, scalar_prefetch = 0 : i64, scratch_operands = 0 : i64, tpu.core_type = #tpu.core_type<tc>, window_params = [{transform_indices = @transform_0, window_bounds = array<i64: 512, 64>}, {pipeline_mode = #tpu.pipeline_mode<synchronous>, transform_indices = @transform_1, window_bounds = array<i64: 1, 64>}, {pipeline_mode = #tpu.pipeline_mode<synchronous>, transform_indices = @transform_2, window_bounds = array<i64: 1, 64>}, {pipeline_mode = #tpu.pipeline_mode<synchronous>, transform_indices = @transform_3, window_bounds = array<i64: 64, 256>}, {transform_indices = @transform_4, window_bounds = array<i64: 512, 256>}, {transform_indices = @transform_5, window_bounds = array<i64: 1, 2, 256>}]} {
    %c0 = arith.constant 0 : index
    %c0_0 = arith.constant 0 : index
    %0 = vector.load %arg1[%c0, %c0_0] : memref<512x64xf32, #tpu.memory_space<vmem>>, vector<512x64xf32>
    %c0_1 = arith.constant 0 : index
    %c0_2 = arith.constant 0 : index
    %1 = vector.load %arg2[%c0_1, %c0_2] : memref<1x64xf32, #tpu.memory_space<vmem>>, vector<1x64xf32>
    %2 = vector.broadcast %1 : vector<1x64xf32> to vector<512x64xf32>
    %3 = arith.mulf %0, %2 : vector<512x64xf32>
    %c0_3 = arith.constant 0 : index
    %c0_4 = arith.constant 0 : index
    %4 = vector.load %arg3[%c0_3, %c0_4] : memref<1x64xf32, #tpu.memory_space<vmem>>, vector<1x64xf32>
    %5 = vector.broadcast %4 : vector<1x64xf32> to vector<512x64xf32>
    %6 = arith.addf %3, %5 : vector<512x64xf32>
    %cst = arith.constant 0.000000e+00 : f32
    %7 = vector.broadcast %cst : f32 to vector<512x64xf32>
    %8 = arith.maximumf %6, %7 : vector<512x64xf32>
    %9 = arith.truncf %8 : vector<512x64xf32> to vector<512x64xbf16>
    %c0_5 = arith.constant 0 : index
    %c0_6 = arith.constant 0 : index
    %10 = vector.load %arg4[%c0_5, %c0_6] : memref<64x256xbf16, #tpu.memory_space<vmem>>, vector<64x256xbf16>
    %cst_7 = arith.constant dense<0.000000e+00> : vector<512x256xf32>
    %11 = tpu.matmul %9, %10, %cst_7 {dimension_numbers = #tpu.dot_dimension_numbers<[1], [0], [0], [1], [0, 0, 1, 1], [], []>} : vector<512x64xbf16>, vector<64x256xbf16>, vector<512x256xf32> -> vector<512x256xf32>
    %c0_8 = arith.constant 0 : index
    %c0_9 = arith.constant 0 : index
    %12 = vector.load %arg5[%c0_8, %c0_9] : memref<512x256xf32, #tpu.memory_space<vmem>>, vector<512x256xf32>
    tpu.vector_store %arg5[%c0_8, %c0_9], %11 {strides = array<i32>} : memref<512x256xf32, #tpu.memory_space<vmem>>, vector<512x256xf32>,
    %cst_10 = arith.constant dense<0.000000e+00> : vector<256xf32>
    %13 = vector.multi_reduction <add>, %11, %cst_10 [0] : vector<512x256xf32> to vector<256xf32>
    %14 = vector.shape_cast %13 : vector<256xf32> to vector<1x256xf32>
    %c0_11 = arith.constant 0 : index
    %c0_12 = arith.constant 0 : index
    %c0_13 = arith.constant 0 : index
    %15 = vector.load %arg6[%c0_11, %c0_12, %c0_13] : memref<1x2x256xf32, #tpu.memory_space<vmem>>, vector<1x1x256xf32>
    %16 = vector.shape_cast %15 : vector<1x1x256xf32> to vector<1x256xf32>
    %17 = vector.shape_cast %14 : vector<1x256xf32> to vector<1x1x256xf32>
    tpu.vector_store %arg6[%c0_11, %c0_12, %c0_13], %17 {strides = array<i32>} : memref<1x2x256xf32, #tpu.memory_space<vmem>>, vector<1x1x256xf32>,
    %18 = arith.mulf %11, %11 : vector<512x256xf32>
    %cst_14 = arith.constant dense<0.000000e+00> : vector<256xf32>
    %19 = vector.multi_reduction <add>, %18, %cst_14 [0] : vector<512x256xf32> to vector<256xf32>
    %20 = vector.shape_cast %19 : vector<256xf32> to vector<1x256xf32>
    %c0_15 = arith.constant 0 : index
    %c1 = arith.constant 1 : index
    %c0_16 = arith.constant 0 : index
    %21 = vector.load %arg6[%c0_15, %c1, %c0_16] : memref<1x2x256xf32, #tpu.memory_space<vmem>>, vector<1x1x256xf32>
    %22 = vector.shape_cast %21 : vector<1x1x256xf32> to vector<1x256xf32>
    %23 = vector.shape_cast %20 : vector<1x256xf32> to vector<1x1x256xf32>
    tpu.vector_store %arg6[%c0_15, %c1, %c0_16], %23 {strides = array<i32>} : memref<1x2x256xf32, #tpu.memory_space<vmem>>, vector<1x1x256xf32>,
    return
  }
  func.func @transform_0(%arg0: i32) -> (i32, i32) {
    %c0_i32 = arith.constant 0 : i32
    %c0_i32_0 = arith.constant 0 : i32
    return %arg0, %c0_i32 : i32, i32
  }
  func.func @transform_1(%arg0: i32) -> (i32, i32) {
    %c0_i32 = arith.constant 0 : i32
    %c0_i32_0 = arith.constant 0 : i32
    %c0_i32_1 = arith.constant 0 : i32
    return %c0_i32, %c0_i32_0 : i32, i32
  }
  func.func @transform_2(%arg0: i32) -> (i32, i32) {
    %c0_i32 = arith.constant 0 : i32
    %c0_i32_0 = arith.constant 0 : i32
    %c0_i32_1 = arith.constant 0 : i32
    return %c0_i32, %c0_i32_0 : i32, i32
  }
  func.func @transform_3(%arg0: i32) -> (i32, i32) {
    %c0_i32 = arith.constant 0 : i32
    %c0_i32_0 = arith.constant 0 : i32
    %c0_i32_1 = arith.constant 0 : i32
    return %c0_i32, %c0_i32_0 : i32, i32
  }
  func.func @transform_4(%arg0: i32) -> (i32, i32) {
    %c0_i32 = arith.constant 0 : i32
    %c0_i32_0 = arith.constant 0 : i32
    return %arg0, %c0_i32 : i32, i32
  }
  func.func @transform_5(%arg0: i32) -> (i32, i32, i32) {
    %c0_i32 = arith.constant 0 : i32
    %c0_i32_0 = arith.constant 0 : i32
    %c0_i32_1 = arith.constant 0 : i32
    return %arg0, %c0_i32, %c0_i32_0 : i32, i32, i32
  }
}

module attributes {stable_mosaic.version = 11 : i64} {
  func.func @_conv3x3_kernel(%arg0: i32, %arg1: memref<1x256x64xf32, #tpu.memory_space<vmem>>, %arg2: memref<1x64xf32, #tpu.memory_space<vmem>>, %arg3: memref<1x64xf32, #tpu.memory_space<vmem>>, %arg4: memref<9x64x64xbf16, #tpu.memory_space<vmem>>, %arg5: memref<1x256x64xf32, #tpu.memory_space<vmem>>, %arg6: memref<1x2x64xf32, #tpu.memory_space<vmem>>, %arg7: memref<328x64xf32, #tpu.memory_space<vmem>>) attributes {dimension_semantics = [#tpu.dimension_semantics<parallel>], iteration_bounds = array<i64: 4>, scalar_prefetch = 0 : i64, scratch_operands = 1 : i64, tpu.core_type = #tpu.core_type<tc>, window_params = [{transform_indices = @transform_0, window_bounds = array<i64: 1, 256, 64>}, {pipeline_mode = #tpu.pipeline_mode<synchronous>, transform_indices = @transform_1, window_bounds = array<i64: 1, 64>}, {pipeline_mode = #tpu.pipeline_mode<synchronous>, transform_indices = @transform_2, window_bounds = array<i64: 1, 64>}, {pipeline_mode = #tpu.pipeline_mode<synchronous>, transform_indices = @transform_3, window_bounds = array<i64: 9, 64, 64>}, {transform_indices = @transform_4, window_bounds = array<i64: 1, 256, 64>}, {transform_indices = @transform_5, window_bounds = array<i64: 1, 2, 64>}]} {
    %c0 = arith.constant 0 : index
    %c0_0 = arith.constant 0 : index
    %c0_1 = arith.constant 0 : index
    %0 = vector.load %arg1[%c0, %c0_0, %c0_1] : memref<1x256x64xf32, #tpu.memory_space<vmem>>, vector<1x256x64xf32>
    %1 = vector.shape_cast %0 : vector<1x256x64xf32> to vector<256x64xf32>
    %c0_2 = arith.constant 0 : index
    %c0_3 = arith.constant 0 : index
    %2 = vector.load %arg2[%c0_2, %c0_3] : memref<1x64xf32, #tpu.memory_space<vmem>>, vector<1x64xf32>
    %3 = vector.broadcast %2 : vector<1x64xf32> to vector<256x64xf32>
    %4 = arith.mulf %1, %3 : vector<256x64xf32>
    %c0_4 = arith.constant 0 : index
    %c0_5 = arith.constant 0 : index
    %5 = vector.load %arg3[%c0_4, %c0_5] : memref<1x64xf32, #tpu.memory_space<vmem>>, vector<1x64xf32>
    %6 = vector.broadcast %5 : vector<1x64xf32> to vector<256x64xf32>
    %7 = arith.addf %4, %6 : vector<256x64xf32>
    %cst = arith.constant 0.000000e+00 : f32
    %8 = vector.broadcast %cst : f32 to vector<256x64xf32>
    %9 = arith.maximumf %7, %8 : vector<256x64xf32>
    %cst_6 = arith.constant 0.000000e+00 : f32
    %10 = vector.broadcast %cst_6 : f32 to vector<19x64xf32>
    %c0_7 = arith.constant 0 : index
    %c0_8 = arith.constant 0 : index
    %11 = vector.load %arg7[%c0_7, %c0_8] : memref<328x64xf32, #tpu.memory_space<vmem>>, vector<19x64xf32>
    tpu.vector_store %arg7[%c0_7, %c0_8], %10 {strides = array<i32>} : memref<328x64xf32, #tpu.memory_space<vmem>>, vector<19x64xf32>,
    %cst_9 = arith.constant 0.000000e+00 : f32
    %12 = vector.broadcast %cst_9 : f32 to vector<2x64xf32>
    %c35 = arith.constant 35 : index
    %c0_10 = arith.constant 0 : index
    %13 = vector.load %arg7[%c35, %c0_10] : memref<328x64xf32, #tpu.memory_space<vmem>>, vector<2x64xf32>
    tpu.vector_store %arg7[%c35, %c0_10], %12 {strides = array<i32>} : memref<328x64xf32, #tpu.memory_space<vmem>>, vector<2x64xf32>,
    %c53 = arith.constant 53 : index
    %c0_11 = arith.constant 0 : index
    %14 = vector.load %arg7[%c53, %c0_11] : memref<328x64xf32, #tpu.memory_space<vmem>>, vector<2x64xf32>
    tpu.vector_store %arg7[%c53, %c0_11], %12 {strides = array<i32>} : memref<328x64xf32, #tpu.memory_space<vmem>>, vector<2x64xf32>,
    %c71 = arith.constant 71 : index
    %c0_12 = arith.constant 0 : index
    %15 = vector.load %arg7[%c71, %c0_12] : memref<328x64xf32, #tpu.memory_space<vmem>>, vector<2x64xf32>
    tpu.vector_store %arg7[%c71, %c0_12], %12 {strides = array<i32>} : memref<328x64xf32, #tpu.memory_space<vmem>>, vector<2x64xf32>,
    %c89 = arith.constant 89 : index
    %c0_13 = arith.constant 0 : index
    %16 = vector.load %arg7[%c89, %c0_13] : memref<328x64xf32, #tpu.memory_space<vmem>>, vector<2x64xf32>
    tpu.vector_store %arg7[%c89, %c0_13], %12 {strides = array<i32>} : memref<328x64xf32, #tpu.memory_space<vmem>>, vector<2x64xf32>,
    %c107 = arith.constant 107 : index
    %c0_14 = arith.constant 0 : index
    %17 = vector.load %arg7[%c107, %c0_14] : memref<328x64xf32, #tpu.memory_space<vmem>>, vector<2x64xf32>
    tpu.vector_store %arg7[%c107, %c0_14], %12 {strides = array<i32>} : memref<328x64xf32, #tpu.memory_space<vmem>>, vector<2x64xf32>,
    %c125 = arith.constant 125 : index
    %c0_15 = arith.constant 0 : index
    %18 = vector.load %arg7[%c125, %c0_15] : memref<328x64xf32, #tpu.memory_space<vmem>>, vector<2x64xf32>
    tpu.vector_store %arg7[%c125, %c0_15], %12 {strides = array<i32>} : memref<328x64xf32, #tpu.memory_space<vmem>>, vector<2x64xf32>,
    %c143 = arith.constant 143 : index
    %c0_16 = arith.constant 0 : index
    %19 = vector.load %arg7[%c143, %c0_16] : memref<328x64xf32, #tpu.memory_space<vmem>>, vector<2x64xf32>
    tpu.vector_store %arg7[%c143, %c0_16], %12 {strides = array<i32>} : memref<328x64xf32, #tpu.memory_space<vmem>>, vector<2x64xf32>,
    %c161 = arith.constant 161 : index
    %c0_17 = arith.constant 0 : index
    %20 = vector.load %arg7[%c161, %c0_17] : memref<328x64xf32, #tpu.memory_space<vmem>>, vector<2x64xf32>
    tpu.vector_store %arg7[%c161, %c0_17], %12 {strides = array<i32>} : memref<328x64xf32, #tpu.memory_space<vmem>>, vector<2x64xf32>,
    %c179 = arith.constant 179 : index
    %c0_18 = arith.constant 0 : index
    %21 = vector.load %arg7[%c179, %c0_18] : memref<328x64xf32, #tpu.memory_space<vmem>>, vector<2x64xf32>
    tpu.vector_store %arg7[%c179, %c0_18], %12 {strides = array<i32>} : memref<328x64xf32, #tpu.memory_space<vmem>>, vector<2x64xf32>,
    %c197 = arith.constant 197 : index
    %c0_19 = arith.constant 0 : index
    %22 = vector.load %arg7[%c197, %c0_19] : memref<328x64xf32, #tpu.memory_space<vmem>>, vector<2x64xf32>
    tpu.vector_store %arg7[%c197, %c0_19], %12 {strides = array<i32>} : memref<328x64xf32, #tpu.memory_space<vmem>>, vector<2x64xf32>,
    %c215 = arith.constant 215 : index
    %c0_20 = arith.constant 0 : index
    %23 = vector.load %arg7[%c215, %c0_20] : memref<328x64xf32, #tpu.memory_space<vmem>>, vector<2x64xf32>
    tpu.vector_store %arg7[%c215, %c0_20], %12 {strides = array<i32>} : memref<328x64xf32, #tpu.memory_space<vmem>>, vector<2x64xf32>,
    %c233 = arith.constant 233 : index
    %c0_21 = arith.constant 0 : index
    %24 = vector.load %arg7[%c233, %c0_21] : memref<328x64xf32, #tpu.memory_space<vmem>>, vector<2x64xf32>
    tpu.vector_store %arg7[%c233, %c0_21], %12 {strides = array<i32>} : memref<328x64xf32, #tpu.memory_space<vmem>>, vector<2x64xf32>,
    %c251 = arith.constant 251 : index
    %c0_22 = arith.constant 0 : index
    %25 = vector.load %arg7[%c251, %c0_22] : memref<328x64xf32, #tpu.memory_space<vmem>>, vector<2x64xf32>
    tpu.vector_store %arg7[%c251, %c0_22], %12 {strides = array<i32>} : memref<328x64xf32, #tpu.memory_space<vmem>>, vector<2x64xf32>,
    %c269 = arith.constant 269 : index
    %c0_23 = arith.constant 0 : index
    %26 = vector.load %arg7[%c269, %c0_23] : memref<328x64xf32, #tpu.memory_space<vmem>>, vector<2x64xf32>
    tpu.vector_store %arg7[%c269, %c0_23], %12 {strides = array<i32>} : memref<328x64xf32, #tpu.memory_space<vmem>>, vector<2x64xf32>,
    %c287 = arith.constant 287 : index
    %c0_24 = arith.constant 0 : index
    %27 = vector.load %arg7[%c287, %c0_24] : memref<328x64xf32, #tpu.memory_space<vmem>>, vector<2x64xf32>
    tpu.vector_store %arg7[%c287, %c0_24], %12 {strides = array<i32>} : memref<328x64xf32, #tpu.memory_space<vmem>>, vector<2x64xf32>,
    %cst_25 = arith.constant 0.000000e+00 : f32
    %28 = vector.broadcast %cst_25 : f32 to vector<23x64xf32>
    %c305 = arith.constant 305 : index
    %c0_26 = arith.constant 0 : index
    %29 = vector.load %arg7[%c305, %c0_26] : memref<328x64xf32, #tpu.memory_space<vmem>>, vector<23x64xf32>
    tpu.vector_store %arg7[%c305, %c0_26], %28 {strides = array<i32>} : memref<328x64xf32, #tpu.memory_space<vmem>>, vector<23x64xf32>,
    %30 = vector.extract_strided_slice %9 {offsets = [0, 0], sizes = [16, 64], strides = [1, 1]} : vector<256x64xf32> to vector<16x64xf32>
    %c19 = arith.constant 19 : index
    %c0_27 = arith.constant 0 : index
    %31 = vector.load %arg7[%c19, %c0_27] : memref<328x64xf32, #tpu.memory_space<vmem>>, vector<16x64xf32>
    tpu.vector_store %arg7[%c19, %c0_27], %30 {strides = array<i32>} : memref<328x64xf32, #tpu.memory_space<vmem>>, vector<16x64xf32>,
    %32 = vector.extract_strided_slice %9 {offsets = [16, 0], sizes = [16, 64], strides = [1, 1]} : vector<256x64xf32> to vector<16x64xf32>
    %c37 = arith.constant 37 : index
    %c0_28 = arith.constant 0 : index
    %33 = vector.load %arg7[%c37, %c0_28] : memref<328x64xf32, #tpu.memory_space<vmem>>, vector<16x64xf32>
    tpu.vector_store %arg7[%c37, %c0_28], %32 {strides = array<i32>} : memref<328x64xf32, #tpu.memory_space<vmem>>, vector<16x64xf32>,
    %34 = vector.extract_strided_slice %9 {offsets = [32, 0], sizes = [16, 64], strides = [1, 1]} : vector<256x64xf32> to vector<16x64xf32>
    %c55 = arith.constant 55 : index
    %c0_29 = arith.constant 0 : index
    %35 = vector.load %arg7[%c55, %c0_29] : memref<328x64xf32, #tpu.memory_space<vmem>>, vector<16x64xf32>
    tpu.vector_store %arg7[%c55, %c0_29], %34 {strides = array<i32>} : memref<328x64xf32, #tpu.memory_space<vmem>>, vector<16x64xf32>,
    %36 = vector.extract_strided_slice %9 {offsets = [48, 0], sizes = [16, 64], strides = [1, 1]} : vector<256x64xf32> to vector<16x64xf32>
    %c73 = arith.constant 73 : index
    %c0_30 = arith.constant 0 : index
    %37 = vector.load %arg7[%c73, %c0_30] : memref<328x64xf32, #tpu.memory_space<vmem>>, vector<16x64xf32>
    tpu.vector_store %arg7[%c73, %c0_30], %36 {strides = array<i32>} : memref<328x64xf32, #tpu.memory_space<vmem>>, vector<16x64xf32>,
    %38 = vector.extract_strided_slice %9 {offsets = [64, 0], sizes = [16, 64], strides = [1, 1]} : vector<256x64xf32> to vector<16x64xf32>
    %c91 = arith.constant 91 : index
    %c0_31 = arith.constant 0 : index
    %39 = vector.load %arg7[%c91, %c0_31] : memref<328x64xf32, #tpu.memory_space<vmem>>, vector<16x64xf32>
    tpu.vector_store %arg7[%c91, %c0_31], %38 {strides = array<i32>} : memref<328x64xf32, #tpu.memory_space<vmem>>, vector<16x64xf32>,
    %40 = vector.extract_strided_slice %9 {offsets = [80, 0], sizes = [16, 64], strides = [1, 1]} : vector<256x64xf32> to vector<16x64xf32>
    %c109 = arith.constant 109 : index
    %c0_32 = arith.constant 0 : index
    %41 = vector.load %arg7[%c109, %c0_32] : memref<328x64xf32, #tpu.memory_space<vmem>>, vector<16x64xf32>
    tpu.vector_store %arg7[%c109, %c0_32], %40 {strides = array<i32>} : memref<328x64xf32, #tpu.memory_space<vmem>>, vector<16x64xf32>,
    %42 = vector.extract_strided_slice %9 {offsets = [96, 0], sizes = [16, 64], strides = [1, 1]} : vector<256x64xf32> to vector<16x64xf32>
    %c127 = arith.constant 127 : index
    %c0_33 = arith.constant 0 : index
    %43 = vector.load %arg7[%c127, %c0_33] : memref<328x64xf32, #tpu.memory_space<vmem>>, vector<16x64xf32>
    tpu.vector_store %arg7[%c127, %c0_33], %42 {strides = array<i32>} : memref<328x64xf32, #tpu.memory_space<vmem>>, vector<16x64xf32>,
    %44 = vector.extract_strided_slice %9 {offsets = [112, 0], sizes = [16, 64], strides = [1, 1]} : vector<256x64xf32> to vector<16x64xf32>
    %c145 = arith.constant 145 : index
    %c0_34 = arith.constant 0 : index
    %45 = vector.load %arg7[%c145, %c0_34] : memref<328x64xf32, #tpu.memory_space<vmem>>, vector<16x64xf32>
    tpu.vector_store %arg7[%c145, %c0_34], %44 {strides = array<i32>} : memref<328x64xf32, #tpu.memory_space<vmem>>, vector<16x64xf32>,
    %46 = vector.extract_strided_slice %9 {offsets = [128, 0], sizes = [16, 64], strides = [1, 1]} : vector<256x64xf32> to vector<16x64xf32>
    %c163 = arith.constant 163 : index
    %c0_35 = arith.constant 0 : index
    %47 = vector.load %arg7[%c163, %c0_35] : memref<328x64xf32, #tpu.memory_space<vmem>>, vector<16x64xf32>
    tpu.vector_store %arg7[%c163, %c0_35], %46 {strides = array<i32>} : memref<328x64xf32, #tpu.memory_space<vmem>>, vector<16x64xf32>,
    %48 = vector.extract_strided_slice %9 {offsets = [144, 0], sizes = [16, 64], strides = [1, 1]} : vector<256x64xf32> to vector<16x64xf32>
    %c181 = arith.constant 181 : index
    %c0_36 = arith.constant 0 : index
    %49 = vector.load %arg7[%c181, %c0_36] : memref<328x64xf32, #tpu.memory_space<vmem>>, vector<16x64xf32>
    tpu.vector_store %arg7[%c181, %c0_36], %48 {strides = array<i32>} : memref<328x64xf32, #tpu.memory_space<vmem>>, vector<16x64xf32>,
    %50 = vector.extract_strided_slice %9 {offsets = [160, 0], sizes = [16, 64], strides = [1, 1]} : vector<256x64xf32> to vector<16x64xf32>
    %c199 = arith.constant 199 : index
    %c0_37 = arith.constant 0 : index
    %51 = vector.load %arg7[%c199, %c0_37] : memref<328x64xf32, #tpu.memory_space<vmem>>, vector<16x64xf32>
    tpu.vector_store %arg7[%c199, %c0_37], %50 {strides = array<i32>} : memref<328x64xf32, #tpu.memory_space<vmem>>, vector<16x64xf32>,
    %52 = vector.extract_strided_slice %9 {offsets = [176, 0], sizes = [16, 64], strides = [1, 1]} : vector<256x64xf32> to vector<16x64xf32>
    %c217 = arith.constant 217 : index
    %c0_38 = arith.constant 0 : index
    %53 = vector.load %arg7[%c217, %c0_38] : memref<328x64xf32, #tpu.memory_space<vmem>>, vector<16x64xf32>
    tpu.vector_store %arg7[%c217, %c0_38], %52 {strides = array<i32>} : memref<328x64xf32, #tpu.memory_space<vmem>>, vector<16x64xf32>,
    %54 = vector.extract_strided_slice %9 {offsets = [192, 0], sizes = [16, 64], strides = [1, 1]} : vector<256x64xf32> to vector<16x64xf32>
    %c235 = arith.constant 235 : index
    %c0_39 = arith.constant 0 : index
    %55 = vector.load %arg7[%c235, %c0_39] : memref<328x64xf32, #tpu.memory_space<vmem>>, vector<16x64xf32>
    tpu.vector_store %arg7[%c235, %c0_39], %54 {strides = array<i32>} : memref<328x64xf32, #tpu.memory_space<vmem>>, vector<16x64xf32>,
    %56 = vector.extract_strided_slice %9 {offsets = [208, 0], sizes = [16, 64], strides = [1, 1]} : vector<256x64xf32> to vector<16x64xf32>
    %c253 = arith.constant 253 : index
    %c0_40 = arith.constant 0 : index
    %57 = vector.load %arg7[%c253, %c0_40] : memref<328x64xf32, #tpu.memory_space<vmem>>, vector<16x64xf32>
    tpu.vector_store %arg7[%c253, %c0_40], %56 {strides = array<i32>} : memref<328x64xf32, #tpu.memory_space<vmem>>, vector<16x64xf32>,
    %58 = vector.extract_strided_slice %9 {offsets = [224, 0], sizes = [16, 64], strides = [1, 1]} : vector<256x64xf32> to vector<16x64xf32>
    %c271 = arith.constant 271 : index
    %c0_41 = arith.constant 0 : index
    %59 = vector.load %arg7[%c271, %c0_41] : memref<328x64xf32, #tpu.memory_space<vmem>>, vector<16x64xf32>
    tpu.vector_store %arg7[%c271, %c0_41], %58 {strides = array<i32>} : memref<328x64xf32, #tpu.memory_space<vmem>>, vector<16x64xf32>,
    %60 = vector.extract_strided_slice %9 {offsets = [240, 0], sizes = [16, 64], strides = [1, 1]} : vector<256x64xf32> to vector<16x64xf32>
    %c289 = arith.constant 289 : index
    %c0_42 = arith.constant 0 : index
    %61 = vector.load %arg7[%c289, %c0_42] : memref<328x64xf32, #tpu.memory_space<vmem>>, vector<16x64xf32>
    tpu.vector_store %arg7[%c289, %c0_42], %60 {strides = array<i32>} : memref<328x64xf32, #tpu.memory_space<vmem>>, vector<16x64xf32>,
    %c0_43 = arith.constant 0 : index
    %c0_44 = arith.constant 0 : index
    %62 = vector.load %arg7[%c0_43, %c0_44] : memref<328x64xf32, #tpu.memory_space<vmem>>, vector<288x64xf32>
    %63 = arith.truncf %62 : vector<288x64xf32> to vector<288x64xbf16>
    %c0_45 = arith.constant 0 : index
    %c0_46 = arith.constant 0 : index
    %c0_47 = arith.constant 0 : index
    %64 = vector.load %arg4[%c0_45, %c0_46, %c0_47] : memref<9x64x64xbf16, #tpu.memory_space<vmem>>, vector<1x64x64xbf16>
    %65 = vector.shape_cast %64 : vector<1x64x64xbf16> to vector<64x64xbf16>
    %cst_48 = arith.constant dense<0.000000e+00> : vector<288x64xf32>
    %66 = tpu.matmul %63, %65, %cst_48 {dimension_numbers = #tpu.dot_dimension_numbers<[1], [0], [0], [1], [0, 0, 1, 1], [], []>} : vector<288x64xbf16>, vector<64x64xbf16>, vector<288x64xf32> -> vector<288x64xf32>
    %c1 = arith.constant 1 : index
    %c0_49 = arith.constant 0 : index
    %67 = vector.load %arg7[%c1, %c0_49] : memref<328x64xf32, #tpu.memory_space<vmem>>, vector<288x64xf32>
    %68 = arith.truncf %67 : vector<288x64xf32> to vector<288x64xbf16>
    %c1_50 = arith.constant 1 : index
    %c0_51 = arith.constant 0 : index
    %c0_52 = arith.constant 0 : index
    %69 = vector.load %arg4[%c1_50, %c0_51, %c0_52] : memref<9x64x64xbf16, #tpu.memory_space<vmem>>, vector<1x64x64xbf16>
    %70 = vector.shape_cast %69 : vector<1x64x64xbf16> to vector<64x64xbf16>
    %cst_53 = arith.constant dense<0.000000e+00> : vector<288x64xf32>
    %71 = tpu.matmul %68, %70, %cst_53 {dimension_numbers = #tpu.dot_dimension_numbers<[1], [0], [0], [1], [0, 0, 1, 1], [], []>} : vector<288x64xbf16>, vector<64x64xbf16>, vector<288x64xf32> -> vector<288x64xf32>
    %72 = arith.addf %66, %71 : vector<288x64xf32>
    %c2 = arith.constant 2 : index
    %c0_54 = arith.constant 0 : index
    %73 = vector.load %arg7[%c2, %c0_54] : memref<328x64xf32, #tpu.memory_space<vmem>>, vector<288x64xf32>
    %74 = arith.truncf %73 : vector<288x64xf32> to vector<288x64xbf16>
    %c2_55 = arith.constant 2 : index
    %c0_56 = arith.constant 0 : index
    %c0_57 = arith.constant 0 : index
    %75 = vector.load %arg4[%c2_55, %c0_56, %c0_57] : memref<9x64x64xbf16, #tpu.memory_space<vmem>>, vector<1x64x64xbf16>
    %76 = vector.shape_cast %75 : vector<1x64x64xbf16> to vector<64x64xbf16>
    %cst_58 = arith.constant dense<0.000000e+00> : vector<288x64xf32>
    %77 = tpu.matmul %74, %76, %cst_58 {dimension_numbers = #tpu.dot_dimension_numbers<[1], [0], [0], [1], [0, 0, 1, 1], [], []>} : vector<288x64xbf16>, vector<64x64xbf16>, vector<288x64xf32> -> vector<288x64xf32>
    %78 = arith.addf %72, %77 : vector<288x64xf32>
    %c18 = arith.constant 18 : index
    %c0_59 = arith.constant 0 : index
    %79 = vector.load %arg7[%c18, %c0_59] : memref<328x64xf32, #tpu.memory_space<vmem>>, vector<288x64xf32>
    %80 = arith.truncf %79 : vector<288x64xf32> to vector<288x64xbf16>
    %c3 = arith.constant 3 : index
    %c0_60 = arith.constant 0 : index
    %c0_61 = arith.constant 0 : index
    %81 = vector.load %arg4[%c3, %c0_60, %c0_61] : memref<9x64x64xbf16, #tpu.memory_space<vmem>>, vector<1x64x64xbf16>
    %82 = vector.shape_cast %81 : vector<1x64x64xbf16> to vector<64x64xbf16>
    %cst_62 = arith.constant dense<0.000000e+00> : vector<288x64xf32>
    %83 = tpu.matmul %80, %82, %cst_62 {dimension_numbers = #tpu.dot_dimension_numbers<[1], [0], [0], [1], [0, 0, 1, 1], [], []>} : vector<288x64xbf16>, vector<64x64xbf16>, vector<288x64xf32> -> vector<288x64xf32>
    %84 = arith.addf %78, %83 : vector<288x64xf32>
    %c19_63 = arith.constant 19 : index
    %c0_64 = arith.constant 0 : index
    %85 = vector.load %arg7[%c19_63, %c0_64] : memref<328x64xf32, #tpu.memory_space<vmem>>, vector<288x64xf32>
    %86 = arith.truncf %85 : vector<288x64xf32> to vector<288x64xbf16>
    %c4 = arith.constant 4 : index
    %c0_65 = arith.constant 0 : index
    %c0_66 = arith.constant 0 : index
    %87 = vector.load %arg4[%c4, %c0_65, %c0_66] : memref<9x64x64xbf16, #tpu.memory_space<vmem>>, vector<1x64x64xbf16>
    %88 = vector.shape_cast %87 : vector<1x64x64xbf16> to vector<64x64xbf16>
    %cst_67 = arith.constant dense<0.000000e+00> : vector<288x64xf32>
    %89 = tpu.matmul %86, %88, %cst_67 {dimension_numbers = #tpu.dot_dimension_numbers<[1], [0], [0], [1], [0, 0, 1, 1], [], []>} : vector<288x64xbf16>, vector<64x64xbf16>, vector<288x64xf32> -> vector<288x64xf32>
    %90 = arith.addf %84, %89 : vector<288x64xf32>
    %c20 = arith.constant 20 : index
    %c0_68 = arith.constant 0 : index
    %91 = vector.load %arg7[%c20, %c0_68] : memref<328x64xf32, #tpu.memory_space<vmem>>, vector<288x64xf32>
    %92 = arith.truncf %91 : vector<288x64xf32> to vector<288x64xbf16>
    %c5 = arith.constant 5 : index
    %c0_69 = arith.constant 0 : index
    %c0_70 = arith.constant 0 : index
    %93 = vector.load %arg4[%c5, %c0_69, %c0_70] : memref<9x64x64xbf16, #tpu.memory_space<vmem>>, vector<1x64x64xbf16>
    %94 = vector.shape_cast %93 : vector<1x64x64xbf16> to vector<64x64xbf16>
    %cst_71 = arith.constant dense<0.000000e+00> : vector<288x64xf32>
    %95 = tpu.matmul %92, %94, %cst_71 {dimension_numbers = #tpu.dot_dimension_numbers<[1], [0], [0], [1], [0, 0, 1, 1], [], []>} : vector<288x64xbf16>, vector<64x64xbf16>, vector<288x64xf32> -> vector<288x64xf32>
    %96 = arith.addf %90, %95 : vector<288x64xf32>
    %c36 = arith.constant 36 : index
    %c0_72 = arith.constant 0 : index
    %97 = vector.load %arg7[%c36, %c0_72] : memref<328x64xf32, #tpu.memory_space<vmem>>, vector<288x64xf32>
    %98 = arith.truncf %97 : vector<288x64xf32> to vector<288x64xbf16>
    %c6 = arith.constant 6 : index
    %c0_73 = arith.constant 0 : index
    %c0_74 = arith.constant 0 : index
    %99 = vector.load %arg4[%c6, %c0_73, %c0_74] : memref<9x64x64xbf16, #tpu.memory_space<vmem>>, vector<1x64x64xbf16>
    %100 = vector.shape_cast %99 : vector<1x64x64xbf16> to vector<64x64xbf16>
    %cst_75 = arith.constant dense<0.000000e+00> : vector<288x64xf32>
    %101 = tpu.matmul %98, %100, %cst_75 {dimension_numbers = #tpu.dot_dimension_numbers<[1], [0], [0], [1], [0, 0, 1, 1], [], []>} : vector<288x64xbf16>, vector<64x64xbf16>, vector<288x64xf32> -> vector<288x64xf32>
    %102 = arith.addf %96, %101 : vector<288x64xf32>
    %c37_76 = arith.constant 37 : index
    %c0_77 = arith.constant 0 : index
    %103 = vector.load %arg7[%c37_76, %c0_77] : memref<328x64xf32, #tpu.memory_space<vmem>>, vector<288x64xf32>
    %104 = arith.truncf %103 : vector<288x64xf32> to vector<288x64xbf16>
    %c7 = arith.constant 7 : index
    %c0_78 = arith.constant 0 : index
    %c0_79 = arith.constant 0 : index
    %105 = vector.load %arg4[%c7, %c0_78, %c0_79] : memref<9x64x64xbf16, #tpu.memory_space<vmem>>, vector<1x64x64xbf16>
    %106 = vector.shape_cast %105 : vector<1x64x64xbf16> to vector<64x64xbf16>
    %cst_80 = arith.constant dense<0.000000e+00> : vector<288x64xf32>
    %107 = tpu.matmul %104, %106, %cst_80 {dimension_numbers = #tpu.dot_dimension_numbers<[1], [0], [0], [1], [0, 0, 1, 1], [], []>} : vector<288x64xbf16>, vector<64x64xbf16>, vector<288x64xf32> -> vector<288x64xf32>
    %108 = arith.addf %102, %107 : vector<288x64xf32>
    %c38 = arith.constant 38 : index
    %c0_81 = arith.constant 0 : index
    %109 = vector.load %arg7[%c38, %c0_81] : memref<328x64xf32, #tpu.memory_space<vmem>>, vector<288x64xf32>
    %110 = arith.truncf %109 : vector<288x64xf32> to vector<288x64xbf16>
    %c8 = arith.constant 8 : index
    %c0_82 = arith.constant 0 : index
    %c0_83 = arith.constant 0 : index
    %111 = vector.load %arg4[%c8, %c0_82, %c0_83] : memref<9x64x64xbf16, #tpu.memory_space<vmem>>, vector<1x64x64xbf16>
    %112 = vector.shape_cast %111 : vector<1x64x64xbf16> to vector<64x64xbf16>
    %cst_84 = arith.constant dense<0.000000e+00> : vector<288x64xf32>
    %113 = tpu.matmul %110, %112, %cst_84 {dimension_numbers = #tpu.dot_dimension_numbers<[1], [0], [0], [1], [0, 0, 1, 1], [], []>} : vector<288x64xbf16>, vector<64x64xbf16>, vector<288x64xf32> -> vector<288x64xf32>
    %114 = arith.addf %108, %113 : vector<288x64xf32>
    %115 = vector.extract_strided_slice %114 {offsets = [0, 0], sizes = [16, 64], strides = [1, 1]} : vector<288x64xf32> to vector<16x64xf32>
    %c0_85 = arith.constant 0 : index
    %c0_86 = arith.constant 0 : index
    %c0_87 = arith.constant 0 : index
    %116 = vector.load %arg5[%c0_85, %c0_86, %c0_87] : memref<1x256x64xf32, #tpu.memory_space<vmem>>, vector<1x16x64xf32>
    %117 = vector.shape_cast %116 : vector<1x16x64xf32> to vector<16x64xf32>
    %118 = vector.shape_cast %115 : vector<16x64xf32> to vector<1x16x64xf32>
    tpu.vector_store %arg5[%c0_85, %c0_86, %c0_87], %118 {strides = array<i32>} : memref<1x256x64xf32, #tpu.memory_space<vmem>>, vector<1x16x64xf32>,
    %119 = vector.extract_strided_slice %114 {offsets = [18, 0], sizes = [16, 64], strides = [1, 1]} : vector<288x64xf32> to vector<16x64xf32>
    %c0_88 = arith.constant 0 : index
    %c16 = arith.constant 16 : index
    %c0_89 = arith.constant 0 : index
    %120 = vector.load %arg5[%c0_88, %c16, %c0_89] : memref<1x256x64xf32, #tpu.memory_space<vmem>>, vector<1x16x64xf32>
    %121 = vector.shape_cast %120 : vector<1x16x64xf32> to vector<16x64xf32>
    %122 = vector.shape_cast %119 : vector<16x64xf32> to vector<1x16x64xf32>
    tpu.vector_store %arg5[%c0_88, %c16, %c0_89], %122 {strides = array<i32>} : memref<1x256x64xf32, #tpu.memory_space<vmem>>, vector<1x16x64xf32>,
    %123 = vector.extract_strided_slice %114 {offsets = [36, 0], sizes = [16, 64], strides = [1, 1]} : vector<288x64xf32> to vector<16x64xf32>
    %c0_90 = arith.constant 0 : index
    %c32 = arith.constant 32 : index
    %c0_91 = arith.constant 0 : index
    %124 = vector.load %arg5[%c0_90, %c32, %c0_91] : memref<1x256x64xf32, #tpu.memory_space<vmem>>, vector<1x16x64xf32>
    %125 = vector.shape_cast %124 : vector<1x16x64xf32> to vector<16x64xf32>
    %126 = vector.shape_cast %123 : vector<16x64xf32> to vector<1x16x64xf32>
    tpu.vector_store %arg5[%c0_90, %c32, %c0_91], %126 {strides = array<i32>} : memref<1x256x64xf32, #tpu.memory_space<vmem>>, vector<1x16x64xf32>,
    %127 = vector.extract_strided_slice %114 {offsets = [54, 0], sizes = [16, 64], strides = [1, 1]} : vector<288x64xf32> to vector<16x64xf32>
    %c0_92 = arith.constant 0 : index
    %c48 = arith.constant 48 : index
    %c0_93 = arith.constant 0 : index
    %128 = vector.load %arg5[%c0_92, %c48, %c0_93] : memref<1x256x64xf32, #tpu.memory_space<vmem>>, vector<1x16x64xf32>
    %129 = vector.shape_cast %128 : vector<1x16x64xf32> to vector<16x64xf32>
    %130 = vector.shape_cast %127 : vector<16x64xf32> to vector<1x16x64xf32>
    tpu.vector_store %arg5[%c0_92, %c48, %c0_93], %130 {strides = array<i32>} : memref<1x256x64xf32, #tpu.memory_space<vmem>>, vector<1x16x64xf32>,
    %131 = vector.extract_strided_slice %114 {offsets = [72, 0], sizes = [16, 64], strides = [1, 1]} : vector<288x64xf32> to vector<16x64xf32>
    %c0_94 = arith.constant 0 : index
    %c64 = arith.constant 64 : index
    %c0_95 = arith.constant 0 : index
    %132 = vector.load %arg5[%c0_94, %c64, %c0_95] : memref<1x256x64xf32, #tpu.memory_space<vmem>>, vector<1x16x64xf32>
    %133 = vector.shape_cast %132 : vector<1x16x64xf32> to vector<16x64xf32>
    %134 = vector.shape_cast %131 : vector<16x64xf32> to vector<1x16x64xf32>
    tpu.vector_store %arg5[%c0_94, %c64, %c0_95], %134 {strides = array<i32>} : memref<1x256x64xf32, #tpu.memory_space<vmem>>, vector<1x16x64xf32>,
    %135 = vector.extract_strided_slice %114 {offsets = [90, 0], sizes = [16, 64], strides = [1, 1]} : vector<288x64xf32> to vector<16x64xf32>
    %c0_96 = arith.constant 0 : index
    %c80 = arith.constant 80 : index
    %c0_97 = arith.constant 0 : index
    %136 = vector.load %arg5[%c0_96, %c80, %c0_97] : memref<1x256x64xf32, #tpu.memory_space<vmem>>, vector<1x16x64xf32>
    %137 = vector.shape_cast %136 : vector<1x16x64xf32> to vector<16x64xf32>
    %138 = vector.shape_cast %135 : vector<16x64xf32> to vector<1x16x64xf32>
    tpu.vector_store %arg5[%c0_96, %c80, %c0_97], %138 {strides = array<i32>} : memref<1x256x64xf32, #tpu.memory_space<vmem>>, vector<1x16x64xf32>,
    %139 = vector.extract_strided_slice %114 {offsets = [108, 0], sizes = [16, 64], strides = [1, 1]} : vector<288x64xf32> to vector<16x64xf32>
    %c0_98 = arith.constant 0 : index
    %c96 = arith.constant 96 : index
    %c0_99 = arith.constant 0 : index
    %140 = vector.load %arg5[%c0_98, %c96, %c0_99] : memref<1x256x64xf32, #tpu.memory_space<vmem>>, vector<1x16x64xf32>
    %141 = vector.shape_cast %140 : vector<1x16x64xf32> to vector<16x64xf32>
    %142 = vector.shape_cast %139 : vector<16x64xf32> to vector<1x16x64xf32>
    tpu.vector_store %arg5[%c0_98, %c96, %c0_99], %142 {strides = array<i32>} : memref<1x256x64xf32, #tpu.memory_space<vmem>>, vector<1x16x64xf32>,
    %143 = vector.extract_strided_slice %114 {offsets = [126, 0], sizes = [16, 64], strides = [1, 1]} : vector<288x64xf32> to vector<16x64xf32>
    %c0_100 = arith.constant 0 : index
    %c112 = arith.constant 112 : index
    %c0_101 = arith.constant 0 : index
    %144 = vector.load %arg5[%c0_100, %c112, %c0_101] : memref<1x256x64xf32, #tpu.memory_space<vmem>>, vector<1x16x64xf32>
    %145 = vector.shape_cast %144 : vector<1x16x64xf32> to vector<16x64xf32>
    %146 = vector.shape_cast %143 : vector<16x64xf32> to vector<1x16x64xf32>
    tpu.vector_store %arg5[%c0_100, %c112, %c0_101], %146 {strides = array<i32>} : memref<1x256x64xf32, #tpu.memory_space<vmem>>, vector<1x16x64xf32>,
    %147 = vector.extract_strided_slice %114 {offsets = [144, 0], sizes = [16, 64], strides = [1, 1]} : vector<288x64xf32> to vector<16x64xf32>
    %c0_102 = arith.constant 0 : index
    %c128 = arith.constant 128 : index
    %c0_103 = arith.constant 0 : index
    %148 = vector.load %arg5[%c0_102, %c128, %c0_103] : memref<1x256x64xf32, #tpu.memory_space<vmem>>, vector<1x16x64xf32>
    %149 = vector.shape_cast %148 : vector<1x16x64xf32> to vector<16x64xf32>
    %150 = vector.shape_cast %147 : vector<16x64xf32> to vector<1x16x64xf32>
    tpu.vector_store %arg5[%c0_102, %c128, %c0_103], %150 {strides = array<i32>} : memref<1x256x64xf32, #tpu.memory_space<vmem>>, vector<1x16x64xf32>,
    %151 = vector.extract_strided_slice %114 {offsets = [162, 0], sizes = [16, 64], strides = [1, 1]} : vector<288x64xf32> to vector<16x64xf32>
    %c0_104 = arith.constant 0 : index
    %c144 = arith.constant 144 : index
    %c0_105 = arith.constant 0 : index
    %152 = vector.load %arg5[%c0_104, %c144, %c0_105] : memref<1x256x64xf32, #tpu.memory_space<vmem>>, vector<1x16x64xf32>
    %153 = vector.shape_cast %152 : vector<1x16x64xf32> to vector<16x64xf32>
    %154 = vector.shape_cast %151 : vector<16x64xf32> to vector<1x16x64xf32>
    tpu.vector_store %arg5[%c0_104, %c144, %c0_105], %154 {strides = array<i32>} : memref<1x256x64xf32, #tpu.memory_space<vmem>>, vector<1x16x64xf32>,
    %155 = vector.extract_strided_slice %114 {offsets = [180, 0], sizes = [16, 64], strides = [1, 1]} : vector<288x64xf32> to vector<16x64xf32>
    %c0_106 = arith.constant 0 : index
    %c160 = arith.constant 160 : index
    %c0_107 = arith.constant 0 : index
    %156 = vector.load %arg5[%c0_106, %c160, %c0_107] : memref<1x256x64xf32, #tpu.memory_space<vmem>>, vector<1x16x64xf32>
    %157 = vector.shape_cast %156 : vector<1x16x64xf32> to vector<16x64xf32>
    %158 = vector.shape_cast %155 : vector<16x64xf32> to vector<1x16x64xf32>
    tpu.vector_store %arg5[%c0_106, %c160, %c0_107], %158 {strides = array<i32>} : memref<1x256x64xf32, #tpu.memory_space<vmem>>, vector<1x16x64xf32>,
    %159 = vector.extract_strided_slice %114 {offsets = [198, 0], sizes = [16, 64], strides = [1, 1]} : vector<288x64xf32> to vector<16x64xf32>
    %c0_108 = arith.constant 0 : index
    %c176 = arith.constant 176 : index
    %c0_109 = arith.constant 0 : index
    %160 = vector.load %arg5[%c0_108, %c176, %c0_109] : memref<1x256x64xf32, #tpu.memory_space<vmem>>, vector<1x16x64xf32>
    %161 = vector.shape_cast %160 : vector<1x16x64xf32> to vector<16x64xf32>
    %162 = vector.shape_cast %159 : vector<16x64xf32> to vector<1x16x64xf32>
    tpu.vector_store %arg5[%c0_108, %c176, %c0_109], %162 {strides = array<i32>} : memref<1x256x64xf32, #tpu.memory_space<vmem>>, vector<1x16x64xf32>,
    %163 = vector.extract_strided_slice %114 {offsets = [216, 0], sizes = [16, 64], strides = [1, 1]} : vector<288x64xf32> to vector<16x64xf32>
    %c0_110 = arith.constant 0 : index
    %c192 = arith.constant 192 : index
    %c0_111 = arith.constant 0 : index
    %164 = vector.load %arg5[%c0_110, %c192, %c0_111] : memref<1x256x64xf32, #tpu.memory_space<vmem>>, vector<1x16x64xf32>
    %165 = vector.shape_cast %164 : vector<1x16x64xf32> to vector<16x64xf32>
    %166 = vector.shape_cast %163 : vector<16x64xf32> to vector<1x16x64xf32>
    tpu.vector_store %arg5[%c0_110, %c192, %c0_111], %166 {strides = array<i32>} : memref<1x256x64xf32, #tpu.memory_space<vmem>>, vector<1x16x64xf32>,
    %167 = vector.extract_strided_slice %114 {offsets = [234, 0], sizes = [16, 64], strides = [1, 1]} : vector<288x64xf32> to vector<16x64xf32>
    %c0_112 = arith.constant 0 : index
    %c208 = arith.constant 208 : index
    %c0_113 = arith.constant 0 : index
    %168 = vector.load %arg5[%c0_112, %c208, %c0_113] : memref<1x256x64xf32, #tpu.memory_space<vmem>>, vector<1x16x64xf32>
    %169 = vector.shape_cast %168 : vector<1x16x64xf32> to vector<16x64xf32>
    %170 = vector.shape_cast %167 : vector<16x64xf32> to vector<1x16x64xf32>
    tpu.vector_store %arg5[%c0_112, %c208, %c0_113], %170 {strides = array<i32>} : memref<1x256x64xf32, #tpu.memory_space<vmem>>, vector<1x16x64xf32>,
    %171 = vector.extract_strided_slice %114 {offsets = [252, 0], sizes = [16, 64], strides = [1, 1]} : vector<288x64xf32> to vector<16x64xf32>
    %c0_114 = arith.constant 0 : index
    %c224 = arith.constant 224 : index
    %c0_115 = arith.constant 0 : index
    %172 = vector.load %arg5[%c0_114, %c224, %c0_115] : memref<1x256x64xf32, #tpu.memory_space<vmem>>, vector<1x16x64xf32>
    %173 = vector.shape_cast %172 : vector<1x16x64xf32> to vector<16x64xf32>
    %174 = vector.shape_cast %171 : vector<16x64xf32> to vector<1x16x64xf32>
    tpu.vector_store %arg5[%c0_114, %c224, %c0_115], %174 {strides = array<i32>} : memref<1x256x64xf32, #tpu.memory_space<vmem>>, vector<1x16x64xf32>,
    %175 = vector.extract_strided_slice %114 {offsets = [270, 0], sizes = [16, 64], strides = [1, 1]} : vector<288x64xf32> to vector<16x64xf32>
    %c0_116 = arith.constant 0 : index
    %c240 = arith.constant 240 : index
    %c0_117 = arith.constant 0 : index
    %176 = vector.load %arg5[%c0_116, %c240, %c0_117] : memref<1x256x64xf32, #tpu.memory_space<vmem>>, vector<1x16x64xf32>
    %177 = vector.shape_cast %176 : vector<1x16x64xf32> to vector<16x64xf32>
    %178 = vector.shape_cast %175 : vector<16x64xf32> to vector<1x16x64xf32>
    tpu.vector_store %arg5[%c0_116, %c240, %c0_117], %178 {strides = array<i32>} : memref<1x256x64xf32, #tpu.memory_space<vmem>>, vector<1x16x64xf32>,
    %c0_118 = arith.constant 0 : index
    %c0_119 = arith.constant 0 : index
    %c0_120 = arith.constant 0 : index
    %179 = vector.load %arg5[%c0_118, %c0_119, %c0_120] : memref<1x256x64xf32, #tpu.memory_space<vmem>>, vector<1x256x64xf32>
    %180 = vector.shape_cast %179 : vector<1x256x64xf32> to vector<256x64xf32>
    %cst_121 = arith.constant dense<0.000000e+00> : vector<64xf32>
    %181 = vector.multi_reduction <add>, %180, %cst_121 [0] : vector<256x64xf32> to vector<64xf32>
    %182 = vector.shape_cast %181 : vector<64xf32> to vector<1x64xf32>
    %c0_122 = arith.constant 0 : index
    %c0_123 = arith.constant 0 : index
    %c0_124 = arith.constant 0 : index
    %183 = vector.load %arg6[%c0_122, %c0_123, %c0_124] : memref<1x2x64xf32, #tpu.memory_space<vmem>>, vector<1x1x64xf32>
    %184 = vector.shape_cast %183 : vector<1x1x64xf32> to vector<1x64xf32>
    %185 = vector.shape_cast %182 : vector<1x64xf32> to vector<1x1x64xf32>
    tpu.vector_store %arg6[%c0_122, %c0_123, %c0_124], %185 {strides = array<i32>} : memref<1x2x64xf32, #tpu.memory_space<vmem>>, vector<1x1x64xf32>,
    %186 = arith.mulf %180, %180 : vector<256x64xf32>
    %cst_125 = arith.constant dense<0.000000e+00> : vector<64xf32>
    %187 = vector.multi_reduction <add>, %186, %cst_125 [0] : vector<256x64xf32> to vector<64xf32>
    %188 = vector.shape_cast %187 : vector<64xf32> to vector<1x64xf32>
    %c0_126 = arith.constant 0 : index
    %c1_127 = arith.constant 1 : index
    %c0_128 = arith.constant 0 : index
    %189 = vector.load %arg6[%c0_126, %c1_127, %c0_128] : memref<1x2x64xf32, #tpu.memory_space<vmem>>, vector<1x1x64xf32>
    %190 = vector.shape_cast %189 : vector<1x1x64xf32> to vector<1x64xf32>
    %191 = vector.shape_cast %188 : vector<1x64xf32> to vector<1x1x64xf32>
    tpu.vector_store %arg6[%c0_126, %c1_127, %c0_128], %191 {strides = array<i32>} : memref<1x2x64xf32, #tpu.memory_space<vmem>>, vector<1x1x64xf32>,
    return
  }
  func.func @transform_0(%arg0: i32) -> (i32, i32, i32) {
    %c0_i32 = arith.constant 0 : i32
    %c0_i32_0 = arith.constant 0 : i32
    %c0_i32_1 = arith.constant 0 : i32
    return %arg0, %c0_i32, %c0_i32_0 : i32, i32, i32
  }
  func.func @transform_1(%arg0: i32) -> (i32, i32) {
    %c0_i32 = arith.constant 0 : i32
    %c0_i32_0 = arith.constant 0 : i32
    %c0_i32_1 = arith.constant 0 : i32
    return %c0_i32, %c0_i32_0 : i32, i32
  }
  func.func @transform_2(%arg0: i32) -> (i32, i32) {
    %c0_i32 = arith.constant 0 : i32
    %c0_i32_0 = arith.constant 0 : i32
    %c0_i32_1 = arith.constant 0 : i32
    return %c0_i32, %c0_i32_0 : i32, i32
  }
  func.func @transform_3(%arg0: i32) -> (i32, i32, i32) {
    %c0_i32 = arith.constant 0 : i32
    %c0_i32_0 = arith.constant 0 : i32
    %c0_i32_1 = arith.constant 0 : i32
    %c0_i32_2 = arith.constant 0 : i32
    return %c0_i32, %c0_i32_0, %c0_i32_1 : i32, i32, i32
  }
  func.func @transform_4(%arg0: i32) -> (i32, i32, i32) {
    %c0_i32 = arith.constant 0 : i32
    %c0_i32_0 = arith.constant 0 : i32
    %c0_i32_1 = arith.constant 0 : i32
    return %arg0, %c0_i32, %c0_i32_0 : i32, i32, i32
  }
  func.func @transform_5(%arg0: i32) -> (i32, i32, i32) {
    %c0_i32 = arith.constant 0 : i32
    %c0_i32_0 = arith.constant 0 : i32
    %c0_i32_1 = arith.constant 0 : i32
    return %arg0, %c0_i32, %c0_i32_0 : i32, i32, i32
  }
}

module attributes {stable_mosaic.version = 11 : i64} {
  func.func @_bn_residual_kernel(%arg0: i32, %arg1: memref<512x256xf32, #tpu.memory_space<vmem>>, %arg2: memref<1x256xf32, #tpu.memory_space<vmem>>, %arg3: memref<1x256xf32, #tpu.memory_space<vmem>>, %arg4: memref<512x256xf32, #tpu.memory_space<vmem>>, %arg5: memref<512x256xf32, #tpu.memory_space<vmem>>) attributes {dimension_semantics = [#tpu.dimension_semantics<parallel>], iteration_bounds = array<i64: 2>, scalar_prefetch = 0 : i64, scratch_operands = 0 : i64, tpu.core_type = #tpu.core_type<tc>, window_params = [{transform_indices = @transform_0, window_bounds = array<i64: 512, 256>}, {pipeline_mode = #tpu.pipeline_mode<synchronous>, transform_indices = @transform_1, window_bounds = array<i64: 1, 256>}, {pipeline_mode = #tpu.pipeline_mode<synchronous>, transform_indices = @transform_2, window_bounds = array<i64: 1, 256>}, {transform_indices = @transform_3, window_bounds = array<i64: 512, 256>}, {transform_indices = @transform_4, window_bounds = array<i64: 512, 256>}]} {
    %c0 = arith.constant 0 : index
    %c0_0 = arith.constant 0 : index
    %0 = vector.load %arg1[%c0, %c0_0] : memref<512x256xf32, #tpu.memory_space<vmem>>, vector<512x256xf32>
    %c0_1 = arith.constant 0 : index
    %c0_2 = arith.constant 0 : index
    %1 = vector.load %arg2[%c0_1, %c0_2] : memref<1x256xf32, #tpu.memory_space<vmem>>, vector<1x256xf32>
    %2 = vector.broadcast %1 : vector<1x256xf32> to vector<512x256xf32>
    %3 = arith.mulf %0, %2 : vector<512x256xf32>
    %c0_3 = arith.constant 0 : index
    %c0_4 = arith.constant 0 : index
    %4 = vector.load %arg3[%c0_3, %c0_4] : memref<1x256xf32, #tpu.memory_space<vmem>>, vector<1x256xf32>
    %5 = vector.broadcast %4 : vector<1x256xf32> to vector<512x256xf32>
    %6 = arith.addf %3, %5 : vector<512x256xf32>
    %c0_5 = arith.constant 0 : index
    %c0_6 = arith.constant 0 : index
    %7 = vector.load %arg4[%c0_5, %c0_6] : memref<512x256xf32, #tpu.memory_space<vmem>>, vector<512x256xf32>
    %8 = arith.addf %6, %7 : vector<512x256xf32>
    %c0_7 = arith.constant 0 : index
    %c0_8 = arith.constant 0 : index
    %9 = vector.load %arg5[%c0_7, %c0_8] : memref<512x256xf32, #tpu.memory_space<vmem>>, vector<512x256xf32>
    tpu.vector_store %arg5[%c0_7, %c0_8], %8 {strides = array<i32>} : memref<512x256xf32, #tpu.memory_space<vmem>>, vector<512x256xf32>,
    return
  }
  func.func @transform_0(%arg0: i32) -> (i32, i32) {
    %c0_i32 = arith.constant 0 : i32
    %c0_i32_0 = arith.constant 0 : i32
    return %arg0, %c0_i32 : i32, i32
  }
  func.func @transform_1(%arg0: i32) -> (i32, i32) {
    %c0_i32 = arith.constant 0 : i32
    %c0_i32_0 = arith.constant 0 : i32
    %c0_i32_1 = arith.constant 0 : i32
    return %c0_i32, %c0_i32_0 : i32, i32
  }
  func.func @transform_2(%arg0: i32) -> (i32, i32) {
    %c0_i32 = arith.constant 0 : i32
    %c0_i32_0 = arith.constant 0 : i32
    %c0_i32_1 = arith.constant 0 : i32
    return %c0_i32, %c0_i32_0 : i32, i32
  }
  func.func @transform_3(%arg0: i32) -> (i32, i32) {
    %c0_i32 = arith.constant 0 : i32
    %c0_i32_0 = arith.constant 0 : i32
    return %arg0, %c0_i32 : i32, i32
  }
  func.func @transform_4(%arg0: i32) -> (i32, i32) {
    %c0_i32 = arith.constant 0 : i32
    %c0_i32_0 = arith.constant 0 : i32
    return %arg0, %c0_i32 : i32, i32
  }
}

</mosaic_0001>

<bundles_post_ra>
// kernel: block_forward_nchw.4
= control target key start
LH: loop header
LB: loop body
LE: loop exit
PB: predicated region body
PF: predicated region fallthrough
CT: control target
= control target key end

     0   :  { %11 = vsyncpa [#allocation3], 0  ;;  %s2489_s0 = inlined_call_operand.hbm [shape: f32[1024,256], index: 0, kind: input, shape index: {}]   ;;  %s2490_s1 = inlined_call_operand.vmem [shape: f32[1,256], index: 1, kind: input, shape index: {}]   ;;  %s2491_s2 = inlined_call_operand.vmem [shape: f32[1,256], index: 2, kind: input, shape index: {}]   ;;  %s2492_s3 = inlined_call_operand.vmem [shape: bf16[256,64], index: 3, kind: input, shape index: {}]   ;;  %s2493_s4 = inlined_call_operand.vmem [shape: f32[1024,64], index: 4, kind: output, shape index: {0}]   ;;  %s2494_s5 = inlined_call_operand.vmem [shape: f32[2,2,64], index: 5, kind: output, shape index: {1}]  }
   0x1   :  { %13 = vsyncpa [#allocation3 + $0x1], 0  ;;  %s1586_s18 = smov 0   ;;  %s1588_s19 = smov 0  }
   0x2   :  { %s1590_s20 = smov 0   ;;  %s1592_s1 = smov 0  }
   0x3 LB: > { %s1605_s2 = sadd.s32 4294967295, %s1550_s1   ;;  %s1608_s21 = sadd.s32 1, %s1550_s1   ;;  %s1550_s1 = sphi %s1592_s1, %s2503_s1   ;;  %s1546_s20 = sphi %s1590_s20, %s2502_s20   ;;  %s1542_s19 = sphi %s1588_s19, %s2501_s19   ;;  %s1538_s18 = sphi %s1586_s18, %s2500_s18  }
   0x4   : > { %s23_s22 = ssub.s32 %s1550_s1, %s1608_s21  ;;  %s26_s23 = sadd.s32 1, %s1546_s20 }
   0x5   : > { %p24_p0 = scmp.eq.s32.totalorder %s23_s22, 0  ;;  %p33_p1 = scmp.ne.s32.totalorder %s1546_s20, %s1542_s19 }
   0x6   : > { %p34_p2 = scmp.eq.s32.totalorder %s1550_s1, 0  ;;  %p39_p3 = scmp.ne.s32.totalorder %s1542_s19, %s1538_s18 }
   0x7   : > { %s1618_s24 = scalar_select %p24_p0, %s1546_s20, %s26_s23  }
   0x8   : > { %p35_p4 = por %p34_p2, %p33_p1  ;;  %p40_p5 = scmp.eq.s32.totalorder %s1605_s2, 0 }
   0x9   : > { %p1436_p6 = scmp.lt.s32.totalorder %s1550_s1, 2  ;;  %s187_s26 = sand.u32 1, %s1546_s20  }
   0xa   : > { %p1622_p7 = por %p40_p5, %p39_p3  ;;  %s1369_s27 = sshll.u32 %s187_s26, 10 }
   0xb   : > { %s1397_s28 = sshll.u32 %s1550_s1, 14  ;;  %s191_s7 = scalar_lea.vmem [#allocation2], %s1369_s27 }
   0xc   : > { %s2496_s25 = scalar_select %p1622_p7, 1, 0 }
   0xd   : > { %s1631_s6 = scalar_lea.hbm %s2489_s0, %s1397_s28  ;;  %s199_s8 = sshll.u32 %s191_s7, 4  ;;  %s1633_s8 = int_to_ptr.vmem [resolvable:$true] %s199_s8 }
   0xe   : > { %p1635_p8 = pnand %p1436_p6, %p35_p4  ;;  %s1640_s10 = scalar_lea.sflag [#allocation3], %s187_s26 }
   0xf   : > { %s1488_s11 = scalar_lea.hbm %s1631_s6, 16384  ;;  %s1493_s14 = scalar_lea.hbm %s2489_s0, 32768 }
  0x10   : > { %p1489_p10 = scmp.ne.s32.totalorder %s1631_s6, %s1488_s11  ;;  %p1490_p11 = pneg %p1635_p8 }
  0x11   : > { %p1494_p0 = scmp.lt.s32.totalorder %s1631_s6, %s2489_s0  ;;  %p1495_p1 = scmp.lt.s32.totalorder %s1493_s14, %s1488_s11 }
  0x12   : > { %p1491_p12 = pnand %p1490_p11, %p1489_p10 }
  0x13   : > { %p1496_p2 = por %p1495_p1, %p1494_p0 }
  0x14   : > { %p1492_p13 = pneg %p1491_p12 }
  0x16   : > { %p1497_p3 = pnand %p1496_p2, %p1492_p13 }
  0x18   : > { %1500 = shalt.err (!%p1497_p3)
}
  0x19   : > { %s1501_s17 = scalar_lea.vmem %s1633_s8, 16384  ;;  %s1552_s18 = smov [#allocation2]  }
  0x1a   : > { %p1502_p4 = scmp.ne.s32.totalorder %s1633_s8, %s1501_s17  ;;  %s1506_s22 = sshll.u32 %s1552_s18, 4  ;;  %s1507_s22 = int_to_ptr.vmem [resolvable:$false] %s1506_s22 }
  0x1b   : > { %s1508_s23 = scalar_lea.vmem %s1507_s22, 32768  ;;  %p1509_p10 = scmp.lt.s32.totalorder %s1633_s8, %s1507_s22 }
  0x1c   : > { %p1504_p5 = pnand %p1502_p4, %p1490_p11  ;;  %p1510_p12 = scmp.lt.s32.totalorder %s1508_s23, %s1501_s17 }
  0x1e   : > { %p1505_p6 = pneg %p1504_p5  ;;  %p1511_p9 = por %p1510_p12, %p1509_p10 }
  0x20   : > { %p1512_p7 = pnand %p1511_p9, %p1505_p6 }
  0x22   : > { %1515 = shalt.err (!%p1512_p7)
}
  0x23   : > { %s1553_s26 = smov 256   ;;  %s1554_s27 = smov 16  }
  0x24   : > { %1435 = dma.hbm_to_vmem [thread:$0]  (!%p1635_p8), %s1631_s6, 16384, %s1633_s8, %s1640_s10, %s1553_s26, %s1553_s26, %s1554_s27  }
  0x25   : > { %p207_p11 = scmp.lt.s32.totalorder %s1550_s1, 3  ;;  %p2498_p13 = scmp.ge.s32.totalorder %s1550_s1, 1 }
  0x27   : > { %p208_p0 = pnand %p2498_p13, %p207_p11 }
  0x28   : > { %s213_s28 = sand.u32 (!%p208_p0), 1, %s1542_s19   ;;  %p2499_p7 = scmp.ne.s32.totalorder (!%p208_p0), %s2496_s25, 0 }
  0x29   : > { %211 = sbr.rel (%p208_p0) target bundleno = 511 (0x1ff), region = 36  ;;  %s1374_s29 = sshll.u32 (!%p208_p0), %s213_s28, 10 }
  0x2a   : > { %s214_s30 = scalar_lea.sflag (!%p208_p0), [#allocation3], %s213_s28  ;;  %s1665_s7 = scalar_lea.vmem (!%p208_p0), [#allocation2], %s1374_s29 }
  0x2e   : > { %1533 = dma.done.wait (%p2499_p7), %s214_s30, 16384  }
  0x2f   : > { %1535 = vsyncadd (%p2499_p7), %s214_s30, 4294950912  ;;  %v1555_v0 = vmov 0   ;;  %v1472_v1 = vld [vmem:[%s2492_s3 + $0x38] sm:$0xff]   ;;  %v1473_v2 = vld [vmem:[%s2492_s3 + $0x30] sm:$0xff]   ;;  %s1375_s16 = sshll.u32 %s1605_s2, 6  ;;  %vm869_vm0 = vcmask 523264  }
  0x30   : > { %580 = vmatprep.subr.bf16.mxu0 %v1555_v0  ;;  %1398 = vmatprep.subr.bf16.mxu1 %v1555_v0  ;;  %v1474_v3 = vld [vmem:[%s2492_s3 + $0x28] sm:$0xff]   ;;  %v1475_v4 = vld [vmem:[%s2492_s3 + $0x20] sm:$0xff]   ;;  %v1476_v5 = vld [vmem:[%s2492_s3 + $0x18] sm:$0xff]   ;;  %p250_p8 = scmp.lt.s32.totalorder %s1375_s16, 127  ;;  %p255_p9 = scmp.lt.s32.totalorder %s1605_s2, 1  ;;  %vm1067_vm1 = vcmask 516096  }
  0x31   : > { %581 = vmatpush1.bf16.msra.mxu0 %v1472_v1  ;;  %1414 = vmatpush1.bf16.msra.mxu1 %v1472_v1  ;;  %v261_v6 = vld [vmem:[%s1665_s7 + $0x8] sm:$0xff]  ;;  %v263_v7 = vld [vmem:[%s1665_s7 + $0x18] sm:$0xff]  ;;  %v1477_v9 = vld [vmem:[%s2492_s3 + $0x10] sm:$0xff]  }
  0x32   : > { %582 = vmatprep.subr.bf16.mxu0 %v1555_v0  ;;  %1399 = vmatprep.subr.bf16.mxu1 %v1555_v0  ;;  %v389_v8 = vpack.c.bf16 %v263_v7, %v261_v6  ;;  %v1478_v10 = vld [vmem:[%s2492_s3 + $0x8] sm:$0xff]   ;;  %v1479_v11 = vld [vmem:[%s2492_s3] sm:$0xff]   ;;  %v327_v13 = vld [vmem:[%s1665_s7 + $0x218] sm:$0xff]  ;;  %s2505_s16 = smov (!%p250_p8, %s1375_s16), 127  ;;  %s2507_s2 = smov (!%p255_p9, %s1605_s2), 1 }
  0x33   : > { %v325_v12 = vld [vmem:[%s1665_s7 + $0x208] sm:$0xff]  ;;  %v1480_v15 = vld [vmem:[%s2492_s3 + $0x78] sm:$0xff]   ;;  %v1481_v16 = vld [vmem:[%s2492_s3 + $0x70] sm:$0xff]   ;;  %s1376_s17 = sshll.u32 %s2505_s16, 3 }
  0x34   : > { %612 = vmatprep.mubr.bf16.mxu0 %v389_v8  ;;  %v421_v14 = vpack.c.bf16 %v327_v13, %v325_v12  ;;  %v1482_v17 = vld [vmem:[%s2492_s3 + $0x68] sm:$0xff]   ;;  %v1483_v18 = vld [vmem:[%s2492_s3 + $0x60] sm:$0xff]   ;;  %v1484_v19 = vld [vmem:[%s2492_s3 + $0x58] sm:$0xff]   ;;  %s1883_s23 = scalar_lea.vmem %s2493_s4, %s1376_s17 }
  0x35   : > { %583 = vmatpush1.bf16.msra.mxu0 %v1473_v2  ;;  %1415 = vmatpush1.bf16.msra.mxu1 %v1473_v2  ;;  %v1485_v20 = vld [vmem:[%s2492_s3 + $0x50] sm:$0xff]   ;;  %v1486_v21 = vld [vmem:[%s2492_s3 + $0x48] sm:$0xff]   ;;  %v1487_v22 = vld [vmem:[%s2492_s3 + $0x40] sm:$0xff]  }
  0x36   : > { %584 = vmatprep.subr.bf16.mxu0 %v1555_v0  ;;  %1400 = vmatprep.subr.bf16.mxu1 %v1555_v0  ;;  %v260_v23 = vld [vmem:[%s1665_s7] sm:$0xff]  ;;  %v262_v24 = vld [vmem:[%s1665_s7 + $0x10] sm:$0xff]  ;;  %v265_v25 = vld [vmem:[%s1665_s7 + $0x28] sm:$0xff] }
  0x37   : > { %740 = vmatprep.mubr.bf16.mxu1 %v421_v14  ;;  %v324_v26 = vld [vmem:[%s1665_s7 + $0x200] sm:$0xff]  ;;  %v326_v27 = vld [vmem:[%s1665_s7 + $0x210] sm:$0xff]  ;;  %v267_v28 = vld [vmem:[%s1665_s7 + $0x38] sm:$0xff]  ;;  %v388_v31 = vpack.c.bf16 %v262_v24, %v260_v23 }
  0x38   : > { %v329_v29 = vld [vmem:[%s1665_s7 + $0x228] sm:$0xff]  ;;  %v331_v30 = vld [vmem:[%s1665_s7 + $0x238] sm:$0xff]  ;;  %v420_v32 = vpack.c.bf16 %v326_v27, %v324_v26  ;;  %v391_v33 = vpack.c.bf16 %v267_v28, %v265_v25  ;;  %v264_v35 = vld [vmem:[%s1665_s7 + $0x20] sm:$0xff] }
  0x39   : > { %585 = vmatpush1.bf16.msra.mxu0 %v1474_v3  ;;  %1416 = vmatpush1.bf16.msra.mxu1 %v1474_v3  ;;  %v423_v34 = vpack.c.bf16 %v331_v30, %v329_v29  ;;  %v266_v36 = vld [vmem:[%s1665_s7 + $0x30] sm:$0xff]  ;;  %v269_v37 = vld [vmem:[%s1665_s7 + $0x48] sm:$0xff]  ;;  %v328_v38 = vld [vmem:[%s1665_s7 + $0x220] sm:$0xff] }
  0x3a   : > { %586 = vmatprep.subr.bf16.mxu0 %v1555_v0  ;;  %1401 = vmatprep.subr.bf16.mxu1 %v1555_v0  ;;  %v330_v39 = vld [vmem:[%s1665_s7 + $0x230] sm:$0xff]  ;;  %v271_v40 = vld [vmem:[%s1665_s7 + $0x58] sm:$0xff]  ;;  %v333_v41 = vld [vmem:[%s1665_s7 + $0x248] sm:$0xff]  ;;  %v390_v43 = vpack.c.bf16 %v266_v36, %v264_v35 }
  0x3b   : > { %v335_v42 = vld [vmem:[%s1665_s7 + $0x258] sm:$0xff]  ;;  %v422_v44 = vpack.c.bf16 %v330_v39, %v328_v38  ;;  %v393_v45 = vpack.c.bf16 %v271_v40, %v269_v37  ;;  %v268_v47 = vld [vmem:[%s1665_s7 + $0x40] sm:$0xff]  ;;  %v270_v48 = vld [vmem:[%s1665_s7 + $0x50] sm:$0xff] }
  0x3c   : > { %v425_v46 = vpack.c.bf16 %v335_v42, %v333_v41  ;;  %v273_v49 = vld [vmem:[%s1665_s7 + $0x68] sm:$0xff]  ;;  %v332_v50 = vld [vmem:[%s1665_s7 + $0x240] sm:$0xff]  ;;  %v334_v51 = vld [vmem:[%s1665_s7 + $0x250] sm:$0xff]  ;;  %v392_v55 = vpack.c.bf16 %v270_v48, %v268_v47 }
  0x3d   : > { %587 = vmatpush1.bf16.msra.mxu0 %v1475_v4  ;;  %1417 = vmatpush1.bf16.msra.mxu1 %v1475_v4  ;;  %v275_v52 = vld [vmem:[%s1665_s7 + $0x78] sm:$0xff]  ;;  %v337_v53 = vld [vmem:[%s1665_s7 + $0x268] sm:$0xff]  ;;  %v424_v56 = vpack.c.bf16 %v334_v51, %v332_v50  ;;  %v272_v59 = vld [vmem:[%s1665_s7 + $0x60] sm:$0xff] }
  0x3e   : > { %588 = vmatprep.subr.bf16.mxu0 %v1555_v0  ;;  %1402 = vmatprep.subr.bf16.mxu1 %v1555_v0  ;;  %v339_v54 = vld [vmem:[%s1665_s7 + $0x278] sm:$0xff]  ;;  %v395_v57 = vpack.c.bf16 %v275_v52, %v273_v49  ;;  %v274_v60 = vld [vmem:[%s1665_s7 + $0x70] sm:$0xff]  ;;  %v277_v61 = vld [vmem:[%s1665_s7 + $0x88] sm:$0xff] }
  0x3f   : > { %v427_v58 = vpack.c.bf16 %v339_v54, %v337_v53  ;;  %v336_v62 = vld [vmem:[%s1665_s7 + $0x260] sm:$0xff]  ;;  %v338_v63 = vld [vmem:[%s1665_s7 + $0x270] sm:$0xff]  ;;  %v341_v1 = vld [vmem:[%s1665_s7 + $0x288] sm:$0xff]  ;;  %v394_v3 = vpack.c.bf16 %v274_v60, %v272_v59 }
  0x40   : > { %v343_v2 = vld [vmem:[%s1665_s7 + $0x298] sm:$0xff]  ;;  %v426_v4 = vpack.c.bf16 %v338_v63, %v336_v62  ;;  %v276_v7 = vld [vmem:[%s1665_s7 + $0x80] sm:$0xff]  ;;  %v278_v8 = vld [vmem:[%s1665_s7 + $0x90] sm:$0xff] }
  0x41   : > { %589 = vmatpush1.bf16.msra.mxu0 %v1476_v5  ;;  %1418 = vmatpush1.bf16.msra.mxu1 %v1476_v5  ;;  %v429_v6 = vpack.c.bf16 %v343_v2, %v341_v1  ;;  %v283_v12 = vld [vmem:[%s1665_s7 + $0xb8] sm:$0xff]  ;;  %v345_v13 = vld [vmem:[%s1665_s7 + $0x2a8] sm:$0xff]  ;;  %v346_v23 = vld [vmem:[%s1665_s7 + $0x2b0] sm:$0xff] }
  0x42   : > { %590 = vmatprep.subr.bf16.mxu0 %v1555_v0  ;;  %1403 = vmatprep.subr.bf16.mxu1 %v1555_v0  ;;  %v347_v14 = vld [vmem:[%s1665_s7 + $0x2b8] sm:$0xff]  ;;  %v349_v25 = vld [vmem:[%s1665_s7 + $0x2c8] sm:$0xff]  ;;  %v350_v35 = vld [vmem:[%s1665_s7 + $0x2d0] sm:$0xff] }
  0x43   : > { %v287_v24 = vld [vmem:[%s1665_s7 + $0xd8] sm:$0xff]  ;;  %v353_v37 = vld [vmem:[%s1665_s7 + $0x2e8] sm:$0xff]  ;;  %v354_v47 = vld [vmem:[%s1665_s7 + $0x2f0] sm:$0xff] }
  0x44   : > { %v351_v26 = vld [vmem:[%s1665_s7 + $0x2d8] sm:$0xff]  ;;  %v357_v49 = vld [vmem:[%s1665_s7 + $0x308] sm:$0xff]  ;;  %v358_v59 = vld [vmem:[%s1665_s7 + $0x310] sm:$0xff] }
  0x45   : > { %591 = vmatpush1.bf16.msra.mxu0 %v1477_v9  ;;  %1419 = vmatpush1.bf16.msra.mxu1 %v1477_v9  ;;  %v281_v9 = vld [vmem:[%s1665_s7 + $0xa8] sm:$0xff]  ;;  %v433_v30 = vpack.c.bf16 %v351_v26, %v349_v25  ;;  %v291_v36 = vld [vmem:[%s1665_s7 + $0xf8] sm:$0xff] }
  0x46   : > { %592 = vmatprep.subr.bf16.mxu0 %v1555_v0  ;;  %1404 = vmatprep.subr.bf16.mxu1 %v1555_v0  ;;  %v355_v38 = vld [vmem:[%s1665_s7 + $0x2f8] sm:$0xff] }
  0x47   : > { %v435_v42 = vpack.c.bf16 %v355_v38, %v353_v37  ;;  %v295_v48 = vld [vmem:[%s1665_s7 + $0x118] sm:$0xff] }
  0x48   : > { %v359_v50 = vld [vmem:[%s1665_s7 + $0x318] sm:$0xff] }
  0x49   : > { %593 = vmatpush1.bf16.msra.mxu0 %v1478_v10  ;;  %1420 = vmatpush1.bf16.msra.mxu1 %v1478_v10  ;;  %v340_v10 = vld [vmem:[%s1665_s7 + $0x280] sm:$0xff]  ;;  %v437_v54 = vpack.c.bf16 %v359_v50, %v357_v49  ;;  %v299_v60 = vld [vmem:[%s1665_s7 + $0x138] sm:$0xff] }
  0x4a   : > { %594 = vmatprep.subr.bf16.mxu0 %v1555_v0  ;;  %1405 = vmatprep.subr.bf16.mxu1 %v1555_v0  ;;  %v363_v62 = vld [vmem:[%s1665_s7 + $0x338] sm:$0xff] }
  0x4d   : > { %595 = vmatpush1.bf16.msra.mxu0 %v1479_v11  ;;  %1421 = vmatpush1.bf16.msra.mxu1 %v1479_v11  ;;  %v342_v11 = vld [vmem:[%s1665_s7 + $0x290] sm:$0xff] }
  0x4e   : > { %596 = vmatprep.subr.bf16.mxu0 %v1555_v0  ;;  %1406 = vmatprep.subr.bf16.mxu1 %v1555_v0 }
  0x51   : > { %597 = vmatpush2.bf16.msra.mxu0 %v1480_v15  ;;  %1422 = vmatpush2.bf16.msra.mxu1 %v1480_v15  ;;  %v396_v15 = vpack.c.bf16 %v278_v8, %v276_v7  ;;  %v362_v7 = vld [vmem:[%s1665_s7 + $0x330] sm:$0xff]  ;;  %v303_v8 = vld [vmem:[%s1665_s7 + $0x158] sm:$0xff] }
  0x52   : > { %598 = vmatprep.subr.bf16.mxu0 %v1555_v0  ;;  %1407 = vmatprep.subr.bf16.mxu1 %v1555_v0 }
  0x55   : > { %599 = vmatpush2.bf16.msra.mxu0 %v1481_v16  ;;  %1423 = vmatpush2.bf16.msra.mxu1 %v1481_v16  ;;  %v428_v16 = vpack.c.bf16 %v342_v11, %v340_v10  ;;  %v367_v10 = vld [vmem:[%s1665_s7 + $0x358] sm:$0xff] }
  0x56   : > { %600 = vmatprep.subr.bf16.mxu0 %v1555_v0  ;;  %1408 = vmatprep.subr.bf16.mxu1 %v1555_v0 }
  0x59   : > { %601 = vmatpush2.bf16.msra.mxu0 %v1482_v17  ;;  %1424 = vmatpush2.bf16.msra.mxu1 %v1482_v17  ;;  %v399_v17 = vpack.c.bf16 %v283_v12, %v281_v9  ;;  %v365_v9 = vld [vmem:[%s1665_s7 + $0x348] sm:$0xff] }
  0x5a   : > { %602 = vmatprep.subr.bf16.mxu0 %v1555_v0  ;;  %1409 = vmatprep.subr.bf16.mxu1 %v1555_v0 }
  0x5d   : > { %603 = vmatpush2.bf16.msra.mxu0 %v1483_v18  ;;  %1425 = vmatpush2.bf16.msra.mxu1 %v1483_v18  ;;  %v431_v18 = vpack.c.bf16 %v347_v14, %v345_v13  ;;  %v441_v14 = vpack.c.bf16 %v367_v10, %v365_v9 }
  0x5e   : > { %604 = vmatprep.subr.bf16.mxu0 %v1555_v0  ;;  %1410 = vmatprep.subr.bf16.mxu1 %v1555_v0 }
  0x61   : > { %605 = vmatpush2.bf16.msra.mxu0 %v1484_v19  ;;  %1426 = vmatpush2.bf16.msra.mxu1 %v1484_v19  ;;  %v280_v19 = vld [vmem:[%s1665_s7 + $0xa0] sm:$0xff] }
  0x62   : > { %606 = vmatprep.subr.bf16.mxu0 %v1555_v0  ;;  %1411 = vmatprep.subr.bf16.mxu1 %v1555_v0 }
  0x65   : > { %607 = vmatpush2.bf16.msra.mxu0 %v1485_v20  ;;  %1427 = vmatpush2.bf16.msra.mxu1 %v1485_v20  ;;  %v282_v20 = vld [vmem:[%s1665_s7 + $0xb0] sm:$0xff] }
  0x66   : > { %608 = vmatprep.subr.bf16.mxu0 %v1555_v0  ;;  %1412 = vmatprep.subr.bf16.mxu1 %v1555_v0  ;;  %v398_v27 = vpack.c.bf16 %v282_v20, %v280_v19  ;;  %v366_v19 = vld [vmem:[%s1665_s7 + $0x350] sm:$0xff]  ;;  %v307_v20 = vld [vmem:[%s1665_s7 + $0x178] sm:$0xff] }
  0x69   : > { %609 = vmatpush2.bf16.msra.mxu0 %v1486_v21  ;;  %1428 = vmatpush2.bf16.msra.mxu1 %v1486_v21  ;;  %v285_v21 = vld [vmem:[%s1665_s7 + $0xc8] sm:$0xff] }
  0x6a   : > { %610 = vmatprep.subr.bf16.mxu0 %v1555_v0  ;;  %1413 = vmatprep.subr.bf16.mxu1 %v1555_v0  ;;  %v279_v0 = vld [vmem:[%s1665_s7 + $0x98] sm:$0xff]  ;;  %v401_v29 = vpack.c.bf16 %v287_v24, %v285_v21  ;;  %v369_v21 = vld [vmem:[%s1665_s7 + $0x368] sm:$0xff] }
  0x6b   : > { %v397_v5 = vpack.c.bf16 %v279_v0, %v277_v61  ;;  %v361_v61 = vld [vmem:[%s1665_s7 + $0x328] sm:$0xff] }
  0x6c   : > { %v439_v2 = vpack.c.bf16 %v363_v62, %v361_v61 }
  0x6d   : > { %611 = vmatpush2.bf16.msra.mxu0 %v1487_v22  ;;  %1429 = vmatpush2.bf16.msra.mxu1 %v1487_v22  ;;  %v344_v22 = vld [vmem:[%s1665_s7 + $0x2a0] sm:$0xff] }
  0x6e   : > { %v430_v28 = vpack.c.bf16 %v346_v23, %v344_v22  ;;  %v371_v22 = vld [vmem:[%s1665_s7 + $0x378] sm:$0xff] }
  0x6f   : > { %v443_v26 = vpack.c.bf16 %v371_v22, %v369_v21 }
  0x70   : > { %613 = vmatmul.mubr.bf16.vlgmr.msra.gmra.mxu0 %v388_v31  ;;  %741 = vmatmul.mubr.bf16.vlgmr.msra.gmra.mxu1 %v420_v32  ;;  %v284_v31 = vld [vmem:[%s1665_s7 + $0xc0] sm:$0xff]  ;;  %v286_v32 = vld [vmem:[%s1665_s7 + $0xd0] sm:$0xff] }
  0x71   : > { %620 = vmatprep.mubr.bf16.mxu0 %v391_v33  ;;  %748 = vmatprep.mubr.bf16.mxu1 %v423_v34  ;;  %v289_v33 = vld [vmem:[%s1665_s7 + $0xe8] sm:$0xff]  ;;  %v348_v34 = vld [vmem:[%s1665_s7 + $0x2c0] sm:$0xff]  ;;  %v400_v39 = vpack.c.bf16 %v286_v32, %v284_v31  ;;  %v370_v31 = vld [vmem:[%s1665_s7 + $0x370] sm:$0xff] }
  0x72   : > { %v432_v40 = vpack.c.bf16 %v350_v35, %v348_v34  ;;  %v403_v41 = vpack.c.bf16 %v291_v36, %v289_v33  ;;  %v311_v32 = vld [vmem:[%s1665_s7 + $0x198] sm:$0xff]  ;;  %v373_v33 = vld [vmem:[%s1665_s7 + $0x388] sm:$0xff] }
  0x73   : > { %v375_v34 = vld [vmem:[%s1665_s7 + $0x398] sm:$0xff] }
  0x74   : > { %v445_v38 = vpack.c.bf16 %v375_v34, %v373_v33 }
  0x78   : > { %621 = vmatmul.mubr.bf16.gmra.mxu0 %v390_v43  ;;  %749 = vmatmul.mubr.bf16.gmra.mxu1 %v422_v44  ;;  %v288_v43 = vld [vmem:[%s1665_s7 + $0xe0] sm:$0xff]  ;;  %v290_v44 = vld [vmem:[%s1665_s7 + $0xf0] sm:$0xff] }
  0x79   : > { %628 = vmatprep.mubr.bf16.mxu0 %v393_v45  ;;  %756 = vmatprep.mubr.bf16.mxu1 %v425_v46  ;;  %v293_v45 = vld [vmem:[%s1665_s7 + $0x108] sm:$0xff]  ;;  %v352_v46 = vld [vmem:[%s1665_s7 + $0x2e0] sm:$0xff]  ;;  %v402_v51 = vpack.c.bf16 %v290_v44, %v288_v43  ;;  %v374_v43 = vld [vmem:[%s1665_s7 + $0x390] sm:$0xff] }
  0x7a   : > { %v434_v52 = vpack.c.bf16 %v354_v47, %v352_v46  ;;  %v405_v53 = vpack.c.bf16 %v295_v48, %v293_v45  ;;  %v315_v44 = vld [vmem:[%s1665_s7 + $0x1b8] sm:$0xff]  ;;  %v377_v45 = vld [vmem:[%s1665_s7 + $0x3a8] sm:$0xff] }
  0x7b   : > { %v379_v46 = vld [vmem:[%s1665_s7 + $0x3b8] sm:$0xff] }
  0x7c   : > { %v447_v50 = vpack.c.bf16 %v379_v46, %v377_v45 }
  0x80   : > { %629 = vmatmul.mubr.bf16.gmra.mxu0 %v392_v55  ;;  %757 = vmatmul.mubr.bf16.gmra.mxu1 %v424_v56  ;;  %v292_v55 = vld [vmem:[%s1665_s7 + $0x100] sm:$0xff]  ;;  %v294_v56 = vld [vmem:[%s1665_s7 + $0x110] sm:$0xff] }
  0x81   : > { %636 = vmatprep.mubr.bf16.mxu0 %v395_v57  ;;  %764 = vmatprep.mubr.bf16.mxu1 %v427_v58  ;;  %v297_v57 = vld [vmem:[%s1665_s7 + $0x128] sm:$0xff]  ;;  %v356_v58 = vld [vmem:[%s1665_s7 + $0x300] sm:$0xff]  ;;  %v404_v63 = vpack.c.bf16 %v294_v56, %v292_v55  ;;  %v378_v55 = vld [vmem:[%s1665_s7 + $0x3b0] sm:$0xff] }
  0x82   : > { %v436_v0 = vpack.c.bf16 %v358_v59, %v356_v58  ;;  %v407_v1 = vpack.c.bf16 %v299_v60, %v297_v57  ;;  %v319_v56 = vld [vmem:[%s1665_s7 + $0x1d8] sm:$0xff]  ;;  %v381_v57 = vld [vmem:[%s1665_s7 + $0x3c8] sm:$0xff] }
  0x83   : > { %v383_v58 = vld [vmem:[%s1665_s7 + $0x3d8] sm:$0xff] }
  0x84   : > { %v449_v62 = vpack.c.bf16 %v383_v58, %v381_v57 }
  0x88   : > { %637 = vmatmul.mubr.bf16.gmra.mxu0 %v394_v3  ;;  %765 = vmatmul.mubr.bf16.gmra.mxu1 %v426_v4  ;;  %v296_v3 = vld [vmem:[%s1665_s7 + $0x120] sm:$0xff]  ;;  %v298_v4 = vld [vmem:[%s1665_s7 + $0x130] sm:$0xff] }
  0x89   : > { %644 = vmatprep.mubr.bf16.mxu0 %v397_v5  ;;  %772 = vmatprep.mubr.bf16.mxu1 %v429_v6  ;;  %v301_v5 = vld [vmem:[%s1665_s7 + $0x148] sm:$0xff]  ;;  %v360_v6 = vld [vmem:[%s1665_s7 + $0x320] sm:$0xff]  ;;  %v406_v11 = vpack.c.bf16 %v298_v4, %v296_v3  ;;  %v382_v3 = vld [vmem:[%s1665_s7 + $0x3d0] sm:$0xff] }
  0x8a   : > { %v438_v12 = vpack.c.bf16 %v362_v7, %v360_v6  ;;  %v409_v13 = vpack.c.bf16 %v303_v8, %v301_v5  ;;  %v323_v4 = vld [vmem:[%s1665_s7 + $0x1f8] sm:$0xff]  ;;  %v385_v5 = vld [vmem:[%s1665_s7 + $0x3e8] sm:$0xff] }
  0x8b   : > { %v387_v6 = vld [vmem:[%s1665_s7 + $0x3f8] sm:$0xff] }
  0x8c   : > { %v451_v10 = vpack.c.bf16 %v387_v6, %v385_v5 }
  0x90   : > { %645 = vmatmul.mubr.bf16.gmra.mxu0 %v396_v15  ;;  %773 = vmatmul.mubr.bf16.gmra.mxu1 %v428_v16  ;;  %v300_v15 = vld [vmem:[%s1665_s7 + $0x140] sm:$0xff]  ;;  %v302_v16 = vld [vmem:[%s1665_s7 + $0x150] sm:$0xff] }
  0x91   : > { %652 = vmatprep.mubr.bf16.mxu0 %v399_v17  ;;  %780 = vmatprep.mubr.bf16.mxu1 %v431_v18  ;;  %v305_v17 = vld [vmem:[%s1665_s7 + $0x168] sm:$0xff]  ;;  %v364_v18 = vld [vmem:[%s1665_s7 + $0x340] sm:$0xff]  ;;  %v408_v23 = vpack.c.bf16 %v302_v16, %v300_v15 }
  0x92   : > { %v440_v24 = vpack.c.bf16 %v366_v19, %v364_v18  ;;  %v411_v25 = vpack.c.bf16 %v307_v20, %v305_v17 }
  0x98   : > { %653 = vmatmul.mubr.bf16.gmra.mxu0 %v398_v27  ;;  %781 = vmatmul.mubr.bf16.gmra.mxu1 %v430_v28  ;;  %v304_v27 = vld [vmem:[%s1665_s7 + $0x160] sm:$0xff]  ;;  %v306_v28 = vld [vmem:[%s1665_s7 + $0x170] sm:$0xff] }
  0x99   : > { %660 = vmatprep.mubr.bf16.mxu0 %v401_v29  ;;  %788 = vmatprep.mubr.bf16.mxu1 %v433_v30  ;;  %v309_v29 = vld [vmem:[%s1665_s7 + $0x188] sm:$0xff]  ;;  %v368_v30 = vld [vmem:[%s1665_s7 + $0x360] sm:$0xff]  ;;  %v410_v35 = vpack.c.bf16 %v306_v28, %v304_v27 }
  0x9a   : > { %v442_v36 = vpack.c.bf16 %v370_v31, %v368_v30  ;;  %v413_v37 = vpack.c.bf16 %v311_v32, %v309_v29 }
  0xa0   : > { %661 = vmatmul.mubr.bf16.gmra.mxu0 %v400_v39  ;;  %789 = vmatmul.mubr.bf16.gmra.mxu1 %v432_v40  ;;  %v308_v39 = vld [vmem:[%s1665_s7 + $0x180] sm:$0xff]  ;;  %v310_v40 = vld [vmem:[%s1665_s7 + $0x190] sm:$0xff] }
  0xa1   : > { %668 = vmatprep.mubr.bf16.mxu0 %v403_v41  ;;  %796 = vmatprep.mubr.bf16.mxu1 %v435_v42  ;;  %v313_v41 = vld [vmem:[%s1665_s7 + $0x1a8] sm:$0xff]  ;;  %v372_v42 = vld [vmem:[%s1665_s7 + $0x380] sm:$0xff]  ;;  %v412_v47 = vpack.c.bf16 %v310_v40, %v308_v39 }
  0xa2   : > { %v444_v48 = vpack.c.bf16 %v374_v43, %v372_v42  ;;  %v415_v49 = vpack.c.bf16 %v315_v44, %v313_v41 }
  0xa8   : > { %669 = vmatmul.mubr.bf16.gmra.mxu0 %v402_v51  ;;  %797 = vmatmul.mubr.bf16.gmra.mxu1 %v434_v52  ;;  %v312_v51 = vld [vmem:[%s1665_s7 + $0x1a0] sm:$0xff]  ;;  %v314_v52 = vld [vmem:[%s1665_s7 + $0x1b0] sm:$0xff] }
  0xa9   : > { %676 = vmatprep.mubr.bf16.mxu0 %v405_v53  ;;  %804 = vmatprep.mubr.bf16.mxu1 %v437_v54  ;;  %v317_v53 = vld [vmem:[%s1665_s7 + $0x1c8] sm:$0xff]  ;;  %v376_v54 = vld [vmem:[%s1665_s7 + $0x3a0] sm:$0xff]  ;;  %v414_v59 = vpack.c.bf16 %v314_v52, %v312_v51 }
  0xaa   : > { %v446_v60 = vpack.c.bf16 %v378_v55, %v376_v54  ;;  %v417_v61 = vpack.c.bf16 %v319_v56, %v317_v53 }
  0xb0   : > { %677 = vmatmul.mubr.bf16.gmra.mxu0 %v404_v63  ;;  %805 = vmatmul.mubr.bf16.gmra.mxu1 %v436_v0  ;;  %v316_v63 = vld [vmem:[%s1665_s7 + $0x1c0] sm:$0xff]  ;;  %v318_v0 = vld [vmem:[%s1665_s7 + $0x1d0] sm:$0xff] }
  0xb1   : > { %684 = vmatprep.mubr.bf16.mxu0 %v407_v1  ;;  %812 = vmatprep.mubr.bf16.mxu1 %v439_v2  ;;  %v321_v1 = vld [vmem:[%s1665_s7 + $0x1e8] sm:$0xff]  ;;  %v380_v2 = vld [vmem:[%s1665_s7 + $0x3c0] sm:$0xff]  ;;  %v416_v7 = vpack.c.bf16 %v318_v0, %v316_v63 }
  0xb2   : > { %v448_v8 = vpack.c.bf16 %v382_v3, %v380_v2  ;;  %v419_v9 = vpack.c.bf16 %v323_v4, %v321_v1 }
  0xb8   : > { %685 = vmatmul.mubr.bf16.gmra.mxu0 %v406_v11  ;;  %813 = vmatmul.mubr.bf16.gmra.mxu1 %v438_v12  ;;  %v320_v11 = vld [vmem:[%s1665_s7 + $0x1e0] sm:$0xff]  ;;  %v322_v12 = vld [vmem:[%s1665_s7 + $0x1f0] sm:$0xff] }
  0xb9   : > { %692 = vmatprep.mubr.bf16.mxu0 %v409_v13  ;;  %820 = vmatprep.mubr.bf16.mxu1 %v441_v14  ;;  %v384_v13 = vld [vmem:[%s1665_s7 + $0x3e0] sm:$0xff]  ;;  %v386_v14 = vld [vmem:[%s1665_s7 + $0x3f0] sm:$0xff]  ;;  %v418_v15 = vpack.c.bf16 %v322_v12, %v320_v11  ;;  %s1377_s7 = sshll.u32 %s2507_s2, 1 }
  0xba   : > { %v450_v16 = vpack.c.bf16 %v386_v14, %v384_v13  ;;  %s258_s28 = scalar_lea.vmem %s2494_s5, %s1377_s7 }
  0xc0   : > { %693 = vmatmul.mubr.bf16.gmra.mxu0 %v408_v23  ;;  %821 = vmatmul.mubr.bf16.gmra.mxu1 %v440_v24 }
  0xc1   : > { %700 = vmatprep.mubr.bf16.mxu0 %v411_v25  ;;  %828 = vmatprep.mubr.bf16.mxu1 %v443_v26 }
  0xc8   : > { %701 = vmatmul.mubr.bf16.gmra.mxu0 %v410_v35  ;;  %829 = vmatmul.mubr.bf16.gmra.mxu1 %v442_v36 }
  0xc9   : > { %708 = vmatprep.mubr.bf16.mxu0 %v413_v37  ;;  %836 = vmatprep.mubr.bf16.mxu1 %v445_v38 }
  0xd0   : > { %709 = vmatmul.mubr.bf16.gmra.mxu0 %v412_v47  ;;  %837 = vmatmul.mubr.bf16.gmra.mxu1 %v444_v48 }
  0xd1   : > { %716 = vmatprep.mubr.bf16.mxu0 %v415_v49  ;;  %844 = vmatprep.mubr.bf16.mxu1 %v447_v50 }
  0xd8   : > { %717 = vmatmul.mubr.bf16.gmra.mxu0 %v414_v59  ;;  %845 = vmatmul.mubr.bf16.gmra.mxu1 %v446_v60 }
  0xd9   : > { %724 = vmatprep.mubr.bf16.mxu0 %v417_v61  ;;  %852 = vmatprep.mubr.bf16.mxu1 %v449_v62 }
  0xe0   : > { %725 = vmatmul.mubr.bf16.gmra.mxu0 %v416_v7  ;;  %853 = vmatmul.mubr.bf16.gmra.mxu1 %v448_v8 }
  0xe1   : > { %732 = vmatprep.mubr.bf16.mxu0 %v419_v9  ;;  %860 = vmatprep.mubr.bf16.mxu1 %v451_v10 }
  0xe8   : > { %733 = vmatmul.mubr.bf16.gmra.mxu0 %v418_v15  ;;  %861 = vmatmul.mubr.bf16.gmra.mxu1 %v450_v16 }
 0x130   : > { %v1885_v17 = vpop.f32.mrf.mxu0  ;;  %v1887_v18 = vpop.f32.mrf.mxu1 }
 0x131   : > { %870 = vst.msk [vmem:[%s1883_s23] sm:$0xff] %vm869_vm0, %v1885_v17  ;;  %902 = vst.msk [vmem:[%s1883_s23 + $0x100] sm:$0xff] %vm869_vm0, %v1887_v18 }
 0x132   : > { %v616_v19 = vpop.f32.mrf.mxu0  ;;  %v744_v20 = vpop.f32.mrf.mxu1 }
 0x133   : > { %v1069_v20 = vmul.f32 %v1885_v17, %v1885_v17 }
 0x134   : > { %v1895_v21 = vpop.f32.mrf.mxu0  ;;  %v1897_v22 = vpop.f32.mrf.mxu1 }
 0x135   : > { %871 = vst.msk [vmem:[%s1883_s23 + $0x8] sm:$0xff] %vm869_vm0, %v1895_v21  ;;  %903 = vst.msk [vmem:[%s1883_s23 + $0x108] sm:$0xff] %vm869_vm0, %v1897_v22  ;;  %v1070_v15 = vmul.f32 %v1895_v21, %v1895_v21 }
 0x136   : > { %v619_v23 = vpop.f32.mrf.mxu0  ;;  %v747_v24 = vpop.f32.mrf.mxu1 }
 0x137   : > { %v935_v23 = vsel %vm869_vm0, %v1895_v21, 0.0 }
 0x138   : > { %v1905_v25 = vpop.f32.mrf.mxu0  ;;  %v1907_v26 = vpop.f32.mrf.mxu1 }
 0x139   : > { %872 = vst.msk [vmem:[%s1883_s23 + $0x10] sm:$0xff] %vm869_vm0, %v1905_v25  ;;  %904 = vst.msk [vmem:[%s1883_s23 + $0x110] sm:$0xff] %vm869_vm0, %v1907_v26  ;;  %v1071_v24 = vmul.f32 %v1905_v25, %v1905_v25 }
 0x13a   : > { %v624_v27 = vpop.f32.mrf.mxu0  ;;  %v752_v28 = vpop.f32.mrf.mxu1 }
 0x13c   : > { %v1915_v29 = vpop.f32.mrf.mxu0  ;;  %v1917_v30 = vpop.f32.mrf.mxu1 }
 0x13d   : > { %873 = vst.msk [vmem:[%s1883_s23 + $0x18] sm:$0xff] %vm869_vm0, %v1915_v29  ;;  %905 = vst.msk [vmem:[%s1883_s23 + $0x118] sm:$0xff] %vm869_vm0, %v1917_v30 }
 0x13e   : > { %v627_v31 = vpop.f32.mrf.mxu0  ;;  %v755_v32 = vpop.f32.mrf.mxu1 }
 0x13f   : > { %v934_v31 = vsel %vm869_vm0, %v1885_v17, 0.0  ;;  %v1134_v32 = vsel %vm869_vm0, %v1070_v15, 0.0  ;;  %v1133_v17 = vsel %vm869_vm0, %v1069_v20, 0.0 }
 0x140   : > { %v1925_v33 = vpop.f32.mrf.mxu0  ;;  %v1927_v34 = vpop.f32.mrf.mxu1  ;;  %v936_v21 = vadd.f32 %v935_v23, %v934_v31 }
 0x141   : > { %874 = vst.msk [vmem:[%s1883_s23 + $0x20] sm:$0xff] %vm869_vm0, %v1925_v33  ;;  %906 = vst.msk [vmem:[%s1883_s23 + $0x120] sm:$0xff] %vm869_vm0, %v1927_v34 }
 0x142   : > { %v632_v35 = vpop.f32.mrf.mxu0  ;;  %v760_v36 = vpop.f32.mrf.mxu1 }
 0x143   : > { %v937_v35 = vsel %vm869_vm0, %v1905_v25, 0.0  ;;  %v1072_v36 = vmul.f32 %v1915_v29, %v1915_v29  ;;  %v939_v25 = vsel %vm869_vm0, %v1915_v29, 0.0 }
 0x144   : > { %v1935_v37 = vpop.f32.mrf.mxu0  ;;  %v1937_v38 = vpop.f32.mrf.mxu1 }
 0x145   : > { %875 = vst.msk [vmem:[%s1883_s23 + $0x28] sm:$0xff] %vm869_vm0, %v1935_v37  ;;  %907 = vst.msk [vmem:[%s1883_s23 + $0x128] sm:$0xff] %vm869_vm0, %v1937_v38 }
 0x146   : > { %v635_v39 = vpop.f32.mrf.mxu0  ;;  %v763_v40 = vpop.f32.mrf.mxu1 }
 0x148   : > { %v1945_v41 = vpop.f32.mrf.mxu0  ;;  %v1947_v42 = vpop.f32.mrf.mxu1 }
 0x149   : > { %876 = vst.msk [vmem:[%s1883_s23 + $0x30] sm:$0xff] %vm869_vm0, %v1945_v41  ;;  %908 = vst.msk [vmem:[%s1883_s23 + $0x130] sm:$0xff] %vm869_vm0, %v1947_v42 }
 0x14a   : > { %v640_v43 = vpop.f32.mrf.mxu0  ;;  %v768_v44 = vpop.f32.mrf.mxu1 }
 0x14b   : > { %v1136_v43 = vsel %vm869_vm0, %v1071_v24, 0.0  ;;  %v1073_v44 = vmul.f32 %v1925_v33, %v1925_v33 }
 0x14c   : > { %v1955_v45 = vpop.f32.mrf.mxu0  ;;  %v1957_v46 = vpop.f32.mrf.mxu1 }
 0x14d   : > { %877 = vst.msk [vmem:[%s1883_s23 + $0x38] sm:$0xff] %vm869_vm0, %v1955_v45  ;;  %909 = vst.msk [vmem:[%s1883_s23 + $0x138] sm:$0xff] %vm869_vm0, %v1957_v46 }
 0x14e   : > { %v643_v47 = vpop.f32.mrf.mxu0  ;;  %v771_v48 = vpop.f32.mrf.mxu1 }
 0x14f   : > { %v1135_v47 = vadd.f32 %v1134_v32, %v1133_v17  ;;  %v938_v48 = vadd.f32 %v937_v35, %v936_v21 }
 0x150   : > { %v1965_v49 = vpop.f32.mrf.mxu0  ;;  %v1967_v50 = vpop.f32.mrf.mxu1 }
 0x151   : > { %878 = vst.msk [vmem:[%s1883_s23 + $0x40] sm:$0xff] %vm869_vm0, %v1965_v49  ;;  %910 = vst.msk [vmem:[%s1883_s23 + $0x140] sm:$0xff] %vm869_vm0, %v1967_v50  ;;  %v1137_v29 = vadd.f32 %v1136_v43, %v1135_v47  ;;  %v1077_v32 = vmul.f32 %v1965_v49, %v1965_v49  ;;  %v949_v17 = vsel %vm869_vm0, %v1965_v49, 0.0 }
 0x152   : > { %v648_v51 = vpop.f32.mrf.mxu0  ;;  %v776_v52 = vpop.f32.mrf.mxu1 }
 0x154   : > { %v1975_v53 = vpop.f32.mrf.mxu0  ;;  %v1977_v54 = vpop.f32.mrf.mxu1 }
 0x155   : > { %879 = vst.msk [vmem:[%s1883_s23 + $0x48] sm:$0xff] %vm869_vm0, %v1975_v53  ;;  %911 = vst.msk [vmem:[%s1883_s23 + $0x148] sm:$0xff] %vm869_vm0, %v1977_v54  ;;  %v1078_v43 = vmul.f32 %v1975_v53, %v1975_v53  ;;  %v951_v49 = vsel %vm869_vm0, %v1975_v53, 0.0 }
 0x156   : > { %v651_v55 = vpop.f32.mrf.mxu0  ;;  %v779_v56 = vpop.f32.mrf.mxu1 }
 0x157   : > { %v1138_v55 = vsel %vm869_vm0, %v1072_v36, 0.0  ;;  %v941_v56 = vsel %vm869_vm0, %v1925_v33, 0.0  ;;  %v943_v33 = vsel %vm869_vm0, %v1935_v37, 0.0 }
 0x158   : > { %v1985_v57 = vpop.f32.mrf.mxu0  ;;  %v1987_v58 = vpop.f32.mrf.mxu1 }
 0x159   : > { %880 = vst.msk [vmem:[%s1883_s23 + $0x50] sm:$0xff] %vm869_vm0, %v1985_v57  ;;  %912 = vst.msk [vmem:[%s1883_s23 + $0x150] sm:$0xff] %vm869_vm0, %v1987_v58 }
 0x15a   : > { %v656_v59 = vpop.f32.mrf.mxu0  ;;  %v784_v60 = vpop.f32.mrf.mxu1 }
 0x15b   : > { %v1074_v59 = vmul.f32 %v1935_v37, %v1935_v37  ;;  %v940_v60 = vadd.f32 %v939_v25, %v938_v48  ;;  %v1148_v48 = vsel %vm869_vm0, %v1077_v32, 0.0 }
 0x15c   : > { %v1995_v61 = vpop.f32.mrf.mxu0  ;;  %v1997_v62 = vpop.f32.mrf.mxu1 }
 0x15d   : > { %881 = vst.msk [vmem:[%s1883_s23 + $0x58] sm:$0xff] %vm869_vm0, %v1995_v61  ;;  %913 = vst.msk [vmem:[%s1883_s23 + $0x158] sm:$0xff] %vm869_vm0, %v1997_v62  ;;  %v1142_v15 = vsel %vm869_vm0, %v1074_v59, 0.0 }
 0x15e   : > { %v659_v63 = vpop.f32.mrf.mxu0  ;;  %v787_v0 = vpop.f32.mrf.mxu1 }
 0x160   : > { %v2005_v1 = vpop.f32.mrf.mxu0  ;;  %v2007_v2 = vpop.f32.mrf.mxu1 }
 0x161   : > { %882 = vst.msk [vmem:[%s1883_s23 + $0x60] sm:$0xff] %vm869_vm0, %v2005_v1  ;;  %914 = vst.msk [vmem:[%s1883_s23 + $0x160] sm:$0xff] %vm869_vm0, %v2007_v2 }
 0x162   : > { %v664_v3 = vpop.f32.mrf.mxu0  ;;  %v792_v4 = vpop.f32.mrf.mxu1 }
 0x163   : > { %v1140_v3 = vsel %vm869_vm0, %v1073_v44, 0.0  ;;  %v1075_v4 = vmul.f32 %v1945_v41, %v1945_v41 }
 0x164   : > { %v2015_v5 = vpop.f32.mrf.mxu0  ;;  %v2017_v6 = vpop.f32.mrf.mxu1 }
 0x165   : > { %883 = vst.msk [vmem:[%s1883_s23 + $0x68] sm:$0xff] %vm869_vm0, %v2015_v5  ;;  %915 = vst.msk [vmem:[%s1883_s23 + $0x168] sm:$0xff] %vm869_vm0, %v2017_v6  ;;  %v1144_v31 = vsel %vm869_vm0, %v1075_v4, 0.0 }
 0x166   : > { %v667_v7 = vpop.f32.mrf.mxu0  ;;  %v795_v8 = vpop.f32.mrf.mxu1 }
 0x167   : > { %v1139_v7 = vadd.f32 %v1138_v55, %v1137_v29  ;;  %v942_v8 = vadd.f32 %v941_v56, %v940_v60  ;;  %v1079_v55 = vmul.f32 %v1985_v57, %v1985_v57 }
 0x168   : > { %v2025_v9 = vpop.f32.mrf.mxu0  ;;  %v2027_v10 = vpop.f32.mrf.mxu1 }
 0x169   : > { %884 = vst.msk [vmem:[%s1883_s23 + $0x70] sm:$0xff] %vm869_vm0, %v2025_v9  ;;  %916 = vst.msk [vmem:[%s1883_s23 + $0x170] sm:$0xff] %vm869_vm0, %v2027_v10  ;;  %v1141_v37 = vadd.f32 %v1140_v3, %v1139_v7  ;;  %v944_v20 = vadd.f32 %v943_v33, %v942_v8  ;;  %v1080_v3 = vmul.f32 %v1995_v61, %v1995_v61  ;;  %v1152_v8 = vsel %vm869_vm0, %v1079_v55, 0.0 }
 0x16a   : > { %v672_v11 = vpop.f32.mrf.mxu0  ;;  %v800_v12 = vpop.f32.mrf.mxu1 }
 0x16b   : > { %v1143_v35 = vadd.f32 %v1142_v15, %v1141_v37  ;;  %v1081_v15 = vmul.f32 %v2005_v1, %v2005_v1 }
 0x16c   : > { %v2035_v13 = vpop.f32.mrf.mxu0  ;;  %v2037_v14 = vpop.f32.mrf.mxu1 }
 0x16d   : > { %885 = vst.msk [vmem:[%s1883_s23 + $0x78] sm:$0xff] %vm869_vm0, %v2035_v13  ;;  %917 = vst.msk [vmem:[%s1883_s23 + $0x178] sm:$0xff] %vm869_vm0, %v2037_v14 }
 0x16e   : > { %v675_v16 = vpop.f32.mrf.mxu0  ;;  %v803_v19 = vpop.f32.mrf.mxu1 }
 0x16f   : > { %v945_v16 = vsel %vm869_vm0, %v1945_v41, 0.0  ;;  %v1076_v19 = vmul.f32 %v1955_v45, %v1955_v45  ;;  %v947_v41 = vsel %vm869_vm0, %v1955_v45, 0.0  ;;  %v1145_v45 = vadd.f32 %v1144_v31, %v1143_v35 }
 0x170   : > { %v2053_v27 = vpop.f32.mrf.mxu0  ;;  %v2055_v28 = vpop.f32.mrf.mxu1  ;;  %v946_v36 = vadd.f32 %v945_v16, %v944_v20  ;;  %v1082_v31 = vmul.f32 %v2015_v5, %v2015_v5 }
 0x171   : > { %886 = vst.msk [vmem:[%s1883_s23 + $0x80] sm:$0xff] %vm869_vm0, %v2053_v27  ;;  %918 = vst.msk [vmem:[%s1883_s23 + $0x180] sm:$0xff] %vm869_vm0, %v2055_v28 }
 0x172   : > { %v680_v39 = vpop.f32.mrf.mxu0  ;;  %v808_v40 = vpop.f32.mrf.mxu1  ;;  %v948_v25 = vadd.f32 %v947_v41, %v946_v36  ;;  %v1156_v36 = vsel %vm869_vm0, %v1081_v15, 0.0 }
 0x173   : > { %v1146_v40 = vsel %vm869_vm0, %v1076_v19, 0.0 }
 0x174   : > { %v2076_v51 = vpop.f32.mrf.mxu0  ;;  %v2078_v52 = vpop.f32.mrf.mxu1  ;;  %v1147_v56 = vadd.f32 %v1146_v40, %v1145_v45  ;;  %v950_v59 = vadd.f32 %v949_v17, %v948_v25  ;;  %v1083_v40 = vmul.f32 %v2025_v9, %v2025_v9 }
 0x175   : > { %887 = vst.msk [vmem:[%s1883_s23 + $0x88] sm:$0xff] %vm869_vm0, %v2076_v51  ;;  %919 = vst.msk [vmem:[%s1883_s23 + $0x188] sm:$0xff] %vm869_vm0, %v2078_v52 }
 0x176   : > { %v683_v63 = vpop.f32.mrf.mxu0  ;;  %v811_v0 = vpop.f32.mrf.mxu1  ;;  %v1149_v53 = vadd.f32 %v1148_v48, %v1147_v56  ;;  %v952_v33 = vadd.f32 %v951_v49, %v950_v59  ;;  %v1084_v48 = vmul.f32 %v2035_v13, %v2035_v13  ;;  %v1160_v59 = vsel %vm869_vm0, %v1083_v40, 0.0 }
 0x177   : > { %v1150_v63 = vsel %vm869_vm0, %v1078_v43, 0.0  ;;  %v953_v0 = vsel %vm869_vm0, %v1985_v57, 0.0  ;;  %v955_v57 = vsel %vm869_vm0, %v1995_v61, 0.0 }
 0x178   : > { %v2096_v11 = vpop.f32.mrf.mxu0  ;;  %v2098_v12 = vpop.f32.mrf.mxu1  ;;  %v1151_v16 = vadd.f32 %v1150_v63, %v1149_v53  ;;  %v954_v19 = vadd.f32 %v953_v0, %v952_v33  ;;  %v1085_v63 = vmul.f32 %v2053_v27, %v2053_v27 }
 0x179   : > { %888 = vst.msk [vmem:[%s1883_s23 + $0x90] sm:$0xff] %vm869_vm0, %v2096_v11  ;;  %920 = vst.msk [vmem:[%s1883_s23 + $0x190] sm:$0xff] %vm869_vm0, %v2098_v12 }
 0x17a   : > { %v688_v23 = vpop.f32.mrf.mxu0  ;;  %v816_v24 = vpop.f32.mrf.mxu1  ;;  %v1153_v61 = vadd.f32 %v1152_v8, %v1151_v16  ;;  %v956_v41 = vadd.f32 %v955_v57, %v954_v19  ;;  %v1086_v8 = vmul.f32 %v2076_v51, %v2076_v51  ;;  %v1164_v19 = vsel %vm869_vm0, %v1085_v63, 0.0 }
 0x17b   : > { %v1154_v23 = vsel %vm869_vm0, %v1080_v3, 0.0  ;;  %v957_v24 = vsel %vm869_vm0, %v2005_v1, 0.0  ;;  %v959_v1 = vsel %vm869_vm0, %v2015_v5, 0.0 }
 0x17c   : > { %v2116_v21 = vpop.f32.mrf.mxu0  ;;  %v2118_v39 = vpop.f32.mrf.mxu1  ;;  %v1155_v17 = vadd.f32 %v1154_v23, %v1153_v61  ;;  %v958_v43 = vadd.f32 %v957_v24, %v956_v41  ;;  %v967_v23 = vsel %vm869_vm0, %v2076_v51, 0.0 }
 0x17d   : > { %889 = vst.msk [vmem:[%s1883_s23 + $0x98] sm:$0xff] %vm869_vm0, %v2116_v21  ;;  %921 = vst.msk [vmem:[%s1883_s23 + $0x198] sm:$0xff] %vm869_vm0, %v2118_v39 }
 0x17e   : > { %v691_v44 = vpop.f32.mrf.mxu0  ;;  %v819_v47 = vpop.f32.mrf.mxu1  ;;  %v1157_v5 = vadd.f32 %v1156_v36, %v1155_v17  ;;  %v960_v49 = vadd.f32 %v959_v1, %v958_v43  ;;  %v1088_v36 = vmul.f32 %v2116_v21, %v2116_v21 }
 0x17f   : > { %v1158_v44 = vsel %vm869_vm0, %v1082_v31, 0.0  ;;  %v961_v47 = vsel %vm869_vm0, %v2025_v9, 0.0  ;;  %v963_v9 = vsel %vm869_vm0, %v2035_v13, 0.0 }
 0x180   : > { %v2136_v29 = vpop.f32.mrf.mxu0  ;;  %v2138_v60 = vpop.f32.mrf.mxu1  ;;  %v1159_v0 = vadd.f32 %v1158_v44, %v1157_v5  ;;  %v962_v3 = vadd.f32 %v961_v47, %v960_v49  ;;  %v971_v44 = vsel %vm869_vm0, %v2116_v21, 0.0 }
 0x181   : > { %890 = vst.msk [vmem:[%s1883_s23 + $0xa0] sm:$0xff] %vm869_vm0, %v2136_v29  ;;  %922 = vst.msk [vmem:[%s1883_s23 + $0x1a0] sm:$0xff] %vm869_vm0, %v2138_v60 }
 0x182   : > { %v696_v4 = vpop.f32.mrf.mxu0  ;;  %v824_v7 = vpop.f32.mrf.mxu1  ;;  %v1161_v13 = vadd.f32 %v1160_v59, %v1159_v0  ;;  %v964_v57 = vadd.f32 %v963_v9, %v962_v3 }
 0x183   : > { %v1162_v4 = vsel %vm869_vm0, %v1084_v48, 0.0  ;;  %v965_v7 = vsel %vm869_vm0, %v2053_v27, 0.0  ;;  %v1087_v27 = vmul.f32 %v2096_v11, %v2096_v11 }
 0x184   : > { %v2156_v37 = vpop.f32.mrf.mxu0  ;;  %v2158_v20 = vpop.f32.mrf.mxu1  ;;  %v1163_v24 = vadd.f32 %v1162_v4, %v1161_v13  ;;  %v966_v31 = vadd.f32 %v965_v7, %v964_v57 }
 0x185   : > { %891 = vst.msk [vmem:[%s1883_s23 + $0xa8] sm:$0xff] %vm869_vm0, %v2156_v37  ;;  %923 = vst.msk [vmem:[%s1883_s23 + $0x1a8] sm:$0xff] %vm869_vm0, %v2158_v20  ;;  %v1168_v43 = vsel %vm869_vm0, %v1087_v27, 0.0  ;;  %v1090_v59 = vmul.f32 %v2156_v37, %v2156_v37  ;;  %v975_v4 = vsel %vm869_vm0, %v2156_v37, 0.0 }
 0x186   : > { %v699_v32 = vpop.f32.mrf.mxu0  ;;  %v827_v35 = vpop.f32.mrf.mxu1  ;;  %v1165_v51 = vadd.f32 %v1164_v19, %v1163_v24  ;;  %v968_v1 = vadd.f32 %v967_v23, %v966_v31 }
 0x187   : > { %v1166_v32 = vsel %vm869_vm0, %v1086_v8, 0.0  ;;  %v969_v35 = vsel %vm869_vm0, %v2096_v11, 0.0  ;;  %v1089_v11 = vmul.f32 %v2136_v29, %v2136_v29 }
 0x188   : > { %v2176_v45 = vpop.f32.mrf.mxu0  ;;  %v2178_v25 = vpop.f32.mrf.mxu1  ;;  %v1167_v47 = vadd.f32 %v1166_v32, %v1165_v51  ;;  %v970_v48 = vadd.f32 %v969_v35, %v968_v1 }
 0x189   : > { %892 = vst.msk [vmem:[%s1883_s23 + $0xb0] sm:$0xff] %vm869_vm0, %v2176_v45  ;;  %924 = vst.msk [vmem:[%s1883_s23 + $0x1b0] sm:$0xff] %vm869_vm0, %v2178_v25  ;;  %v1172_v3 = vsel %vm869_vm0, %v1089_v11, 0.0 }
 0x18a   : > { %v704_v55 = vpop.f32.mrf.mxu0  ;;  %v832_v56 = vpop.f32.mrf.mxu1  ;;  %v1169_v21 = vadd.f32 %v1168_v43, %v1167_v47  ;;  %v972_v9 = vadd.f32 %v971_v44, %v970_v48 }
 0x18b   : > { %v1170_v55 = vsel %vm869_vm0, %v1088_v36, 0.0  ;;  %v973_v56 = vsel %vm869_vm0, %v2136_v29, 0.0  ;;  %v1091_v29 = vmul.f32 %v2176_v45, %v2176_v45 }
 0x18c   : > { %v705_v53 = vpop.f32.mrf.mxu0  ;;  %v2196_v33 = vpop.f32.mrf.mxu1  ;;  %v1171_v7 = vadd.f32 %v1170_v55, %v1169_v21  ;;  %v974_v8 = vadd.f32 %v973_v56, %v972_v9 }
 0x18d   : > { %893 = vst.msk [vmem:[%s1883_s23 + $0xb8] sm:$0xff] %vm869_vm0, %v705_v53  ;;  %925 = vst.msk [vmem:[%s1883_s23 + $0x1b8] sm:$0xff] %vm869_vm0, %v2196_v33  ;;  %v1092_v19 = vmul.f32 %v705_v53, %v705_v53  ;;  %v1176_v31 = vsel %vm869_vm0, %v1091_v29, 0.0  ;;  %v979_v32 = vsel %vm869_vm0, %v705_v53, 0.0 }
 0x18e   : > { %v707_v15 = vpop.f32.mrf.mxu0  ;;  %v835_v16 = vpop.f32.mrf.mxu1  ;;  %v1173_v37 = vadd.f32 %v1172_v3, %v1171_v7  ;;  %v976_v23 = vadd.f32 %v975_v4, %v974_v8 }
 0x18f   : > { %v1174_v15 = vsel %vm869_vm0, %v1090_v59, 0.0  ;;  %v977_v16 = vsel %vm869_vm0, %v2176_v45, 0.0 }
 0x190   : > { %v710_v61 = vpop.f32.mrf.mxu0  ;;  %v2213_v41 = vpop.f32.mrf.mxu1  ;;  %v1175_v36 = vadd.f32 %v1174_v15, %v1173_v37  ;;  %v978_v51 = vadd.f32 %v977_v16, %v976_v23 }
 0x191   : > { %894 = vst.msk [vmem:[%s1883_s23 + $0xc0] sm:$0xff] %vm869_vm0, %v710_v61  ;;  %926 = vst.msk [vmem:[%s1883_s23 + $0x1c0] sm:$0xff] %vm869_vm0, %v2213_v41  ;;  %v1093_v35 = vmul.f32 %v710_v61, %v710_v61 }
 0x192   : > { %v712_v40 = vpop.f32.mrf.mxu0  ;;  %v840_v17 = vpop.f32.mrf.mxu1  ;;  %v1177_v44 = vadd.f32 %v1176_v31, %v1175_v36  ;;  %v980_v53 = vadd.f32 %v979_v32, %v978_v51 }
 0x193   : > { %v1178_v40 = vsel %vm869_vm0, %v1092_v19, 0.0  ;;  %v981_v17 = vsel %vm869_vm0, %v710_v61, 0.0  ;;  %v1180_v48 = vsel %vm869_vm0, %v1093_v35, 0.0 }
 0x194   : > { %v713_v5 = vpop.f32.mrf.mxu0  ;;  %v2230_v49 = vpop.f32.mrf.mxu1  ;;  %v1179_v59 = vadd.f32 %v1178_v40, %v1177_v44  ;;  %v982_v21 = vadd.f32 %v981_v17, %v980_v53 }
 0x195   : > { %895 = vst.msk [vmem:[%s1883_s23 + $0xc8] sm:$0xff] %vm869_vm0, %v713_v5  ;;  %927 = vst.msk [vmem:[%s1883_s23 + $0x1c8] sm:$0xff] %vm869_vm0, %v2230_v49  ;;  %v1094_v43 = vmul.f32 %v713_v5, %v713_v5  ;;  %v983_v55 = vsel %vm869_vm0, %v713_v5, 0.0 }
 0x196   : > { %v715_v63 = vpop.f32.mrf.mxu0  ;;  %v843_v0 = vpop.f32.mrf.mxu1  ;;  %v1181_v4 = vadd.f32 %v1180_v48, %v1179_v59  ;;  %v984_v5 = vadd.f32 %v983_v55, %v982_v21 }
 0x197   : > { %v1182_v63 = vsel %vm869_vm0, %v1094_v43, 0.0 }
 0x198   : > { %v718_v13 = vpop.f32.mrf.mxu0  ;;  %v2247_v57 = vpop.f32.mrf.mxu1  ;;  %v1183_v19 = vadd.f32 %v1182_v63, %v1181_v4 }
 0x199   : > { %896 = vst.msk [vmem:[%s1883_s23 + $0xd0] sm:$0xff] %vm869_vm0, %v718_v13  ;;  %928 = vst.msk [vmem:[%s1883_s23 + $0x1d0] sm:$0xff] %vm869_vm0, %v2247_v57  ;;  %v1095_v56 = vmul.f32 %v718_v13, %v718_v13  ;;  %v985_v0 = vsel %vm869_vm0, %v718_v13, 0.0 }
 0x19a   : > { %v720_v27 = vpop.f32.mrf.mxu0  ;;  %v848_v24 = vpop.f32.mrf.mxu1  ;;  %v986_v37 = vadd.f32 %v985_v0, %v984_v5  ;;  %v1101_v5 = vmul.f32 %v1887_v18, %v1887_v18 }
 0x19b   : > { %v1184_v8 = vsel %vm869_vm0, %v1095_v56, 0.0 }
 0x19c   : > { %v721_v45 = vpop.f32.mrf.mxu0  ;;  %v2259_v1 = vpop.f32.mrf.mxu1  ;;  %v1185_v32 = vadd.f32 %v1184_v8, %v1183_v19 }
 0x19d   : > { %897 = vst.msk [vmem:[%s1883_s23 + $0xd8] sm:$0xff] %vm869_vm0, %v721_v45  ;;  %929 = vst.msk [vmem:[%s1883_s23 + $0x1d8] sm:$0xff] %vm869_vm0, %v2259_v1  ;;  %v1096_v3 = vmul.f32 %v721_v45, %v721_v45  ;;  %v987_v15 = vsel %vm869_vm0, %v721_v45, 0.0 }
 0x19e   : > { %v723_v11 = vpop.f32.mrf.mxu0  ;;  %v851_v47 = vpop.f32.mrf.mxu1  ;;  %v988_v35 = vadd.f32 %v987_v15, %v986_v37  ;;  %v997_v37 = vsel %vm869_vm0, %v1887_v18, 0.0  ;;  %v1001_v18 = vsel %vm869_vm0, %v1907_v26, 0.0 }
 0x19f   : > { %v1186_v27 = vsel %vm869_vm0, %v1096_v3, 0.0 }
 0x1a0   : > { %v726_v61 = vpop.f32.mrf.mxu0  ;;  %v2270_v9 = vpop.f32.mrf.mxu1  ;;  %v1187_v17 = vadd.f32 %v1186_v27, %v1185_v32  ;;  %v1196_v32 = vsel %vm869_vm0, %v1101_v5, 0.0 }
 0x1a1   : > { %898 = vst.msk [vmem:[%s1883_s23 + $0xe0] sm:$0xff] %vm869_vm0, %v726_v61  ;;  %930 = vst.msk [vmem:[%s1883_s23 + $0x1e0] sm:$0xff] %vm869_vm0, %v2270_v9  ;;  %v1097_v16 = vmul.f32 %v726_v61, %v726_v61  ;;  %v989_v24 = vsel %vm869_vm0, %v726_v61, 0.0 }
 0x1a2   : > { %v728_v29 = vpop.f32.mrf.mxu0  ;;  %v856_v7 = vpop.f32.mrf.mxu1  ;;  %v990_v43 = vadd.f32 %v989_v24, %v988_v35  ;;  %v999_v35 = vsel %vm869_vm0, %v1897_v22, 0.0 }
 0x1a3   : > { %v1188_v45 = vsel %vm869_vm0, %v1097_v16, 0.0 }
 0x1a4   : > { %v729_v13 = vpop.f32.mrf.mxu0  ;;  %v2281_v23 = vpop.f32.mrf.mxu1  ;;  %v1189_v55 = vadd.f32 %v1188_v45, %v1187_v17  ;;  %v1104_v17 = vmul.f32 %v1917_v30, %v1917_v30 }
 0x1a5   : > { %899 = vst.msk [vmem:[%s1883_s23 + $0xe8] sm:$0xff] %vm869_vm0, %v729_v13  ;;  %v1098_v31 = vmul.f32 %v729_v13, %v729_v13  ;;  %931 = vst.msk [vmem:[%s1883_s23 + $0x1e8] sm:$0xff] %vm869_vm0, %v2281_v23  ;;  %v991_v40 = vsel %vm869_vm0, %v729_v13, 0.0  ;;  %v1102_v13 = vmul.f32 %v1897_v22, %v1897_v22  ;;  %v1003_v22 = vsel %vm869_vm0, %v1917_v30, 0.0 }
 0x1a6   : > { %v731_v36 = vpop.f32.mrf.mxu0  ;;  %v859_v51 = vpop.f32.mrf.mxu1  ;;  %v992_v56 = vadd.f32 %v991_v40, %v990_v43  ;;  %v1007_v30 = vsel %vm869_vm0, %v1937_v38, 0.0 }
 0x1a7   : > { %v1190_v11 = vsel %vm869_vm0, %v1098_v31, 0.0  ;;  %v1103_v36 = vmul.f32 %v1907_v26, %v1907_v26  ;;  %v1198_v40 = vsel %vm869_vm0, %v1102_v13, 0.0  ;;  %v1005_v26 = vsel %vm869_vm0, %v1927_v34, 0.0 }
 0x1a8   : > { %v734_v44 = vpop.f32.mrf.mxu0  ;;  %v2292_v53 = vpop.f32.mrf.mxu1  ;;  %v1191_v63 = vadd.f32 %v1190_v11, %v1189_v55 }
 0x1a9   : > { %900 = vst.msk [vmem:[%s1883_s23 + $0xf0] sm:$0xff] %vm869_vm0, %v734_v44  ;;  %v993_v47 = vsel %vm869_vm0, %v734_v44, 0.0  ;;  %v1099_v48 = vmul.f32 %v734_v44, %v734_v44  ;;  %932 = vst.msk [vmem:[%s1883_s23 + $0x1f0] sm:$0xff] %vm869_vm0, %v2292_v53  ;;  %v1200_v11 = vsel %vm869_vm0, %v1103_v36, 0.0  ;;  %v1111_v36 = vmul.f32 %v1987_v58, %v1987_v58 }
 0x1aa   : > { %v736_v59 = vpop.f32.mrf.mxu0  ;;  %v864_v21 = vpop.f32.mrf.mxu1  ;;  %v994_v0 = vadd.f32 %v993_v47, %v992_v56  ;;  %v1105_v47 = vmul.f32 %v1927_v34, %v1927_v34  ;;  %v1202_v56 = vsel %vm869_vm0, %v1104_v17, 0.0  ;;  %v1009_v34 = vsel %vm869_vm0, %v1947_v42, 0.0 }
 0x1ab   : > { %v1192_v61 = vsel %vm869_vm0, %v1099_v48, 0.0  ;;  %v1106_v59 = vmul.f32 %v1937_v38, %v1937_v38  ;;  %v1011_v38 = vsel %vm869_vm0, %v1957_v46, 0.0 }
 0x1ac   : > { %v737_v3 = vpop.f32.mrf.mxu0  ;;  %v2302_v4 = vpop.f32.mrf.mxu1  ;;  %v1193_v8 = vadd.f32 %v1192_v61, %v1191_v63  ;;  %v1204_v63 = vsel %vm869_vm0, %v1105_v47, 0.0 }
 0x1ad   : > { %901 = vst.msk [vmem:[%s1883_s23 + $0xf8] sm:$0xff] %vm869_vm0, %v737_v3  ;;  %v995_v29 = vsel %vm869_vm0, %v737_v3, 0.0  ;;  %v1100_v7 = vmul.f32 %v737_v3, %v737_v3  ;;  %933 = vst.msk [vmem:[%s1883_s23 + $0x1f8] sm:$0xff] %vm869_vm0, %v2302_v4 }
 0x1ae   : > { %v996_v15 = vadd.f32 %v995_v29, %v994_v0  ;;  %v739_v16 = vpop.f32.mrf.mxu0  ;;  %v867_v19 = vpop.f32.mrf.mxu1  ;;  %v1107_v0 = vmul.f32 %v1947_v42, %v1947_v42  ;;  %v1206_v29 = vsel %vm869_vm0, %v1106_v59, 0.0  ;;  %v1013_v42 = vsel %vm869_vm0, %v1967_v50, 0.0 }
 0x1af   : > { %v1194_v27 = vsel %vm869_vm0, %v1100_v7, 0.0  ;;  %v1108_v7 = vmul.f32 %v1957_v46, %v1957_v46  ;;  %v1109_v19 = vmul.f32 %v1967_v50, %v1967_v50  ;;  %v1015_v46 = vsel %vm869_vm0, %v1977_v54, 0.0 }
 0x1b0   : > { %v998_v24 = vadd.f32 %v997_v37, %v996_v15  ;;  %v1195_v31 = vadd.f32 %v1194_v27, %v1193_v8  ;;  %v1208_v16 = vsel %vm869_vm0, %v1107_v0, 0.0  ;;  %v1017_v50 = vsel %vm869_vm0, %v1987_v58, 0.0 }
 0x1b1   : > { %v1210_v27 = vsel %vm869_vm0, %v1108_v7, 0.0  ;;  %v1021_v58 = vsel %vm869_vm0, %v2007_v2, 0.0  ;;  %v1116_v0 = vmul.f32 %v2037_v14, %v2037_v14 }
 0x1b2   : > { %v1000_v51 = vadd.f32 %v999_v35, %v998_v24  ;;  %v1197_v45 = vadd.f32 %v1196_v32, %v1195_v31  ;;  %v1110_v24 = vmul.f32 %v1977_v54, %v1977_v54  ;;  %v1212_v35 = vsel %vm869_vm0, %v1109_v19, 0.0 }
 0x1b3   : > { %v1019_v54 = vsel %vm869_vm0, %v1997_v62, 0.0 }
 0x1b4   : > { %v1002_v43 = vadd.f32 %v1001_v18, %v1000_v51  ;;  %v1199_v44 = vadd.f32 %v1198_v40, %v1197_v45  ;;  %v1214_v40 = vsel %vm869_vm0, %v1110_v24, 0.0  ;;  %v1112_v18 = vmul.f32 %v1997_v62, %v1997_v62 }
 0x1b5   : > { %v1023_v62 = vsel %vm869_vm0, %v2017_v6, 0.0 }
 0x1b6   : > { %v1004_v48 = vadd.f32 %v1003_v22, %v1002_v43  ;;  %v1201_v55 = vadd.f32 %v1200_v11, %v1199_v44  ;;  %v1216_v44 = vsel %vm869_vm0, %v1111_v36, 0.0  ;;  %v1113_v11 = vmul.f32 %v2007_v2, %v2007_v2 }
 0x1b7   : > { %v1025_v2 = vsel %vm869_vm0, %v2027_v10, 0.0  ;;  %v1121_v36 = vmul.f32 %v2138_v60, %v2138_v60 }
 0x1b8   : > { %v1006_v21 = vadd.f32 %v1005_v26, %v1004_v48  ;;  %v1203_v61 = vadd.f32 %v1202_v56, %v1201_v55  ;;  %v1218_v48 = vsel %vm869_vm0, %v1112_v18, 0.0  ;;  %v1114_v55 = vmul.f32 %v2017_v6, %v2017_v6 }
 0x1b9   : > { %v1220_v59 = vsel %vm869_vm0, %v1113_v11, 0.0  ;;  %v1027_v6 = vsel %vm869_vm0, %v2037_v14, 0.0  ;;  %v1031_v14 = vsel %vm869_vm0, %v2078_v52, 0.0 }
 0x1ba   : > { %v1008_v3 = vadd.f32 %v1007_v30, %v1006_v21  ;;  %v1205_v5 = vadd.f32 %v1204_v63, %v1203_v61  ;;  %v1115_v21 = vmul.f32 %v2027_v10, %v2027_v10  ;;  %v1222_v30 = vsel %vm869_vm0, %v1114_v55, 0.0 }
 0x1bb   : > { %v1029_v10 = vsel %vm869_vm0, %v2055_v28, 0.0 }
 0x1bc   : > { %v1010_v8 = vadd.f32 %v1009_v34, %v1008_v3  ;;  %v1207_v15 = vadd.f32 %v1206_v29, %v1205_v5  ;;  %v1224_v29 = vsel %vm869_vm0, %v1115_v21, 0.0  ;;  %v1117_v34 = vmul.f32 %v2055_v28, %v2055_v28 }
 0x1bd   : > { %v1033_v28 = vsel %vm869_vm0, %v2098_v12, 0.0  ;;  %v1126_v21 = vmul.f32 %v2230_v49, %v2230_v49 }
 0x1be   : > { %v1012_v37 = vadd.f32 %v1011_v38, %v1010_v8  ;;  %v1209_v13 = vadd.f32 %v1208_v16, %v1207_v15  ;;  %v1226_v15 = vsel %vm869_vm0, %v1116_v0, 0.0  ;;  %v1118_v16 = vmul.f32 %v2078_v52, %v2078_v52 }
 0x1bf   : > { %v1035_v52 = vsel %vm869_vm0, %v2118_v39, 0.0 }
 0x1c0   : > { %v1211_v31 = vadd.f32 %v1210_v27, %v1209_v13  ;;  %v1014_v32 = vadd.f32 %v1013_v42, %v1012_v37  ;;  %v1228_v37 = vsel %vm869_vm0, %v1117_v34, 0.0  ;;  %v1119_v13 = vmul.f32 %v2098_v12, %v2098_v12 }
 0x1c1   : > { %v1230_v24 = vsel %vm869_vm0, %v1118_v16, 0.0  ;;  %v1037_v12 = vsel %vm869_vm0, %v2138_v60, 0.0  ;;  %v1041_v60 = vsel %vm869_vm0, %v2178_v25, 0.0 }
 0x1c2   : > { %v1016_v51 = vadd.f32 %v1015_v46, %v1014_v32  ;;  %v1213_v45 = vadd.f32 %v1212_v35, %v1211_v31  ;;  %v1120_v31 = vmul.f32 %v2118_v39, %v2118_v39  ;;  %v1232_v46 = vsel %vm869_vm0, %v1119_v13, 0.0 }
 0x1c3   : > { %v1039_v39 = vsel %vm869_vm0, %v2158_v20, 0.0  ;;  %v1131_v13 = vmul.f32 %v2292_v53, %v2292_v53 }
 0x1c4   : > { %v1018_v17 = vadd.f32 %v1017_v50, %v1016_v51  ;;  %v1215_v43 = vadd.f32 %v1214_v40, %v1213_v45  ;;  %v1234_v40 = vsel %vm869_vm0, %v1120_v31, 0.0  ;;  %v1122_v50 = vmul.f32 %v2158_v20, %v2158_v20 }
 0x1c5   : > { %v1043_v20 = vsel %vm869_vm0, %v2196_v33, 0.0 }
 0x1c6   : > { %v1020_v22 = vadd.f32 %v1019_v54, %v1018_v17  ;;  %v1217_v47 = vadd.f32 %v1216_v44, %v1215_v43  ;;  %v1236_v43 = vsel %vm869_vm0, %v1121_v36, 0.0  ;;  %v1123_v44 = vmul.f32 %v2178_v25, %v2178_v25 }
 0x1c7   : > { %v1045_v25 = vsel %vm869_vm0, %v2213_v41, 0.0 }
 0x1c8   : > { %v1022_v56 = vadd.f32 %v1021_v58, %v1020_v22  ;;  %v1219_v26 = vadd.f32 %v1218_v48, %v1217_v47  ;;  %v1238_v22 = vsel %vm869_vm0, %v1122_v50, 0.0  ;;  %v1124_v47 = vmul.f32 %v2196_v33, %v2196_v33 }
 0x1c9   : > { %v1240_v55 = vsel %vm869_vm0, %v1123_v44, 0.0  ;;  %v1047_v33 = vsel %vm869_vm0, %v2230_v49, 0.0  ;;  %v1051_v49 = vsel %vm869_vm0, %v2259_v1, 0.0 }
 0x1ca   : > { %v1024_v61 = vadd.f32 %v1023_v62, %v1022_v56  ;;  %v1221_v63 = vadd.f32 %v1220_v59, %v1219_v26  ;;  %v1125_v56 = vmul.f32 %v2213_v41, %v2213_v41  ;;  %v1242_v62 = vsel %vm869_vm0, %v1124_v47, 0.0 }
 0x1cb   : > { %v1049_v41 = vsel %vm869_vm0, %v2247_v57, 0.0 }
 0x1cc   : > { %v1026_v3 = vadd.f32 %v1025_v2, %v1024_v61  ;;  %v1223_v5 = vadd.f32 %v1222_v30, %v1221_v63  ;;  %v1244_v30 = vsel %vm869_vm0, %v1125_v56, 0.0  ;;  %v1127_v2 = vmul.f32 %v2247_v57, %v2247_v57 }
 0x1cd   : > { %v1053_v57 = vsel %vm869_vm0, %v2270_v9, 0.0 }
 0x1ce   : > { %v1028_v7 = vadd.f32 %v1027_v6, %v1026_v3  ;;  %v1225_v8 = vadd.f32 %v1224_v29, %v1223_v5  ;;  %v1246_v5 = vsel %vm869_vm0, %v1126_v21, 0.0  ;;  %v1128_v29 = vmul.f32 %v2259_v1, %v2259_v1 }
 0x1cf   : > { %v1055_v1 = vsel %vm869_vm0, %v2281_v23, 0.0 }
 0x1d0   : > { %v1030_v38 = vadd.f32 %v1029_v10, %v1028_v7  ;;  %v1227_v19 = vadd.f32 %v1226_v15, %v1225_v8  ;;  %v1248_v7 = vsel %vm869_vm0, %v1127_v2, 0.0  ;;  %v1129_v8 = vmul.f32 %v2270_v9, %v2270_v9 }
 0x1d1   : > { %v1250_v16 = vsel %vm869_vm0, %v1128_v29, 0.0  ;;  %v1057_v9 = vsel %vm869_vm0, %v2292_v53, 0.0 }
 0x1d2   : > { %v1032_v27 = vadd.f32 %v1031_v14, %v1030_v38  ;;  %v1229_v42 = vadd.f32 %v1228_v37, %v1227_v19  ;;  %v1130_v38 = vmul.f32 %v2281_v23, %v2281_v23  ;;  %v1252_v14 = vsel %vm869_vm0, %v1129_v8, 0.0 }
 0x1d3   : > { %v1059_v23 = vsel %vm869_vm0, %v2302_v4, 0.0 }
 0x1d4   : > { %v1231_v32 = vadd.f32 %v1230_v24, %v1229_v42  ;;  %v1034_v35 = vadd.f32 %v1033_v28, %v1032_v27  ;;  %v1254_v24 = vsel %vm869_vm0, %v1130_v38, 0.0  ;;  %v1132_v28 = vmul.f32 %v2302_v4, %v2302_v4 }
 0x1d6   : > { %v1233_v51 = vadd.f32 %v1232_v46, %v1231_v32  ;;  %v1036_v45 = vadd.f32 %v1035_v52, %v1034_v35  ;;  %v1256_v35 = vsel %vm869_vm0, %v1131_v13, 0.0  ;;  %v1258_v36 = vsel %vm869_vm0, %v1132_v28, 0.0 }
 0x1d8   : > { %v1235_v18 = vadd.f32 %v1234_v40, %v1233_v51  ;;  %v1038_v17 = vadd.f32 %v1037_v12, %v1036_v45 }
 0x1da   : > { %v1237_v54 = vadd.f32 %v1236_v43, %v1235_v18  ;;  %v1040_v11 = vadd.f32 %v1039_v39, %v1038_v17 }
 0x1dc   : > { %v1239_v48 = vadd.f32 %v1238_v22, %v1237_v54  ;;  %v1042_v58 = vadd.f32 %v1041_v60, %v1040_v11 }
 0x1de   : > { %v1241_v26 = vadd.f32 %v1240_v55, %v1239_v48  ;;  %v1044_v59 = vadd.f32 %v1043_v20, %v1042_v58 }
 0x1e0   : > { %v1243_v61 = vadd.f32 %v1242_v62, %v1241_v26  ;;  %v1046_v63 = vadd.f32 %v1045_v25, %v1044_v59 }
 0x1e2   : > { %v1245_v0 = vadd.f32 %v1244_v30, %v1243_v61  ;;  %v1048_v3 = vadd.f32 %v1047_v33, %v1046_v63 }
 0x1e4   : > { %v1247_v6 = vadd.f32 %v1246_v5, %v1245_v0  ;;  %v1050_v34 = vadd.f32 %v1049_v41, %v1048_v3 }
 0x1e6   : > { %v1249_v15 = vadd.f32 %v1248_v7, %v1247_v6  ;;  %v1052_v10 = vadd.f32 %v1051_v49, %v1050_v34 }
 0x1e8   : > { %v1251_v19 = vadd.f32 %v1250_v16, %v1249_v15  ;;  %v1054_v37 = vadd.f32 %v1053_v57, %v1052_v10 }
 0x1ea   : > { %v1253_v27 = vadd.f32 %v1252_v14, %v1251_v19  ;;  %v1056_v42 = vadd.f32 %v1055_v1, %v1054_v37 }
 0x1ec   : > { %v1255_v31 = vadd.f32 %v1254_v24, %v1253_v27  ;;  %v1058_v32 = vadd.f32 %v1057_v9, %v1056_v42 }
 0x1ee   : > { %v1257_v46 = vadd.f32 %v1256_v35, %v1255_v31  ;;  %v1060_v52 = vadd.f32 %v1059_v23, %v1058_v32 }
 0x1f0   : > { %v1061_v51 = vrot.slane %v1060_v52, 4  ;;  %v1259_v45 = vadd.f32 %v1258_v36, %v1257_v46 }
 0x1f2   : > { %v1062_v40 = vadd.f32 %v1061_v51, %v1060_v52  ;;  %v1260_v53 = vrot.slane %v1259_v45, 4 }
 0x1f4   : > { %v1063_v12 = vrot.slane %v1062_v40, 2  ;;  %v1261_v50 = vadd.f32 %v1260_v53, %v1259_v45 }
 0x1f6   : > { %v1064_v18 = vadd.f32 %v1063_v12, %v1062_v40  ;;  %v1262_v17 = vrot.slane %v1261_v50, 2 }
 0x1f8   : > { %v1065_v43 = vrot.slane %v1064_v18, 1  ;;  %v1263_v39 = vadd.f32 %v1262_v17, %v1261_v50 }
 0x1fa   : > { %v1066_v4 = vadd.f32 %v1065_v43, %v1064_v18  ;;  %v1264_v44 = vrot.slane %v1263_v39, 1 }
 0x1fc   : > { %1068 = vst.msk [vmem:[%s258_s28] sm:$0x1] %vm1067_vm1, %v1066_v4  ;;  %v1265_v54 = vadd.f32 %v1264_v44, %v1263_v39 }
 0x1fe   : > { %1266 = vst.msk [vmem:[%s258_s28 + $0x1] sm:$0x1] %vm1067_vm1, %v1265_v54 }
 0x1ff PF: > { %p16_p1 = scmp.ge.s32.totalorder %s1608_s21, 4   ;;  %s2500_s18 = smov %s1542_s19 }
 0x200   : > { %s2501_s19 = smov %s1546_s20  ;;  %s2502_s20 = smov %s1618_s24 }
 0x201   : > { %s2503_s1 = smov %s1608_s21  ;;  %18 = sbr.rel (!%p16_p1) target bundleno = 3 (0x3), region = 88 }
 0x206   :  { %1303 = vsyncpa [#allocation3], 1 }
 0x207   :  { %1305 = vsyncpa [#allocation3 + $0x1], 1 }

// kernel: block_forward_nchw.6
= control target key start
LH: loop header
LB: loop body
LE: loop exit
PB: predicated region body
PF: predicated region fallthrough
CT: control target
= control target key end

     0   :  { %s1839_s18 = smov 0   ;;  %s3085_s0 = inlined_call_operand.vmem [shape: f32[1024,64], index: 0, kind: input, shape index: {}]   ;;  %s3086_s1 = inlined_call_operand.vmem [shape: f32[1,64], index: 1, kind: input, shape index: {}]   ;;  %s3087_s2 = inlined_call_operand.vmem [shape: f32[1,64], index: 2, kind: input, shape index: {}]   ;;  %s3088_s3 = inlined_call_operand.vmem [shape: bf16[64,256], index: 3, kind: input, shape index: {}]   ;;  %s3089_s4 = inlined_call_operand.vmem [shape: f32[1024,256], index: 4, kind: output, shape index: {0}]   ;;  %s3090_s5 = inlined_call_operand.vmem [shape: f32[2,2,256], index: 5, kind: output, shape index: {1}]  }
   0x1 LB: > { %s1845_s19 = sadd.s32 4294967295, %s1805_s18   ;;  %p1714_p0 = scmp.ge.s32.totalorder %s1805_s18, 1  ;;  %s1805_s18 = sphi %s1839_s18, %s16_s18  }
   0x2   : > { %p191_p1 = scmp.lt.s32.totalorder %s1805_s18, 3 }
   0x4   : > { %p192_p2 = pnand %p1714_p0, %p191_p1 }
   0x6   : > { %195 = sbr.rel (%p192_p2) target bundleno = 435 (0x1b3), region = 36 }
   0xb   : > { %v1787_v0 = vld [vmem:[%s3088_s3 + $0x34] ss:$8 sps:$4 sm:$0xff]   ;;  %s1715_s22 = sshll.u32 %s1845_s19, 6  ;;  %v1789_v1 = vld [vmem:[%s3088_s3 + $0x30] ss:$8 sps:$4 sm:$0xff]   ;;  %v1807_v2 = vmov 0  }
   0xc   : > { %723 = vmatprep.mubr.bf16.mxu0 %v1807_v2  ;;  %p226_p3 = scmp.lt.s32.totalorder %s1715_s22, 127  ;;  %883 = vmatprep.mubr.bf16.mxu1 %v1807_v2  ;;  %v1790_v3 = vld [vmem:[%s3088_s3 + $0x24] ss:$8 sps:$4 sm:$0xff]   ;;  %v1792_v4 = vld [vmem:[%s3088_s3 + $0x20] ss:$8 sps:$4 sm:$0xff]   ;;  %vm594_vm0 = vcmask 523264  }
   0xd   : > { %699 = vmatprep.subr.bf16.mxu0 %v1787_v0  ;;  %1769 = vmatprep.subr.bf16.mxu1 %v1787_v0  ;;  %v1793_v5 = vld [vmem:[%s3088_s3 + $0x14] ss:$8 sps:$4 sm:$0xff]   ;;  %v1873_v6 = vld [vmem:[%s3086_s1] ss:$0 sm:$0xff]  ;;  %v1795_v7 = vld [vmem:[%s3088_s3 + $0x10] ss:$8 sps:$4 sm:$0xff]  }
   0xe   : > { %700 = vmatpush1.bf16.msra.mxu0 %v1789_v1  ;;  %s3152_s22 = smov (!%p226_p3, %s1715_s22), 127  ;;  %1773 = vmatpush1.bf16.msra.mxu1 %v1789_v1  ;;  %v1796_v8 = vld [vmem:[%s3088_s3 + $0x4] ss:$8 sps:$4 sm:$0xff]   ;;  %v1889_v9 = vld [vmem:[%s3087_s2] ss:$0 sm:$0xff]  ;;  %p238_p4 = scmp.lt.s32.totalorder %s1845_s19, 1 }
   0xf   : > { %701 = vmatprep.subr.bf16.mxu0 %v1790_v3  ;;  %1770 = vmatprep.subr.bf16.mxu1 %v1790_v3  ;;  %s1716_s6 = sshll.u32 %s3152_s22, 3  ;;  %v1798_v28 = vld [vmem:[%s3088_s3] ss:$8 sps:$4 sm:$0xff]   ;;  %s1767_s23 = sshll.u32 %s3152_s22, 4 }
  0x10   : > { %s1884_s15 = scalar_lea.vmem %s3085_s0, %s1716_s6  ;;  %s2251_s26 = scalar_lea.vmem %s3089_s4, %s1767_s23 }
  0x11   : > { %v244_v10 = vld [vmem:[%s1884_s15] sm:$0xff]  ;;  %v245_v11 = vld [vmem:[%s1884_s15 + $0x8] sm:$0xff]  ;;  %v246_v12 = vld [vmem:[%s1884_s15 + $0x10] sm:$0xff]  ;;  %s3154_s19 = smov (!%p238_p4, %s1845_s19), 1 }
  0x12   : > { %702 = vmatpush1.bf16.msra.mxu0 %v1792_v4  ;;  %1774 = vmatpush1.bf16.msra.mxu1 %v1792_v4  ;;  %v315_v13 = vmul.f32 %v1873_v6, %v244_v10  ;;  %v316_v14 = vmul.f32 %v1873_v6, %v245_v11  ;;  %v247_v15 = vld [vmem:[%s1884_s15 + $0x18] sm:$0xff]  ;;  %v317_v16 = vmul.f32 %v1873_v6, %v246_v12  ;;  %v248_v17 = vld [vmem:[%s1884_s15 + $0x20] sm:$0xff]  ;;  %v249_v18 = vld [vmem:[%s1884_s15 + $0x28] sm:$0xff]  ;;  %s1768_s22 = sshll.u32 %s3154_s19, 2 }
  0x13   : > { %703 = vmatprep.subr.bf16.mxu0 %v1793_v5  ;;  %1771 = vmatprep.subr.bf16.mxu1 %v1793_v5  ;;  %v318_v19 = vmul.f32 %v1873_v6, %v247_v15  ;;  %v319_v20 = vmul.f32 %v1873_v6, %v248_v17  ;;  %v320_v21 = vmul.f32 %v1873_v6, %v249_v18  ;;  %v250_v22 = vld [vmem:[%s1884_s15 + $0x30] sm:$0xff]  ;;  %v251_v23 = vld [vmem:[%s1884_s15 + $0x38] sm:$0xff]  ;;  %v252_v33 = vld [vmem:[%s1884_s15 + $0x40] sm:$0xff]  ;;  %s242_s29 = scalar_lea.vmem %s3090_s5, %s1768_s22 }
  0x14   : > { %v386_v24 = vadd.f32 %v1889_v9, %v315_v13  ;;  %v387_v25 = vadd.f32 %v1889_v9, %v316_v14  ;;  %v388_v26 = vadd.f32 %v1889_v9, %v317_v16  ;;  %v321_v27 = vmul.f32 %v1873_v6, %v250_v22  ;;  %v253_v34 = vld [vmem:[%s1884_s15 + $0x48] sm:$0xff]  ;;  %v254_v38 = vld [vmem:[%s1884_s15 + $0x50] sm:$0xff]  ;;  %v255_v44 = vld [vmem:[%s1884_s15 + $0x58] sm:$0xff] }
  0x15   : > { %v389_v29 = vadd.f32 %v1889_v9, %v318_v19  ;;  %v390_v30 = vadd.f32 %v1889_v9, %v319_v20  ;;  %v391_v31 = vadd.f32 %v1889_v9, %v320_v21  ;;  %v322_v32 = vmul.f32 %v1873_v6, %v251_v23  ;;  %v256_v45 = vld [vmem:[%s1884_s15 + $0x60] sm:$0xff]  ;;  %v257_v53 = vld [vmem:[%s1884_s15 + $0x68] sm:$0xff]  ;;  %v258_v57 = vld [vmem:[%s1884_s15 + $0x70] sm:$0xff] }
  0x16   : > { %704 = vmatpush1.bf16.msra.mxu0 %v1795_v7  ;;  %v450_v35 = vmax.f32 %v386_v24, 0.0  ;;  %v451_v36 = vmax.f32 %v387_v25, 0.0  ;;  %v392_v37 = vadd.f32 %v1889_v9, %v321_v27  ;;  %1775 = vmatpush1.bf16.msra.mxu1 %v1795_v7  ;;  %v452_v41 = vmax.f32 %v388_v26, 0.0  ;;  %v276_v58 = vld [vmem:[%s1884_s15 + $0x100] sm:$0xff]  ;;  %v277_v60 = vld [vmem:[%s1884_s15 + $0x108] sm:$0xff]  ;;  %v259_v5 = vld [vmem:[%s1884_s15 + $0x78] sm:$0xff] }
  0x17   : > { %705 = vmatprep.subr.bf16.mxu0 %v1796_v8  ;;  %v393_v39 = vadd.f32 %v1889_v9, %v322_v32  ;;  %1772 = vmatprep.subr.bf16.mxu1 %v1796_v8  ;;  %v323_v42 = vmul.f32 %v1873_v6, %v252_v33  ;;  %v324_v43 = vmul.f32 %v1873_v6, %v253_v34  ;;  %v453_v46 = vmax.f32 %v389_v29, 0.0  ;;  %v260_v0 = vld [vmem:[%s1884_s15 + $0x80] sm:$0xff]  ;;  %v261_v1 = vld [vmem:[%s1884_s15 + $0x88] sm:$0xff]  ;;  %v278_v10 = vld [vmem:[%s1884_s15 + $0x110] sm:$0xff] }
  0x18   : > { %v514_v40 = vpack.c.bf16 %v451_v36, %v450_v35  ;;  %v454_v47 = vmax.f32 %v390_v30, 0.0  ;;  %v455_v48 = vmax.f32 %v391_v31, 0.0  ;;  %v325_v49 = vmul.f32 %v1873_v6, %v254_v38  ;;  %v279_v15 = vld [vmem:[%s1884_s15 + $0x118] sm:$0xff]  ;;  %v262_v20 = vld [vmem:[%s1884_s15 + $0x90] sm:$0xff]  ;;  %v280_v30 = vld [vmem:[%s1884_s15 + $0x120] sm:$0xff] }
  0x19   : > { %v456_v50 = vmax.f32 %v392_v37, 0.0  ;;  %v457_v51 = vmax.f32 %v393_v39, 0.0  ;;  %v1927_v52 = vadd.f32 %v1889_v9, %v323_v42  ;;  %v1931_v54 = vadd.f32 %v1889_v9, %v324_v43  ;;  %v263_v25 = vld [vmem:[%s1884_s15 + $0x98] sm:$0xff]  ;;  %v281_v35 = vld [vmem:[%s1884_s15 + $0x128] sm:$0xff] }
  0x1a   : > { %706 = vmatpush1.bf16.msra.mxu0 %v1798_v28  ;;  %1776 = vmatpush1.bf16.msra.mxu1 %v1798_v28  ;;  %v326_v55 = vmul.f32 %v1873_v6, %v255_v44  ;;  %v327_v56 = vmul.f32 %v1873_v6, %v256_v45  ;;  %v1939_v59 = vadd.f32 %v1889_v9, %v325_v49 }
  0x1b   : > { %v515_v61 = vpack.c.bf16 %v453_v46, %v452_v41  ;;  %v1943_v62 = vpack.c.bf16 %v455_v48, %v454_v47  ;;  %v328_v63 = vmul.f32 %v1873_v6, %v257_v53  ;;  %v1948_v3 = vpack.c.bf16 %v457_v51, %v456_v50  ;;  %v265_v41 = vld [vmem:[%s1884_s15 + $0xa8] sm:$0xff]  ;;  %v282_v46 = vld [vmem:[%s1884_s15 + $0x130] sm:$0xff]  ;;  %v283_v51 = vld [vmem:[%s1884_s15 + $0x138] sm:$0xff] }
  0x1c   : > { %v458_v4 = vmax.f32 %v1927_v52, 0.0  ;;  %v329_v7 = vmul.f32 %v1873_v6, %v258_v57  ;;  %v347_v8 = vmul.f32 %v1873_v6, %v276_v58  ;;  %v459_v11 = vmax.f32 %v1931_v54, 0.0 }
  0x1d   : > { %1732 = vmatmul.mubr.msk.bf16.vlgmr.msra.gmra.mxu0 %vm594_vm0, %v514_v40  ;;  %v1957_v12 = vadd.f32 %v1889_v9, %v326_v55  ;;  %v1960_v13 = vadd.f32 %v1889_v9, %v327_v56  ;;  %v348_v14 = vmul.f32 %v1873_v6, %v277_v60  ;;  %v460_v16 = vmax.f32 %v1939_v59, 0.0  ;;  %v264_v40 = vld [vmem:[%s1884_s15 + $0xa0] sm:$0xff]  ;;  %v266_v56 = vld [vmem:[%s1884_s15 + $0xb0] sm:$0xff] }
  0x1e   : > { %733 = vmatprep.mubr.bf16.mxu0 %v1807_v2  ;;  %v418_v17 = vadd.f32 %v1889_v9, %v347_v8  ;;  %v331_v18 = vmul.f32 %v1873_v6, %v260_v0  ;;  %v332_v19 = vmul.f32 %v1873_v6, %v261_v1  ;;  %v1970_v21 = vadd.f32 %v1889_v9, %v328_v63  ;;  %v267_v63 = vld [vmem:[%s1884_s15 + $0xb8] sm:$0xff] }
  0x1f   : > { %v1973_v22 = vmul.f32 %v1873_v6, %v259_v5  ;;  %v419_v23 = vadd.f32 %v1889_v9, %v348_v14  ;;  %v349_v24 = vmul.f32 %v1873_v6, %v278_v10  ;;  %v350_v29 = vmul.f32 %v1873_v6, %v279_v15  ;;  %v285_v15 = vld [vmem:[%s1884_s15 + $0x148] sm:$0xff] }
  0x20   : > { %v482_v26 = vmax.f32 %v418_v17, 0.0  ;;  %v402_v27 = vadd.f32 %v1889_v9, %v331_v18  ;;  %v403_v28 = vadd.f32 %v1889_v9, %v332_v19  ;;  %v1983_v31 = vadd.f32 %v1889_v9, %v329_v7  ;;  %v284_v7 = vld [vmem:[%s1884_s15 + $0x140] sm:$0xff] }
  0x21   : > { %v483_v32 = vmax.f32 %v419_v23, 0.0  ;;  %v420_v33 = vadd.f32 %v1889_v9, %v349_v24  ;;  %v333_v34 = vmul.f32 %v1873_v6, %v262_v20  ;;  %v421_v38 = vadd.f32 %v1889_v9, %v350_v29  ;;  %v268_v23 = vld [vmem:[%s1884_s15 + $0xc0] sm:$0xff]  ;;  %v269_v24 = vld [vmem:[%s1884_s15 + $0xc8] sm:$0xff]  ;;  %v286_v29 = vld [vmem:[%s1884_s15 + $0x150] sm:$0xff] }
  0x22   : > { %v466_v36 = vmax.f32 %v402_v27, 0.0  ;;  %v467_v37 = vmax.f32 %v403_v28, 0.0  ;;  %v334_v39 = vmul.f32 %v1873_v6, %v263_v25  ;;  %v351_v45 = vmul.f32 %v1873_v6, %v280_v30 }
  0x23   : > { %v530_v42 = vpack.c.bf16 %v483_v32, %v482_v26  ;;  %v484_v43 = vmax.f32 %v420_v33, 0.0  ;;  %v404_v44 = vadd.f32 %v1889_v9, %v333_v34  ;;  %v485_v48 = vmax.f32 %v421_v38, 0.0 }
  0x24   : > { %v1997_v47 = vpack.c.bf16 %v467_v37, %v466_v36  ;;  %v405_v49 = vadd.f32 %v1889_v9, %v334_v39  ;;  %v352_v50 = vmul.f32 %v1873_v6, %v281_v35  ;;  %v2002_v52 = vpack.c.bf16 %v459_v11, %v458_v4  ;;  %v270_v39 = vld [vmem:[%s1884_s15 + $0xd0] sm:$0xff] }
  0x25   : > { %1733 = vmatmul.mubr.msk.bf16.gmra.mxu0 %vm594_vm0, %v515_v61  ;;  %1748 = vmatmul.mubr.msk.bf16.vlgmr.msra.gmra.mxu1 %vm594_vm0, %v530_v42  ;;  %v468_v53 = vmax.f32 %v404_v44, 0.0  ;;  %v335_v54 = vmul.f32 %v1873_v6, %v264_v40  ;;  %v336_v55 = vmul.f32 %v1873_v6, %v265_v41  ;;  %v461_v57 = vmax.f32 %v1957_v12, 0.0  ;;  %v271_v44 = vld [vmem:[%s1884_s15 + $0xd8] sm:$0xff] }
  0x26   : > { %743 = vmatprep.mubr.bf16.mxu0 %v1807_v2  ;;  %893 = vmatprep.mubr.bf16.mxu1 %v1807_v2  ;;  %v469_v58 = vmax.f32 %v405_v49, 0.0  ;;  %v422_v60 = vadd.f32 %v1889_v9, %v351_v45  ;;  %v353_v61 = vmul.f32 %v1873_v6, %v282_v46  ;;  %v423_v0 = vadd.f32 %v1889_v9, %v352_v50 }
  0x27   : > { %v406_v1 = vadd.f32 %v1889_v9, %v335_v54  ;;  %v407_v4 = vadd.f32 %v1889_v9, %v336_v55  ;;  %v354_v5 = vmul.f32 %v1873_v6, %v283_v51  ;;  %v462_v8 = vmax.f32 %v1960_v13, 0.0 }
  0x28   : > { %v531_v10 = vpack.c.bf16 %v485_v48, %v484_v43  ;;  %v2019_v11 = vpack.c.bf16 %v469_v58, %v468_v53  ;;  %v337_v14 = vmul.f32 %v1873_v6, %v266_v56  ;;  %v424_v19 = vadd.f32 %v1889_v9, %v353_v61  ;;  %v272_v61 = vld [vmem:[%s1884_s15 + $0xe0] sm:$0xff] }
  0x29   : > { %v470_v17 = vmax.f32 %v406_v1, 0.0  ;;  %v471_v18 = vmax.f32 %v407_v4, 0.0  ;;  %v338_v20 = vmul.f32 %v1873_v6, %v267_v63  ;;  %v486_v25 = vmax.f32 %v422_v60, 0.0  ;;  %v273_v63 = vld [vmem:[%s1884_s15 + $0xe8] sm:$0xff] }
  0x2a   : > { %v425_v26 = vadd.f32 %v1889_v9, %v354_v5  ;;  %v408_v27 = vadd.f32 %v1889_v9, %v337_v14  ;;  %v355_v28 = vmul.f32 %v1873_v6, %v284_v7  ;;  %v487_v30 = vmax.f32 %v423_v0, 0.0  ;;  %v290_v7 = vld [vmem:[%s1884_s15 + $0x170] sm:$0xff] }
  0x2b   : > { %v2034_v32 = vpack.c.bf16 %v471_v18, %v470_v17  ;;  %v409_v33 = vadd.f32 %v1889_v9, %v338_v20  ;;  %v356_v34 = vmul.f32 %v1873_v6, %v285_v15  ;;  %v339_v37 = vmul.f32 %v1873_v6, %v268_v23  ;;  %v288_v17 = vld [vmem:[%s1884_s15 + $0x160] sm:$0xff]  ;;  %v291_v18 = vld [vmem:[%s1884_s15 + $0x178] sm:$0xff] }
  0x2c   : > { %v472_v35 = vmax.f32 %v408_v27, 0.0  ;;  %v426_v36 = vadd.f32 %v1889_v9, %v355_v28  ;;  %v340_v38 = vmul.f32 %v1873_v6, %v269_v24  ;;  %v488_v40 = vmax.f32 %v424_v19, 0.0 }
  0x2d   : > { %1734 = vmatmul.mubr.msk.bf16.gmra.mxu0 %vm594_vm0, %v1943_v62  ;;  %v287_v62 = vld [vmem:[%s1884_s15 + $0x158] sm:$0xff]  ;;  %1749 = vmatmul.mubr.msk.bf16.gmra.mxu1 %vm594_vm0, %v531_v10  ;;  %v473_v41 = vmax.f32 %v409_v33, 0.0  ;;  %v427_v42 = vadd.f32 %v1889_v9, %v356_v34  ;;  %v357_v43 = vmul.f32 %v1873_v6, %v286_v29  ;;  %v489_v45 = vmax.f32 %v425_v26, 0.0  ;;  %v289_v26 = vld [vmem:[%s1884_s15 + $0x168] sm:$0xff]  ;;  %v292_v33 = vld [vmem:[%s1884_s15 + $0x180] sm:$0xff] }
  0x2e   : > { %753 = vmatprep.mubr.bf16.mxu0 %v1807_v2  ;;  %903 = vmatprep.mubr.bf16.mxu1 %v1807_v2  ;;  %v410_v46 = vadd.f32 %v1889_v9, %v339_v37  ;;  %v411_v48 = vadd.f32 %v1889_v9, %v340_v38  ;;  %v358_v49 = vmul.f32 %v1873_v6, %v287_v62  ;;  %v490_v51 = vmax.f32 %v426_v36, 0.0  ;;  %v293_v37 = vld [vmem:[%s1884_s15 + $0x188] sm:$0xff] }
  0x2f   : > { %v2051_v50 = vpack.c.bf16 %v473_v41, %v472_v35  ;;  %v491_v53 = vmax.f32 %v427_v42, 0.0  ;;  %v341_v54 = vmul.f32 %v1873_v6, %v270_v39  ;;  %v2055_v58 = vadd.f32 %v1889_v9, %v357_v43  ;;  %v294_v42 = vld [vmem:[%s1884_s15 + $0x190] sm:$0xff]  ;;  %v295_v43 = vld [vmem:[%s1884_s15 + $0x198] sm:$0xff] }
  0x30   : > { %v474_v55 = vmax.f32 %v410_v46, 0.0  ;;  %v475_v56 = vmax.f32 %v411_v48, 0.0  ;;  %v342_v60 = vmul.f32 %v1873_v6, %v271_v44  ;;  %v463_v0 = vmax.f32 %v1970_v21, 0.0 }
  0x31   : > { %v2063_v1 = vadd.f32 %v1889_v9, %v1973_v22  ;;  %v532_v4 = vpack.c.bf16 %v487_v30, %v486_v25  ;;  %v412_v5 = vadd.f32 %v1889_v9, %v341_v54  ;;  %v2073_v10 = vpack.c.bf16 %v461_v57, %v460_v16  ;;  %v274_v57 = vld [vmem:[%s1884_s15 + $0xf0] sm:$0xff]  ;;  %v275_v25 = vld [vmem:[%s1884_s15 + $0xf8] sm:$0xff] }
  0x32   : > { %v2075_v14 = vpack.c.bf16 %v475_v56, %v474_v55  ;;  %v2078_v22 = vadd.f32 %v1889_v9, %v358_v49  ;;  %v413_v15 = vadd.f32 %v1889_v9, %v342_v60  ;;  %v343_v12 = vmul.f32 %v1873_v6, %v272_v61  ;;  %v296_v49 = vld [vmem:[%s1884_s15 + $0x1a0] sm:$0xff]  ;;  %v297_v56 = vld [vmem:[%s1884_s15 + $0x1a8] sm:$0xff] }
  0x33   : > { %v476_v59 = vmax.f32 %v412_v5, 0.0  ;;  %v344_v16 = vmul.f32 %v1873_v6, %v273_v63  ;;  %v2087_v19 = vpack.c.bf16 %v491_v53, %v490_v51  ;;  %v492_v20 = vmax.f32 %v2055_v58, 0.0  ;;  %v298_v5 = vld [vmem:[%s1884_s15 + $0x1b0] sm:$0xff] }
  0x34   : > { %v477_v23 = vmax.f32 %v413_v15, 0.0  ;;  %v361_v24 = vmul.f32 %v1873_v6, %v290_v7  ;;  %v2095_v27 = vmul.f32 %v1873_v6, %v288_v17  ;;  %v414_v28 = vadd.f32 %v1889_v9, %v343_v12 }
  0x35   : > { %1735 = vmatmul.mubr.msk.bf16.gmra.mxu0 %vm594_vm0, %v1948_v3  ;;  %v533_v3 = vpack.c.bf16 %v489_v45, %v488_v40  ;;  %1750 = vmatmul.mubr.msk.bf16.gmra.mxu1 %vm594_vm0, %v532_v4  ;;  %v415_v29 = vadd.f32 %v1889_v9, %v344_v16  ;;  %v362_v30 = vmul.f32 %v1873_v6, %v291_v18  ;;  %v493_v34 = vmax.f32 %v2078_v22, 0.0 }
  0x36   : > { %763 = vmatprep.mubr.bf16.mxu0 %v1807_v2  ;;  %913 = vmatprep.mubr.bf16.mxu1 %v1807_v2  ;;  %v2103_v62 = vpack.c.bf16 %v477_v23, %v476_v59  ;;  %v432_v35 = vadd.f32 %v1889_v9, %v361_v24  ;;  %v345_v36 = vmul.f32 %v1873_v6, %v274_v57  ;;  %v478_v38 = vmax.f32 %v414_v28, 0.0  ;;  %v300_v23 = vld [vmem:[%s1884_s15 + $0x1c0] sm:$0xff] }
  0x37   : > { %v479_v39 = vmax.f32 %v415_v29, 0.0  ;;  %v433_v40 = vadd.f32 %v1889_v9, %v362_v30  ;;  %v346_v41 = vmul.f32 %v1873_v6, %v275_v25  ;;  %v2113_v44 = vmul.f32 %v1873_v6, %v289_v26  ;;  %v301_v29 = vld [vmem:[%s1884_s15 + $0x1c8] sm:$0xff] }
  0x38   : > { %v496_v45 = vmax.f32 %v432_v35, 0.0  ;;  %v416_v46 = vadd.f32 %v1889_v9, %v345_v36  ;;  %v363_v48 = vmul.f32 %v1873_v6, %v292_v33  ;;  %v364_v55 = vmul.f32 %v1873_v6, %v293_v37  ;;  %v302_v37 = vld [vmem:[%s1884_s15 + $0x1d0] sm:$0xff] }
  0x39   : > { %v2118_v51 = vpack.c.bf16 %v479_v39, %v478_v38  ;;  %v497_v53 = vmax.f32 %v433_v40, 0.0  ;;  %v417_v54 = vadd.f32 %v1889_v9, %v346_v41  ;;  %v365_v63 = vmul.f32 %v1873_v6, %v294_v42  ;;  %v304_v42 = vld [vmem:[%s1884_s15 + $0x1e0] sm:$0xff] }
  0x3a   : > { %v480_v60 = vmax.f32 %v416_v46, 0.0  ;;  %v434_v61 = vadd.f32 %v1889_v9, %v363_v48  ;;  %v366_v4 = vmul.f32 %v1873_v6, %v295_v43  ;;  %v435_v17 = vadd.f32 %v1889_v9, %v364_v55 }
  0x3b   : > { %v2130_v7 = vpack.c.bf16 %v497_v53, %v496_v45  ;;  %v481_v15 = vmax.f32 %v417_v54, 0.0  ;;  %v367_v18 = vmul.f32 %v1873_v6, %v296_v49  ;;  %v436_v12 = vadd.f32 %v1889_v9, %v365_v63  ;;  %v305_v49 = vld [vmem:[%s1884_s15 + $0x1e8] sm:$0xff] }
  0x3c   : > { %v498_v59 = vmax.f32 %v434_v61, 0.0  ;;  %v437_v16 = vadd.f32 %v1889_v9, %v366_v4  ;;  %v368_v57 = vmul.f32 %v1873_v6, %v297_v56  ;;  %v499_v25 = vmax.f32 %v435_v17, 0.0 }
  0x3d   : > { %1736 = vmatmul.mubr.msk.bf16.gmra.mxu0 %vm594_vm0, %v2002_v52  ;;  %v299_v52 = vld [vmem:[%s1884_s15 + $0x1b8] sm:$0xff]  ;;  %1751 = vmatmul.mubr.msk.bf16.gmra.mxu1 %vm594_vm0, %v533_v3  ;;  %v2140_v24 = vpack.c.bf16 %v481_v15, %v480_v60  ;;  %v438_v26 = vadd.f32 %v1889_v9, %v367_v18  ;;  %v369_v28 = vmul.f32 %v1873_v6, %v298_v5  ;;  %v500_v30 = vmax.f32 %v436_v12, 0.0  ;;  %v306_v60 = vld [vmem:[%s1884_s15 + $0x1f0] sm:$0xff] }
  0x3e   : > { %773 = vmatprep.mubr.bf16.mxu0 %v1807_v2  ;;  %923 = vmatprep.mubr.bf16.mxu1 %v1807_v2  ;;  %v501_v33 = vmax.f32 %v437_v16, 0.0  ;;  %v439_v35 = vadd.f32 %v1889_v9, %v368_v57  ;;  %v370_v36 = vmul.f32 %v1873_v6, %v299_v52  ;;  %v303_v3 = vld [vmem:[%s1884_s15 + $0x1d8] sm:$0xff]  ;;  %v2150_v38 = vpack.c.bf16 %v499_v25, %v498_v59 }
  0x3f   : > { %v502_v39 = vmax.f32 %v438_v26, 0.0  ;;  %v440_v40 = vadd.f32 %v1889_v9, %v369_v28  ;;  %v371_v41 = vmul.f32 %v1873_v6, %v300_v23  ;;  %v372_v48 = vmul.f32 %v1873_v6, %v301_v29  ;;  %v307_v15 = vld [vmem:[%s1884_s15 + $0x1f8] sm:$0xff] }
  0x40   : > { %v2155_v43 = vpack.c.bf16 %v501_v33, %v500_v30  ;;  %v503_v45 = vmax.f32 %v439_v35, 0.0  ;;  %v441_v46 = vadd.f32 %v1889_v9, %v370_v36  ;;  %v373_v55 = vmul.f32 %v1873_v6, %v302_v37 }
  0x41   : > { %v504_v53 = vmax.f32 %v440_v40, 0.0  ;;  %v442_v54 = vadd.f32 %v1889_v9, %v371_v41  ;;  %v374_v56 = vmul.f32 %v1873_v6, %v303_v3  ;;  %v443_v4 = vadd.f32 %v1889_v9, %v372_v48 }
  0x42   : > { %v540_v61 = vpack.c.bf16 %v503_v45, %v502_v39  ;;  %v505_v63 = vmax.f32 %v441_v46, 0.0  ;;  %v375_v5 = vmul.f32 %v1873_v6, %v304_v42  ;;  %v444_v18 = vadd.f32 %v1889_v9, %v373_v55 }
  0x43   : > { %v506_v17 = vmax.f32 %v442_v54, 0.0  ;;  %v445_v52 = vadd.f32 %v1889_v9, %v374_v56  ;;  %v376_v59 = vmul.f32 %v1873_v6, %v305_v49  ;;  %v507_v16 = vmax.f32 %v443_v4, 0.0 }
  0x44   : > { %v541_v12 = vpack.c.bf16 %v505_v63, %v504_v53  ;;  %v377_v57 = vmul.f32 %v1873_v6, %v306_v60  ;;  %v508_v23 = vmax.f32 %v444_v18, 0.0  ;;  %v378_v28 = vmul.f32 %v1873_v6, %v307_v15 }
  0x45   : > { %1737 = vmatmul.mubr.msk.bf16.gmra.mxu0 %vm594_vm0, %v2073_v10  ;;  %v446_v10 = vadd.f32 %v1889_v9, %v375_v5  ;;  %1752 = vmatmul.mubr.msk.bf16.gmra.mxu1 %vm594_vm0, %v2087_v19  ;;  %v509_v25 = vmax.f32 %v445_v52, 0.0  ;;  %v447_v26 = vadd.f32 %v1889_v9, %v376_v59  ;;  %v520_v29 = vpack.c.bf16 %v463_v0, %v462_v8 }
  0x46   : > { %783 = vmatprep.mubr.bf16.mxu0 %v1807_v2  ;;  %933 = vmatprep.mubr.bf16.mxu1 %v1807_v2  ;;  %v542_v30 = vpack.c.bf16 %v507_v16, %v506_v17  ;;  %v448_v35 = vadd.f32 %v1889_v9, %v377_v57  ;;  %v449_v19 = vadd.f32 %v1889_v9, %v378_v28  ;;  %v464_v0 = vmax.f32 %v1983_v31, 0.0 }
  0x47   : > { %v510_v33 = vmax.f32 %v446_v10, 0.0  ;;  %v543_v36 = vpack.c.bf16 %v509_v25, %v508_v23  ;;  %v511_v37 = vmax.f32 %v447_v26, 0.0  ;;  %v430_v3 = vadd.f32 %v1889_v9, %v2095_v27 }
  0x48   : > { %v512_v39 = vmax.f32 %v448_v35, 0.0  ;;  %v535_v6 = vpack.c.bf16 %v493_v34, %v492_v20  ;;  %v431_v13 = vadd.f32 %v1889_v9, %v2113_v44  ;;  %v513_v8 = vmax.f32 %v449_v19, 0.0 }
  0x49   : > { %v544_v21 = vpack.c.bf16 %v511_v37, %v510_v33  ;;  %v465_v40 = vmax.f32 %v2063_v1, 0.0  ;;  %v494_v58 = vmax.f32 %v430_v3, 0.0 }
  0x4a   : > { %v545_v27 = vpack.c.bf16 %v513_v8, %v512_v39  ;;  %v495_v41 = vmax.f32 %v431_v13, 0.0 }
  0x4b   : > { %v521_v22 = vpack.c.bf16 %v465_v40, %v464_v0 }
  0x4c   : > { %v536_v20 = vpack.c.bf16 %v495_v41, %v494_v58 }
  0x4d   : > { %1738 = vmatmul.mubr.msk.bf16.gmra.mxu0 %vm594_vm0, %v520_v29  ;;  %1753 = vmatmul.mubr.msk.bf16.gmra.mxu1 %vm594_vm0, %v535_v6 }
  0x4e   : > { %793 = vmatprep.mubr.bf16.mxu0 %v1807_v2  ;;  %943 = vmatprep.mubr.bf16.mxu1 %v1807_v2 }
  0x55   : > { %1739 = vmatmul.mubr.msk.bf16.gmra.mxu0 %vm594_vm0, %v521_v22  ;;  %1754 = vmatmul.mubr.msk.bf16.gmra.mxu1 %vm594_vm0, %v536_v20 }
  0x56   : > { %803 = vmatprep.mubr.bf16.mxu0 %v1807_v2  ;;  %953 = vmatprep.mubr.bf16.mxu1 %v1807_v2 }
  0x5d   : > { %1740 = vmatmul.mubr.msk.bf16.gmra.mxu0 %vm594_vm0, %v1997_v47  ;;  %1755 = vmatmul.mubr.msk.bf16.gmra.mxu1 %vm594_vm0, %v2130_v7 }
  0x5e   : > { %813 = vmatprep.mubr.bf16.mxu0 %v1807_v2  ;;  %963 = vmatprep.mubr.bf16.mxu1 %v1807_v2 }
  0x65   : > { %1741 = vmatmul.mubr.msk.bf16.gmra.mxu0 %vm594_vm0, %v2019_v11  ;;  %1756 = vmatmul.mubr.msk.bf16.gmra.mxu1 %vm594_vm0, %v2150_v38 }
  0x66   : > { %823 = vmatprep.mubr.bf16.mxu0 %v1807_v2  ;;  %973 = vmatprep.mubr.bf16.mxu1 %v1807_v2 }
  0x6d   : > { %1742 = vmatmul.mubr.msk.bf16.gmra.mxu0 %vm594_vm0, %v2034_v32  ;;  %1757 = vmatmul.mubr.msk.bf16.gmra.mxu1 %vm594_vm0, %v2155_v43 }
  0x6e   : > { %833 = vmatprep.mubr.bf16.mxu0 %v1807_v2  ;;  %983 = vmatprep.mubr.bf16.mxu1 %v1807_v2 }
  0x75   : > { %1743 = vmatmul.mubr.msk.bf16.gmra.mxu0 %vm594_vm0, %v2051_v50  ;;  %1758 = vmatmul.mubr.msk.bf16.gmra.mxu1 %vm594_vm0, %v540_v61 }
  0x76   : > { %843 = vmatprep.mubr.bf16.mxu0 %v1807_v2  ;;  %993 = vmatprep.mubr.bf16.mxu1 %v1807_v2 }
  0x7d   : > { %1744 = vmatmul.mubr.msk.bf16.gmra.mxu0 %vm594_vm0, %v2075_v14  ;;  %1759 = vmatmul.mubr.msk.bf16.gmra.mxu1 %vm594_vm0, %v541_v12 }
  0x7e   : > { %853 = vmatprep.mubr.bf16.mxu0 %v1807_v2  ;;  %1003 = vmatprep.mubr.bf16.mxu1 %v1807_v2 }
  0x85   : > { %1745 = vmatmul.mubr.msk.bf16.gmra.mxu0 %vm594_vm0, %v2103_v62  ;;  %1760 = vmatmul.mubr.msk.bf16.gmra.mxu1 %vm594_vm0, %v542_v30 }
  0x86   : > { %863 = vmatprep.mubr.bf16.mxu0 %v1807_v2  ;;  %1013 = vmatprep.mubr.bf16.mxu1 %v1807_v2 }
  0x8d   : > { %1746 = vmatmul.mubr.msk.bf16.gmra.mxu0 %vm594_vm0, %v2118_v51  ;;  %1761 = vmatmul.mubr.msk.bf16.gmra.mxu1 %vm594_vm0, %v543_v36 }
  0x8e   : > { %873 = vmatprep.mubr.bf16.mxu0 %v1807_v2  ;;  %1023 = vmatprep.mubr.bf16.mxu1 %v1807_v2 }
  0x95   : > { %1747 = vmatmul.mubr.msk.bf16.gmra.mxu0 %vm594_vm0, %v2140_v24  ;;  %1762 = vmatmul.mubr.msk.bf16.gmra.mxu1 %vm594_vm0, %v544_v21 }
  0x96   : > { %1033 = vmatprep.mubr.bf16.mxu1 %v1807_v2 }
  0x9d   : > { %1763 = vmatmul.mubr.msk.bf16.gmra.mxu1 %vm594_vm0, %v545_v27 }
  0xdd   : > { %v2253_v9 = vpop.f32.mrf.mxu0 }
  0xde   : > { %1044 = vst [vmem:[%s2251_s26] sm:$0xff] %v2253_v9  ;;  %v1333_v22 = vmul.f32 %v2253_v9, %v2253_v9 }
  0xdf   : > { %v2257_v2 = vpop.f32.mrf.mxu0 }
  0xe0   : > { %1045 = vst [vmem:[%s2251_s26 + $0x8] sm:$0xff] %v2257_v2 }
  0xe1   : > { %v2261_v31 = vpop.f32.mrf.mxu0 }
  0xe2   : > { %1046 = vst [vmem:[%s2251_s26 + $0x10] sm:$0xff] %v2261_v31  ;;  %v1335_v40 = vmul.f32 %v2261_v31, %v2261_v31  ;;  %v1172_v20 = vadd.f32 %v2261_v31, %v2253_v9 }
  0xe3   : > { %v2265_v47 = vpop.f32.mrf.mxu0 }
  0xe4   : > { %1047 = vst [vmem:[%s2251_s26 + $0x18] sm:$0xff] %v2265_v47  ;;  %v1336_v58 = vmul.f32 %v2265_v47, %v2265_v47  ;;  %v1461_v9 = vadd.f32 %v1335_v40, %v1333_v22  ;;  %v1241_v31 = vadd.f32 %v2265_v47, %v2257_v2 }
  0xe5   : > { %v2269_v11 = vpop.f32.mrf.mxu0  ;;  %v2277_v50 = vpop.f32.mrf.mxu1 }
  0xe6   : > { %1048 = vst [vmem:[%s2251_s26 + $0x20] sm:$0xff] %v2269_v11  ;;  %1108 = vst [vmem:[%s2251_s26 + $0x200] sm:$0xff] %v2277_v50 }
  0xe7   : > { %v2273_v32 = vpop.f32.mrf.mxu0  ;;  %v2285_v14 = vpop.f32.mrf.mxu1 }
  0xe8   : > { %1049 = vst [vmem:[%s2251_s26 + $0x28] sm:$0xff] %v2273_v32  ;;  %1109 = vst [vmem:[%s2251_s26 + $0x208] sm:$0xff] %v2285_v14  ;;  %v1242_v47 = vadd.f32 %v1241_v31, %v2273_v32 }
  0xe9   : > { %v2279_v1 = vpop.f32.mrf.mxu0  ;;  %v2293_v62 = vpop.f32.mrf.mxu1 }
  0xea   : > { %1050 = vst [vmem:[%s2251_s26 + $0x30] sm:$0xff] %v2279_v1  ;;  %1110 = vst [vmem:[%s2251_s26 + $0x210] sm:$0xff] %v2293_v62 }
  0xeb   : > { %v2287_v34 = vpop.f32.mrf.mxu0  ;;  %v2301_v51 = vpop.f32.mrf.mxu1 }
  0xec   : > { %1051 = vst [vmem:[%s2251_s26 + $0x38] sm:$0xff] %v2287_v34  ;;  %1111 = vst [vmem:[%s2251_s26 + $0x218] sm:$0xff] %v2301_v51 }
  0xed   : > { %v2295_v44 = vpop.f32.mrf.mxu0  ;;  %v2309_v24 = vpop.f32.mrf.mxu1 }
  0xee   : > { %1052 = vst [vmem:[%s2251_s26 + $0x40] sm:$0xff] %v2295_v44  ;;  %1112 = vst [vmem:[%s2251_s26 + $0x220] sm:$0xff] %v2309_v24  ;;  %v1341_v40 = vmul.f32 %v2295_v44, %v2295_v44 }
  0xef   : > { %v2303_v7 = vpop.f32.mrf.mxu0  ;;  %v2317_v42 = vpop.f32.mrf.mxu1 }
  0xf0   : > { %1053 = vst [vmem:[%s2251_s26 + $0x48] sm:$0xff] %v2303_v7  ;;  %1113 = vst [vmem:[%s2251_s26 + $0x228] sm:$0xff] %v2317_v42  ;;  %v1342_v22 = vmul.f32 %v2303_v7, %v2303_v7 }
  0xf1   : > { %v2311_v38 = vpop.f32.mrf.mxu0  ;;  %v2325_v45 = vpop.f32.mrf.mxu1 }
  0xf2   : > { %1054 = vst [vmem:[%s2251_s26 + $0x50] sm:$0xff] %v2311_v38  ;;  %1114 = vst [vmem:[%s2251_s26 + $0x230] sm:$0xff] %v2325_v45 }
  0xf3   : > { %v2319_v43 = vpop.f32.mrf.mxu0  ;;  %v2333_v48 = vpop.f32.mrf.mxu1 }
  0xf4   : > { %1055 = vst [vmem:[%s2251_s26 + $0x58] sm:$0xff] %v2319_v43  ;;  %1115 = vst [vmem:[%s2251_s26 + $0x238] sm:$0xff] %v2333_v48 }
  0xf5   : > { %v2327_v46 = vpop.f32.mrf.mxu0  ;;  %v2341_v53 = vpop.f32.mrf.mxu1 }
  0xf6   : > { %1056 = vst [vmem:[%s2251_s26 + $0x60] sm:$0xff] %v2327_v46  ;;  %1116 = vst [vmem:[%s2251_s26 + $0x240] sm:$0xff] %v2341_v53 }
  0xf7   : > { %v2335_v49 = vpop.f32.mrf.mxu0  ;;  %v2349_v55 = vpop.f32.mrf.mxu1 }
  0xf8   : > { %1057 = vst [vmem:[%s2251_s26 + $0x68] sm:$0xff] %v2335_v49  ;;  %1117 = vst [vmem:[%s2251_s26 + $0x248] sm:$0xff] %v2349_v55 }
  0xf9   : > { %v2343_v54 = vpop.f32.mrf.mxu0  ;;  %v2357_v60 = vpop.f32.mrf.mxu1 }
  0xfa   : > { %1058 = vst [vmem:[%s2251_s26 + $0x70] sm:$0xff] %v2343_v54  ;;  %1118 = vst [vmem:[%s2251_s26 + $0x250] sm:$0xff] %v2357_v60 }
  0xfb   : > { %v2351_v56 = vpop.f32.mrf.mxu0  ;;  %v2365_v63 = vpop.f32.mrf.mxu1 }
  0xfc   : > { %1059 = vst [vmem:[%s2251_s26 + $0x78] sm:$0xff] %v2351_v56  ;;  %1119 = vst [vmem:[%s2251_s26 + $0x258] sm:$0xff] %v2365_v63 }
  0xfd   : > { %v2359_v61 = vpop.f32.mrf.mxu0  ;;  %v2373_v5 = vpop.f32.mrf.mxu1 }
  0xfe   : > { %1060 = vst [vmem:[%s2251_s26 + $0x80] sm:$0xff] %v2359_v61  ;;  %1120 = vst [vmem:[%s2251_s26 + $0x260] sm:$0xff] %v2373_v5 }
  0xff   : > { %v2367_v4 = vpop.f32.mrf.mxu0  ;;  %v2381_v17 = vpop.f32.mrf.mxu1 }
 0x100   : > { %1061 = vst [vmem:[%s2251_s26 + $0x88] sm:$0xff] %v2367_v4  ;;  %1121 = vst [vmem:[%s2251_s26 + $0x268] sm:$0xff] %v2381_v17 }
 0x101   : > { %v2375_v15 = vpop.f32.mrf.mxu0  ;;  %v2389_v52 = vpop.f32.mrf.mxu1 }
 0x102   : > { %1062 = vst [vmem:[%s2251_s26 + $0x90] sm:$0xff] %v2375_v15  ;;  %1122 = vst [vmem:[%s2251_s26 + $0x270] sm:$0xff] %v2389_v52 }
 0x103   : > { %v2383_v18 = vpop.f32.mrf.mxu0  ;;  %v2397_v12 = vpop.f32.mrf.mxu1 }
 0x104   : > { %1063 = vst [vmem:[%s2251_s26 + $0x98] sm:$0xff] %v2383_v18  ;;  %1123 = vst [vmem:[%s2251_s26 + $0x278] sm:$0xff] %v2397_v12 }
 0x105   : > { %v2391_v59 = vpop.f32.mrf.mxu0  ;;  %v2405_v10 = vpop.f32.mrf.mxu1 }
 0x106   : > { %1064 = vst [vmem:[%s2251_s26 + $0xa0] sm:$0xff] %v2391_v59  ;;  %3121 = vst [vmem:[#allocation2_spill] sm:$0xff] %v2405_v10 }
 0x107   : > { %v2399_v16 = vpop.f32.mrf.mxu0  ;;  %1124 = vst [vmem:[%s2251_s26 + $0x280] sm:$0xff] %v2405_v10  ;;  %v2413_v23 = vpop.f32.mrf.mxu1 }
 0x108   : > { %1065 = vst [vmem:[%s2251_s26 + $0xa8] sm:$0xff] %v2399_v16  ;;  %3122 = vst [vmem:[#allocation3_spill] sm:$0xff] %v2413_v23 }
 0x109   : > { %v2407_v57 = vpop.f32.mrf.mxu0  ;;  %1125 = vst [vmem:[%s2251_s26 + $0x288] sm:$0xff] %v2413_v23  ;;  %v2421_v26 = vpop.f32.mrf.mxu1  ;;  %v1340_v23 = vmul.f32 %v2287_v34, %v2287_v34 }
 0x10a   : > { %1066 = vst [vmem:[%s2251_s26 + $0xb0] sm:$0xff] %v2407_v57  ;;  %3123 = vst [vmem:[#allocation4_spill] sm:$0xff] %v2421_v26 }
 0x10b   : > { %v2415_v25 = vpop.f32.mrf.mxu0  ;;  %1126 = vst [vmem:[%s2251_s26 + $0x290] sm:$0xff] %v2421_v26  ;;  %v2429_v29 = vpop.f32.mrf.mxu1 }
 0x10c   : > { %1067 = vst [vmem:[%s2251_s26 + $0xb8] sm:$0xff] %v2415_v25  ;;  %3124 = vst [vmem:[#allocation5_spill] sm:$0xff] %v2429_v29 }
 0x10d   : > { %v2423_v28 = vpop.f32.mrf.mxu0  ;;  %1127 = vst [vmem:[%s2251_s26 + $0x298] sm:$0xff] %v2429_v29  ;;  %v2437_v33 = vpop.f32.mrf.mxu1 }
 0x10e   : > { %1068 = vst [vmem:[%s2251_s26 + $0xc0] sm:$0xff] %v2423_v28  ;;  %3125 = vst [vmem:[#allocation6_spill] sm:$0xff] %v2437_v33 }
 0x10f   : > { %v2431_v30 = vpop.f32.mrf.mxu0  ;;  %1128 = vst [vmem:[%s2251_s26 + $0x2a0] sm:$0xff] %v2437_v33  ;;  %v2445_v36 = vpop.f32.mrf.mxu1  ;;  %v1339_v33 = vmul.f32 %v2279_v1, %v2279_v1 }
 0x110   : > { %1069 = vst [vmem:[%s2251_s26 + $0xc8] sm:$0xff] %v2431_v30  ;;  %3126 = vst [vmem:[#allocation7_spill] sm:$0xff] %v2445_v36 }
 0x111   : > { %v2439_v35 = vpop.f32.mrf.mxu0  ;;  %1129 = vst [vmem:[%s2251_s26 + $0x2a8] sm:$0xff] %v2445_v36  ;;  %v2453_v19 = vpop.f32.mrf.mxu1  ;;  %v1173_v36 = vadd.f32 %v1172_v20, %v2269_v11 }
 0x112   : > { %1070 = vst [vmem:[%s2251_s26 + $0xd0] sm:$0xff] %v2439_v35  ;;  %3127 = vst [vmem:[#allocation8_spill] sm:$0xff] %v2453_v19 }
 0x113   : > { %v2447_v37 = vpop.f32.mrf.mxu0  ;;  %1130 = vst [vmem:[%s2251_s26 + $0x2b0] sm:$0xff] %v2453_v19  ;;  %v2461_v39 = vpop.f32.mrf.mxu1 }
 0x114   : > { %1071 = vst [vmem:[%s2251_s26 + $0xd8] sm:$0xff] %v2447_v37  ;;  %3128 = vst [vmem:[#allocation9_spill] sm:$0xff] %v2461_v39 }
 0x115   : > { %v2455_v3 = vpop.f32.mrf.mxu0  ;;  %1131 = vst [vmem:[%s2251_s26 + $0x2b8] sm:$0xff] %v2461_v39  ;;  %v2469_v13 = vpop.f32.mrf.mxu1  ;;  %v1334_v39 = vmul.f32 %v2257_v2, %v2257_v2 }
 0x116   : > { %1072 = vst [vmem:[%s2251_s26 + $0xe0] sm:$0xff] %v2455_v3  ;;  %3129 = vst [vmem:[#allocation10_spill] sm:$0xff] %v2469_v13 }
 0x117   : > { %v2463_v6 = vpop.f32.mrf.mxu0  ;;  %1132 = vst [vmem:[%s2251_s26 + $0x2c0] sm:$0xff] %v2469_v13  ;;  %v2477_v8 = vpop.f32.mrf.mxu1  ;;  %v1530_v26 = vadd.f32 %v1336_v58, %v1334_v39 }
 0x118   : > { %1073 = vst [vmem:[%s2251_s26 + $0xe8] sm:$0xff] %v2463_v6  ;;  %3130 = vst [vmem:[#allocation11_spill] sm:$0xff] %v2477_v8 }
 0x119   : > { %v2471_v21 = vpop.f32.mrf.mxu0  ;;  %1133 = vst [vmem:[%s2251_s26 + $0x2c8] sm:$0xff] %v2477_v8  ;;  %v2487_v27 = vpop.f32.mrf.mxu1  ;;  %v1337_v8 = vmul.f32 %v2269_v11, %v2269_v11  ;;  %v1174_v11 = vadd.f32 %v1173_v36, %v2279_v1  ;;  %v1243_v1 = vadd.f32 %v1242_v47, %v2287_v34 }
 0x11a   : > { %1074 = vst [vmem:[%s2251_s26 + $0xf0] sm:$0xff] %v2471_v21  ;;  %3131 = vst [vmem:[#allocation12_spill] sm:$0xff] %v2487_v27 }
 0x11b   : > { %v2479_v0 = vpop.f32.mrf.mxu0  ;;  %1134 = vst [vmem:[%s2251_s26 + $0x2d0] sm:$0xff] %v2487_v27  ;;  %v2503_v13 = vpop.f32.mrf.mxu1  ;;  %v1338_v27 = vmul.f32 %v2273_v32, %v2273_v32  ;;  %v1462_v2 = vadd.f32 %v1461_v9, %v1337_v8  ;;  %v1175_v36 = vadd.f32 %v1174_v11, %v2295_v44  ;;  %v1343_v8 = vmul.f32 %v2311_v38, %v2311_v38 }
 0x11c   : > { %1075 = vst [vmem:[%s2251_s26 + $0xf8] sm:$0xff] %v2479_v0  ;;  %1135 = vst [vmem:[%s2251_s26 + $0x2d8] sm:$0xff] %v2503_v13  ;;  %v1344_v9 = vmul.f32 %v2319_v43, %v2319_v43  ;;  %v1244_v44 = vadd.f32 %v1243_v1, %v2303_v7  ;;  %v1346_v11 = vmul.f32 %v2335_v49, %v2335_v49 }
 0x11d   : > { %v2491_v41 = vpop.f32.mrf.mxu0  ;;  %v2520_v29 = vpop.f32.mrf.mxu1  ;;  %v1531_v58 = vadd.f32 %v1530_v26, %v1338_v27  ;;  %v1463_v32 = vadd.f32 %v1462_v2, %v1339_v33  ;;  %v1176_v33 = vadd.f32 %v1175_v36, %v2311_v38  ;;  %v1345_v2 = vmul.f32 %v2327_v46, %v2327_v46 }
 0x11e   : > { %1076 = vst [vmem:[%s2251_s26 + $0x100] sm:$0xff] %v2491_v41  ;;  %1136 = vst [vmem:[%s2251_s26 + $0x2e0] sm:$0xff] %v2520_v29  ;;  %v1245_v38 = vadd.f32 %v1244_v44, %v2319_v43  ;;  %v1348_v36 = vmul.f32 %v2351_v56, %v2351_v56 }
 0x11f   : > { %v2509_v19 = vpop.f32.mrf.mxu0  ;;  %v2534_v39 = vpop.f32.mrf.mxu1  ;;  %v1532_v27 = vadd.f32 %v1531_v58, %v1340_v23  ;;  %v1464_v34 = vadd.f32 %v1463_v32, %v1341_v40  ;;  %v1177_v40 = vadd.f32 %v1176_v33, %v2327_v46  ;;  %v1347_v32 = vmul.f32 %v2343_v54, %v2343_v54 }
 0x120   : > { %1077 = vst [vmem:[%s2251_s26 + $0x108] sm:$0xff] %v2509_v19  ;;  %1137 = vst [vmem:[%s2251_s26 + $0x2e8] sm:$0xff] %v2534_v39  ;;  %v1246_v46 = vadd.f32 %v1245_v38, %v2335_v49  ;;  %v1350_v33 = vmul.f32 %v2367_v4, %v2367_v4 }
 0x121   : > { %v2524_v10 = vpop.f32.mrf.mxu0  ;;  %v2548_v26 = vpop.f32.mrf.mxu1  ;;  %v1533_v47 = vadd.f32 %v1532_v27, %v1342_v22  ;;  %v1465_v7 = vadd.f32 %v1464_v34, %v1343_v8  ;;  %v1178_v8 = vadd.f32 %v1177_v40, %v2343_v54  ;;  %v1349_v34 = vmul.f32 %v2359_v61, %v2359_v61 }
 0x122   : > { %1078 = vst [vmem:[%s2251_s26 + $0x110] sm:$0xff] %v2524_v10  ;;  %1138 = vst [vmem:[%s2251_s26 + $0x2f0] sm:$0xff] %v2548_v26  ;;  %v1247_v54 = vadd.f32 %v1246_v46, %v2351_v56  ;;  %v1352_v40 = vmul.f32 %v2383_v18, %v2383_v18 }
 0x123   : > { %v2538_v20 = vpop.f32.mrf.mxu0  ;;  %v2562_v23 = vpop.f32.mrf.mxu1  ;;  %v1534_v1 = vadd.f32 %v1533_v47, %v1344_v9  ;;  %v1466_v43 = vadd.f32 %v1465_v7, %v1345_v2  ;;  %v1179_v2 = vadd.f32 %v1178_v8, %v2359_v61  ;;  %v1351_v7 = vmul.f32 %v2375_v15, %v2375_v15 }
 0x124   : > { %1079 = vst [vmem:[%s2251_s26 + $0x118] sm:$0xff] %v2538_v20  ;;  %1139 = vst [vmem:[%s2251_s26 + $0x2f8] sm:$0xff] %v2562_v23  ;;  %v1248_v61 = vadd.f32 %v1247_v54, %v2367_v4  ;;  %v1354_v8 = vmul.f32 %v2399_v16, %v2399_v16 }
 0x125   : > { %v2552_v31 = vpop.f32.mrf.mxu0  ;;  %v2576_v22 = vpop.f32.mrf.mxu1  ;;  %v1535_v44 = vadd.f32 %v1534_v1, %v1346_v11  ;;  %v1467_v49 = vadd.f32 %v1466_v43, %v1347_v32  ;;  %v1180_v32 = vadd.f32 %v1179_v2, %v2375_v15  ;;  %v1353_v43 = vmul.f32 %v2391_v59, %v2391_v59 }
 0x126   : > { %1080 = vst [vmem:[%s2251_s26 + $0x120] sm:$0xff] %v2552_v31  ;;  %1140 = vst [vmem:[%s2251_s26 + $0x300] sm:$0xff] %v2576_v22  ;;  %v1249_v15 = vadd.f32 %v1248_v61, %v2383_v18  ;;  %v1356_v2 = vmul.f32 %v2415_v25, %v2415_v25 }
 0x127   : > { %v2566_v58 = vpop.f32.mrf.mxu0  ;;  %v2590_v9 = vpop.f32.mrf.mxu1  ;;  %v1536_v38 = vadd.f32 %v1535_v44, %v1348_v36  ;;  %v1468_v56 = vadd.f32 %v1467_v49, %v1349_v34  ;;  %v1181_v34 = vadd.f32 %v1180_v32, %v2391_v59  ;;  %v1355_v49 = vmul.f32 %v2407_v57, %v2407_v57 }
 0x128   : > { %1081 = vst [vmem:[%s2251_s26 + $0x128] sm:$0xff] %v2566_v58  ;;  %1141 = vst [vmem:[%s2251_s26 + $0x308] sm:$0xff] %v2590_v9  ;;  %v1250_v59 = vadd.f32 %v1249_v15, %v2399_v16  ;;  %v1358_v32 = vmul.f32 %v2431_v30, %v2431_v30 }
 0x129   : > { %v2580_v27 = vpop.f32.mrf.mxu0  ;;  %v2604_v11 = vpop.f32.mrf.mxu1  ;;  %v1537_v46 = vadd.f32 %v1536_v38, %v1350_v33  ;;  %v1469_v4 = vadd.f32 %v1468_v56, %v1351_v7  ;;  %v1182_v7 = vadd.f32 %v1181_v34, %v2407_v57  ;;  %v1357_v56 = vmul.f32 %v2423_v28, %v2423_v28 }
 0x12a   : > { %1082 = vst [vmem:[%s2251_s26 + $0x130] sm:$0xff] %v2580_v27  ;;  %1142 = vst [vmem:[%s2251_s26 + $0x310] sm:$0xff] %v2604_v11  ;;  %v1251_v57 = vadd.f32 %v1250_v59, %v2415_v25  ;;  %v1360_v34 = vmul.f32 %v2447_v37, %v2447_v37 }
 0x12b   : > { %v2594_v47 = vpop.f32.mrf.mxu0  ;;  %v2618_v36 = vpop.f32.mrf.mxu1  ;;  %v1538_v54 = vadd.f32 %v1537_v46, %v1352_v40  ;;  %v1470_v18 = vadd.f32 %v1469_v4, %v1353_v43  ;;  %v1183_v43 = vadd.f32 %v1182_v7, %v2423_v28  ;;  %v1359_v4 = vmul.f32 %v2439_v35, %v2439_v35 }
 0x12c   : > { %1083 = vst [vmem:[%s2251_s26 + $0x138] sm:$0xff] %v2594_v47  ;;  %1143 = vst [vmem:[%s2251_s26 + $0x318] sm:$0xff] %v2618_v36  ;;  %v1252_v28 = vadd.f32 %v1251_v57, %v2431_v30  ;;  %v1362_v7 = vmul.f32 %v2463_v6, %v2463_v6 }
 0x12d   : > { %v2608_v1 = vpop.f32.mrf.mxu0  ;;  %v2632_v33 = vpop.f32.mrf.mxu1  ;;  %v1539_v61 = vadd.f32 %v1538_v54, %v1354_v8  ;;  %v1471_v16 = vadd.f32 %v1470_v18, %v1355_v49  ;;  %v1184_v49 = vadd.f32 %v1183_v43, %v2439_v35  ;;  %v1361_v18 = vmul.f32 %v2455_v3, %v2455_v3 }
 0x12e   : > { %1084 = vst [vmem:[%s2251_s26 + $0x140] sm:$0xff] %v2608_v1  ;;  %1144 = vst [vmem:[%s2251_s26 + $0x320] sm:$0xff] %v2632_v33  ;;  %v1253_v35 = vadd.f32 %v1252_v28, %v2447_v37  ;;  %v1364_v43 = vmul.f32 %v2479_v0, %v2479_v0 }
 0x12f   : > { %v2622_v44 = vpop.f32.mrf.mxu0  ;;  %v2646_v40 = vpop.f32.mrf.mxu1  ;;  %v1540_v15 = vadd.f32 %v1539_v61, %v1356_v2  ;;  %v1472_v25 = vadd.f32 %v1471_v16, %v1357_v56  ;;  %v1185_v56 = vadd.f32 %v1184_v49, %v2455_v3  ;;  %v1363_v16 = vmul.f32 %v2471_v21, %v2471_v21 }
 0x130   : > { %1085 = vst [vmem:[%s2251_s26 + $0x148] sm:$0xff] %v2622_v44  ;;  %1145 = vst [vmem:[%s2251_s26 + $0x328] sm:$0xff] %v2646_v40  ;;  %v1254_v3 = vadd.f32 %v1253_v35, %v2463_v6  ;;  %v1366_v49 = vmul.f32 %v2509_v19, %v2509_v19 }
 0x131   : > { %v2636_v38 = vpop.f32.mrf.mxu0  ;;  %v2660_v8 = vpop.f32.mrf.mxu1  ;;  %v1541_v59 = vadd.f32 %v1540_v15, %v1358_v32  ;;  %v1473_v30 = vadd.f32 %v1472_v25, %v1359_v4  ;;  %v1186_v4 = vadd.f32 %v1185_v56, %v2471_v21  ;;  %v1365_v25 = vmul.f32 %v2491_v41, %v2491_v41 }
 0x132   : > { %1086 = vst [vmem:[%s2251_s26 + $0x150] sm:$0xff] %v2636_v38  ;;  %1146 = vst [vmem:[%s2251_s26 + $0x330] sm:$0xff] %v2660_v8  ;;  %v1255_v21 = vadd.f32 %v1254_v3, %v2479_v0  ;;  %v1368_v56 = vmul.f32 %v2538_v20, %v2538_v20 }
 0x133   : > { %v2650_v46 = vpop.f32.mrf.mxu0  ;;  %v2674_v2 = vpop.f32.mrf.mxu1  ;;  %v1542_v57 = vadd.f32 %v1541_v59, %v1360_v34  ;;  %v1474_v37 = vadd.f32 %v1473_v30, %v1361_v18  ;;  %v1187_v18 = vadd.f32 %v1186_v4, %v2491_v41  ;;  %v1367_v30 = vmul.f32 %v2524_v10, %v2524_v10 }
 0x134   : > { %1087 = vst [vmem:[%s2251_s26 + $0x158] sm:$0xff] %v2650_v46  ;;  %1147 = vst [vmem:[%s2251_s26 + $0x338] sm:$0xff] %v2674_v2  ;;  %v1256_v41 = vadd.f32 %v1255_v21, %v2509_v19  ;;  %v1370_v4 = vmul.f32 %v2566_v58, %v2566_v58 }
 0x135   : > { %v2664_v54 = vpop.f32.mrf.mxu0  ;;  %v2688_v32 = vpop.f32.mrf.mxu1  ;;  %v1543_v28 = vadd.f32 %v1542_v57, %v1362_v7  ;;  %v1475_v6 = vadd.f32 %v1474_v37, %v1363_v16  ;;  %v1188_v16 = vadd.f32 %v1187_v18, %v2524_v10  ;;  %v1369_v37 = vmul.f32 %v2552_v31, %v2552_v31 }
 0x136   : > { %1088 = vst [vmem:[%s2251_s26 + $0x160] sm:$0xff] %v2664_v54  ;;  %1148 = vst [vmem:[%s2251_s26 + $0x340] sm:$0xff] %v2688_v32  ;;  %v1257_v10 = vadd.f32 %v1256_v41, %v2538_v20  ;;  %v1372_v18 = vmul.f32 %v2594_v47, %v2594_v47 }
 0x137   : > { %v2678_v61 = vpop.f32.mrf.mxu0  ;;  %v2702_v34 = vpop.f32.mrf.mxu1  ;;  %v1544_v35 = vadd.f32 %v1543_v28, %v1364_v43  ;;  %v1476_v0 = vadd.f32 %v1475_v6, %v1365_v25  ;;  %v1189_v25 = vadd.f32 %v1188_v16, %v2552_v31  ;;  %v1371_v6 = vmul.f32 %v2580_v27, %v2580_v27 }
 0x138   : > { %1089 = vst [vmem:[%s2251_s26 + $0x168] sm:$0xff] %v2678_v61  ;;  %1149 = vst [vmem:[%s2251_s26 + $0x348] sm:$0xff] %v2702_v34  ;;  %v1258_v31 = vadd.f32 %v1257_v10, %v2566_v58  ;;  %v1374_v16 = vmul.f32 %v2622_v44, %v2622_v44 }
 0x139   : > { %v2692_v15 = vpop.f32.mrf.mxu0  ;;  %v2716_v7 = vpop.f32.mrf.mxu1  ;;  %v1545_v3 = vadd.f32 %v1544_v35, %v1366_v49  ;;  %v1477_v19 = vadd.f32 %v1476_v0, %v1367_v30  ;;  %v1190_v30 = vadd.f32 %v1189_v25, %v2580_v27  ;;  %v1373_v0 = vmul.f32 %v2608_v1, %v2608_v1 }
 0x13a   : > { %1090 = vst [vmem:[%s2251_s26 + $0x170] sm:$0xff] %v2692_v15  ;;  %1150 = vst [vmem:[%s2251_s26 + $0x350] sm:$0xff] %v2716_v7  ;;  %v1259_v27 = vadd.f32 %v1258_v31, %v2594_v47  ;;  %v1376_v25 = vmul.f32 %v2650_v46, %v2650_v46 }
 0x13b   : > { %v2706_v59 = vpop.f32.mrf.mxu0  ;;  %v2730_v43 = vpop.f32.mrf.mxu1  ;;  %v1546_v21 = vadd.f32 %v1545_v3, %v1368_v56  ;;  %v1478_v20 = vadd.f32 %v1477_v19, %v1369_v37  ;;  %v1191_v37 = vadd.f32 %v1190_v30, %v2608_v1  ;;  %v1375_v19 = vmul.f32 %v2636_v38, %v2636_v38 }
 0x13c   : > { %1091 = vst [vmem:[%s2251_s26 + $0x178] sm:$0xff] %v2706_v59  ;;  %1151 = vst [vmem:[%s2251_s26 + $0x358] sm:$0xff] %v2730_v43  ;;  %v1260_v47 = vadd.f32 %v1259_v27, %v2622_v44  ;;  %v1378_v30 = vmul.f32 %v2678_v61, %v2678_v61 }
 0x13d   : > { %v2720_v57 = vpop.f32.mrf.mxu0  ;;  %v2744_v49 = vpop.f32.mrf.mxu1  ;;  %v1547_v41 = vadd.f32 %v1546_v21, %v1370_v4  ;;  %v1479_v58 = vadd.f32 %v1478_v20, %v1371_v6  ;;  %v1192_v1 = vadd.f32 %v1191_v37, %v2636_v38  ;;  %v1377_v20 = vmul.f32 %v2664_v54, %v2664_v54 }
 0x13e   : > { %1092 = vst [vmem:[%s2251_s26 + $0x180] sm:$0xff] %v2720_v57  ;;  %1152 = vst [vmem:[%s2251_s26 + $0x360] sm:$0xff] %v2744_v49  ;;  %v1261_v44 = vadd.f32 %v1260_v47, %v2650_v46  ;;  %v1380_v37 = vmul.f32 %v2706_v59, %v2706_v59 }
 0x13f   : > { %v2734_v28 = vpop.f32.mrf.mxu0  ;;  %v2758_v56 = vpop.f32.mrf.mxu1  ;;  %v1548_v10 = vadd.f32 %v1547_v41, %v1372_v18  ;;  %v1480_v6 = vadd.f32 %v1479_v58, %v1373_v0  ;;  %v1193_v38 = vadd.f32 %v1192_v1, %v2664_v54  ;;  %v1379_v58 = vmul.f32 %v2692_v15, %v2692_v15 }
 0x140   : > { %1093 = vst [vmem:[%s2251_s26 + $0x188] sm:$0xff] %v2734_v28  ;;  %1153 = vst [vmem:[%s2251_s26 + $0x368] sm:$0xff] %v2758_v56  ;;  %v1262_v46 = vadd.f32 %v1261_v44, %v2678_v61  ;;  %v1382_v1 = vmul.f32 %v2734_v28, %v2734_v28 }
 0x141   : > { %v2748_v35 = vpop.f32.mrf.mxu0  ;;  %v2772_v4 = vpop.f32.mrf.mxu1  ;;  %v1549_v18 = vadd.f32 %v1548_v10, %v1374_v16  ;;  %v1481_v0 = vadd.f32 %v1480_v6, %v1375_v19  ;;  %v1194_v54 = vadd.f32 %v1193_v38, %v2692_v15  ;;  %v1381_v6 = vmul.f32 %v2720_v57, %v2720_v57 }
 0x142   : > { %1094 = vst [vmem:[%s2251_s26 + $0x190] sm:$0xff] %v2748_v35  ;;  %1154 = vst [vmem:[%s2251_s26 + $0x370] sm:$0xff] %v2772_v4  ;;  %v1263_v61 = vadd.f32 %v1262_v46, %v2706_v59 }
 0x143   : > { %v2762_v3 = vpop.f32.mrf.mxu0  ;;  %v2783_v31 = vpop.f32.mrf.mxu1  ;;  %v1550_v16 = vadd.f32 %v1549_v18, %v1376_v25  ;;  %v1482_v19 = vadd.f32 %v1481_v0, %v1377_v20  ;;  %v1195_v15 = vadd.f32 %v1194_v54, %v2720_v57  ;;  %v1383_v0 = vmul.f32 %v2748_v35, %v2748_v35 }
 0x144   : > { %1095 = vst [vmem:[%s2251_s26 + $0x198] sm:$0xff] %v2762_v3  ;;  %3132 = vst [vmem:[#allocation13_spill] sm:$0xff] %v2783_v31  ;;  %v1384_v38 = vmul.f32 %v2762_v3, %v2762_v3  ;;  %v1264_v59 = vadd.f32 %v1263_v61, %v2734_v28 }
 0x145   : > { %v855_v21 = vpop.f32.mrf.mxu0  ;;  %1155 = vst [vmem:[%s2251_s26 + $0x378] sm:$0xff] %v2783_v31  ;;  %v2794_v27 = vpop.f32.mrf.mxu1  ;;  %v1551_v25 = vadd.f32 %v1550_v16, %v1378_v30  ;;  %v1483_v20 = vadd.f32 %v1482_v19, %v1379_v58  ;;  %v1196_v57 = vadd.f32 %v1195_v15, %v2748_v35 }
 0x146   : > { %1096 = vst [vmem:[%s2251_s26 + $0x1a0] sm:$0xff] %v855_v21  ;;  %3133 = vst [vmem:[#allocation14_spill] sm:$0xff] %v2794_v27  ;;  %v1385_v19 = vmul.f32 %v855_v21, %v855_v21 }
 0x147   : > { %v857_v41 = vpop.f32.mrf.mxu0  ;;  %1156 = vst [vmem:[%s2251_s26 + $0x380] sm:$0xff] %v2794_v27  ;;  %v2805_v47 = vpop.f32.mrf.mxu1  ;;  %v1552_v30 = vadd.f32 %v1551_v25, %v1380_v37  ;;  %v1484_v58 = vadd.f32 %v1483_v20, %v1381_v6  ;;  %v1265_v27 = vadd.f32 %v1264_v59, %v2762_v3 }
 0x148   : > { %1097 = vst [vmem:[%s2251_s26 + $0x1a8] sm:$0xff] %v857_v41  ;;  %3134 = vst [vmem:[#allocation15_spill] sm:$0xff] %v2805_v47 }
 0x149   : > { %v859_v10 = vpop.f32.mrf.mxu0  ;;  %1157 = vst [vmem:[%s2251_s26 + $0x388] sm:$0xff] %v2805_v47  ;;  %v2816_v44 = vpop.f32.mrf.mxu1  ;;  %v1553_v54 = vadd.f32 %v1552_v30, %v1382_v1  ;;  %v1386_v47 = vmul.f32 %v857_v41, %v857_v41  ;;  %v1485_v25 = vadd.f32 %v1484_v58, %v1383_v0  ;;  %v1266_v15 = vadd.f32 %v1265_v27, %v857_v41 }
 0x14a   : > { %1098 = vst [vmem:[%s2251_s26 + $0x1b0] sm:$0xff] %v859_v10  ;;  %3135 = vst [vmem:[#allocation16_spill] sm:$0xff] %v2816_v44  ;;  %v1387_v6 = vmul.f32 %v859_v10, %v859_v10 }
 0x14b   : > { %v861_v18 = vpop.f32.mrf.mxu0  ;;  %1158 = vst [vmem:[%s2251_s26 + $0x390] sm:$0xff] %v2816_v44  ;;  %v2825_v46 = vpop.f32.mrf.mxu1  ;;  %v1197_v44 = vadd.f32 %v1196_v57, %v855_v21  ;;  %v1554_v35 = vadd.f32 %v1553_v54, %v1384_v38  ;;  %v1486_v1 = vadd.f32 %v1485_v25, %v1385_v19 }
 0x14c   : > { %1099 = vst [vmem:[%s2251_s26 + $0x1b8] sm:$0xff] %v861_v18  ;;  %1159 = vst [vmem:[%s2251_s26 + $0x398] sm:$0xff] %v2825_v46  ;;  %v1388_v20 = vmul.f32 %v861_v18, %v861_v18  ;;  %v1267_v59 = vadd.f32 %v1266_v15, %v861_v18 }
 0x14d   : > { %v865_v16 = vpop.f32.mrf.mxu0  ;;  %v2831_v28 = vpop.f32.mrf.mxu1  ;;  %v1198_v30 = vadd.f32 %v1197_v44, %v859_v10  ;;  %v1555_v3 = vadd.f32 %v1554_v35, %v1386_v47  ;;  %v1487_v38 = vadd.f32 %v1486_v1, %v1387_v6 }
 0x14e   : > { %1100 = vst [vmem:[%s2251_s26 + $0x1c0] sm:$0xff] %v865_v16  ;;  %1160 = vst [vmem:[%s2251_s26 + $0x3a0] sm:$0xff] %v2831_v28  ;;  %v1389_v31 = vmul.f32 %v865_v16, %v865_v16 }
 0x14f   : > { %v867_v37 = vpop.f32.mrf.mxu0  ;;  %v2836_v0 = vpop.f32.mrf.mxu1  ;;  %v1199_v57 = vadd.f32 %v1198_v30, %v865_v16  ;;  %v1556_v41 = vadd.f32 %v1555_v3, %v1388_v20 }
 0x150   : > { %1101 = vst [vmem:[%s2251_s26 + $0x1c8] sm:$0xff] %v867_v37  ;;  %v1390_v21 = vmul.f32 %v867_v37, %v867_v37  ;;  %1161 = vst [vmem:[%s2251_s26 + $0x3a8] sm:$0xff] %v2836_v0  ;;  %v1488_v47 = vadd.f32 %v1487_v38, %v1389_v31  ;;  %v1268_v44 = vadd.f32 %v1267_v59, %v867_v37 }
 0x151   : > { %v869_v61 = vpop.f32.mrf.mxu0  ;;  %v2841_v19 = vpop.f32.mrf.mxu1 }
 0x152   : > { %1102 = vst [vmem:[%s2251_s26 + $0x1d0] sm:$0xff] %v869_v61  ;;  %v1391_v54 = vmul.f32 %v869_v61, %v869_v61  ;;  %1162 = vst [vmem:[%s2251_s26 + $0x3b0] sm:$0xff] %v2841_v19  ;;  %v1200_v25 = vadd.f32 %v1199_v57, %v869_v61  ;;  %v1557_v16 = vadd.f32 %v1556_v41, %v1390_v21 }
 0x153   : > { %v871_v58 = vpop.f32.mrf.mxu0  ;;  %v2846_v18 = vpop.f32.mrf.mxu1 }
 0x154   : > { %1103 = vst [vmem:[%s2251_s26 + $0x1d8] sm:$0xff] %v871_v58  ;;  %v1392_v27 = vmul.f32 %v871_v58, %v871_v58  ;;  %1163 = vst [vmem:[%s2251_s26 + $0x3b8] sm:$0xff] %v2846_v18  ;;  %v1489_v1 = vadd.f32 %v1488_v47, %v1391_v54  ;;  %v1269_v20 = vadd.f32 %v1268_v44, %v871_v58 }
 0x155   : > { %v875_v10 = vpop.f32.mrf.mxu0  ;;  %v2851_v3 = vpop.f32.mrf.mxu1  ;;  %v1397_v58 = vmul.f32 %v2277_v50, %v2277_v50 }
 0x156   : > { %1104 = vst [vmem:[%s2251_s26 + $0x1e0] sm:$0xff] %v875_v10  ;;  %v1393_v35 = vmul.f32 %v875_v10, %v875_v10  ;;  %v1201_v15 = vadd.f32 %v1200_v25, %v875_v10  ;;  %v1558_v31 = vadd.f32 %v1557_v16, %v1392_v27  ;;  %1164 = vst [vmem:[%s2251_s26 + $0x3c0] sm:$0xff] %v2851_v3 }
 0x157   : > { %v877_v6 = vpop.f32.mrf.mxu0  ;;  %v2856_v57 = vpop.f32.mrf.mxu1  ;;  %v1399_v16 = vmul.f32 %v2293_v62, %v2293_v62 }
 0x158   : > { %1105 = vst [vmem:[%s2251_s26 + $0x1e8] sm:$0xff] %v877_v6  ;;  %v1394_v30 = vmul.f32 %v877_v6, %v877_v6  ;;  %v1490_v61 = vadd.f32 %v1489_v1, %v1393_v35  ;;  %v1270_v38 = vadd.f32 %v1269_v20, %v877_v6  ;;  %1165 = vst [vmem:[%s2251_s26 + $0x3c8] sm:$0xff] %v2856_v57 }
 0x159   : > { %v879_v37 = vpop.f32.mrf.mxu0  ;;  %v2864_v25 = vpop.f32.mrf.mxu1  ;;  %v1398_v35 = vmul.f32 %v2285_v14, %v2285_v14 }
 0x15a   : > { %1106 = vst [vmem:[%s2251_s26 + $0x1f0] sm:$0xff] %v879_v37  ;;  %v1202_v21 = vadd.f32 %v1201_v15, %v879_v37  ;;  %v1395_v59 = vmul.f32 %v879_v37, %v879_v37  ;;  %v1559_v54 = vadd.f32 %v1558_v31, %v1394_v30  ;;  %1166 = vst [vmem:[%s2251_s26 + $0x3d0] sm:$0xff] %v2864_v25 }
 0x15b   : > { %v881_v41 = vpop.f32.mrf.mxu0  ;;  %v2874_v15 = vpop.f32.mrf.mxu1  ;;  %v1400_v30 = vmul.f32 %v2301_v51, %v2301_v51  ;;  %v1401_v31 = vmul.f32 %v2309_v24, %v2309_v24 }
 0x15c   : > { %v1203_v27 = vadd.f32 %v1202_v21, %v2277_v50  ;;  %v1491_v10 = vadd.f32 %v1490_v61, %v1395_v59  ;;  %1107 = vst [vmem:[%s2251_s26 + $0x1f8] sm:$0xff] %v881_v41  ;;  %v1271_v47 = vadd.f32 %v1270_v38, %v881_v41  ;;  %v1396_v44 = vmul.f32 %v881_v41, %v881_v41 }
 0x15d   : > { %1167 = vst [vmem:[%s2251_s26 + $0x3d8] sm:$0xff] %v2874_v15  ;;  %v2884_v21 = vpop.f32.mrf.mxu1  ;;  %v1403_v59 = vmul.f32 %v2325_v45, %v2325_v45 }
 0x15e   : > { %v1204_v6 = vadd.f32 %v1203_v27, %v2293_v62  ;;  %v1492_v1 = vadd.f32 %v1491_v10, %v1397_v58  ;;  %v1272_v50 = vadd.f32 %v1271_v47, %v2285_v14  ;;  %v1560_v20 = vadd.f32 %v1559_v54, %v1396_v44  ;;  %1168 = vst [vmem:[%s2251_s26 + $0x3e0] sm:$0xff] %v2884_v21 }
 0x15f   : > { %v1402_v14 = vmul.f32 %v2317_v42, %v2317_v42  ;;  %v2894_v27 = vpop.f32.mrf.mxu1  ;;  %v1405_v10 = vmul.f32 %v2341_v53, %v2341_v53 }
 0x160   : > { %v1205_v37 = vadd.f32 %v1204_v6, %v2309_v24  ;;  %v1493_v61 = vadd.f32 %v1492_v1, %v1399_v16  ;;  %v1273_v62 = vadd.f32 %v1272_v50, %v2301_v51  ;;  %v1561_v38 = vadd.f32 %v1560_v20, %v1398_v35  ;;  %1169 = vst [vmem:[%s2251_s26 + $0x3e8] sm:$0xff] %v2894_v27 }
 0x161   : > { %v1404_v51 = vmul.f32 %v2333_v48, %v2333_v48  ;;  %v2904_v16 = vpop.f32.mrf.mxu1  ;;  %v1407_v6 = vmul.f32 %v2357_v60, %v2357_v60 }
 0x162   : > { %v1206_v58 = vadd.f32 %v1205_v37, %v2325_v45  ;;  %v1494_v54 = vadd.f32 %v1493_v61, %v1401_v31  ;;  %v1274_v24 = vadd.f32 %v1273_v62, %v2317_v42  ;;  %v1562_v41 = vadd.f32 %v1561_v38, %v1400_v30  ;;  %1170 = vst [vmem:[%s2251_s26 + $0x3f0] sm:$0xff] %v2904_v16 }
 0x163   : > { %v1406_v42 = vmul.f32 %v2349_v55, %v2349_v55  ;;  %v2914_v30 = vpop.f32.mrf.mxu1  ;;  %v1409_v31 = vmul.f32 %v2373_v5, %v2373_v5  ;;  %v1411_v38 = vmul.f32 %v2389_v52, %v2389_v52 }
 0x164   : > { %v1207_v47 = vadd.f32 %v1206_v58, %v2341_v53  ;;  %v1495_v44 = vadd.f32 %v1494_v54, %v1403_v59  ;;  %v1275_v45 = vadd.f32 %v1274_v24, %v2333_v48  ;;  %v1563_v35 = vadd.f32 %v1562_v41, %v1402_v14  ;;  %1171 = vst [vmem:[%s2251_s26 + $0x3f8] sm:$0xff] %v2914_v30 }
 0x165   : > { %v1408_v48 = vmul.f32 %v2365_v63, %v2365_v63  ;;  %v1412_v24 = vmul.f32 %v2397_v12, %v2397_v12 }
 0x166   : > { %v1208_v1 = vadd.f32 %v1207_v47, %v2357_v60  ;;  %v1496_v50 = vadd.f32 %v1495_v44, %v1405_v10  ;;  %v1276_v20 = vadd.f32 %v1275_v45, %v2349_v55  ;;  %v1564_v53 = vadd.f32 %v1563_v35, %v1404_v51  ;;  %v3137_v44 = vld [vmem:[#allocation3_spill] sm:$0xff] }
 0x167   : > { %v1410_v55 = vmul.f32 %v2381_v17, %v2381_v17  ;;  %v1414_v45 = vmul.f32 %v3137_v44, %v3137_v44 }
 0x168   : > { %v1209_v37 = vadd.f32 %v1208_v1, %v2373_v5  ;;  %v1497_v61 = vadd.f32 %v1496_v50, %v1407_v6  ;;  %v1277_v62 = vadd.f32 %v1276_v20, %v2365_v63  ;;  %v1565_v60 = vadd.f32 %v1564_v53, %v1406_v42  ;;  %v3136_v5 = vld [vmem:[#allocation2_spill] sm:$0xff]  ;;  %v3139_v50 = vld [vmem:[#allocation5_spill] sm:$0xff] }
 0x169   : > { %v1413_v41 = vmul.f32 %v3136_v5, %v3136_v5  ;;  %v1416_v20 = vmul.f32 %v3139_v50, %v3139_v50  ;;  %v3140_v53 = vld [vmem:[#allocation6_spill] sm:$0xff] }
 0x16a   : > { %v1210_v14 = vadd.f32 %v1209_v37, %v2389_v52  ;;  %v1498_v59 = vadd.f32 %v1497_v61, %v1409_v31  ;;  %v1278_v58 = vadd.f32 %v1277_v62, %v2381_v17  ;;  %v1566_v54 = vadd.f32 %v1565_v60, %v1408_v48  ;;  %v3138_v52 = vld [vmem:[#allocation4_spill] sm:$0xff]  ;;  %v3141_v62 = vld [vmem:[#allocation7_spill] sm:$0xff] }
 0x16b   : > { %v1415_v35 = vmul.f32 %v3138_v52, %v3138_v52  ;;  %v1418_v60 = vmul.f32 %v3141_v62, %v3141_v62 }
 0x16c   : > { %v1499_v63 = vadd.f32 %v1498_v59, %v1411_v38  ;;  %v1279_v51 = vadd.f32 %v1278_v58, %v2397_v12  ;;  %v1567_v10 = vadd.f32 %v1566_v54, %v1410_v55  ;;  %v1211_v47 = vadd.f32 %v1210_v14, %v3136_v5  ;;  %v3142_v55 = vld [vmem:[#allocation8_spill] sm:$0xff] }
 0x16d   : > { %v1417_v12 = vmul.f32 %v3140_v53, %v3140_v53  ;;  %v1419_v38 = vmul.f32 %v3142_v55, %v3142_v55 }
 0x16e   : > { %v1280_v17 = vadd.f32 %v1279_v51, %v3137_v44  ;;  %v1568_v42 = vadd.f32 %v1567_v10, %v1412_v24  ;;  %v1212_v6 = vadd.f32 %v1211_v47, %v3138_v52  ;;  %v1500_v1 = vadd.f32 %v1499_v63, %v1413_v41  ;;  %v3143_v24 = vld [vmem:[#allocation9_spill] sm:$0xff]  ;;  %v3144_v41 = vld [vmem:[#allocation10_spill] sm:$0xff] }
 0x16f   : > { %v1420_v5 = vmul.f32 %v3143_v24, %v3143_v24  ;;  %v1421_v63 = vmul.f32 %v3144_v41, %v3144_v41 }
 0x170   : > { %v1569_v48 = vadd.f32 %v1568_v42, %v1414_v45  ;;  %v1213_v31 = vadd.f32 %v1212_v6, %v3140_v53  ;;  %v1501_v37 = vadd.f32 %v1500_v1, %v1415_v35  ;;  %v1281_v61 = vadd.f32 %v1280_v17, %v3139_v50  ;;  %v3145_v45 = vld [vmem:[#allocation11_spill] sm:$0xff]  ;;  %v3146_v35 = vld [vmem:[#allocation12_spill] sm:$0xff] }
 0x171   : > { %v1422_v52 = vmul.f32 %v3145_v45, %v3145_v45  ;;  %v1423_v17 = vmul.f32 %v3146_v35, %v3146_v35  ;;  %v1425_v53 = vmul.f32 %v2520_v29, %v2520_v29 }
 0x172   : > { %v1214_v14 = vadd.f32 %v1213_v31, %v3142_v55  ;;  %v1502_v59 = vadd.f32 %v1501_v37, %v1417_v12  ;;  %v1282_v58 = vadd.f32 %v1281_v61, %v3141_v62  ;;  %v1570_v54 = vadd.f32 %v1569_v48, %v1416_v20 }
 0x173   : > { %v1424_v20 = vmul.f32 %v2503_v13, %v2503_v13  ;;  %v1426_v61 = vmul.f32 %v2534_v39, %v2534_v39  ;;  %v1427_v62 = vmul.f32 %v2548_v26, %v2548_v26 }
 0x174   : > { %v1215_v51 = vadd.f32 %v1214_v14, %v3144_v41  ;;  %v1503_v10 = vadd.f32 %v1502_v59, %v1419_v38  ;;  %v1283_v47 = vadd.f32 %v1282_v58, %v3143_v24  ;;  %v1571_v44 = vadd.f32 %v1570_v54, %v1418_v60 }
 0x175   : > { %v1428_v59 = vmul.f32 %v2562_v23, %v2562_v23 }
 0x176   : > { %v1216_v42 = vadd.f32 %v1215_v51, %v3146_v35  ;;  %v1504_v6 = vadd.f32 %v1503_v10, %v1421_v63  ;;  %v1284_v1 = vadd.f32 %v1283_v47, %v3145_v45  ;;  %v1572_v50 = vadd.f32 %v1571_v44, %v1420_v5 }
 0x177   : > { %v1430_v5 = vmul.f32 %v2590_v9, %v2590_v9  ;;  %v1432_v10 = vmul.f32 %v2618_v36, %v2618_v36 }
 0x178   : > { %v1217_v12 = vadd.f32 %v1216_v42, %v2520_v29  ;;  %v1505_v48 = vadd.f32 %v1504_v6, %v1423_v17  ;;  %v1285_v31 = vadd.f32 %v1284_v1, %v2503_v13  ;;  %v1573_v37 = vadd.f32 %v1572_v50, %v1422_v52 }
 0x179   : > { %v1429_v29 = vmul.f32 %v2576_v22, %v2576_v22  ;;  %v1434_v52 = vmul.f32 %v2646_v40, %v2646_v40  ;;  %v1436_v6 = vmul.f32 %v2674_v2, %v2674_v2 }
 0x17a   : > { %v1218_v60 = vadd.f32 %v1217_v12, %v2548_v26  ;;  %v1506_v55 = vadd.f32 %v1505_v48, %v1425_v53  ;;  %v1286_v38 = vadd.f32 %v1285_v31, %v2534_v39  ;;  %v1574_v14 = vadd.f32 %v1573_v37, %v1424_v20 }
 0x17b   : > { %v1431_v26 = vmul.f32 %v2604_v11, %v2604_v11  ;;  %v1438_v53 = vmul.f32 %v2702_v34, %v2702_v34  ;;  %v1440_v37 = vmul.f32 %v2730_v43, %v2730_v43 }
 0x17c   : > { %v1219_v13 = vadd.f32 %v1218_v60, %v2576_v22  ;;  %v1507_v58 = vadd.f32 %v1506_v55, %v1427_v62  ;;  %v1287_v54 = vadd.f32 %v1286_v38, %v2562_v23  ;;  %v1575_v24 = vadd.f32 %v1574_v14, %v1426_v61 }
 0x17d   : > { %v1433_v22 = vmul.f32 %v2632_v33, %v2632_v33  ;;  %v1442_v55 = vmul.f32 %v2758_v56, %v2758_v56 }
 0x17e   : > { %v1220_v39 = vadd.f32 %v1219_v13, %v2604_v11  ;;  %v1508_v41 = vadd.f32 %v1507_v58, %v1429_v29  ;;  %v1288_v63 = vadd.f32 %v1287_v54, %v2590_v9  ;;  %v1576_v51 = vadd.f32 %v1575_v24, %v1428_v59  ;;  %v3147_v29 = vld [vmem:[#allocation13_spill] sm:$0xff]  ;;  %v3148_v58 = vld [vmem:[#allocation14_spill] sm:$0xff] }
 0x17f   : > { %v1435_v11 = vmul.f32 %v2660_v8, %v2660_v8  ;;  %v1444_v13 = vmul.f32 %v3147_v29, %v3147_v29 }
 0x180   : > { %v1509_v23 = vadd.f32 %v1508_v41, %v1431_v26  ;;  %v1289_v47 = vadd.f32 %v1288_v63, %v2618_v36  ;;  %v1577_v44 = vadd.f32 %v1576_v51, %v1430_v5  ;;  %v1221_v45 = vadd.f32 %v1220_v39, %v2632_v33  ;;  %v3149_v26 = vld [vmem:[#allocation15_spill] sm:$0xff]  ;;  %v3150_v41 = vld [vmem:[#allocation16_spill] sm:$0xff] }
 0x181   : > { %v1437_v36 = vmul.f32 %v2688_v32, %v2688_v32  ;;  %v1446_v39 = vmul.f32 %v3149_v26, %v3149_v26 }
 0x182   : > { %v1578_v9 = vadd.f32 %v1577_v44, %v1432_v10  ;;  %v1510_v35 = vadd.f32 %v1509_v23, %v1433_v22  ;;  %v1290_v17 = vadd.f32 %v1289_v47, %v2646_v40  ;;  %v1222_v42 = vadd.f32 %v1221_v45, %v2660_v8 }
 0x183   : > { %v1439_v40 = vmul.f32 %v2716_v7, %v2716_v7  ;;  %v1448_v22 = vmul.f32 %v2825_v46, %v2825_v46  ;;  %v1449_v23 = vmul.f32 %v2831_v28, %v2831_v28 }
 0x184   : > { %v1579_v1 = vadd.f32 %v1578_v9, %v1434_v52  ;;  %v1511_v33 = vadd.f32 %v1510_v35, %v1435_v11  ;;  %v1291_v50 = vadd.f32 %v1290_v17, %v2674_v2  ;;  %v1223_v20 = vadd.f32 %v1222_v42, %v2688_v32 }
 0x185   : > { %v1441_v2 = vmul.f32 %v2744_v49, %v2744_v49  ;;  %v1450_v11 = vmul.f32 %v2836_v0, %v2836_v0  ;;  %v1451_v9 = vmul.f32 %v2841_v19, %v2841_v19 }
 0x186   : > { %v1580_v12 = vadd.f32 %v1579_v1, %v1436_v6  ;;  %v1512_v8 = vadd.f32 %v1511_v33, %v1437_v36  ;;  %v1292_v48 = vadd.f32 %v1291_v50, %v2702_v34  ;;  %v1224_v31 = vadd.f32 %v1223_v20, %v2716_v7 }
 0x187   : > { %v1443_v34 = vmul.f32 %v2772_v4, %v2772_v4  ;;  %v1452_v36 = vmul.f32 %v2846_v18, %v2846_v18  ;;  %v1454_v20 = vmul.f32 %v2856_v57, %v2856_v57 }
 0x188   : > { %v1581_v61 = vadd.f32 %v1580_v12, %v1438_v53  ;;  %v1513_v32 = vadd.f32 %v1512_v8, %v1439_v40  ;;  %v1293_v62 = vadd.f32 %v1292_v48, %v2730_v43  ;;  %v1225_v60 = vadd.f32 %v1224_v31, %v2744_v49 }
 0x189   : > { %v1445_v43 = vmul.f32 %v3148_v58, %v3148_v58  ;;  %v1456_v8 = vmul.f32 %v2874_v15, %v2874_v15 }
 0x18a   : > { %v1582_v38 = vadd.f32 %v1581_v61, %v1440_v37  ;;  %v1514_v7 = vadd.f32 %v1513_v32, %v1441_v2  ;;  %v1294_v14 = vadd.f32 %v1293_v62, %v2758_v56  ;;  %v1226_v59 = vadd.f32 %v1225_v60, %v2772_v4 }
 0x18b   : > { %v1447_v56 = vmul.f32 %v3150_v41, %v3150_v41  ;;  %v1458_v2 = vmul.f32 %v2894_v27, %v2894_v27  ;;  %v1460_v60 = vmul.f32 %v2914_v30, %v2914_v30 }
 0x18c   : > { %v1583_v54 = vadd.f32 %v1582_v38, %v1442_v55  ;;  %v1515_v49 = vadd.f32 %v1514_v7, %v1443_v34  ;;  %v1295_v24 = vadd.f32 %v1294_v14, %v3147_v29  ;;  %v1227_v5 = vadd.f32 %v1226_v59, %v3148_v58 }
 0x18d   : > { %v1808_v29 = vmov 1966171168   ;;  %v1316_v58 = vlaneseq }
 0x18e   : > { %v1584_v63 = vadd.f32 %v1583_v54, %v1444_v13  ;;  %v1516_v4 = vadd.f32 %v1515_v49, %v1445_v43  ;;  %v1296_v51 = vadd.f32 %v1295_v24, %v3149_v26  ;;  %v1228_v10 = vadd.f32 %v1227_v5, %v3150_v41 }
 0x18f   : > { %v1314_v13 = vunpack.c.l.s4 %v1808_v29  ;;  %v1317_v41 = vshrl.u32 %v1316_v58, 7  ;;  %vm1330_vm1 = vcmp.lt.s32.totalorder %v1316_v58, 256 }
 0x190   : > { %v1585_v47 = vadd.f32 %v1584_v63, %v1446_v39  ;;  %v1517_v44 = vadd.f32 %v1516_v4, %v1447_v56  ;;  %v1297_v45 = vadd.f32 %v1296_v51, %v2825_v46  ;;  %v1229_v52 = vadd.f32 %v1228_v10, %v2831_v28 }
 0x191   : > { %v1453_v46 = vmul.f32 %v2851_v3, %v2851_v3  ;;  %v1315_v39 = vunpack.c.0.s8 %v1314_v13 }
 0x192   : > { %v1586_v35 = vadd.f32 %v1585_v47, %v1448_v22  ;;  %v1518_v17 = vadd.f32 %v1517_v44, %v1449_v23  ;;  %v1298_v42 = vadd.f32 %v1297_v45, %v2836_v0  ;;  %v1230_v6 = vadd.f32 %v1229_v52, %v2841_v19 }
 0x193   : > { %v1455_v0 = vmul.f32 %v2864_v25, %v2864_v25  ;;  %v1318_v44 = vsub.s32 %v1315_v39, %v1317_v41 }
 0x194   : > { %v1587_v1 = vadd.f32 %v1586_v35, %v1450_v11  ;;  %v1519_v28 = vadd.f32 %v1518_v17, %v1451_v9  ;;  %v1299_v33 = vadd.f32 %v1298_v42, %v2846_v18  ;;  %v1231_v50 = vadd.f32 %v1230_v6, %v2851_v3 }
 0x195   : > { %v1457_v18 = vmul.f32 %v2884_v21, %v2884_v21 }
 0x196   : > { %v1588_v53 = vadd.f32 %v1587_v1, %v1452_v36  ;;  %v1520_v19 = vadd.f32 %v1519_v28, %v1453_v46  ;;  %v1300_v40 = vadd.f32 %v1299_v33, %v2856_v57  ;;  %v1232_v12 = vadd.f32 %v1231_v50, %v2864_v25 }
 0x197   : > { %v1459_v57 = vmul.f32 %v2904_v16, %v2904_v16 }
 0x198   : > { %v1589_v48 = vadd.f32 %v1588_v53, %v1454_v20  ;;  %v1521_v3 = vadd.f32 %v1520_v19, %v1455_v0  ;;  %v1301_v31 = vadd.f32 %v1300_v40, %v2874_v15  ;;  %v1233_v37 = vadd.f32 %v1232_v12, %v2884_v21 }
 0x19a   : > { %v1590_v61 = vadd.f32 %v1589_v48, %v1456_v8  ;;  %v1522_v25 = vadd.f32 %v1521_v3, %v1457_v18  ;;  %v1302_v32 = vadd.f32 %v1301_v31, %v2894_v27  ;;  %v1234_v62 = vadd.f32 %v1233_v37, %v2904_v16 }
 0x19c   : > { %v1591_v55 = vadd.f32 %v1590_v61, %v1458_v2  ;;  %v1235_v34 = vrot.slane %v1234_v62, 4  ;;  %v1523_v15 = vadd.f32 %v1522_v25, %v1459_v57  ;;  %v1303_v21 = vadd.f32 %v1302_v32, %v2914_v30 }
 0x19e   : > { %v1236_v38 = vadd.f32 %v1235_v34, %v1234_v62  ;;  %v1524_v7 = vrot.slane %v1523_v15, 4  ;;  %v1304_v14 = vrot.slane %v1303_v21, 4  ;;  %v1592_v59 = vadd.f32 %v1591_v55, %v1460_v60 }
 0x1a0   : > { %v1237_v43 = vrot.slane %v1236_v38, 2  ;;  %v1525_v27 = vadd.f32 %v1524_v7, %v1523_v15  ;;  %v1305_v16 = vadd.f32 %v1304_v14, %v1303_v21  ;;  %v1593_v54 = vrot.slane %v1592_v59, 4 }
 0x1a2   : > { %v1238_v49 = vadd.f32 %v1237_v43, %v1236_v38  ;;  %v1526_v24 = vrot.slane %v1525_v27, 2  ;;  %v1306_v5 = vrot.slane %v1305_v16, 2  ;;  %v1594_v26 = vadd.f32 %v1593_v54, %v1592_v59 }
 0x1a4   : > { %v1239_v30 = vrot.slane %v1238_v49, 1  ;;  %v1527_v56 = vadd.f32 %v1526_v24, %v1525_v27  ;;  %v1307_v63 = vadd.f32 %v1306_v5, %v1305_v16  ;;  %v1595_v4 = vrot.slane %v1594_v26, 2 }
 0x1a6   : > { %v1528_v51 = vrot.slane %v1527_v56, 1  ;;  %v1308_v10 = vrot.slane %v1307_v63, 1  ;;  %v1596_v22 = vadd.f32 %v1595_v4, %v1594_v26  ;;  %v1240_v23 = vadd.f32 %v1239_v30, %v1238_v49 }
 0x1a8   : > { %v1309_v47 = vadd.f32 %v1308_v10, %v1307_v63  ;;  %v1597_v45 = vrot.slane %v1596_v22, 1  ;;  %v1529_v52 = vadd.f32 %v1528_v51, %v1527_v56 }
 0x1aa   : > { %v1312_v11 = vcombine.low %v1240_v23, %v1309_v47  ;;  %v1598_v9 = vadd.f32 %v1597_v45, %v1596_v22 }
 0x1ac   : > { %v1319_v35 = vrot.slane %v1312_v11, %v1318_v44  ;;  %v1601_v17 = vcombine.low %v1529_v52, %v1598_v9 }
 0x1ae   : > { %v1326_v42 = vrot.slane %v1319_v35, %v1318_v44  ;;  %v1608_v6 = vrot.slane %v1601_v17, %v1318_v44 }
 0x1b0   : > { %1332 = vst.msk [vmem:[%s242_s29] ss:$2 sm:$0x3] %vm1330_vm1, %v1326_v42  ;;  %v1615_v36 = vrot.slane %v1608_v6, %v1318_v44 }
 0x1b2   : > { %1764 = vst.msk [vmem:[%s242_s29 + $0x1] ss:$2 sm:$0x3] %vm1330_vm1, %v1615_v36 }
 0x1b3 PF: > { %s16_s18 = sadd.s32 1, %s1805_s18  }
 0x1b4   : > { %p13_p5 = scmp.ge.s32.totalorder %s16_s18, 4  }
 0x1b6   :  { %15 = sbr.rel (!%p13_p5) target bundleno = 1 (0x1), region = 79 }

// kernel: block_forward_nchw.7
= control target key start
LH: loop header
LB: loop body
LE: loop exit
PB: predicated region body
PF: predicated region fallthrough
CT: control target
= control target key end

     0   :  { %9 = vsyncpa [#allocation3], 0  ;;  %s2032_s0 = inlined_call_operand.vmem [shape: f32[1024,256], index: 0, kind: input, shape index: {}]   ;;  %s2033_s1 = inlined_call_operand.vmem [shape: f32[1,256], index: 1, kind: input, shape index: {}]   ;;  %s2034_s2 = inlined_call_operand.vmem [shape: f32[1,256], index: 2, kind: input, shape index: {}]   ;;  %s2035_s3 = inlined_call_operand.vmem [shape: f32[1024,256], index: 3, kind: input, shape index: {}]   ;;  %s2036_s4 = inlined_call_operand.hbm [shape: f32[1024,256], index: 4, kind: output, shape index: {}]  }
   0x1   :  { %11 = vsyncpa [#allocation3 + $0x1], 0  ;;  %s1260_s15 = smov 0   ;;  %s1262_s16 = smov 0  }
   0x2   :  { %s1264_s17 = smov 0   ;;  %s1266_s18 = smov 0  }
   0x3 LB: > { %s1281_s19 = sadd.s32 4294967295, %s1230_s18   ;;  %s1108_s20 = sadd.s32 4294967294, %s1230_s18   ;;  %s1230_s18 = sphi %s1266_s18, %s2042_s18   ;;  %s1226_s17 = sphi %s1264_s17, %s2041_s17   ;;  %s1222_s16 = sphi %s1262_s16, %s2040_s16   ;;  %s1218_s15 = sphi %s1260_s15, %s2039_s15  }
   0x4   : > { %s1285_s21 = sadd.s32 1, %s1230_s18   ;;  %s118_s22 = sadd.s32 1, %s1226_s17 }
   0x5   : > { %s115_s23 = ssub.s32 %s1230_s18, %s1285_s21  ;;  %p128_p0 = scmp.ne.s32.totalorder %s1226_s17, %s1222_s16 }
   0x6   : > { %p116_p1 = scmp.eq.s32.totalorder %s115_s23, 0  ;;  %p129_p2 = scmp.eq.s32.totalorder %s1281_s19, 1 }
   0x7   : > { %p134_p3 = scmp.ne.s32.totalorder %s1222_s16, %s1218_s15  ;;  %p135_p4 = scmp.eq.s32.totalorder %s1108_s20, 1 }
   0x8   : > { %s1296_s24 = scalar_select %p116_p1, %s1226_s17, %s118_s22  }
   0x9   : > { %p1298_p5 = por %p129_p2, %p128_p0  ;;  %p1302_p6 = por %p135_p4, %p134_p3 }
   0xa   : > { %p1111_p7 = scmp.ge.s32.totalorder %s1230_s18, 1  ;;  %p179_p8 = scmp.lt.s32.totalorder %s1230_s18, 3 }
   0xc   : > { %p180_p9 = pnand %p1111_p7, %p179_p8 }
   0xd   : > { %s1113_s27 = sshll.u32 (!%p180_p9), %s1281_s19, 6  ;;  %s209_s6 = sand.u32 (!%p180_p9), 1, %s1222_s16  }
   0xe   : > { %183 = sbr.rel (%p180_p9) target bundleno = 149 (0x95), region = 36  ;;  %p213_p10 = scmp.lt.s32.totalorder (!%p180_p9), %s1113_s27, 127 }
   0xf   : > { %s1338_s14 = sshll.u32 (!%p180_p9), %s209_s6, 10  ;;  %s1128_s22 = sshll.u32 (!%p180_p9), %s1281_s19, 14 }
  0x10   : > { %s1371_s20 = scalar_lea.vmem (!%p180_p9), [#allocation2], %s1338_s14  ;;  %s1983_s28 = scalar_lea.hbm (!%p180_p9), %s2036_s4, %s1128_s22 }
  0x11   : > { %s1034_s23 = sshll.u32 (!%p180_p9), %s1371_s20, 4  ;;  %s1992_s29 = scalar_lea.sflag (!%p180_p9), [#allocation3], %s209_s6  ;;  %s1985_s23 = int_to_ptr.vmem [resolvable:$true] %s1034_s23 }
  0x12   : > { %s1170_s30 = scalar_lea.vmem (!%p180_p9), %s1985_s23, 16384  ;;  %s1232_s5 = smov (!%p180_p9), [#allocation2]  }
  0x13   : > { %v357_v0 = vlaneseq  ;;  %s2044_s27 = smov (!%p213_p10, %s1113_s27), 127  ;;  %v355_v2 = vld [vmem:[%s2033_s1] sm:$0x3]  ;;  %p1171_p11 = scmp.ne.s32.totalorder %s1985_s23, %s1170_s30 }
  0x14   : > { %v495_v3 = vld [vmem:[%s2034_s2] sm:$0x3]  ;;  %s1125_s7 = sshll.u32 %s2044_s27, 4 }
  0x15   : > { %v358_v1 = vshrl.u32 %v357_v0, 7  ;;  %s1319_s10 = scalar_lea.vmem %s2032_s0, %s1125_s7  ;;  %s1324_s13 = scalar_lea.vmem %s2035_s3, %s1125_s7 }
  0x16   : > { %v227_v10 = vld [vmem:[%s1319_s10] sm:$0xff]  ;;  %v228_v11 = vld [vmem:[%s1319_s10 + $0x8] sm:$0xff]  ;;  %v229_v15 = vld [vmem:[%s1319_s10 + $0x10] sm:$0xff]  ;;  %p1172_p12 = pnand %p1171_p11, %p1298_p5  ;;  %s1174_s7 = sshll.u32 %s1232_s5, 4  ;;  %s1175_s7 = int_to_ptr.vmem [resolvable:$false] %s1174_s7 }
  0x17   : > { %v359_v4 = vsub.s32 0, %v358_v1  ;;  %v363_v5 = vsub.s32 1, %v358_v1  ;;  %v635_v13 = vld [vmem:[%s1324_s13] sm:$0xff]  ;;  %v636_v16 = vld [vmem:[%s1324_s13 + $0x8] sm:$0xff]  ;;  %v230_v18 = vld [vmem:[%s1319_s10 + $0x18] sm:$0xff]  ;;  %s1176_s8 = scalar_lea.vmem %s1175_s7, 32768  ;;  %p1177_p0 = scmp.lt.s32.totalorder %s1985_s23, %s1175_s7 }
  0x18   : > { %v231_v19 = vld [vmem:[%s1319_s10 + $0x20] sm:$0xff]  ;;  %v637_v22 = vld [vmem:[%s1324_s13 + $0x10] sm:$0xff]  ;;  %v638_v24 = vld [vmem:[%s1324_s13 + $0x18] sm:$0xff]  ;;  %p1173_p13 = pneg %p1172_p12  ;;  %p1178_p1 = scmp.lt.s32.totalorder %s1176_s8, %s1170_s30 }
  0x19   : > { %v1326_v6 = vrot.slane %v355_v2, %v359_v4  ;;  %v1328_v7 = vrot.slane %v495_v3, %v359_v4  ;;  %v1330_v8 = vrot.slane %v355_v2, %v363_v5  ;;  %v1332_v9 = vrot.slane %v495_v3, %v363_v5  ;;  %v232_v26 = vld [vmem:[%s1319_s10 + $0x28] sm:$0xff]  ;;  %v639_v28 = vld [vmem:[%s1324_s13 + $0x20] sm:$0xff]  ;;  %v233_v30 = vld [vmem:[%s1319_s10 + $0x30] sm:$0xff] }
  0x1a   : > { %v234_v31 = vld [vmem:[%s1319_s10 + $0x38] sm:$0xff]  ;;  %v640_v36 = vld [vmem:[%s1324_s13 + $0x28] sm:$0xff]  ;;  %v235_v37 = vld [vmem:[%s1319_s10 + $0x40] sm:$0xff]  ;;  %p1179_p2 = por %p1178_p1, %p1177_p0 }
  0x1b   : > { %v367_v12 = vmul.f32 %v1326_v6, %v227_v10  ;;  %v368_v14 = vmul.f32 %v1330_v8, %v228_v11  ;;  %v369_v17 = vmul.f32 %v1326_v6, %v229_v15  ;;  %v370_v23 = vmul.f32 %v1330_v8, %v230_v18  ;;  %v641_v41 = vld [vmem:[%s1324_s13 + $0x30] sm:$0xff]  ;;  %v236_v43 = vld [vmem:[%s1319_s10 + $0x48] sm:$0xff]  ;;  %v642_v47 = vld [vmem:[%s1324_s13 + $0x38] sm:$0xff] }
  0x1c   : > { %v371_v25 = vmul.f32 %v1326_v6, %v231_v19  ;;  %v372_v29 = vmul.f32 %v1330_v8, %v232_v26  ;;  %v373_v40 = vmul.f32 %v1326_v6, %v233_v30  ;;  %v374_v42 = vmul.f32 %v1330_v8, %v234_v31  ;;  %v237_v44 = vld [vmem:[%s1319_s10 + $0x50] sm:$0xff]  ;;  %v643_v49 = vld [vmem:[%s1324_s13 + $0x40] sm:$0xff]  ;;  %v238_v51 = vld [vmem:[%s1319_s10 + $0x58] sm:$0xff]  ;;  %p1180_p3 = pnand %p1179_p2, %p1173_p13 }
  0x1d   : > { %v507_v20 = vadd.f32 %v1328_v7, %v367_v12  ;;  %v508_v21 = vadd.f32 %v1332_v9, %v368_v14  ;;  %v509_v27 = vadd.f32 %v1328_v7, %v369_v17  ;;  %v510_v34 = vadd.f32 %v1332_v9, %v370_v23  ;;  %v644_v55 = vld [vmem:[%s1324_s13 + $0x48] sm:$0xff]  ;;  %v239_v57 = vld [vmem:[%s1319_s10 + $0x60] sm:$0xff]  ;;  %v645_v61 = vld [vmem:[%s1324_s13 + $0x50] sm:$0xff] }
  0x1e   : > { %v511_v35 = vadd.f32 %v1328_v7, %v371_v25  ;;  %v512_v39 = vadd.f32 %v1332_v9, %v372_v29  ;;  %v375_v48 = vmul.f32 %v1326_v6, %v235_v37  ;;  %v376_v50 = vmul.f32 %v1330_v8, %v236_v43  ;;  %v240_v58 = vld [vmem:[%s1319_s10 + $0x68] sm:$0xff]  ;;  %v646_v63 = vld [vmem:[%s1324_s13 + $0x58] sm:$0xff]  ;;  %v241_v1 = vld [vmem:[%s1319_s10 + $0x70] sm:$0xff] }
  0x1f   : > { %v763_v32 = vadd.f32 %v635_v13, %v507_v20  ;;  %v764_v33 = vadd.f32 %v636_v16, %v508_v21  ;;  %v765_v38 = vadd.f32 %v637_v22, %v509_v27  ;;  %v766_v45 = vadd.f32 %v638_v24, %v510_v34  ;;  %v647_v5 = vld [vmem:[%s1324_s13 + $0x60] sm:$0xff]  ;;  %v242_v11 = vld [vmem:[%s1319_s10 + $0x78] sm:$0xff]  ;;  %v648_v17 = vld [vmem:[%s1324_s13 + $0x68] sm:$0xff] }
  0x20   : > { %v767_v46 = vadd.f32 %v639_v28, %v511_v35  ;;  %v768_v52 = vadd.f32 %v640_v36, %v512_v39  ;;  %v513_v53 = vadd.f32 %v1328_v7, %v373_v40  ;;  %v514_v54 = vadd.f32 %v1332_v9, %v374_v42  ;;  %v243_v12 = vld [vmem:[%s1319_s10 + $0x80] sm:$0xff]  ;;  %v244_v18 = vld [vmem:[%s1319_s10 + $0x88] sm:$0xff]  ;;  %v649_v22 = vld [vmem:[%s1324_s13 + $0x70] sm:$0xff] }
  0x21   : > { %891 = vst [vmem:[%s1371_s20] sm:$0xff] %v763_v32  ;;  %892 = vst [vmem:[%s1371_s20 + $0x8] sm:$0xff] %v764_v33  ;;  %v377_v56 = vmul.f32 %v1326_v6, %v237_v44  ;;  %v515_v59 = vadd.f32 %v1328_v7, %v375_v48  ;;  %v516_v60 = vadd.f32 %v1332_v9, %v376_v50  ;;  %v245_v24 = vld [vmem:[%s1319_s10 + $0x90] sm:$0xff]  ;;  %v246_v25 = vld [vmem:[%s1319_s10 + $0x98] sm:$0xff] }
  0x22   : > { %893 = vst [vmem:[%s1371_s20 + $0x10] sm:$0xff] %v765_v38  ;;  %894 = vst [vmem:[%s1371_s20 + $0x18] sm:$0xff] %v766_v45  ;;  %v378_v62 = vmul.f32 %v1330_v8, %v238_v51  ;;  %v379_v0 = vmul.f32 %v1326_v6, %v239_v57  ;;  %v769_v2 = vadd.f32 %v641_v41, %v513_v53  ;;  %v650_v28 = vld [vmem:[%s1324_s13 + $0x78] sm:$0xff]  ;;  %v651_v30 = vld [vmem:[%s1324_s13 + $0x80] sm:$0xff] }
  0x23   : > { %895 = vst [vmem:[%s1371_s20 + $0x20] sm:$0xff] %v767_v46  ;;  %896 = vst [vmem:[%s1371_s20 + $0x28] sm:$0xff] %v768_v52  ;;  %v770_v3 = vadd.f32 %v642_v47, %v514_v54  ;;  %v517_v4 = vadd.f32 %v1328_v7, %v377_v56  ;;  %v380_v10 = vmul.f32 %v1330_v8, %v240_v58  ;;  %v247_v32 = vld [vmem:[%s1319_s10 + $0xa0] sm:$0xff]  ;;  %v652_v36 = vld [vmem:[%s1324_s13 + $0x88] sm:$0xff] }
  0x24   : > { %v771_v13 = vadd.f32 %v643_v49, %v515_v59  ;;  %v772_v14 = vadd.f32 %v644_v55, %v516_v60  ;;  %v518_v15 = vadd.f32 %v1332_v9, %v378_v62  ;;  %v519_v16 = vadd.f32 %v1328_v7, %v379_v0  ;;  %897 = vst [vmem:[%s1371_s20 + $0x30] sm:$0xff] %v769_v2  ;;  %v653_v38 = vld [vmem:[%s1324_s13 + $0x90] sm:$0xff]  ;;  %v248_v39 = vld [vmem:[%s1319_s10 + $0xa8] sm:$0xff]  ;;  %v654_v43 = vld [vmem:[%s1324_s13 + $0x98] sm:$0xff] }
  0x25   : > { %898 = vst [vmem:[%s1371_s20 + $0x38] sm:$0xff] %v770_v3  ;;  %v773_v19 = vadd.f32 %v645_v61, %v517_v4  ;;  %v520_v20 = vadd.f32 %v1332_v9, %v380_v10  ;;  %v381_v21 = vmul.f32 %v1326_v6, %v241_v1  ;;  %v382_v23 = vmul.f32 %v1330_v8, %v242_v11  ;;  %v249_v45 = vld [vmem:[%s1319_s10 + $0xb0] sm:$0xff]  ;;  %v250_v46 = vld [vmem:[%s1319_s10 + $0xb8] sm:$0xff]  ;;  %v655_v50 = vld [vmem:[%s1324_s13 + $0xa0] sm:$0xff] }
  0x26   : > { %899 = vst [vmem:[%s1371_s20 + $0x40] sm:$0xff] %v771_v13  ;;  %900 = vst [vmem:[%s1371_s20 + $0x48] sm:$0xff] %v772_v14  ;;  %v774_v26 = vadd.f32 %v646_v63, %v518_v15  ;;  %v775_v27 = vadd.f32 %v647_v5, %v519_v16  ;;  %v383_v29 = vmul.f32 %v1326_v6, %v243_v12  ;;  %v251_v52 = vld [vmem:[%s1319_s10 + $0xc0] sm:$0xff]  ;;  %v252_v53 = vld [vmem:[%s1319_s10 + $0xc8] sm:$0xff] }
  0x27   : > { %v384_v31 = vmul.f32 %v1330_v8, %v244_v18  ;;  %901 = vst [vmem:[%s1371_s20 + $0x50] sm:$0xff] %v773_v19  ;;  %v776_v33 = vadd.f32 %v648_v17, %v520_v20  ;;  %v521_v34 = vadd.f32 %v1328_v7, %v381_v21  ;;  %v522_v35 = vadd.f32 %v1332_v9, %v382_v23  ;;  %v656_v58 = vld [vmem:[%s1324_s13 + $0xa8] sm:$0xff]  ;;  %v253_v59 = vld [vmem:[%s1319_s10 + $0xd0] sm:$0xff]  ;;  %v254_v0 = vld [vmem:[%s1319_s10 + $0xd8] sm:$0xff] }
  0x28   : > { %v385_v37 = vmul.f32 %v1326_v6, %v245_v24  ;;  %902 = vst [vmem:[%s1371_s20 + $0x58] sm:$0xff] %v774_v26  ;;  %903 = vst [vmem:[%s1371_s20 + $0x60] sm:$0xff] %v775_v27  ;;  %v523_v40 = vadd.f32 %v1328_v7, %v383_v29  ;;  %v386_v42 = vmul.f32 %v1330_v8, %v246_v25  ;;  %v255_v1 = vld [vmem:[%s1319_s10 + $0xe0] sm:$0xff]  ;;  %v657_v4 = vld [vmem:[%s1324_s13 + $0xb0] sm:$0xff] }
  0x29   : > { %v524_v41 = vadd.f32 %v1332_v9, %v384_v31  ;;  %v387_v44 = vmul.f32 %v1326_v6, %v247_v32  ;;  %904 = vst [vmem:[%s1371_s20 + $0x68] sm:$0xff] %v776_v33  ;;  %v777_v47 = vadd.f32 %v649_v22, %v521_v34  ;;  %v778_v48 = vadd.f32 %v650_v28, %v522_v35  ;;  %v658_v5 = vld [vmem:[%s1324_s13 + $0xb8] sm:$0xff]  ;;  %v256_v12 = vld [vmem:[%s1319_s10 + $0xe8] sm:$0xff]  ;;  %v659_v16 = vld [vmem:[%s1324_s13 + $0xc0] sm:$0xff] }
  0x2a   : > { %v525_v49 = vadd.f32 %v1328_v7, %v385_v37  ;;  %v388_v51 = vmul.f32 %v1330_v8, %v248_v39  ;;  %v779_v54 = vadd.f32 %v651_v30, %v523_v40  ;;  %v526_v56 = vadd.f32 %v1332_v9, %v386_v42  ;;  %v660_v17 = vld [vmem:[%s1324_s13 + $0xc8] sm:$0xff]  ;;  %v661_v19 = vld [vmem:[%s1324_s13 + $0xd0] sm:$0xff]  ;;  %v662_v23 = vld [vmem:[%s1324_s13 + $0xd8] sm:$0xff] }
  0x2b   : > { %v780_v55 = vadd.f32 %v652_v36, %v524_v41  ;;  %v527_v57 = vadd.f32 %v1328_v7, %v387_v44  ;;  %905 = vst [vmem:[%s1371_s20 + $0x70] sm:$0xff] %v777_v47  ;;  %906 = vst [vmem:[%s1371_s20 + $0x78] sm:$0xff] %v778_v48  ;;  %v389_v62 = vmul.f32 %v1326_v6, %v249_v45  ;;  %v257_v25 = vld [vmem:[%s1319_s10 + $0xf0] sm:$0xff]  ;;  %v258_v26 = vld [vmem:[%s1319_s10 + $0xf8] sm:$0xff] }
  0x2c   : > { %v781_v60 = vadd.f32 %v653_v38, %v525_v49  ;;  %v528_v61 = vadd.f32 %v1332_v9, %v388_v51  ;;  %v390_v63 = vmul.f32 %v1330_v8, %v250_v46  ;;  %907 = vst [vmem:[%s1371_s20 + $0x80] sm:$0xff] %v779_v54  ;;  %v782_v2 = vadd.f32 %v654_v43, %v526_v56  ;;  %v663_v30 = vld [vmem:[%s1324_s13 + $0xe0] sm:$0xff]  ;;  %v260_v33 = vld [vmem:[%s1319_s10 + $0x108] sm:$0xff]  ;;  %v261_v39 = vld [vmem:[%s1319_s10 + $0x110] sm:$0xff] }
  0x2d   : > { %908 = vst [vmem:[%s1371_s20 + $0x88] sm:$0xff] %v780_v55  ;;  %v783_v3 = vadd.f32 %v655_v50, %v527_v57  ;;  %v391_v10 = vmul.f32 %v1326_v6, %v251_v52  ;;  %v392_v11 = vmul.f32 %v1330_v8, %v252_v53  ;;  %v529_v14 = vadd.f32 %v1328_v7, %v389_v62  ;;  %v259_v32 = vld [vmem:[%s1319_s10 + $0x100] sm:$0xff]  ;;  %v664_v38 = vld [vmem:[%s1324_s13 + $0xe8] sm:$0xff]  ;;  %v262_v44 = vld [vmem:[%s1319_s10 + $0x118] sm:$0xff] }
  0x2e   : > { %909 = vst [vmem:[%s1371_s20 + $0x90] sm:$0xff] %v781_v60  ;;  %v784_v13 = vadd.f32 %v656_v58, %v528_v61  ;;  %v530_v15 = vadd.f32 %v1332_v9, %v390_v63  ;;  %v393_v18 = vmul.f32 %v1326_v6, %v253_v59  ;;  %910 = vst [vmem:[%s1371_s20 + $0x98] sm:$0xff] %v782_v2  ;;  %v263_v45 = vld [vmem:[%s1319_s10 + $0x120] sm:$0xff]  ;;  %v665_v48 = vld [vmem:[%s1324_s13 + $0xf0] sm:$0xff] }
  0x2f   : > { %911 = vst [vmem:[%s1371_s20 + $0xa0] sm:$0xff] %v783_v3  ;;  %v531_v20 = vadd.f32 %v1328_v7, %v391_v10  ;;  %v532_v21 = vadd.f32 %v1332_v9, %v392_v11  ;;  %v394_v22 = vmul.f32 %v1330_v8, %v254_v0  ;;  %v395_v24 = vmul.f32 %v1326_v6, %v255_v1  ;;  %v666_v49 = vld [vmem:[%s1324_s13 + $0xf8] sm:$0xff]  ;;  %v264_v52 = vld [vmem:[%s1319_s10 + $0x128] sm:$0xff]  ;;  %v667_v56 = vld [vmem:[%s1324_s13 + $0x100] sm:$0xff] }
  0x30   : > { %912 = vst [vmem:[%s1371_s20 + $0xa8] sm:$0xff] %v784_v13  ;;  %v785_v27 = vadd.f32 %v657_v4, %v529_v14  ;;  %v786_v28 = vadd.f32 %v658_v5, %v530_v15  ;;  %v533_v29 = vadd.f32 %v1328_v7, %v393_v18  ;;  %v396_v31 = vmul.f32 %v1330_v8, %v256_v12  ;;  %v668_v57 = vld [vmem:[%s1324_s13 + $0x108] sm:$0xff]  ;;  %v669_v59 = vld [vmem:[%s1324_s13 + $0x110] sm:$0xff]  ;;  %v670_v63 = vld [vmem:[%s1324_s13 + $0x118] sm:$0xff] }
  0x31   : > { %v787_v34 = vadd.f32 %v659_v16, %v531_v20  ;;  %v788_v35 = vadd.f32 %v660_v17, %v532_v21  ;;  %v534_v36 = vadd.f32 %v1332_v9, %v394_v22  ;;  %v535_v37 = vadd.f32 %v1328_v7, %v395_v24  ;;  %v265_v1 = vld [vmem:[%s1319_s10 + $0x130] sm:$0xff]  ;;  %v266_v2 = vld [vmem:[%s1319_s10 + $0x138] sm:$0xff]  ;;  %v671_v10 = vld [vmem:[%s1324_s13 + $0x120] sm:$0xff] }
  0x32   : > { %913 = vst [vmem:[%s1371_s20 + $0xb0] sm:$0xff] %v785_v27  ;;  %914 = vst [vmem:[%s1371_s20 + $0xb8] sm:$0xff] %v786_v28  ;;  %v789_v40 = vadd.f32 %v661_v19, %v533_v29  ;;  %v536_v41 = vadd.f32 %v1332_v9, %v396_v31  ;;  %v397_v42 = vmul.f32 %v1326_v6, %v257_v25  ;;  %v267_v12 = vld [vmem:[%s1319_s10 + $0x140] sm:$0xff]  ;;  %v268_v13 = vld [vmem:[%s1319_s10 + $0x148] sm:$0xff] }
  0x33   : > { %v398_v43 = vmul.f32 %v1330_v8, %v258_v26  ;;  %915 = vst [vmem:[%s1371_s20 + $0xc0] sm:$0xff] %v787_v34  ;;  %916 = vst [vmem:[%s1371_s20 + $0xc8] sm:$0xff] %v788_v35  ;;  %v790_v46 = vadd.f32 %v662_v23, %v534_v36  ;;  %v791_v47 = vadd.f32 %v663_v30, %v535_v37  ;;  %v672_v18 = vld [vmem:[%s1324_s13 + $0x128] sm:$0xff]  ;;  %v269_v19 = vld [vmem:[%s1319_s10 + $0x150] sm:$0xff] }
  0x34   : > { %v399_v50 = vmul.f32 %v1326_v6, %v259_v32  ;;  %v400_v51 = vmul.f32 %v1330_v8, %v260_v33  ;;  %917 = vst [vmem:[%s1371_s20 + $0xd0] sm:$0xff] %v789_v40  ;;  %v792_v53 = vadd.f32 %v664_v38, %v536_v41  ;;  %v537_v54 = vadd.f32 %v1328_v7, %v397_v42  ;;  %v270_v24 = vld [vmem:[%s1319_s10 + $0x158] sm:$0xff]  ;;  %v271_v25 = vld [vmem:[%s1319_s10 + $0x160] sm:$0xff]  ;;  %v673_v28 = vld [vmem:[%s1324_s13 + $0x130] sm:$0xff] }
  0x35   : > { %v538_v55 = vadd.f32 %v1332_v9, %v398_v43  ;;  %v401_v58 = vmul.f32 %v1326_v6, %v261_v39  ;;  %918 = vst [vmem:[%s1371_s20 + $0xd8] sm:$0xff] %v790_v46  ;;  %919 = vst [vmem:[%s1371_s20 + $0xe0] sm:$0xff] %v791_v47  ;;  %v402_v62 = vmul.f32 %v1330_v8, %v262_v44  ;;  %v674_v29 = vld [vmem:[%s1324_s13 + $0x138] sm:$0xff]  ;;  %v272_v32 = vld [vmem:[%s1319_s10 + $0x168] sm:$0xff] }
  0x36   : > { %v539_v60 = vadd.f32 %v1328_v7, %v399_v50  ;;  %v540_v61 = vadd.f32 %v1332_v9, %v400_v51  ;;  %v403_v0 = vmul.f32 %v1326_v6, %v263_v45  ;;  %920 = vst [vmem:[%s1371_s20 + $0xe8] sm:$0xff] %v792_v53  ;;  %v793_v3 = vadd.f32 %v665_v48, %v537_v54  ;;  %v675_v36 = vld [vmem:[%s1324_s13 + $0x140] sm:$0xff]  ;;  %v676_v37 = vld [vmem:[%s1324_s13 + $0x148] sm:$0xff]  ;;  %v677_v39 = vld [vmem:[%s1324_s13 + $0x150] sm:$0xff] }
  0x37   : > { %v794_v4 = vadd.f32 %v666_v49, %v538_v55  ;;  %v541_v5 = vadd.f32 %v1328_v7, %v401_v58  ;;  %v404_v11 = vmul.f32 %v1330_v8, %v264_v52  ;;  %v542_v16 = vadd.f32 %v1332_v9, %v402_v62  ;;  %v678_v43 = vld [vmem:[%s1324_s13 + $0x158] sm:$0xff]  ;;  %v273_v45 = vld [vmem:[%s1319_s10 + $0x170] sm:$0xff]  ;;  %v679_v50 = vld [vmem:[%s1324_s13 + $0x160] sm:$0xff] }
  0x38   : > { %v795_v14 = vadd.f32 %v667_v56, %v539_v60  ;;  %v796_v15 = vadd.f32 %v668_v57, %v540_v61  ;;  %v543_v17 = vadd.f32 %v1328_v7, %v403_v0  ;;  %921 = vst [vmem:[%s1371_s20 + $0xf0] sm:$0xff] %v793_v3  ;;  %v405_v22 = vmul.f32 %v1326_v6, %v265_v1  ;;  %v274_v46 = vld [vmem:[%s1319_s10 + $0x178] sm:$0xff]  ;;  %v275_v52 = vld [vmem:[%s1319_s10 + $0x180] sm:$0xff]  ;;  %v276_v53 = vld [vmem:[%s1319_s10 + $0x188] sm:$0xff] }
  0x39   : > { %922 = vst [vmem:[%s1371_s20 + $0xf8] sm:$0xff] %v794_v4  ;;  %v797_v20 = vadd.f32 %v669_v59, %v541_v5  ;;  %v544_v21 = vadd.f32 %v1332_v9, %v404_v11  ;;  %v406_v23 = vmul.f32 %v1330_v8, %v266_v2  ;;  %v798_v26 = vadd.f32 %v670_v63, %v542_v16  ;;  %v680_v58 = vld [vmem:[%s1324_s13 + $0x168] sm:$0xff]  ;;  %v277_v59 = vld [vmem:[%s1319_s10 + $0x190] sm:$0xff]  ;;  %v278_v0 = vld [vmem:[%s1319_s10 + $0x198] sm:$0xff] }
  0x3a   : > { %923 = vst [vmem:[%s1371_s20 + $0x100] sm:$0xff] %v795_v14  ;;  %924 = vst [vmem:[%s1371_s20 + $0x108] sm:$0xff] %v796_v15  ;;  %v799_v27 = vadd.f32 %v671_v10, %v543_v17  ;;  %v407_v30 = vmul.f32 %v1326_v6, %v267_v12  ;;  %v408_v31 = vmul.f32 %v1330_v8, %v268_v13  ;;  %v279_v1 = vld [vmem:[%s1319_s10 + $0x1a0] sm:$0xff]  ;;  %v681_v4 = vld [vmem:[%s1324_s13 + $0x170] sm:$0xff] }
  0x3b   : > { %925 = vst [vmem:[%s1371_s20 + $0x110] sm:$0xff] %v797_v20  ;;  %v800_v33 = vadd.f32 %v672_v18, %v544_v21  ;;  %v545_v34 = vadd.f32 %v1328_v7, %v405_v22  ;;  %v546_v35 = vadd.f32 %v1332_v9, %v406_v23  ;;  %v409_v38 = vmul.f32 %v1326_v6, %v269_v19  ;;  %v682_v5 = vld [vmem:[%s1324_s13 + $0x178] sm:$0xff]  ;;  %v280_v12 = vld [vmem:[%s1319_s10 + $0x1a8] sm:$0xff]  ;;  %v683_v16 = vld [vmem:[%s1324_s13 + $0x180] sm:$0xff] }
  0x3c   : > { %926 = vst [vmem:[%s1371_s20 + $0x118] sm:$0xff] %v798_v26  ;;  %927 = vst [vmem:[%s1371_s20 + $0x120] sm:$0xff] %v799_v27  ;;  %v547_v40 = vadd.f32 %v1328_v7, %v407_v30  ;;  %v548_v41 = vadd.f32 %v1332_v9, %v408_v31  ;;  %v410_v42 = vmul.f32 %v1330_v8, %v270_v24  ;;  %v684_v17 = vld [vmem:[%s1324_s13 + $0x188] sm:$0xff]  ;;  %v685_v19 = vld [vmem:[%s1324_s13 + $0x190] sm:$0xff] }
  0x3d   : > { %v411_v44 = vmul.f32 %v1326_v6, %v271_v25  ;;  %928 = vst [vmem:[%s1371_s20 + $0x128] sm:$0xff] %v800_v33  ;;  %v801_v47 = vadd.f32 %v673_v28, %v545_v34  ;;  %v802_v48 = vadd.f32 %v674_v29, %v546_v35  ;;  %v549_v49 = vadd.f32 %v1328_v7, %v409_v38  ;;  %v686_v23 = vld [vmem:[%s1324_s13 + $0x198] sm:$0xff]  ;;  %v281_v25 = vld [vmem:[%s1319_s10 + $0x1b0] sm:$0xff]  ;;  %v687_v30 = vld [vmem:[%s1324_s13 + $0x1a0] sm:$0xff] }
  0x3e   : > { %v412_v51 = vmul.f32 %v1330_v8, %v272_v32  ;;  %v803_v54 = vadd.f32 %v675_v36, %v547_v40  ;;  %v804_v55 = vadd.f32 %v676_v37, %v548_v41  ;;  %v550_v56 = vadd.f32 %v1332_v9, %v410_v42  ;;  %v282_v26 = vld [vmem:[%s1319_s10 + $0x1b8] sm:$0xff]  ;;  %v283_v32 = vld [vmem:[%s1319_s10 + $0x1c0] sm:$0xff]  ;;  %v284_v33 = vld [vmem:[%s1319_s10 + $0x1c8] sm:$0xff] }
  0x3f   : > { %v551_v57 = vadd.f32 %v1328_v7, %v411_v44  ;;  %929 = vst [vmem:[%s1371_s20 + $0x130] sm:$0xff] %v801_v47  ;;  %930 = vst [vmem:[%s1371_s20 + $0x138] sm:$0xff] %v802_v48  ;;  %v805_v60 = vadd.f32 %v677_v39, %v549_v49  ;;  %v413_v62 = vmul.f32 %v1326_v6, %v273_v45  ;;  %v688_v38 = vld [vmem:[%s1324_s13 + $0x1a8] sm:$0xff]  ;;  %v285_v39 = vld [vmem:[%s1319_s10 + $0x1d0] sm:$0xff] }
  0x40   : > { %v552_v61 = vadd.f32 %v1332_v9, %v412_v51  ;;  %v414_v63 = vmul.f32 %v1330_v8, %v274_v46  ;;  %931 = vst [vmem:[%s1371_s20 + $0x140] sm:$0xff] %v803_v54  ;;  %932 = vst [vmem:[%s1371_s20 + $0x148] sm:$0xff] %v804_v55  ;;  %v806_v2 = vadd.f32 %v678_v43, %v550_v56  ;;  %v286_v44 = vld [vmem:[%s1319_s10 + $0x1d8] sm:$0xff]  ;;  %v287_v45 = vld [vmem:[%s1319_s10 + $0x1e0] sm:$0xff] }
  0x41   : > { %v807_v3 = vadd.f32 %v679_v50, %v551_v57  ;;  %v415_v10 = vmul.f32 %v1326_v6, %v275_v52  ;;  %v416_v11 = vmul.f32 %v1330_v8, %v276_v53  ;;  %933 = vst [vmem:[%s1371_s20 + $0x150] sm:$0xff] %v805_v60  ;;  %v553_v14 = vadd.f32 %v1328_v7, %v413_v62  ;;  %v689_v48 = vld [vmem:[%s1324_s13 + $0x1b0] sm:$0xff]  ;;  %v690_v49 = vld [vmem:[%s1324_s13 + $0x1b8] sm:$0xff]  ;;  %v288_v52 = vld [vmem:[%s1319_s10 + $0x1e8] sm:$0xff] }
  0x42   : > { %v808_v13 = vadd.f32 %v680_v58, %v552_v61  ;;  %v554_v15 = vadd.f32 %v1332_v9, %v414_v63  ;;  %v417_v18 = vmul.f32 %v1326_v6, %v277_v59  ;;  %934 = vst [vmem:[%s1371_s20 + $0x158] sm:$0xff] %v806_v2  ;;  %v418_v22 = vmul.f32 %v1330_v8, %v278_v0  ;;  %v691_v56 = vld [vmem:[%s1324_s13 + $0x1c0] sm:$0xff]  ;;  %v692_v57 = vld [vmem:[%s1324_s13 + $0x1c8] sm:$0xff]  ;;  %v693_v59 = vld [vmem:[%s1324_s13 + $0x1d0] sm:$0xff] }
  0x43   : > { %935 = vst [vmem:[%s1371_s20 + $0x160] sm:$0xff] %v807_v3  ;;  %v555_v20 = vadd.f32 %v1328_v7, %v415_v10  ;;  %v556_v21 = vadd.f32 %v1332_v9, %v416_v11  ;;  %v419_v24 = vmul.f32 %v1326_v6, %v279_v1  ;;  %v809_v27 = vadd.f32 %v681_v4, %v553_v14  ;;  %v694_v63 = vld [vmem:[%s1324_s13 + $0x1d8] sm:$0xff]  ;;  %v289_v1 = vld [vmem:[%s1319_s10 + $0x1f0] sm:$0xff]  ;;  %v695_v10 = vld [vmem:[%s1324_s13 + $0x1e0] sm:$0xff] }
  0x44   : > { %936 = vst [vmem:[%s1371_s20 + $0x168] sm:$0xff] %v808_v13  ;;  %v810_v28 = vadd.f32 %v682_v5, %v554_v15  ;;  %v557_v29 = vadd.f32 %v1328_v7, %v417_v18  ;;  %v420_v31 = vmul.f32 %v1330_v8, %v280_v12  ;;  %v558_v36 = vadd.f32 %v1332_v9, %v418_v22  ;;  %v290_v2 = vld [vmem:[%s1319_s10 + $0x1f8] sm:$0xff]  ;;  %v291_v12 = vld [vmem:[%s1319_s10 + $0x200] sm:$0xff]  ;;  %v292_v13 = vld [vmem:[%s1319_s10 + $0x208] sm:$0xff] }
  0x45   : > { %v811_v34 = vadd.f32 %v683_v16, %v555_v20  ;;  %v812_v35 = vadd.f32 %v684_v17, %v556_v21  ;;  %v559_v37 = vadd.f32 %v1328_v7, %v419_v24  ;;  %937 = vst [vmem:[%s1371_s20 + $0x170] sm:$0xff] %v809_v27  ;;  %v421_v42 = vmul.f32 %v1326_v6, %v281_v25  ;;  %v696_v18 = vld [vmem:[%s1324_s13 + $0x1e8] sm:$0xff]  ;;  %v294_v24 = vld [vmem:[%s1319_s10 + $0x218] sm:$0xff]  ;;  %v295_v25 = vld [vmem:[%s1319_s10 + $0x220] sm:$0xff] }
  0x46   : > { %938 = vst [vmem:[%s1371_s20 + $0x178] sm:$0xff] %v810_v28  ;;  %v813_v40 = vadd.f32 %v685_v19, %v557_v29  ;;  %v560_v41 = vadd.f32 %v1332_v9, %v420_v31  ;;  %v422_v43 = vmul.f32 %v1330_v8, %v282_v26  ;;  %v814_v46 = vadd.f32 %v686_v23, %v558_v36  ;;  %v293_v19 = vld [vmem:[%s1319_s10 + $0x210] sm:$0xff]  ;;  %v698_v29 = vld [vmem:[%s1324_s13 + $0x1f8] sm:$0xff]  ;;  %v699_v36 = vld [vmem:[%s1324_s13 + $0x200] sm:$0xff] }
  0x47   : > { %939 = vst [vmem:[%s1371_s20 + $0x180] sm:$0xff] %v811_v34  ;;  %940 = vst [vmem:[%s1371_s20 + $0x188] sm:$0xff] %v812_v35  ;;  %v815_v47 = vadd.f32 %v687_v30, %v559_v37  ;;  %v423_v50 = vmul.f32 %v1326_v6, %v283_v32  ;;  %v424_v51 = vmul.f32 %v1330_v8, %v284_v33  ;;  %v697_v28 = vld [vmem:[%s1324_s13 + $0x1f0] sm:$0xff]  ;;  %v296_v32 = vld [vmem:[%s1319_s10 + $0x228] sm:$0xff] }
  0x48   : > { %941 = vst [vmem:[%s1371_s20 + $0x190] sm:$0xff] %v813_v40  ;;  %v816_v53 = vadd.f32 %v688_v38, %v560_v41  ;;  %v561_v54 = vadd.f32 %v1328_v7, %v421_v42  ;;  %v562_v55 = vadd.f32 %v1332_v9, %v422_v43  ;;  %v425_v58 = vmul.f32 %v1326_v6, %v285_v39  ;;  %v700_v37 = vld [vmem:[%s1324_s13 + $0x208] sm:$0xff]  ;;  %v701_v39 = vld [vmem:[%s1324_s13 + $0x210] sm:$0xff]  ;;  %v702_v43 = vld [vmem:[%s1324_s13 + $0x218] sm:$0xff] }
  0x49   : > { %942 = vst [vmem:[%s1371_s20 + $0x198] sm:$0xff] %v814_v46  ;;  %943 = vst [vmem:[%s1371_s20 + $0x1a0] sm:$0xff] %v815_v47  ;;  %v563_v60 = vadd.f32 %v1328_v7, %v423_v50  ;;  %v564_v61 = vadd.f32 %v1332_v9, %v424_v51  ;;  %v426_v62 = vmul.f32 %v1330_v8, %v286_v44  ;;  %v298_v46 = vld [vmem:[%s1319_s10 + $0x238] sm:$0xff]  ;;  %v703_v50 = vld [vmem:[%s1324_s13 + $0x220] sm:$0xff] }
  0x4a   : > { %v427_v0 = vmul.f32 %v1326_v6, %v287_v45  ;;  %944 = vst [vmem:[%s1371_s20 + $0x1a8] sm:$0xff] %v816_v53  ;;  %v817_v3 = vadd.f32 %v689_v48, %v561_v54  ;;  %v818_v4 = vadd.f32 %v690_v49, %v562_v55  ;;  %v565_v5 = vadd.f32 %v1328_v7, %v425_v58  ;;  %v297_v45 = vld [vmem:[%s1319_s10 + $0x230] sm:$0xff]  ;;  %v300_v53 = vld [vmem:[%s1319_s10 + $0x248] sm:$0xff] }
  0x4b   : > { %v428_v11 = vmul.f32 %v1330_v8, %v288_v52  ;;  %v819_v14 = vadd.f32 %v691_v56, %v563_v60  ;;  %v820_v15 = vadd.f32 %v692_v57, %v564_v61  ;;  %v566_v16 = vadd.f32 %v1332_v9, %v426_v62  ;;  %v299_v52 = vld [vmem:[%s1319_s10 + $0x240] sm:$0xff]  ;;  %v704_v58 = vld [vmem:[%s1324_s13 + $0x228] sm:$0xff] }
  0x4c   : > { %v567_v17 = vadd.f32 %v1328_v7, %v427_v0  ;;  %945 = vst [vmem:[%s1371_s20 + $0x1b0] sm:$0xff] %v817_v3  ;;  %946 = vst [vmem:[%s1371_s20 + $0x1b8] sm:$0xff] %v818_v4  ;;  %v821_v20 = vadd.f32 %v693_v59, %v565_v5  ;;  %v429_v22 = vmul.f32 %v1326_v6, %v289_v1  ;;  %v301_v59 = vld [vmem:[%s1319_s10 + $0x250] sm:$0xff]  ;;  %v302_v0 = vld [vmem:[%s1319_s10 + $0x258] sm:$0xff] }
  0x4d   : > { %v568_v21 = vadd.f32 %v1332_v9, %v428_v11  ;;  %v430_v23 = vmul.f32 %v1330_v8, %v290_v2  ;;  %947 = vst [vmem:[%s1371_s20 + $0x1c0] sm:$0xff] %v819_v14  ;;  %948 = vst [vmem:[%s1371_s20 + $0x1c8] sm:$0xff] %v820_v15  ;;  %v822_v26 = vadd.f32 %v694_v63, %v566_v16  ;;  %v303_v1 = vld [vmem:[%s1319_s10 + $0x260] sm:$0xff]  ;;  %v705_v4 = vld [vmem:[%s1324_s13 + $0x230] sm:$0xff] }
  0x4e   : > { %v823_v27 = vadd.f32 %v695_v10, %v567_v17  ;;  %v431_v30 = vmul.f32 %v1326_v6, %v291_v12  ;;  %v432_v31 = vmul.f32 %v1330_v8, %v292_v13  ;;  %949 = vst [vmem:[%s1371_s20 + $0x1d0] sm:$0xff] %v821_v20  ;;  %v569_v34 = vadd.f32 %v1328_v7, %v429_v22  ;;  %v706_v5 = vld [vmem:[%s1324_s13 + $0x238] sm:$0xff]  ;;  %v304_v12 = vld [vmem:[%s1319_s10 + $0x268] sm:$0xff]  ;;  %v707_v16 = vld [vmem:[%s1324_s13 + $0x240] sm:$0xff] }
  0x4f   : > { %v824_v33 = vadd.f32 %v696_v18, %v568_v21  ;;  %v570_v35 = vadd.f32 %v1332_v9, %v430_v23  ;;  %v433_v38 = vmul.f32 %v1326_v6, %v293_v19  ;;  %950 = vst [vmem:[%s1371_s20 + $0x1d8] sm:$0xff] %v822_v26  ;;  %v434_v42 = vmul.f32 %v1330_v8, %v294_v24  ;;  %v708_v17 = vld [vmem:[%s1324_s13 + $0x248] sm:$0xff]  ;;  %v709_v19 = vld [vmem:[%s1324_s13 + $0x250] sm:$0xff]  ;;  %v710_v23 = vld [vmem:[%s1324_s13 + $0x258] sm:$0xff] }
  0x50   : > { %951 = vst [vmem:[%s1371_s20 + $0x1e0] sm:$0xff] %v823_v27  ;;  %v571_v40 = vadd.f32 %v1328_v7, %v431_v30  ;;  %v572_v41 = vadd.f32 %v1332_v9, %v432_v31  ;;  %v435_v44 = vmul.f32 %v1326_v6, %v295_v25  ;;  %v825_v47 = vadd.f32 %v697_v28, %v569_v34  ;;  %v305_v25 = vld [vmem:[%s1319_s10 + $0x270] sm:$0xff]  ;;  %v306_v26 = vld [vmem:[%s1319_s10 + $0x278] sm:$0xff]  ;;  %v711_v30 = vld [vmem:[%s1324_s13 + $0x260] sm:$0xff] }
  0x51   : > { %952 = vst [vmem:[%s1371_s20 + $0x1e8] sm:$0xff] %v824_v33  ;;  %v826_v48 = vadd.f32 %v698_v29, %v570_v35  ;;  %v573_v49 = vadd.f32 %v1328_v7, %v433_v38  ;;  %v436_v51 = vmul.f32 %v1330_v8, %v296_v32  ;;  %v574_v56 = vadd.f32 %v1332_v9, %v434_v42  ;;  %v307_v32 = vld [vmem:[%s1319_s10 + $0x280] sm:$0xff]  ;;  %v308_v33 = vld [vmem:[%s1319_s10 + $0x288] sm:$0xff] }
  0x52   : > { %v827_v54 = vadd.f32 %v699_v36, %v571_v40  ;;  %v828_v55 = vadd.f32 %v700_v37, %v572_v41  ;;  %v575_v57 = vadd.f32 %v1328_v7, %v435_v44  ;;  %953 = vst [vmem:[%s1371_s20 + $0x1f0] sm:$0xff] %v825_v47  ;;  %v437_v62 = vmul.f32 %v1326_v6, %v297_v45  ;;  %v712_v38 = vld [vmem:[%s1324_s13 + $0x268] sm:$0xff]  ;;  %v310_v44 = vld [vmem:[%s1319_s10 + $0x298] sm:$0xff]  ;;  %v311_v45 = vld [vmem:[%s1319_s10 + $0x2a0] sm:$0xff] }
  0x53   : > { %954 = vst [vmem:[%s1371_s20 + $0x1f8] sm:$0xff] %v826_v48  ;;  %v829_v60 = vadd.f32 %v701_v39, %v573_v49  ;;  %v576_v61 = vadd.f32 %v1332_v9, %v436_v51  ;;  %v438_v63 = vmul.f32 %v1330_v8, %v298_v46  ;;  %v830_v2 = vadd.f32 %v702_v43, %v574_v56  ;;  %v309_v39 = vld [vmem:[%s1319_s10 + $0x290] sm:$0xff]  ;;  %v714_v49 = vld [vmem:[%s1324_s13 + $0x278] sm:$0xff]  ;;  %v715_v56 = vld [vmem:[%s1324_s13 + $0x280] sm:$0xff] }
  0x54   : > { %955 = vst [vmem:[%s1371_s20 + $0x200] sm:$0xff] %v827_v54  ;;  %956 = vst [vmem:[%s1371_s20 + $0x208] sm:$0xff] %v828_v55  ;;  %v831_v3 = vadd.f32 %v703_v50, %v575_v57  ;;  %v439_v10 = vmul.f32 %v1326_v6, %v299_v52  ;;  %v440_v11 = vmul.f32 %v1330_v8, %v300_v53  ;;  %v713_v48 = vld [vmem:[%s1324_s13 + $0x270] sm:$0xff]  ;;  %v312_v52 = vld [vmem:[%s1319_s10 + $0x2a8] sm:$0xff] }
  0x55   : > { %957 = vst [vmem:[%s1371_s20 + $0x210] sm:$0xff] %v829_v60  ;;  %v832_v13 = vadd.f32 %v704_v58, %v576_v61  ;;  %v577_v14 = vadd.f32 %v1328_v7, %v437_v62  ;;  %v578_v15 = vadd.f32 %v1332_v9, %v438_v63  ;;  %v441_v18 = vmul.f32 %v1326_v6, %v301_v59  ;;  %v716_v57 = vld [vmem:[%s1324_s13 + $0x288] sm:$0xff]  ;;  %v717_v59 = vld [vmem:[%s1324_s13 + $0x290] sm:$0xff]  ;;  %v718_v63 = vld [vmem:[%s1324_s13 + $0x298] sm:$0xff] }
  0x56   : > { %958 = vst [vmem:[%s1371_s20 + $0x218] sm:$0xff] %v830_v2  ;;  %959 = vst [vmem:[%s1371_s20 + $0x220] sm:$0xff] %v831_v3  ;;  %v579_v20 = vadd.f32 %v1328_v7, %v439_v10  ;;  %v580_v21 = vadd.f32 %v1332_v9, %v440_v11  ;;  %v442_v22 = vmul.f32 %v1330_v8, %v302_v0  ;;  %v314_v2 = vld [vmem:[%s1319_s10 + $0x2b8] sm:$0xff]  ;;  %v719_v10 = vld [vmem:[%s1324_s13 + $0x2a0] sm:$0xff] }
  0x57   : > { %v443_v24 = vmul.f32 %v1326_v6, %v303_v1  ;;  %960 = vst [vmem:[%s1371_s20 + $0x228] sm:$0xff] %v832_v13  ;;  %v833_v27 = vadd.f32 %v705_v4, %v577_v14  ;;  %v834_v28 = vadd.f32 %v706_v5, %v578_v15  ;;  %v581_v29 = vadd.f32 %v1328_v7, %v441_v18  ;;  %v313_v1 = vld [vmem:[%s1319_s10 + $0x2b0] sm:$0xff]  ;;  %v316_v13 = vld [vmem:[%s1319_s10 + $0x2c8] sm:$0xff] }
  0x58   : > { %v444_v31 = vmul.f32 %v1330_v8, %v304_v12  ;;  %v835_v34 = vadd.f32 %v707_v16, %v579_v20  ;;  %v836_v35 = vadd.f32 %v708_v17, %v580_v21  ;;  %v582_v36 = vadd.f32 %v1332_v9, %v442_v22  ;;  %v315_v12 = vld [vmem:[%s1319_s10 + $0x2c0] sm:$0xff]  ;;  %v720_v18 = vld [vmem:[%s1324_s13 + $0x2a8] sm:$0xff] }
  0x59   : > { %v583_v37 = vadd.f32 %v1328_v7, %v443_v24  ;;  %961 = vst [vmem:[%s1371_s20 + $0x230] sm:$0xff] %v833_v27  ;;  %962 = vst [vmem:[%s1371_s20 + $0x238] sm:$0xff] %v834_v28  ;;  %v837_v40 = vadd.f32 %v709_v19, %v581_v29  ;;  %v445_v42 = vmul.f32 %v1326_v6, %v305_v25  ;;  %v317_v19 = vld [vmem:[%s1319_s10 + $0x2d0] sm:$0xff]  ;;  %v318_v24 = vld [vmem:[%s1319_s10 + $0x2d8] sm:$0xff] }
  0x5a   : > { %v584_v41 = vadd.f32 %v1332_v9, %v444_v31  ;;  %v446_v43 = vmul.f32 %v1330_v8, %v306_v26  ;;  %963 = vst [vmem:[%s1371_s20 + $0x240] sm:$0xff] %v835_v34  ;;  %964 = vst [vmem:[%s1371_s20 + $0x248] sm:$0xff] %v836_v35  ;;  %v838_v46 = vadd.f32 %v710_v23, %v582_v36  ;;  %v319_v25 = vld [vmem:[%s1319_s10 + $0x2e0] sm:$0xff]  ;;  %v721_v28 = vld [vmem:[%s1324_s13 + $0x2b0] sm:$0xff] }
  0x5b   : > { %v839_v47 = vadd.f32 %v711_v30, %v583_v37  ;;  %v447_v50 = vmul.f32 %v1326_v6, %v307_v32  ;;  %v448_v51 = vmul.f32 %v1330_v8, %v308_v33  ;;  %965 = vst [vmem:[%s1371_s20 + $0x250] sm:$0xff] %v837_v40  ;;  %v585_v54 = vadd.f32 %v1328_v7, %v445_v42  ;;  %v722_v29 = vld [vmem:[%s1324_s13 + $0x2b8] sm:$0xff]  ;;  %v320_v32 = vld [vmem:[%s1319_s10 + $0x2e8] sm:$0xff]  ;;  %v723_v36 = vld [vmem:[%s1324_s13 + $0x2c0] sm:$0xff] }
  0x5c   : > { %v840_v53 = vadd.f32 %v712_v38, %v584_v41  ;;  %v586_v55 = vadd.f32 %v1332_v9, %v446_v43  ;;  %v449_v58 = vmul.f32 %v1326_v6, %v309_v39  ;;  %966 = vst [vmem:[%s1371_s20 + $0x258] sm:$0xff] %v838_v46  ;;  %v450_v62 = vmul.f32 %v1330_v8, %v310_v44  ;;  %v724_v37 = vld [vmem:[%s1324_s13 + $0x2c8] sm:$0xff]  ;;  %v725_v39 = vld [vmem:[%s1324_s13 + $0x2d0] sm:$0xff]  ;;  %v726_v43 = vld [vmem:[%s1324_s13 + $0x2d8] sm:$0xff] }
  0x5d   : > { %967 = vst [vmem:[%s1371_s20 + $0x260] sm:$0xff] %v839_v47  ;;  %v587_v60 = vadd.f32 %v1328_v7, %v447_v50  ;;  %v588_v61 = vadd.f32 %v1332_v9, %v448_v51  ;;  %v451_v0 = vmul.f32 %v1326_v6, %v311_v45  ;;  %v841_v3 = vadd.f32 %v713_v48, %v585_v54  ;;  %v321_v45 = vld [vmem:[%s1319_s10 + $0x2f0] sm:$0xff]  ;;  %v322_v46 = vld [vmem:[%s1319_s10 + $0x2f8] sm:$0xff]  ;;  %v727_v50 = vld [vmem:[%s1324_s13 + $0x2e0] sm:$0xff] }
  0x5e   : > { %968 = vst [vmem:[%s1371_s20 + $0x268] sm:$0xff] %v840_v53  ;;  %v842_v4 = vadd.f32 %v714_v49, %v586_v55  ;;  %v589_v5 = vadd.f32 %v1328_v7, %v449_v58  ;;  %v452_v11 = vmul.f32 %v1330_v8, %v312_v52  ;;  %v590_v16 = vadd.f32 %v1332_v9, %v450_v62  ;;  %v323_v52 = vld [vmem:[%s1319_s10 + $0x300] sm:$0xff]  ;;  %v324_v53 = vld [vmem:[%s1319_s10 + $0x308] sm:$0xff] }
  0x5f   : > { %v843_v14 = vadd.f32 %v715_v56, %v587_v60  ;;  %v844_v15 = vadd.f32 %v716_v57, %v588_v61  ;;  %v591_v17 = vadd.f32 %v1328_v7, %v451_v0  ;;  %969 = vst [vmem:[%s1371_s20 + $0x270] sm:$0xff] %v841_v3  ;;  %v453_v22 = vmul.f32 %v1326_v6, %v313_v1  ;;  %v728_v58 = vld [vmem:[%s1324_s13 + $0x2e8] sm:$0xff]  ;;  %v326_v0 = vld [vmem:[%s1319_s10 + $0x318] sm:$0xff]  ;;  %v327_v1 = vld [vmem:[%s1319_s10 + $0x320] sm:$0xff] }
  0x60   : > { %970 = vst [vmem:[%s1371_s20 + $0x278] sm:$0xff] %v842_v4  ;;  %v845_v20 = vadd.f32 %v717_v59, %v589_v5  ;;  %v592_v21 = vadd.f32 %v1332_v9, %v452_v11  ;;  %v454_v23 = vmul.f32 %v1330_v8, %v314_v2  ;;  %v846_v26 = vadd.f32 %v718_v63, %v590_v16  ;;  %v325_v59 = vld [vmem:[%s1319_s10 + $0x310] sm:$0xff]  ;;  %v730_v5 = vld [vmem:[%s1324_s13 + $0x2f8] sm:$0xff]  ;;  %v731_v16 = vld [vmem:[%s1324_s13 + $0x300] sm:$0xff] }
  0x61   : > { %971 = vst [vmem:[%s1371_s20 + $0x280] sm:$0xff] %v843_v14  ;;  %972 = vst [vmem:[%s1371_s20 + $0x288] sm:$0xff] %v844_v15  ;;  %v847_v27 = vadd.f32 %v719_v10, %v591_v17  ;;  %v455_v30 = vmul.f32 %v1326_v6, %v315_v12  ;;  %v456_v31 = vmul.f32 %v1330_v8, %v316_v13  ;;  %v729_v4 = vld [vmem:[%s1324_s13 + $0x2f0] sm:$0xff]  ;;  %v328_v12 = vld [vmem:[%s1319_s10 + $0x328] sm:$0xff] }
  0x62   : > { %973 = vst [vmem:[%s1371_s20 + $0x290] sm:$0xff] %v845_v20  ;;  %v848_v33 = vadd.f32 %v720_v18, %v592_v21  ;;  %v593_v34 = vadd.f32 %v1328_v7, %v453_v22  ;;  %v594_v35 = vadd.f32 %v1332_v9, %v454_v23  ;;  %v457_v38 = vmul.f32 %v1326_v6, %v317_v19  ;;  %v732_v17 = vld [vmem:[%s1324_s13 + $0x308] sm:$0xff]  ;;  %v733_v19 = vld [vmem:[%s1324_s13 + $0x310] sm:$0xff]  ;;  %v734_v23 = vld [vmem:[%s1324_s13 + $0x318] sm:$0xff] }
  0x63   : > { %974 = vst [vmem:[%s1371_s20 + $0x298] sm:$0xff] %v846_v26  ;;  %975 = vst [vmem:[%s1371_s20 + $0x2a0] sm:$0xff] %v847_v27  ;;  %v595_v40 = vadd.f32 %v1328_v7, %v455_v30  ;;  %v596_v41 = vadd.f32 %v1332_v9, %v456_v31  ;;  %v458_v42 = vmul.f32 %v1330_v8, %v318_v24  ;;  %v330_v26 = vld [vmem:[%s1319_s10 + $0x338] sm:$0xff]  ;;  %v735_v30 = vld [vmem:[%s1324_s13 + $0x320] sm:$0xff] }
  0x64   : > { %v459_v44 = vmul.f32 %v1326_v6, %v319_v25  ;;  %976 = vst [vmem:[%s1371_s20 + $0x2a8] sm:$0xff] %v848_v33  ;;  %v849_v47 = vadd.f32 %v721_v28, %v593_v34  ;;  %v850_v48 = vadd.f32 %v722_v29, %v594_v35  ;;  %v597_v49 = vadd.f32 %v1328_v7, %v457_v38  ;;  %v329_v25 = vld [vmem:[%s1319_s10 + $0x330] sm:$0xff]  ;;  %v332_v33 = vld [vmem:[%s1319_s10 + $0x348] sm:$0xff] }
  0x65   : > { %v460_v51 = vmul.f32 %v1330_v8, %v320_v32  ;;  %v851_v54 = vadd.f32 %v723_v36, %v595_v40  ;;  %v852_v55 = vadd.f32 %v724_v37, %v596_v41  ;;  %v598_v56 = vadd.f32 %v1332_v9, %v458_v42  ;;  %v331_v32 = vld [vmem:[%s1319_s10 + $0x340] sm:$0xff]  ;;  %v736_v38 = vld [vmem:[%s1324_s13 + $0x328] sm:$0xff] }
  0x66   : > { %v599_v57 = vadd.f32 %v1328_v7, %v459_v44  ;;  %977 = vst [vmem:[%s1371_s20 + $0x2b0] sm:$0xff] %v849_v47  ;;  %978 = vst [vmem:[%s1371_s20 + $0x2b8] sm:$0xff] %v850_v48  ;;  %v853_v60 = vadd.f32 %v725_v39, %v597_v49  ;;  %v461_v62 = vmul.f32 %v1326_v6, %v321_v45  ;;  %v333_v39 = vld [vmem:[%s1319_s10 + $0x350] sm:$0xff]  ;;  %v334_v44 = vld [vmem:[%s1319_s10 + $0x358] sm:$0xff] }
  0x67   : > { %v600_v61 = vadd.f32 %v1332_v9, %v460_v51  ;;  %v462_v63 = vmul.f32 %v1330_v8, %v322_v46  ;;  %979 = vst [vmem:[%s1371_s20 + $0x2c0] sm:$0xff] %v851_v54  ;;  %980 = vst [vmem:[%s1371_s20 + $0x2c8] sm:$0xff] %v852_v55  ;;  %v854_v2 = vadd.f32 %v726_v43, %v598_v56  ;;  %v335_v45 = vld [vmem:[%s1319_s10 + $0x360] sm:$0xff]  ;;  %v737_v48 = vld [vmem:[%s1324_s13 + $0x330] sm:$0xff] }
  0x68   : > { %v855_v3 = vadd.f32 %v727_v50, %v599_v57  ;;  %v463_v10 = vmul.f32 %v1326_v6, %v323_v52  ;;  %v464_v11 = vmul.f32 %v1330_v8, %v324_v53  ;;  %981 = vst [vmem:[%s1371_s20 + $0x2d0] sm:$0xff] %v853_v60  ;;  %v601_v14 = vadd.f32 %v1328_v7, %v461_v62  ;;  %v738_v49 = vld [vmem:[%s1324_s13 + $0x338] sm:$0xff]  ;;  %v336_v52 = vld [vmem:[%s1319_s10 + $0x368] sm:$0xff]  ;;  %v739_v56 = vld [vmem:[%s1324_s13 + $0x340] sm:$0xff] }
  0x69   : > { %v856_v13 = vadd.f32 %v728_v58, %v600_v61  ;;  %v602_v15 = vadd.f32 %v1332_v9, %v462_v63  ;;  %v465_v18 = vmul.f32 %v1326_v6, %v325_v59  ;;  %982 = vst [vmem:[%s1371_s20 + $0x2d8] sm:$0xff] %v854_v2  ;;  %v466_v22 = vmul.f32 %v1330_v8, %v326_v0  ;;  %v740_v57 = vld [vmem:[%s1324_s13 + $0x348] sm:$0xff]  ;;  %v741_v59 = vld [vmem:[%s1324_s13 + $0x350] sm:$0xff]  ;;  %v742_v63 = vld [vmem:[%s1324_s13 + $0x358] sm:$0xff] }
  0x6a   : > { %983 = vst [vmem:[%s1371_s20 + $0x2e0] sm:$0xff] %v855_v3  ;;  %v603_v20 = vadd.f32 %v1328_v7, %v463_v10  ;;  %v604_v21 = vadd.f32 %v1332_v9, %v464_v11  ;;  %v467_v24 = vmul.f32 %v1326_v6, %v327_v1  ;;  %v857_v27 = vadd.f32 %v729_v4, %v601_v14  ;;  %v337_v1 = vld [vmem:[%s1319_s10 + $0x370] sm:$0xff]  ;;  %v338_v2 = vld [vmem:[%s1319_s10 + $0x378] sm:$0xff]  ;;  %v743_v10 = vld [vmem:[%s1324_s13 + $0x360] sm:$0xff] }
  0x6b   : > { %984 = vst [vmem:[%s1371_s20 + $0x2e8] sm:$0xff] %v856_v13  ;;  %v858_v28 = vadd.f32 %v730_v5, %v602_v15  ;;  %v605_v29 = vadd.f32 %v1328_v7, %v465_v18  ;;  %v468_v31 = vmul.f32 %v1330_v8, %v328_v12  ;;  %v606_v36 = vadd.f32 %v1332_v9, %v466_v22  ;;  %v339_v12 = vld [vmem:[%s1319_s10 + $0x380] sm:$0xff]  ;;  %v340_v13 = vld [vmem:[%s1319_s10 + $0x388] sm:$0xff] }
  0x6c   : > { %v859_v34 = vadd.f32 %v731_v16, %v603_v20  ;;  %v860_v35 = vadd.f32 %v732_v17, %v604_v21  ;;  %v607_v37 = vadd.f32 %v1328_v7, %v467_v24  ;;  %985 = vst [vmem:[%s1371_s20 + $0x2f0] sm:$0xff] %v857_v27  ;;  %v469_v42 = vmul.f32 %v1326_v6, %v329_v25  ;;  %v744_v18 = vld [vmem:[%s1324_s13 + $0x368] sm:$0xff]  ;;  %v342_v24 = vld [vmem:[%s1319_s10 + $0x398] sm:$0xff]  ;;  %v343_v25 = vld [vmem:[%s1319_s10 + $0x3a0] sm:$0xff] }
  0x6d   : > { %986 = vst [vmem:[%s1371_s20 + $0x2f8] sm:$0xff] %v858_v28  ;;  %v861_v40 = vadd.f32 %v733_v19, %v605_v29  ;;  %v608_v41 = vadd.f32 %v1332_v9, %v468_v31  ;;  %v470_v43 = vmul.f32 %v1330_v8, %v330_v26  ;;  %v862_v46 = vadd.f32 %v734_v23, %v606_v36  ;;  %v341_v19 = vld [vmem:[%s1319_s10 + $0x390] sm:$0xff]  ;;  %v746_v29 = vld [vmem:[%s1324_s13 + $0x378] sm:$0xff]  ;;  %v747_v36 = vld [vmem:[%s1324_s13 + $0x380] sm:$0xff] }
  0x6e   : > { %987 = vst [vmem:[%s1371_s20 + $0x300] sm:$0xff] %v859_v34  ;;  %988 = vst [vmem:[%s1371_s20 + $0x308] sm:$0xff] %v860_v35  ;;  %v863_v47 = vadd.f32 %v735_v30, %v607_v37  ;;  %v471_v50 = vmul.f32 %v1326_v6, %v331_v32  ;;  %v472_v51 = vmul.f32 %v1330_v8, %v332_v33  ;;  %v745_v28 = vld [vmem:[%s1324_s13 + $0x370] sm:$0xff]  ;;  %v344_v32 = vld [vmem:[%s1319_s10 + $0x3a8] sm:$0xff] }
  0x6f   : > { %989 = vst [vmem:[%s1371_s20 + $0x310] sm:$0xff] %v861_v40  ;;  %v864_v53 = vadd.f32 %v736_v38, %v608_v41  ;;  %v609_v54 = vadd.f32 %v1328_v7, %v469_v42  ;;  %v610_v55 = vadd.f32 %v1332_v9, %v470_v43  ;;  %v473_v58 = vmul.f32 %v1326_v6, %v333_v39  ;;  %v748_v37 = vld [vmem:[%s1324_s13 + $0x388] sm:$0xff]  ;;  %v749_v39 = vld [vmem:[%s1324_s13 + $0x390] sm:$0xff]  ;;  %v750_v43 = vld [vmem:[%s1324_s13 + $0x398] sm:$0xff] }
  0x70   : > { %990 = vst [vmem:[%s1371_s20 + $0x318] sm:$0xff] %v862_v46  ;;  %991 = vst [vmem:[%s1371_s20 + $0x320] sm:$0xff] %v863_v47  ;;  %v611_v60 = vadd.f32 %v1328_v7, %v471_v50  ;;  %v612_v61 = vadd.f32 %v1332_v9, %v472_v51  ;;  %v474_v62 = vmul.f32 %v1330_v8, %v334_v44  ;;  %v346_v46 = vld [vmem:[%s1319_s10 + $0x3b8] sm:$0xff]  ;;  %v751_v50 = vld [vmem:[%s1324_s13 + $0x3a0] sm:$0xff] }
  0x71   : > { %v475_v0 = vmul.f32 %v1326_v6, %v335_v45  ;;  %992 = vst [vmem:[%s1371_s20 + $0x328] sm:$0xff] %v864_v53  ;;  %v865_v3 = vadd.f32 %v737_v48, %v609_v54  ;;  %v866_v4 = vadd.f32 %v738_v49, %v610_v55  ;;  %v613_v5 = vadd.f32 %v1328_v7, %v473_v58  ;;  %v345_v45 = vld [vmem:[%s1319_s10 + $0x3b0] sm:$0xff]  ;;  %v348_v53 = vld [vmem:[%s1319_s10 + $0x3c8] sm:$0xff] }
  0x72   : > { %v476_v11 = vmul.f32 %v1330_v8, %v336_v52  ;;  %v867_v14 = vadd.f32 %v739_v56, %v611_v60  ;;  %v868_v15 = vadd.f32 %v740_v57, %v612_v61  ;;  %v614_v16 = vadd.f32 %v1332_v9, %v474_v62  ;;  %v347_v52 = vld [vmem:[%s1319_s10 + $0x3c0] sm:$0xff]  ;;  %v752_v58 = vld [vmem:[%s1324_s13 + $0x3a8] sm:$0xff] }
  0x73   : > { %v615_v17 = vadd.f32 %v1328_v7, %v475_v0  ;;  %993 = vst [vmem:[%s1371_s20 + $0x330] sm:$0xff] %v865_v3  ;;  %994 = vst [vmem:[%s1371_s20 + $0x338] sm:$0xff] %v866_v4  ;;  %v869_v20 = vadd.f32 %v741_v59, %v613_v5  ;;  %v477_v22 = vmul.f32 %v1326_v6, %v337_v1  ;;  %v349_v59 = vld [vmem:[%s1319_s10 + $0x3d0] sm:$0xff]  ;;  %v350_v0 = vld [vmem:[%s1319_s10 + $0x3d8] sm:$0xff] }
  0x74   : > { %v616_v21 = vadd.f32 %v1332_v9, %v476_v11  ;;  %v478_v23 = vmul.f32 %v1330_v8, %v338_v2  ;;  %995 = vst [vmem:[%s1371_s20 + $0x340] sm:$0xff] %v867_v14  ;;  %996 = vst [vmem:[%s1371_s20 + $0x348] sm:$0xff] %v868_v15  ;;  %v870_v26 = vadd.f32 %v742_v63, %v614_v16  ;;  %v351_v1 = vld [vmem:[%s1319_s10 + $0x3e0] sm:$0xff]  ;;  %v753_v4 = vld [vmem:[%s1324_s13 + $0x3b0] sm:$0xff] }
  0x75   : > { %v871_v27 = vadd.f32 %v743_v10, %v615_v17  ;;  %v479_v30 = vmul.f32 %v1326_v6, %v339_v12  ;;  %v480_v31 = vmul.f32 %v1330_v8, %v340_v13  ;;  %997 = vst [vmem:[%s1371_s20 + $0x350] sm:$0xff] %v869_v20  ;;  %v617_v34 = vadd.f32 %v1328_v7, %v477_v22  ;;  %v754_v5 = vld [vmem:[%s1324_s13 + $0x3b8] sm:$0xff]  ;;  %v352_v12 = vld [vmem:[%s1319_s10 + $0x3e8] sm:$0xff]  ;;  %v755_v16 = vld [vmem:[%s1324_s13 + $0x3c0] sm:$0xff] }
  0x76   : > { %v872_v33 = vadd.f32 %v744_v18, %v616_v21  ;;  %v618_v35 = vadd.f32 %v1332_v9, %v478_v23  ;;  %v481_v38 = vmul.f32 %v1326_v6, %v341_v19  ;;  %998 = vst [vmem:[%s1371_s20 + $0x358] sm:$0xff] %v870_v26  ;;  %v482_v42 = vmul.f32 %v1330_v8, %v342_v24  ;;  %v756_v17 = vld [vmem:[%s1324_s13 + $0x3c8] sm:$0xff]  ;;  %v757_v21 = vld [vmem:[%s1324_s13 + $0x3d0] sm:$0xff] }
  0x77   : > { %999 = vst [vmem:[%s1371_s20 + $0x360] sm:$0xff] %v871_v27  ;;  %v619_v40 = vadd.f32 %v1328_v7, %v479_v30  ;;  %v620_v41 = vadd.f32 %v1332_v9, %v480_v31  ;;  %v483_v44 = vmul.f32 %v1326_v6, %v343_v25  ;;  %v873_v47 = vadd.f32 %v745_v28, %v617_v34  ;;  %v353_v24 = vld [vmem:[%s1319_s10 + $0x3f0] sm:$0xff]  ;;  %v354_v25 = vld [vmem:[%s1319_s10 + $0x3f8] sm:$0xff]  ;;  %v759_v30 = vld [vmem:[%s1324_s13 + $0x3e0] sm:$0xff] }
  0x78   : > { %1000 = vst [vmem:[%s1371_s20 + $0x368] sm:$0xff] %v872_v33  ;;  %v874_v48 = vadd.f32 %v746_v29, %v618_v35  ;;  %v621_v49 = vadd.f32 %v1328_v7, %v481_v38  ;;  %v484_v51 = vmul.f32 %v1330_v8, %v344_v32  ;;  %v622_v56 = vadd.f32 %v1332_v9, %v482_v42  ;;  %v758_v29 = vld [vmem:[%s1324_s13 + $0x3d8] sm:$0xff] }
  0x79   : > { %v875_v54 = vadd.f32 %v747_v36, %v619_v40  ;;  %v876_v55 = vadd.f32 %v748_v37, %v620_v41  ;;  %v623_v57 = vadd.f32 %v1328_v7, %v483_v44  ;;  %1001 = vst [vmem:[%s1371_s20 + $0x370] sm:$0xff] %v873_v47  ;;  %v485_v62 = vmul.f32 %v1326_v6, %v345_v45  ;;  %v760_v36 = vld [vmem:[%s1324_s13 + $0x3e8] sm:$0xff]  ;;  %v762_v44 = vld [vmem:[%s1324_s13 + $0x3f8] sm:$0xff] }
  0x7a   : > { %1002 = vst [vmem:[%s1371_s20 + $0x378] sm:$0xff] %v874_v48  ;;  %v877_v60 = vadd.f32 %v749_v39, %v621_v49  ;;  %v624_v61 = vadd.f32 %v1332_v9, %v484_v51  ;;  %v486_v63 = vmul.f32 %v1330_v8, %v346_v46  ;;  %v878_v2 = vadd.f32 %v750_v43, %v622_v56  ;;  %v761_v43 = vld [vmem:[%s1324_s13 + $0x3f0] sm:$0xff] }
  0x7b   : > { %1003 = vst [vmem:[%s1371_s20 + $0x380] sm:$0xff] %v875_v54  ;;  %1004 = vst [vmem:[%s1371_s20 + $0x388] sm:$0xff] %v876_v55  ;;  %v879_v3 = vadd.f32 %v751_v50, %v623_v57  ;;  %v487_v10 = vmul.f32 %v1326_v6, %v347_v52  ;;  %v488_v11 = vmul.f32 %v1330_v8, %v348_v53 }
  0x7c   : > { %1005 = vst [vmem:[%s1371_s20 + $0x390] sm:$0xff] %v877_v60  ;;  %v880_v13 = vadd.f32 %v752_v58, %v624_v61  ;;  %v625_v14 = vadd.f32 %v1328_v7, %v485_v62  ;;  %v626_v15 = vadd.f32 %v1332_v9, %v486_v63  ;;  %v489_v18 = vmul.f32 %v1326_v6, %v349_v59 }
  0x7d   : > { %1006 = vst [vmem:[%s1371_s20 + $0x398] sm:$0xff] %v878_v2  ;;  %1007 = vst [vmem:[%s1371_s20 + $0x3a0] sm:$0xff] %v879_v3  ;;  %v627_v19 = vadd.f32 %v1328_v7, %v487_v10  ;;  %v628_v20 = vadd.f32 %v1332_v9, %v488_v11  ;;  %v490_v22 = vmul.f32 %v1330_v8, %v350_v0 }
  0x7e   : > { %v491_v23 = vmul.f32 %v1326_v6, %v351_v1  ;;  %1008 = vst [vmem:[%s1371_s20 + $0x3a8] sm:$0xff] %v880_v13  ;;  %v881_v26 = vadd.f32 %v753_v4, %v625_v14  ;;  %v882_v27 = vadd.f32 %v754_v5, %v626_v15  ;;  %v629_v28 = vadd.f32 %v1328_v7, %v489_v18 }
  0x7f   : > { %v492_v31 = vmul.f32 %v1330_v8, %v352_v12  ;;  %v883_v32 = vadd.f32 %v755_v16, %v627_v19  ;;  %v884_v33 = vadd.f32 %v756_v17, %v628_v20  ;;  %v630_v34 = vadd.f32 %v1332_v9, %v490_v22 }
  0x80   : > { %v631_v35 = vadd.f32 %v1328_v7, %v491_v23  ;;  %1009 = vst [vmem:[%s1371_s20 + $0x3b0] sm:$0xff] %v881_v26  ;;  %1010 = vst [vmem:[%s1371_s20 + $0x3b8] sm:$0xff] %v882_v27  ;;  %v885_v37 = vadd.f32 %v757_v21, %v629_v28  ;;  %v493_v39 = vmul.f32 %v1326_v6, %v353_v24 }
  0x81   : > { %v632_v38 = vadd.f32 %v1332_v9, %v492_v31  ;;  %v494_v40 = vmul.f32 %v1330_v8, %v354_v25  ;;  %1011 = vst [vmem:[%s1371_s20 + $0x3c0] sm:$0xff] %v883_v32  ;;  %1012 = vst [vmem:[%s1371_s20 + $0x3c8] sm:$0xff] %v884_v33  ;;  %v886_v41 = vadd.f32 %v758_v29, %v630_v34 }
  0x82   : > { %v887_v42 = vadd.f32 %v759_v30, %v631_v35  ;;  %1013 = vst [vmem:[%s1371_s20 + $0x3d0] sm:$0xff] %v885_v37  ;;  %v633_v46 = vadd.f32 %v1328_v7, %v493_v39 }
  0x83   : > { %v888_v45 = vadd.f32 %v760_v36, %v632_v38  ;;  %v634_v6 = vadd.f32 %v1332_v9, %v494_v40  ;;  %1014 = vst [vmem:[%s1371_s20 + $0x3d8] sm:$0xff] %v886_v41 }
  0x84   : > { %1015 = vst [vmem:[%s1371_s20 + $0x3e0] sm:$0xff] %v887_v42  ;;  %v889_v8 = vadd.f32 %v761_v43, %v633_v46 }
  0x85   : > { %1016 = vst [vmem:[%s1371_s20 + $0x3e8] sm:$0xff] %v888_v45  ;;  %v890_v47 = vadd.f32 %v762_v44, %v634_v6 }
  0x86   : > { %1017 = vst [vmem:[%s1371_s20 + $0x3f0] sm:$0xff] %v889_v8 }
  0x87   : > { %1018 = vst [vmem:[%s1371_s20 + $0x3f8] sm:$0xff] %v890_v47 }
  0x88   : > { %1183 = shalt.err (!%p1180_p3)
}
  0x89   : > { %s1184_s6 = scalar_lea.hbm %s1983_s28, 16384  ;;  %s1188_s11 = scalar_lea.hbm %s2036_s4, 32768 }
  0x8a   : > { %p1185_p4 = scmp.ne.s32.totalorder %s1983_s28, %s1184_s6  ;;  %p1189_p9 = scmp.lt.s32.totalorder %s1983_s28, %s2036_s4 }
  0x8b   : > { %p1190_p10 = scmp.lt.s32.totalorder %s1188_s11, %s1184_s6 }
  0x8c   : > { %p1186_p7 = pnand %p1185_p4, %p1298_p5 }
  0x8d   : > { %p1191_p11 = por %p1190_p10, %p1189_p9 }
  0x8e   : > { %p1187_p8 = pneg %p1186_p7 }
  0x90   : > { %p1192_p12 = pnand %p1191_p11, %p1187_p8 }
  0x92   : > { %1195 = shalt.err (!%p1192_p12)
}
  0x93   : > { %s1233_s14 = smov 256   ;;  %s1234_s20 = smov 16  }
  0x94   : > { %1129 = dma.vmem_to_hbm [thread:$0]  (%p1298_p5), %s1985_s23, 16384, %s1983_s28, %s1992_s29, %s1233_s14, %s1233_s14, %s1234_s20  }
  0x95 PF: > { %p1135_p13 = scmp.ge.s32.totalorder %s1230_s18, 2  ;;  %s1049_s22 = sand.u32 1, %s1218_s15  }
  0x96   : > { %s1050_s19 = scalar_lea.sflag [#allocation3], %s1049_s22 }
  0x97   : > { %p1132_p0 = pnand %p1135_p13, %p1302_p6 }
  0x99   : > { %p1133_p1 = pneg %p1132_p0 }
  0x9b   : > { %1213 = dma.done.wait (%p1133_p1), %s1050_s19, 16384  }
  0x9c   : > { %1215 = vsyncadd (%p1133_p1), %s1050_s19, 4294950912  ;;  %p14_p2 = scmp.ge.s32.totalorder %s1285_s21, 4   ;;  %s2039_s15 = smov %s1222_s16 }
  0x9d   : > { %s2040_s16 = smov %s1226_s17  ;;  %s2041_s17 = smov %s1296_s24 }
  0x9e   : > { %s2042_s18 = smov %s1285_s21  ;;  %16 = sbr.rel (!%p14_p2) target bundleno = 3 (0x3), region = 74 }
  0xa3   :  { %1055 = vsyncpa [#allocation3], 1 }
  0xa4   :  { %1057 = vsyncpa [#allocation3 + $0x1], 1 }

// kernel: block_forward_nchw.5
= control target key start
LH: loop header
LB: loop body
LE: loop exit
PB: predicated region body
PF: predicated region fallthrough
CT: control target
= control target key end

     0   :  { %s4853_s18 = smov 0   ;;  %s6057_s0 = inlined_call_operand.vmem [shape: f32[4,256,64], index: 0, kind: input, shape index: {}]   ;;  %s6058_s1 = inlined_call_operand.vmem [shape: f32[1,64], index: 1, kind: input, shape index: {}]   ;;  %s6059_s2 = inlined_call_operand.vmem [shape: f32[1,64], index: 2, kind: input, shape index: {}]   ;;  %s6060_s3 = inlined_call_operand.vmem [shape: bf16[9,64,64], index: 3, kind: input, shape index: {}]   ;;  %s6061_s4 = inlined_call_operand.vmem [shape: f32[4,256,64], index: 4, kind: output, shape index: {0}]   ;;  %s6062_s5 = inlined_call_operand.vmem [shape: f32[4,2,64], index: 5, kind: output, shape index: {1}]  }
   0x1 LB: > { %s3889_s19 = sadd.s32 4294967295, %s4820_s18   ;;  %p3893_p0 = scmp.ge.s32.totalorder %s4820_s18, 1  ;;  %s4820_s18 = sphi %s4853_s18, %s16_s18  }
   0x2   : > { %p190_p1 = scmp.lt.s32.totalorder %s4820_s18, 5 }
   0x4   : > { %p191_p2 = pnand %p3893_p0, %p190_p1 }
   0x5   : > { %p222_p3 = scmp.lt.s32.totalorder (!%p191_p2), %s3889_s19, 3 }
   0x6   : > { %194 = sbr.rel (%p191_p2) target bundleno = 585 (0x249), region = 36 }
   0xb   : > { %v4778_v0 = vld [vmem:[%s6060_s3 + $0x38] sm:$0xff]   ;;  %vm379_vm0 = vcmask 523264   ;;  %v4779_v1 = vld [vmem:[%s6060_s3 + $0x30] sm:$0xff]   ;;  %v4822_v2 = vmov 0.0   ;;  %vm382_vm1 = vcmask 518144   ;;  %v4780_v3 = vld [vmem:[%s6060_s3 + $0x28] sm:$0xff]  }
   0xc   : > { %4365 = vmatprep.subr.bf16.mxu0 %v4778_v0  ;;  %4761 = vmatprep.subr.bf16.mxu1 %v4778_v0  ;;  %380 = vst.msk [vmem:[#allocation2] sm:$0xff] %vm379_vm0, %v4822_v2  ;;  %381 = vst.msk [vmem:[#allocation2 + $0x8] sm:$0xff] %vm379_vm0, %v4822_v2  ;;  %vm384_vm2 = vcmask 517120   ;;  %s6064_s19 = smov (!%p222_p3, %s3889_s19), 3  ;;  %v4884_v4 = vld [vmem:[%s6058_s1] ss:$0 sm:$0xff] }
   0xd   : > { %400 = vst.msk [vmem:[#allocation2 + $0x131] sm:$0xff] %vm379_vm0, %v4822_v2  ;;  %401 = vst.msk [vmem:[#allocation2 + $0x139] sm:$0xff] %vm379_vm0, %v4822_v2  ;;  %4366 = vmatpush3.bf16.msra.mxu0 %v4778_v0  ;;  %4765 = vmatpush3.bf16.msra.mxu1 %v4778_v0  ;;  %v4781_v5 = vld [vmem:[%s6060_s3 + $0x20] sm:$0xff]   ;;  %s4165_s30 = sshll.u32 %s6064_s19, 8  ;;  %v4946_v21 = vld [vmem:[%s6060_s3 + $0x58] sm:$0xff]   ;;  %vm402_vm3 = vcmask 522240  }
   0xe   : > { %383 = vst.msk [vmem:[#allocation2 + $0x10] sm:$0x7] %vm382_vm1, %v4822_v2  ;;  %4367 = vmatprep.subr.bf16.mxu0 %v4779_v1  ;;  %4762 = vmatprep.subr.bf16.mxu1 %v4779_v1  ;;  %s4925_s8 = scalar_lea.vmem %s6057_s0, %s4165_s30  ;;  %v4930_v6 = vld [vmem:[%s6059_s2] ss:$0 sm:$0xff]  ;;  %v4954_v25 = vld [vmem:[%s6060_s3 + $0x18] sm:$0xff]   ;;  %s5829_s12 = scalar_lea.vmem %s6061_s4, %s4165_s30  ;;  %vm3551_vm4 = vcmask 523266  }
   0xf   : > { %392 = vst.msk [vmem:[#allocation2 + $0xa1] sm:$0x3] %vm384_vm2, %v4822_v2  ;;  %385 = vst.msk [vmem:[#allocation2 + $0x23] sm:$0x3] %vm384_vm2, %v4822_v2  ;;  %v237_v8 = vld [vmem:[%s4925_s8] sm:$0xff]  ;;  %v238_v9 = vld [vmem:[%s4925_s8 + $0x8] sm:$0xff] }
  0x10   : > { %386 = vst.msk [vmem:[#allocation2 + $0x35] sm:$0x3] %vm384_vm2, %v4822_v2  ;;  %387 = vst.msk [vmem:[#allocation2 + $0x47] sm:$0x3] %vm384_vm2, %v4822_v2  ;;  %v276_v11 = vmul.f32 %v4884_v4, %v237_v8  ;;  %v277_v12 = vmul.f32 %v4884_v4, %v238_v9  ;;  %v253_v13 = vld [vmem:[%s4925_s8 + $0x80] sm:$0xff]  ;;  %v254_v14 = vld [vmem:[%s4925_s8 + $0x88] sm:$0xff] }
  0x11   : > { %388 = vst.msk [vmem:[#allocation2 + $0x59] sm:$0x3] %vm384_vm2, %v4822_v2  ;;  %389 = vst.msk [vmem:[#allocation2 + $0x6b] sm:$0x3] %vm384_vm2, %v4822_v2  ;;  %4368 = vmatpush3.bf16.msra.mxu0 %v4779_v1  ;;  %4766 = vmatpush3.bf16.msra.mxu1 %v4779_v1  ;;  %v292_v16 = vmul.f32 %v4884_v4, %v253_v13  ;;  %v293_v17 = vmul.f32 %v4884_v4, %v254_v14  ;;  %v255_v18 = vld [vmem:[%s4925_s8 + $0x90] sm:$0xff]  ;;  %v256_v19 = vld [vmem:[%s4925_s8 + $0x98] sm:$0xff] }
  0x12   : > { %390 = vst.msk [vmem:[#allocation2 + $0x7d] sm:$0x3] %vm384_vm2, %v4822_v2  ;;  %391 = vst.msk [vmem:[#allocation2 + $0x8f] sm:$0x3] %vm384_vm2, %v4822_v2  ;;  %4369 = vmatprep.subr.bf16.mxu0 %v4780_v3  ;;  %4763 = vmatprep.subr.bf16.mxu1 %v4780_v3  ;;  %v239_v20 = vld [vmem:[%s4925_s8 + $0x10] sm:$0xff]  ;;  %v315_v22 = vadd.f32 %v4930_v6, %v276_v11  ;;  %v316_v23 = vadd.f32 %v4930_v6, %v277_v12  ;;  %v240_v26 = vld [vmem:[%s4925_s8 + $0x18] sm:$0xff] }
  0x13   : > { %393 = vst.msk [vmem:[#allocation2 + $0xb3] sm:$0x3] %vm384_vm2, %v4822_v2  ;;  %394 = vst.msk [vmem:[#allocation2 + $0xc5] sm:$0x3] %vm384_vm2, %v4822_v2  ;;  %v498_v7 = vld [vmem:[#allocation2 + $0x1] sm:$0xff]  ;;  %v294_v24 = vmul.f32 %v4884_v4, %v255_v18  ;;  %v331_v27 = vadd.f32 %v4930_v6, %v292_v16  ;;  %v332_v28 = vadd.f32 %v4930_v6, %v293_v17  ;;  %v259_v43 = vld [vmem:[%s4925_s8 + $0xb0] sm:$0xff] }
  0x14   : > { %395 = vst.msk [vmem:[#allocation2 + $0xd7] sm:$0x3] %vm384_vm2, %v4822_v2  ;;  %396 = vst.msk [vmem:[#allocation2 + $0xe9] sm:$0x3] %vm384_vm2, %v4822_v2  ;;  %v295_v29 = vmul.f32 %v4884_v4, %v256_v19  ;;  %v278_v30 = vmul.f32 %v4884_v4, %v239_v20  ;;  %v241_v31 = vld [vmem:[%s4925_s8 + $0x20] sm:$0xff]  ;;  %v242_v32 = vld [vmem:[%s4925_s8 + $0x28] sm:$0xff]  ;;  %v279_v36 = vmul.f32 %v4884_v4, %v240_v26 }
  0x15   : > { %397 = vst.msk [vmem:[#allocation2 + $0xfb] sm:$0x3] %vm384_vm2, %v4822_v2  ;;  %398 = vst.msk [vmem:[#allocation2 + $0x10d] sm:$0x3] %vm384_vm2, %v4822_v2  ;;  %v499_v10 = vld [vmem:[#allocation2 + $0x9] sm:$0xff]  ;;  %4370 = vmatpush3.bf16.msra.mxu0 %v4780_v3  ;;  %4767 = vmatpush3.bf16.msra.mxu1 %v4780_v3  ;;  %v347_v33 = vmax.f32 %v315_v22, 0.0  ;;  %v333_v35 = vadd.f32 %v4930_v6, %v294_v24  ;;  %v280_v47 = vmul.f32 %v4884_v4, %v241_v31 }
  0x16   : > { %399 = vst.msk [vmem:[#allocation2 + $0x11f] sm:$0x3] %vm384_vm2, %v4822_v2  ;;  %v534_v15 = vpack.c.bf16 %v499_v10, %v498_v7  ;;  %4371 = vmatprep.subr.bf16.mxu0 %v4781_v5  ;;  %4764 = vmatprep.subr.bf16.mxu1 %v4781_v5  ;;  %v348_v34 = vmax.f32 %v316_v23, 0.0  ;;  %v257_v37 = vld [vmem:[%s4925_s8 + $0xa0] sm:$0xff]  ;;  %v258_v38 = vld [vmem:[%s4925_s8 + $0xa8] sm:$0xff]  ;;  %v363_v39 = vmax.f32 %v331_v27, 0.0  ;;  %v334_v41 = vadd.f32 %v4930_v6, %v295_v29 }
  0x17   : > { %v364_v40 = vmax.f32 %v332_v28, 0.0  ;;  %v317_v42 = vadd.f32 %v4930_v6, %v278_v30  ;;  %v243_v44 = vld [vmem:[%s4925_s8 + $0x30] sm:$0xff]  ;;  %404 = vst.msk [vmem:[#allocation2 + $0x13] sm:$0xff] %vm379_vm0, %v347_v33  ;;  %v365_v45 = vmax.f32 %v333_v35, 0.0  ;;  %v318_v46 = vadd.f32 %v4930_v6, %v279_v36  ;;  %v244_v49 = vld [vmem:[%s4925_s8 + $0x38] sm:$0xff]  ;;  %v245_v50 = vld [vmem:[%s4925_s8 + $0x40] sm:$0xff] }
  0x18   : > { %4373 = vmatprep.mubr.msk.bf16.mxu0 %vm379_vm0, %v534_v15  ;;  %405 = vst.msk [vmem:[#allocation2 + $0x1b] sm:$0xff] %vm379_vm0, %v348_v34  ;;  %v281_v48 = vmul.f32 %v4884_v4, %v242_v32  ;;  %420 = vst.msk [vmem:[#allocation2 + $0xa3] sm:$0xff] %vm379_vm0, %v363_v39  ;;  %v366_v51 = vmax.f32 %v334_v41, 0.0  ;;  %v296_v53 = vmul.f32 %v4884_v4, %v257_v37  ;;  %v260_v63 = vld [vmem:[%s4925_s8 + $0xb8] sm:$0xff]  ;;  %v261_v0 = vld [vmem:[%s4925_s8 + $0xc0] sm:$0xff]  ;;  %vm3558_vm5 = vcmask 519168  }
  0x19   : > { %4372 = vmatpush3.bf16.msra.mxu0 %v4781_v5  ;;  %4768 = vmatpush3.bf16.msra.mxu1 %v4781_v5  ;;  %421 = vst.msk [vmem:[#allocation2 + $0xab] sm:$0xff] %vm379_vm0, %v364_v40  ;;  %v349_v52 = vmax.f32 %v317_v42, 0.0  ;;  %v297_v54 = vmul.f32 %v4884_v4, %v258_v38  ;;  %422 = vst.msk [vmem:[#allocation2 + $0xb5] sm:$0xff] %vm379_vm0, %v365_v45  ;;  %v350_v55 = vmax.f32 %v318_v46, 0.0  ;;  %v262_v8 = vld [vmem:[%s4925_s8 + $0xc8] sm:$0xff]  ;;  %v263_v9 = vld [vmem:[%s4925_s8 + $0xd0] sm:$0xff] }
  0x1a   : > { %4453 = vmatprep.subr.bf16.mxu0 %v4946_v21  ;;  %4409 = vmatprep.subr.bf16.mxu1 %v4954_v25  ;;  %v319_v56 = vadd.f32 %v4930_v6, %v280_v47  ;;  %v320_v57 = vadd.f32 %v4930_v6, %v281_v48  ;;  %v298_v58 = vmul.f32 %v4884_v4, %v259_v43  ;;  %v246_v14 = vld [vmem:[%s4925_s8 + $0x48] sm:$0xff]  ;;  %v5010_v16 = vld [vmem:[%s6060_s3 + $0x50] sm:$0xff]   ;;  %v248_v29 = vld [vmem:[%s4925_s8 + $0x58] sm:$0xff]  ;;  %vm3560_vm6 = vcmask 523270   ;;  %s3898_s30 = sshll.u32 %s6064_s19, 1 }
  0x1b   : > { %423 = vst.msk [vmem:[#allocation2 + $0xbd] sm:$0xff] %vm379_vm0, %v366_v51  ;;  %406 = vst.msk [vmem:[#allocation2 + $0x25] sm:$0xff] %vm379_vm0, %v349_v52  ;;  %v335_v59 = vadd.f32 %v4930_v6, %v296_v53  ;;  %v336_v60 = vadd.f32 %v4930_v6, %v297_v54  ;;  %v282_v61 = vmul.f32 %v4884_v4, %v243_v44  ;;  %v247_v20 = vld [vmem:[%s4925_s8 + $0x50] sm:$0xff]  ;;  %v249_v36 = vld [vmem:[%s4925_s8 + $0x60] sm:$0xff]  ;;  %vm3555_vm7 = vcmask 523268   ;;  %s235_s15 = scalar_lea.vmem %s6062_s5, %s3898_s30 }
  0x1c   : > { %v283_v62 = vmul.f32 %v4884_v4, %v244_v49  ;;  %407 = vst.msk [vmem:[#allocation2 + $0x2d] sm:$0xff] %vm379_vm0, %v350_v55  ;;  %v351_v1 = vmax.f32 %v319_v56, 0.0  ;;  %v352_v3 = vmax.f32 %v320_v57, 0.0  ;;  %v337_v5 = vadd.f32 %v4930_v6, %v298_v58  ;;  %v5028_v39 = vld [vmem:[%s6060_s3 + $0x10] sm:$0xff]   ;;  %v264_v43 = vld [vmem:[%s4925_s8 + $0xd8] sm:$0xff]  ;;  %v265_v44 = vld [vmem:[%s4925_s8 + $0xe0] sm:$0xff] }
  0x1d   : > { %v284_v7 = vmul.f32 %v4884_v4, %v245_v50  ;;  %v367_v10 = vmax.f32 %v335_v59, 0.0  ;;  %v368_v11 = vmax.f32 %v336_v60, 0.0  ;;  %v321_v12 = vadd.f32 %v4930_v6, %v282_v61  ;;  %v266_v51 = vld [vmem:[%s4925_s8 + $0xe8] sm:$0xff]  ;;  %403 = vst.msk [vmem:[#allocation2 + $0x141] sm:$0x7f] %vm402_vm3, %v4822_v2 }
  0x1e   : > { %v322_v13 = vadd.f32 %v4930_v6, %v283_v62  ;;  %408 = vst.msk [vmem:[#allocation2 + $0x37] sm:$0xff] %vm379_vm0, %v351_v1  ;;  %409 = vst.msk [vmem:[#allocation2 + $0x3f] sm:$0xff] %vm379_vm0, %v352_v3  ;;  %v369_v15 = vmax.f32 %v337_v5, 0.0  ;;  %v299_v18 = vmul.f32 %v4884_v4, %v260_v63  ;;  %v300_v19 = vmul.f32 %v4884_v4, %v261_v0  ;;  %v500_v22 = vld [vmem:[#allocation2 + $0x11] sm:$0xff]  ;;  %v5047_v56 = vld [vmem:[%s6060_s3 + $0x48] sm:$0xff]  }
  0x1f   : > { %v323_v17 = vadd.f32 %v4930_v6, %v284_v7  ;;  %v501_v23 = vld [vmem:[#allocation2 + $0x19] sm:$0xff]  ;;  %424 = vst.msk [vmem:[#allocation2 + $0xc7] sm:$0xff] %vm379_vm0, %v367_v10  ;;  %425 = vst.msk [vmem:[#allocation2 + $0xcf] sm:$0xff] %vm379_vm0, %v368_v11  ;;  %v353_v24 = vmax.f32 %v321_v12, 0.0  ;;  %v301_v27 = vmul.f32 %v4884_v4, %v262_v8  ;;  %v302_v28 = vmul.f32 %v4884_v4, %v263_v9  ;;  %v518_v31 = vld [vmem:[#allocation2 + $0xa1] sm:$0xff] }
  0x20   : > { %v354_v26 = vmax.f32 %v322_v13, 0.0  ;;  %v535_v30 = vpack.c.bf16 %v501_v23, %v500_v22  ;;  %v519_v32 = vld [vmem:[#allocation2 + $0xa9] sm:$0xff]  ;;  %426 = vst.msk [vmem:[#allocation2 + $0xd9] sm:$0xff] %vm379_vm0, %v369_v15  ;;  %v338_v34 = vadd.f32 %v4930_v6, %v299_v18  ;;  %v339_v35 = vadd.f32 %v4930_v6, %v300_v19  ;;  %v520_v38 = vld [vmem:[#allocation2 + $0xb1] sm:$0xff] }
  0x21   : > { %v355_v33 = vmax.f32 %v323_v17, 0.0  ;;  %v544_v37 = vpack.c.bf16 %v519_v32, %v518_v31  ;;  %410 = vst.msk [vmem:[#allocation2 + $0x49] sm:$0xff] %vm379_vm0, %v353_v24  ;;  %v340_v40 = vadd.f32 %v4930_v6, %v301_v27  ;;  %v341_v41 = vadd.f32 %v4930_v6, %v302_v28  ;;  %v250_v61 = vld [vmem:[%s4925_s8 + $0x68] sm:$0xff]  ;;  %v251_v62 = vld [vmem:[%s4925_s8 + $0x70] sm:$0xff]  ;;  %v252_v22 = vld [vmem:[%s4925_s8 + $0x78] sm:$0xff] }
  0x22   : > { %411 = vst.msk [vmem:[#allocation2 + $0x51] sm:$0xff] %vm379_vm0, %v354_v26  ;;  %v285_v42 = vmul.f32 %v4884_v4, %v246_v14  ;;  %4374 = vmatmul.mubr.msk.bf16.vlgmr.msra.gmra.mxu0 %vm379_vm0, %v535_v30  ;;  %v521_v45 = vld [vmem:[#allocation2 + $0xb9] sm:$0xff]  ;;  %v502_v46 = vld [vmem:[#allocation2 + $0x21] sm:$0xff]  ;;  %v370_v47 = vmax.f32 %v338_v34, 0.0  ;;  %v371_v48 = vmax.f32 %v339_v35, 0.0  ;;  %v286_v49 = vmul.f32 %v4884_v4, %v247_v20 }
  0x23   : > { %412 = vst.msk [vmem:[#allocation2 + $0x5b] sm:$0xff] %vm379_vm0, %v355_v33  ;;  %v287_v50 = vmul.f32 %v4884_v4, %v248_v29  ;;  %4393 = vmatprep.mubr.msk.bf16.mxu1 %vm379_vm0, %v544_v37  ;;  %4454 = vmatpush3.bf16.msra.mxu0 %v4946_v21  ;;  %v545_v52 = vpack.c.bf16 %v521_v45, %v520_v38  ;;  %v503_v53 = vld [vmem:[#allocation2 + $0x29] sm:$0xff]  ;;  %v372_v54 = vmax.f32 %v340_v40, 0.0  ;;  %v373_v55 = vmax.f32 %v341_v41, 0.0  ;;  %v4789_v27 = vld [vmem:[%s6060_s3 + $0x40] sm:$0xff]   ;;  %v5104_v45 = vld [vmem:[%s6060_s3 + $0x98] sm:$0xff]  }
  0x24   : > { %v324_v57 = vadd.f32 %v4930_v6, %v285_v42  ;;  %v536_v58 = vpack.c.bf16 %v503_v53, %v502_v46  ;;  %4455 = vmatprep.subr.bf16.mxu0 %v5010_v16  ;;  %427 = vst.msk [vmem:[#allocation2 + $0xe1] sm:$0xff] %vm379_vm0, %v370_v47  ;;  %428 = vst.msk [vmem:[#allocation2 + $0xeb] sm:$0xff] %vm379_vm0, %v371_v48  ;;  %v325_v21 = vadd.f32 %v4930_v6, %v286_v49  ;;  %v4787_v13 = vld [vmem:[%s6060_s3 + $0x8] sm:$0xff]   ;;  %v4788_v35 = vld [vmem:[%s6060_s3] sm:$0xff]   ;;  %vm3563_vm8 = vcmask 521216  }
  0x25   : > { %v288_v59 = vmul.f32 %v4884_v4, %v249_v36  ;;  %v326_v60 = vadd.f32 %v4930_v6, %v287_v50  ;;  %4394 = vmatmul.mubr.msk.bf16.vlgmr.msra.gmra.mxu1 %vm379_vm0, %v545_v52  ;;  %v504_v63 = vld [vmem:[#allocation2 + $0x31] sm:$0xff]  ;;  %v505_v0 = vld [vmem:[#allocation2 + $0x39] sm:$0xff]  ;;  %v506_v1 = vld [vmem:[#allocation2 + $0x41] sm:$0xff]  ;;  %429 = vst.msk [vmem:[#allocation2 + $0xf3] sm:$0xff] %vm379_vm0, %v372_v54  ;;  %v303_v5 = vmul.f32 %v4884_v4, %v264_v43  ;;  %vm3699_vm9 = vcmask 516096  }
  0x26   : > { %430 = vst.msk [vmem:[#allocation2 + $0xfd] sm:$0xff] %vm379_vm0, %v373_v55  ;;  %v356_v3 = vmax.f32 %v324_v57, 0.0  ;;  %v304_v7 = vmul.f32 %v4884_v4, %v265_v44  ;;  %v305_v8 = vmul.f32 %v4884_v4, %v266_v51  ;;  %4410 = vmatpush3.bf16.msra.mxu1 %v4954_v25  ;;  %4377 = vmatprep.mubr.msk.bf16.mxu0 %vm379_vm0, %v536_v58  ;;  %v522_v10 = vld [vmem:[#allocation2 + $0xc1] sm:$0xff]  ;;  %v523_v11 = vld [vmem:[#allocation2 + $0xc9] sm:$0xff]  ;;  %v524_v12 = vld [vmem:[#allocation2 + $0xd1] sm:$0xff]  ;;  %v357_v14 = vmax.f32 %v325_v21, 0.0 }
  0x27   : > { %v537_v9 = vpack.c.bf16 %v505_v0, %v504_v63  ;;  %v327_v15 = vadd.f32 %v4930_v6, %v288_v59  ;;  %v358_v17 = vmax.f32 %v326_v60, 0.0  ;;  %v546_v18 = vpack.c.bf16 %v523_v11, %v522_v10  ;;  %v525_v19 = vld [vmem:[#allocation2 + $0xd9] sm:$0xff]  ;;  %4456 = vmatpush3.bf16.msra.mxu0 %v5010_v16  ;;  %4411 = vmatprep.subr.bf16.mxu1 %v5028_v39  ;;  %v1071_v11 = vld [vmem:[#allocation2 + $0x2] sm:$0xff] }
  0x28   : > { %413 = vst.msk [vmem:[#allocation2 + $0x63] sm:$0xff] %vm379_vm0, %v356_v3  ;;  %v342_v25 = vadd.f32 %v4930_v6, %v303_v5  ;;  %v343_v20 = vadd.f32 %v4930_v6, %v304_v7  ;;  %v547_v23 = vpack.c.bf16 %v525_v19, %v524_v12  ;;  %v507_v24 = vld [vmem:[#allocation2 + $0x49] sm:$0xff]  ;;  %4457 = vmatprep.subr.bf16.mxu0 %v5047_v56  ;;  %414 = vst.msk [vmem:[#allocation2 + $0x6d] sm:$0xff] %vm379_vm0, %v357_v14  ;;  %v4790_v53 = vld [vmem:[%s6060_s3 + $0x78] sm:$0xff]  }
  0x29   : > { %v359_v26 = vmax.f32 %v327_v15, 0.0  ;;  %415 = vst.msk [vmem:[#allocation2 + $0x75] sm:$0xff] %vm379_vm0, %v358_v17  ;;  %v344_v16 = vadd.f32 %v4930_v6, %v305_v8  ;;  %v289_v28 = vmul.f32 %v4884_v4, %v250_v61  ;;  %4397 = vmatprep.mubr.msk.bf16.mxu1 %vm379_vm0, %v546_v18  ;;  %v538_v29 = vpack.c.bf16 %v507_v24, %v506_v1  ;;  %v508_v33 = vld [vmem:[#allocation2 + $0x51] sm:$0xff]  ;;  %v436_v1 = vld [vmem:[#allocation2] sm:$0xff]  ;;  %v437_v5 = vld [vmem:[#allocation2 + $0x8] sm:$0xff] }
  0x2a   : > { %v374_v30 = vmax.f32 %v342_v25, 0.0  ;;  %v375_v31 = vmax.f32 %v343_v20, 0.0  ;;  %v290_v32 = vmul.f32 %v4884_v4, %v251_v62  ;;  %4378 = vmatmul.mubr.msk.bf16.gmra.mxu0 %vm379_vm0, %v537_v9  ;;  %4412 = vmatpush3.bf16.msra.mxu1 %v5028_v39  ;;  %v291_v37 = vmul.f32 %v4884_v4, %v252_v22  ;;  %v509_v38 = vld [vmem:[#allocation2 + $0x59] sm:$0xff]  ;;  %v1072_v12 = vld [vmem:[#allocation2 + $0xa] sm:$0xff] }
  0x2b   : > { %416 = vst.msk [vmem:[#allocation2 + $0x7f] sm:$0xff] %vm379_vm0, %v359_v26  ;;  %v376_v34 = vmax.f32 %v344_v16, 0.0  ;;  %v328_v36 = vadd.f32 %v4930_v6, %v289_v28  ;;  %4381 = vmatprep.mubr.msk.bf16.mxu0 %vm379_vm0, %v538_v29  ;;  %v526_v40 = vld [vmem:[#allocation2 + $0xe1] sm:$0xff]  ;;  %v527_v41 = vld [vmem:[#allocation2 + $0xe9] sm:$0xff]  ;;  %4458 = vmatpush3.bf16.msra.mxu0 %v5047_v56  ;;  %v539_v47 = vpack.c.bf16 %v509_v38, %v508_v33  ;;  %v439_v15 = vld [vmem:[#allocation2 + $0x18] sm:$0xff] }
  0x2c   : > { %431 = vst.msk [vmem:[#allocation2 + $0x105] sm:$0xff] %vm379_vm0, %v374_v30  ;;  %432 = vst.msk [vmem:[#allocation2 + $0x10f] sm:$0xff] %vm379_vm0, %v375_v31  ;;  %v329_v39 = vadd.f32 %v4930_v6, %v290_v32  ;;  %v548_v42 = vpack.c.bf16 %v527_v41, %v526_v40  ;;  %4413 = vmatprep.subr.bf16.mxu1 %v4787_v13  ;;  %4459 = vmatprep.subr.bf16.mxu0 %v4789_v27  ;;  %v528_v48 = vld [vmem:[#allocation2 + $0xf1] sm:$0xff]  ;;  %v440_v18 = vld [vmem:[#allocation2 + $0x20] sm:$0xff] }
  0x2d   : > { %433 = vst.msk [vmem:[#allocation2 + $0x117] sm:$0xff] %vm379_vm0, %v376_v34  ;;  %v360_v43 = vmax.f32 %v328_v36, 0.0  ;;  %v330_v44 = vadd.f32 %v4930_v6, %v291_v37  ;;  %4398 = vmatmul.mubr.msk.bf16.gmra.mxu1 %vm379_vm0, %v547_v23  ;;  %v529_v49 = vld [vmem:[#allocation2 + $0xf9] sm:$0xff]  ;;  %v472_v8 = vpack.c.bf16 %v437_v5, %v436_v1  ;;  %v1107_v17 = vpack.c.bf16 %v1072_v12, %v1071_v11  ;;  %v441_v19 = vld [vmem:[#allocation2 + $0x28] sm:$0xff]  ;;  %v4792_v24 = vld [vmem:[%s6060_s3 + $0x70] sm:$0xff]  }
  0x2e   : > { %v361_v46 = vmax.f32 %v329_v39, 0.0  ;;  %4401 = vmatprep.mubr.msk.bf16.mxu1 %vm379_vm0, %v548_v42  ;;  %4414 = vmatpush3.bf16.msra.mxu1 %v4787_v13  ;;  %v549_v55 = vpack.c.bf16 %v529_v49, %v528_v48  ;;  %v438_v13 = vld [vmem:[#allocation2 + $0x10] sm:$0xff]  ;;  %v474_v20 = vpack.c.bf16 %v441_v19, %v440_v18  ;;  %v1074_v23 = vld [vmem:[#allocation2 + $0x1a] sm:$0xff]  ;;  %v1075_v26 = vld [vmem:[#allocation2 + $0x22] sm:$0xff] }
  0x2f   : > { %v510_v50 = vld [vmem:[#allocation2 + $0x61] sm:$0xff]  ;;  %417 = vst.msk [vmem:[#allocation2 + $0x87] sm:$0xff] %vm379_vm0, %v360_v43  ;;  %v362_v51 = vmax.f32 %v330_v44, 0.0  ;;  %v511_v52 = vld [vmem:[#allocation2 + $0x69] sm:$0xff]  ;;  %4415 = vmatprep.subr.bf16.mxu1 %v4788_v35  ;;  %4460 = vmatpush3.bf16.msra.mxu0 %v4789_v27  ;;  %v473_v25 = vpack.c.bf16 %v439_v15, %v438_v13  ;;  %v1073_v22 = vld [vmem:[#allocation2 + $0x12] sm:$0xff] }
  0x30   : > { %418 = vst.msk [vmem:[#allocation2 + $0x91] sm:$0xff] %vm379_vm0, %v361_v46  ;;  %v540_v54 = vpack.c.bf16 %v511_v52, %v510_v50  ;;  %4541 = vmatprep.subr.bf16.mxu0 %v5104_v45  ;;  %v512_v58 = vld [vmem:[#allocation2 + $0x71] sm:$0xff]  ;;  %v5130_v28 = vpack.c.bf16 %v1074_v23, %v1073_v22  ;;  %v444_v31 = vld [vmem:[#allocation2 + $0x40] sm:$0xff]  ;;  %v445_v32 = vld [vmem:[#allocation2 + $0x48] sm:$0xff] }
  0x31   : > { %419 = vst.msk [vmem:[#allocation2 + $0x99] sm:$0xff] %vm379_vm0, %v362_v51  ;;  %v1076_v16 = vld [vmem:[#allocation2 + $0x2a] sm:$0xff]  ;;  %v443_v29 = vld [vmem:[#allocation2 + $0x38] sm:$0xff]  ;;  %v476_v37 = vpack.c.bf16 %v445_v32, %v444_v31  ;;  %v1079_v40 = vld [vmem:[#allocation2 + $0x42] sm:$0xff] }
  0x32   : > { %4382 = vmatmul.mubr.msk.bf16.gmra.mxu0 %vm379_vm0, %v539_v47  ;;  %4416 = vmatpush3.bf16.msra.mxu1 %v4788_v35  ;;  %v513_v21 = vld [vmem:[#allocation2 + $0x79] sm:$0xff]  ;;  %v442_v27 = vld [vmem:[#allocation2 + $0x30] sm:$0xff]  ;;  %v5132_v30 = vpack.c.bf16 %v1076_v16, %v1075_v26  ;;  %v4794_v34 = vld [vmem:[%s6060_s3 + $0x68] sm:$0xff]  }
  0x33   : > { %v530_v56 = vld [vmem:[#allocation2 + $0x101] sm:$0xff]  ;;  %v531_v57 = vld [vmem:[#allocation2 + $0x109] sm:$0xff]  ;;  %4385 = vmatprep.mubr.msk.bf16.mxu0 %vm379_vm0, %v540_v54  ;;  %4497 = vmatprep.subr.bf16.mxu1 %v4790_v53  ;;  %v541_v62 = vpack.c.bf16 %v513_v21, %v512_v58  ;;  %v475_v35 = vpack.c.bf16 %v443_v29, %v442_v27  ;;  %v1077_v36 = vld [vmem:[#allocation2 + $0x32] sm:$0xff] }
  0x34   : > { %v550_v59 = vpack.c.bf16 %v531_v57, %v530_v56  ;;  %v532_v63 = vld [vmem:[#allocation2 + $0x111] sm:$0xff]  ;;  %v533_v0 = vld [vmem:[#allocation2 + $0x119] sm:$0xff]  ;;  %v4795_v44 = vld [vmem:[%s6060_s3 + $0x88] sm:$0xff]  }
  0x35   : > { %4402 = vmatmul.mubr.msk.bf16.gmra.mxu1 %vm379_vm0, %v549_v55  ;;  %v551_v7 = vpack.c.bf16 %v533_v0, %v532_v63  ;;  %v4793_v33 = vld [vmem:[%s6060_s3 + $0x90] sm:$0xff]   ;;  %v1078_v38 = vld [vmem:[#allocation2 + $0x3a] sm:$0xff]  ;;  %v449_v51 = vld [vmem:[#allocation2 + $0x68] sm:$0xff] }
  0x36   : > { %v514_v60 = vld [vmem:[#allocation2 + $0x81] sm:$0xff]  ;;  %v515_v61 = vld [vmem:[#allocation2 + $0x89] sm:$0xff]  ;;  %4405 = vmatprep.mubr.msk.bf16.mxu1 %vm379_vm0, %v550_v59  ;;  %v5156_v46 = vpack.c.bf16 %v1078_v38, %v1077_v36  ;;  %v447_v48 = vld [vmem:[#allocation2 + $0x58] sm:$0xff] }
  0x37   : > { %v542_v3 = vpack.c.bf16 %v515_v61, %v514_v60  ;;  %v516_v9 = vld [vmem:[#allocation2 + $0x91] sm:$0xff]  ;;  %v4796_v39 = vld [vmem:[%s6060_s3 + $0x60] sm:$0xff]   ;;  %v457_v19 = vld [vmem:[#allocation2 + $0xa8] sm:$0xff] }
  0x38   : > { %v517_v10 = vld [vmem:[#allocation2 + $0x99] sm:$0xff]  ;;  %v267_v41 = vld [vmem:[%s4925_s8 + $0xf0] sm:$0xff]  ;;  %v1083_v21 = vld [vmem:[#allocation2 + $0x62] sm:$0xff] }
  0x39   : > { %v543_v14 = vpack.c.bf16 %v517_v10, %v516_v9  ;;  %v306_v42 = vmul.f32 %v4884_v4, %v267_v41  ;;  %v1080_v43 = vld [vmem:[#allocation2 + $0x4a] sm:$0xff]  ;;  %v448_v50 = vld [vmem:[#allocation2 + $0x60] sm:$0xff]  ;;  %v5166_v54 = vld [vmem:[%s6060_s3 + $0xb8] sm:$0xff]  }
  0x3a   : > { %4386 = vmatmul.mubr.msk.bf16.gmra.mxu0 %vm379_vm0, %v541_v62  ;;  %v446_v47 = vld [vmem:[#allocation2 + $0x50] sm:$0xff]  ;;  %v5158_v49 = vpack.c.bf16 %v1080_v43, %v1079_v40  ;;  %v4797_v52 = vld [vmem:[%s6060_s3 + $0x80] sm:$0xff]   ;;  %v478_v56 = vpack.c.bf16 %v449_v51, %v448_v50  ;;  %v5177_v60 = vld [vmem:[%s6060_s3 + $0xd8] sm:$0xff]  }
  0x3b   : > { %4389 = vmatprep.mubr.msk.bf16.mxu0 %vm379_vm0, %v542_v3  ;;  %v477_v55 = vpack.c.bf16 %v447_v48, %v446_v47  ;;  %v1081_v57 = vld [vmem:[#allocation2 + $0x52] sm:$0xff]  ;;  %v1082_v58 = vld [vmem:[#allocation2 + $0x5a] sm:$0xff]  ;;  %v1084_v59 = vld [vmem:[#allocation2 + $0x6a] sm:$0xff] }
  0x3c   : > { %v450_v61 = vld [vmem:[#allocation2 + $0x70] sm:$0xff]  ;;  %v5181_v62 = vpack.c.bf16 %v1082_v58, %v1081_v57  ;;  %v451_v63 = vld [vmem:[#allocation2 + $0x78] sm:$0xff]  ;;  %v5183_v0 = vpack.c.bf16 %v1084_v59, %v1083_v21  ;;  %v452_v1 = vld [vmem:[#allocation2 + $0x80] sm:$0xff] }
  0x3d   : > { %4406 = vmatmul.mubr.msk.bf16.gmra.mxu1 %vm379_vm0, %v551_v7  ;;  %v453_v3 = vld [vmem:[#allocation2 + $0x88] sm:$0xff]  ;;  %v479_v5 = vpack.c.bf16 %v451_v63, %v450_v61  ;;  %v1086_v9 = vld [vmem:[#allocation2 + $0x7a] sm:$0xff]  ;;  %v454_v13 = vld [vmem:[#allocation2 + $0x90] sm:$0xff] }
  0x3e   : > { %4417 = vmatprep.mubr.msk.bf16.mxu1 %vm379_vm0, %v472_v8  ;;  %v480_v7 = vpack.c.bf16 %v453_v3, %v452_v1  ;;  %v1085_v8 = vld [vmem:[#allocation2 + $0x72] sm:$0xff]  ;;  %v1087_v10 = vld [vmem:[#allocation2 + $0x82] sm:$0xff]  ;;  %v1088_v11 = vld [vmem:[#allocation2 + $0x8a] sm:$0xff] }
  0x3f   : > { %v5192_v12 = vpack.c.bf16 %v1086_v9, %v1085_v8  ;;  %v268_v15 = vld [vmem:[%s4925_s8 + $0xf8] sm:$0xff]  ;;  %v456_v18 = vld [vmem:[#allocation2 + $0xa0] sm:$0xff]  ;;  %v458_v27 = vld [vmem:[#allocation2 + $0xb0] sm:$0xff] }
  0x40   : > { %v482_v23 = vpack.c.bf16 %v457_v19, %v456_v18  ;;  %v1090_v26 = vld [vmem:[#allocation2 + $0x9a] sm:$0xff]  ;;  %v1091_v31 = vld [vmem:[#allocation2 + $0xa2] sm:$0xff]  ;;  %v1092_v32 = vld [vmem:[#allocation2 + $0xaa] sm:$0xff] }
  0x41   : > { %v459_v29 = vld [vmem:[#allocation2 + $0xb8] sm:$0xff]  ;;  %v1095_v40 = vld [vmem:[#allocation2 + $0xc2] sm:$0xff]  ;;  %v1096_v41 = vld [vmem:[#allocation2 + $0xca] sm:$0xff] }
  0x42   : > { %4390 = vmatmul.mubr.msk.bf16.gmra.mxu0 %vm379_vm0, %v543_v14  ;;  %v455_v14 = vld [vmem:[#allocation2 + $0x98] sm:$0xff]  ;;  %v465_v47 = vld [vmem:[#allocation2 + $0xe8] sm:$0xff]  ;;  %v466_v57 = vld [vmem:[#allocation2 + $0xf0] sm:$0xff] }
  0x43   : > { %4461 = vmatprep.mubr.msk.bf16.mxu0 %vm379_vm0, %v1107_v17  ;;  %v5195_v17 = vpack.c.bf16 %v1088_v11, %v1087_v10  ;;  %v1094_v38 = vld [vmem:[#allocation2 + $0xba] sm:$0xff]  ;;  %v1097_v51 = vld [vmem:[#allocation2 + $0xd2] sm:$0xff]  ;;  %v469_v61 = vld [vmem:[#allocation2 + $0x108] sm:$0xff] }
  0x44   : > { %v463_v43 = vld [vmem:[#allocation2 + $0xd8] sm:$0xff]  ;;  %v468_v59 = vld [vmem:[#allocation2 + $0x100] sm:$0xff]  ;;  %v1104_v8 = vld [vmem:[#allocation2 + $0x10a] sm:$0xff] }
  0x45   : > { %4418 = vmatmul.mubr.msk.bf16.vlgmr.msra.gmra.mxu1 %vm379_vm0, %v473_v25  ;;  %v307_v25 = vmul.f32 %v4884_v4, %v268_v15  ;;  %v460_v4 = vld [vmem:[#allocation2 + $0xc0] sm:$0xff]  ;;  %v467_v58 = vld [vmem:[#allocation2 + $0xf8] sm:$0xff]  ;;  %v488_v1 = vpack.c.bf16 %v469_v61, %v468_v59  ;;  %v470_v10 = vld [vmem:[#allocation2 + $0x110] sm:$0xff] }
  0x46   : > { %4498 = vmatpush3.bf16.msra.mxu1 %v4790_v53  ;;  %4421 = vmatprep.mubr.msk.bf16.mxu1 %vm379_vm0, %v474_v20  ;;  %v481_v20 = vpack.c.bf16 %v455_v14, %v454_v13  ;;  %v487_v63 = vpack.c.bf16 %v467_v58, %v466_v57  ;;  %v1101_v3 = vld [vmem:[#allocation2 + $0xf2] sm:$0xff]  ;;  %v1804_v61 = vld [vmem:[#allocation2 + $0xdb] sm:$0xff] }
  0x47   : > { %4499 = vmatprep.subr.bf16.mxu1 %v4792_v24  ;;  %v346_v22 = vadd.f32 %v4930_v6, %v307_v25  ;;  %v471_v11 = vld [vmem:[#allocation2 + $0x118] sm:$0xff]  ;;  %v1802_v58 = vld [vmem:[#allocation2 + $0xcb] sm:$0xff] }
  0x48   : > { %v489_v14 = vpack.c.bf16 %v471_v11, %v470_v10  ;;  %v1105_v15 = vld [vmem:[#allocation2 + $0x112] sm:$0xff]  ;;  %v1780_v25 = vld [vmem:[#allocation2 + $0x1b] sm:$0xff] }
  0x49   : > { %v378_v16 = vmax.f32 %v346_v22, 0.0  ;;  %v1779_v19 = vld [vmem:[#allocation2 + $0x13] sm:$0xff] }
  0x4a   : > { %4462 = vmatmul.mubr.msk.bf16.vlgmr.msra.gmra.mxu0 %vm379_vm0, %v5130_v28  ;;  %4500 = vmatpush3.bf16.msra.mxu1 %v4792_v24  ;;  %v1089_v24 = vld [vmem:[#allocation2 + $0x92] sm:$0xff]  ;;  %v1815_v22 = vpack.c.bf16 %v1780_v25, %v1779_v19  ;;  %v2134_v19 = vld [vmem:[#allocation2 + $0x1c] sm:$0xff] }
  0x4b   : > { %4542 = vmatpush3.bf16.msra.mxu0 %v5104_v45  ;;  %4465 = vmatprep.mubr.msk.bf16.mxu0 %vm379_vm0, %v5132_v30  ;;  %v345_v45 = vadd.f32 %v4930_v6, %v306_v42  ;;  %435 = vst.msk [vmem:[#allocation2 + $0x129] sm:$0xff] %vm379_vm0, %v378_v16  ;;  %v5206_v6 = vpack.c.bf16 %v1090_v26, %v1089_v24  ;;  %v462_v42 = vld [vmem:[#allocation2 + $0xd0] sm:$0xff] }
  0x4c   : > { %4543 = vmatprep.subr.bf16.mxu0 %v4793_v33  ;;  %4501 = vmatprep.subr.bf16.mxu1 %v4794_v34  ;;  %v485_v48 = vpack.c.bf16 %v463_v43, %v462_v42  ;;  %v1782_v24 = vld [vmem:[#allocation2 + $0x2b] sm:$0xff]  ;;  %v1783_v16 = vld [vmem:[#allocation2 + $0x33] sm:$0xff] }
  0x4d   : > { %4422 = vmatmul.mubr.msk.bf16.gmra.mxu1 %vm379_vm0, %v475_v35  ;;  %v377_v53 = vmax.f32 %v345_v45, 0.0  ;;  %v483_v35 = vpack.c.bf16 %v459_v29, %v458_v27  ;;  %v464_v45 = vld [vmem:[#allocation2 + $0xe0] sm:$0xff]  ;;  %v4800_v26 = vld [vmem:[%s6060_s3 + $0xb0] sm:$0xff]  }
  0x4e   : > { %4425 = vmatprep.mubr.msk.bf16.mxu1 %vm379_vm0, %v476_v37  ;;  %4502 = vmatpush3.bf16.msra.mxu1 %v4794_v34  ;;  %v5208_v34 = vpack.c.bf16 %v1092_v32, %v1091_v31  ;;  %v1093_v37 = vld [vmem:[#allocation2 + $0xb2] sm:$0xff]  ;;  %v486_v50 = vpack.c.bf16 %v465_v47, %v464_v45  ;;  %v1784_v27 = vld [vmem:[#allocation2 + $0x3b] sm:$0xff]  ;;  %v4802_v32 = vld [vmem:[%s6060_s3 + $0xa8] sm:$0xff]  }
  0x4f   : > { %4544 = vmatpush3.bf16.msra.mxu0 %v4793_v33  ;;  %4503 = vmatprep.subr.bf16.mxu1 %v4796_v39  ;;  %434 = vst.msk [vmem:[#allocation2 + $0x121] sm:$0xff] %vm379_vm0, %v377_v53  ;;  %v461_v33 = vld [vmem:[#allocation2 + $0xc8] sm:$0xff]  ;;  %v1817_v29 = vpack.c.bf16 %v1784_v27, %v1783_v16  ;;  %v4801_v31 = vld [vmem:[%s6060_s3 + $0xd0] sm:$0xff]   ;;  %v2138_v27 = vld [vmem:[#allocation2 + $0x3c] sm:$0xff] }
  0x50   : > { %4545 = vmatprep.subr.bf16.mxu0 %v4795_v44  ;;  %v484_v36 = vpack.c.bf16 %v461_v33, %v460_v4  ;;  %v1099_v53 = vld [vmem:[#allocation2 + $0xe2] sm:$0xff]  ;;  %v1787_v4 = vld [vmem:[#allocation2 + $0x53] sm:$0xff]  ;;  %v1794_v47 = vld [vmem:[#allocation2 + $0x8b] sm:$0xff] }
  0x51   : > { %v1788_v33 = vld [vmem:[#allocation2 + $0x5b] sm:$0xff]  ;;  %v1793_v45 = vld [vmem:[#allocation2 + $0x83] sm:$0xff]  ;;  %v1803_v59 = vld [vmem:[#allocation2 + $0xd3] sm:$0xff] }
  0x52   : > { %4466 = vmatmul.mubr.msk.bf16.gmra.mxu0 %vm379_vm0, %v5156_v46  ;;  %4504 = vmatpush3.bf16.msra.mxu1 %v4796_v39  ;;  %v5216_v39 = vpack.c.bf16 %v1094_v38, %v1093_v37  ;;  %v5286_v37 = vld [vmem:[%s6060_s3 + $0xf8] sm:$0xff]  }
  0x53   : > { %4469 = vmatprep.mubr.msk.bf16.mxu0 %vm379_vm0, %v5158_v49  ;;  %4546 = vmatpush3.bf16.msra.mxu0 %v4795_v44  ;;  %v5218_v44 = vpack.c.bf16 %v1096_v41, %v1095_v40  ;;  %v1791_v38 = vld [vmem:[#allocation2 + $0x73] sm:$0xff]  ;;  %v1792_v40 = vld [vmem:[#allocation2 + $0x7b] sm:$0xff] }
  0x54   : > { %4547 = vmatprep.subr.bf16.mxu0 %v4797_v52  ;;  %4585 = vmatprep.subr.bf16.mxu1 %v5166_v54  ;;  %v5294_v41 = vld [vmem:[%s6060_s3 + $0x118] sm:$0xff]   ;;  %v1821_v43 = vpack.c.bf16 %v1792_v40, %v1791_v38  ;;  %v4813_v40 = vld [vmem:[%s6060_s3 + $0x100] sm:$0xff]  }
  0x55   : > { %4426 = vmatmul.mubr.msk.bf16.gmra.mxu1 %vm379_vm0, %v477_v55  ;;  %v1100_v55 = vld [vmem:[#allocation2 + $0xea] sm:$0xff]  ;;  %v1811_v10 = vld [vmem:[#allocation2 + $0x113] sm:$0xff]  ;;  %v2146_v38 = vld [vmem:[#allocation2 + $0x7c] sm:$0xff] }
  0x56   : > { %4429 = vmatprep.mubr.msk.bf16.mxu1 %vm379_vm0, %v478_v56  ;;  %v5228_v21 = vpack.c.bf16 %v1100_v55, %v1099_v53  ;;  %v1106_v18 = vld [vmem:[#allocation2 + $0x11a] sm:$0xff] }
  0x57   : > { %4548 = vmatpush3.bf16.msra.mxu0 %v4797_v52  ;;  %v1098_v52 = vld [vmem:[#allocation2 + $0xda] sm:$0xff] }
  0x58   : > { %4629 = vmatprep.subr.bf16.mxu0 %v5177_v60  ;;  %v5226_v56 = vpack.c.bf16 %v1098_v52, %v1097_v51  ;;  %v1797_v51 = vld [vmem:[#allocation2 + $0xa3] sm:$0xff]  ;;  %v1798_v52 = vld [vmem:[#allocation2 + $0xab] sm:$0xff]  ;;  %v1799_v53 = vld [vmem:[#allocation2 + $0xb3] sm:$0xff] }
  0x59   : > { %v1800_v55 = vld [vmem:[#allocation2 + $0xbb] sm:$0xff] }
  0x5a   : > { %4470 = vmatmul.mubr.msk.bf16.gmra.mxu0 %vm379_vm0, %v5181_v62  ;;  %v1825_v57 = vpack.c.bf16 %v1800_v55, %v1799_v53  ;;  %v1812_v11 = vld [vmem:[#allocation2 + $0x11b] sm:$0xff] }
  0x5b   : > { %4473 = vmatprep.mubr.msk.bf16.mxu0 %vm379_vm0, %v5183_v0  ;;  %v2137_v16 = vld [vmem:[#allocation2 + $0x34] sm:$0xff] }
  0x5d   : > { %4430 = vmatmul.mubr.msk.bf16.gmra.mxu1 %vm379_vm0, %v479_v5  ;;  %v1102_v5 = vld [vmem:[#allocation2 + $0xfa] sm:$0xff] }
  0x5e   : > { %4433 = vmatprep.mubr.msk.bf16.mxu1 %vm379_vm0, %v480_v7  ;;  %v1103_v7 = vld [vmem:[#allocation2 + $0x102] sm:$0xff]  ;;  %v5236_v9 = vpack.c.bf16 %v1102_v5, %v1101_v3  ;;  %v1807_v3 = vld [vmem:[#allocation2 + $0xf3] sm:$0xff] }
  0x5f   : > { %v5238_v13 = vpack.c.bf16 %v1104_v8, %v1103_v7  ;;  %v1808_v5 = vld [vmem:[#allocation2 + $0xfb] sm:$0xff]  ;;  %v1810_v8 = vld [vmem:[#allocation2 + $0x10b] sm:$0xff] }
  0x60   : > { %v1829_v7 = vpack.c.bf16 %v1808_v5, %v1807_v3  ;;  %v2153_v3 = vld [vmem:[#allocation2 + $0xb4] sm:$0xff]  ;;  %v2154_v5 = vld [vmem:[#allocation2 + $0xbc] sm:$0xff] }
  0x62   : > { %4474 = vmatmul.mubr.msk.bf16.gmra.mxu0 %vm379_vm0, %v5192_v12 }
  0x63   : > { %4477 = vmatprep.mubr.msk.bf16.mxu0 %vm379_vm0, %v5195_v17 }
  0x65   : > { %4434 = vmatmul.mubr.msk.bf16.gmra.mxu1 %vm379_vm0, %v481_v20  ;;  %v5245_v20 = vpack.c.bf16 %v1106_v18, %v1105_v15  ;;  %v1460_v15 = vld [vmem:[#allocation2 + $0x12a] sm:$0xff]  ;;  %v2133_v18 = vld [vmem:[#allocation2 + $0x14] sm:$0xff] }
  0x66   : > { %4437 = vmatprep.mubr.msk.bf16.mxu1 %vm379_vm0, %v482_v23  ;;  %v1781_v23 = vld [vmem:[#allocation2 + $0x23] sm:$0xff] }
  0x6a   : > { %4478 = vmatmul.mubr.msk.bf16.gmra.mxu0 %vm379_vm0, %v5206_v6 }
  0x6b   : > { %4481 = vmatprep.mubr.msk.bf16.mxu0 %vm379_vm0, %v5208_v34 }
  0x6d   : > { %4438 = vmatmul.mubr.msk.bf16.gmra.mxu1 %vm379_vm0, %v483_v35  ;;  %v4803_v35 = vld [vmem:[%s6060_s3 + $0xc8] sm:$0xff]  }
  0x6e   : > { %4441 = vmatprep.mubr.msk.bf16.mxu1 %vm379_vm0, %v484_v36  ;;  %v4805_v36 = vld [vmem:[%s6060_s3 + $0xc0] sm:$0xff]  }
  0x72   : > { %4482 = vmatmul.mubr.msk.bf16.gmra.mxu0 %vm379_vm0, %v5216_v39 }
  0x73   : > { %4485 = vmatprep.mubr.msk.bf16.mxu0 %vm379_vm0, %v5218_v44 }
  0x75   : > { %4442 = vmatmul.mubr.msk.bf16.gmra.mxu1 %vm379_vm0, %v485_v48  ;;  %v1795_v48 = vld [vmem:[#allocation2 + $0x93] sm:$0xff] }
  0x76   : > { %4445 = vmatprep.mubr.msk.bf16.mxu1 %vm379_vm0, %v486_v50  ;;  %v1796_v50 = vld [vmem:[#allocation2 + $0x9b] sm:$0xff] }
  0x7a   : > { %4486 = vmatmul.mubr.msk.bf16.gmra.mxu0 %vm379_vm0, %v5226_v56 }
  0x7b   : > { %4489 = vmatprep.mubr.msk.bf16.mxu0 %vm379_vm0, %v5228_v21 }
  0x7d   : > { %4446 = vmatmul.mubr.msk.bf16.gmra.mxu1 %vm379_vm0, %v487_v63  ;;  %v1827_v63 = vpack.c.bf16 %v1804_v61, %v1803_v59 }
  0x7e   : > { %4449 = vmatprep.mubr.msk.bf16.mxu1 %vm379_vm0, %v488_v1  ;;  %v1806_v1 = vld [vmem:[#allocation2 + $0xeb] sm:$0xff] }
  0x82   : > { %4490 = vmatmul.mubr.msk.bf16.gmra.mxu0 %vm379_vm0, %v5236_v9 }
  0x83   : > { %4493 = vmatprep.mubr.msk.bf16.mxu0 %vm379_vm0, %v5238_v13 }
  0x85   : > { %4450 = vmatmul.mubr.msk.bf16.gmra.mxu1 %vm379_vm0, %v489_v14  ;;  %v1459_v14 = vld [vmem:[#allocation2 + $0x122] sm:$0xff] }
  0x86   : > { %4505 = vmatprep.mubr.msk.bf16.mxu1 %vm379_vm0, %v5130_v28  ;;  %v1816_v28 = vpack.c.bf16 %v1782_v24, %v1781_v23  ;;  %v1478_v25 = vpack.c.bf16 %v1460_v15, %v1459_v14  ;;  %v1813_v23 = vld [vmem:[#allocation2 + $0x123] sm:$0xff]  ;;  %v1814_v24 = vld [vmem:[#allocation2 + $0x12b] sm:$0xff] }
  0x8a   : > { %4494 = vmatmul.mubr.msk.bf16.gmra.mxu0 %vm379_vm0, %v5245_v20 }
  0x8b   : > { %4549 = vmatprep.mubr.msk.bf16.mxu0 %vm379_vm0, %v1815_v22  ;;  %v2169_v22 = vpack.c.bf16 %v2134_v19, %v2133_v18  ;;  %v2156_v18 = vld [vmem:[#allocation2 + $0xcc] sm:$0xff] }
  0x8d   : > { %4506 = vmatmul.mubr.msk.bf16.vlgmr.msra.gmra.mxu1 %vm379_vm0, %v5132_v30  ;;  %v1785_v30 = vld [vmem:[#allocation2 + $0x43] sm:$0xff] }
  0x8e   : > { %4586 = vmatpush3.bf16.msra.mxu1 %v5166_v54  ;;  %4509 = vmatprep.mubr.msk.bf16.mxu1 %vm379_vm0, %v5156_v46  ;;  %v1786_v46 = vld [vmem:[#allocation2 + $0x4b] sm:$0xff]  ;;  %v4804_v54 = vld [vmem:[%s6060_s3 + $0xa0] sm:$0xff]  }
  0x8f   : > { %4587 = vmatprep.subr.bf16.mxu1 %v4800_v26  ;;  %v1818_v2 = vpack.c.bf16 %v1786_v46, %v1785_v30  ;;  %v2140_v30 = vld [vmem:[#allocation2 + $0x4c] sm:$0xff]  ;;  %v2141_v46 = vld [vmem:[#allocation2 + $0x54] sm:$0xff] }
  0x92   : > { %4550 = vmatmul.mubr.msk.bf16.vlgmr.msra.gmra.mxu0 %vm379_vm0, %v1816_v28  ;;  %4588 = vmatpush3.bf16.msra.mxu1 %v4800_v26  ;;  %v2136_v26 = vld [vmem:[#allocation2 + $0x2c] sm:$0xff] }
  0x93   : > { %4630 = vmatpush3.bf16.msra.mxu0 %v5177_v60  ;;  %4553 = vmatprep.mubr.msk.bf16.mxu0 %vm379_vm0, %v1817_v29  ;;  %v1819_v60 = vpack.c.bf16 %v1788_v33, %v1787_v4  ;;  %v2171_v29 = vpack.c.bf16 %v2138_v27, %v2137_v16  ;;  %v4809_v4 = vld [vmem:[%s6060_s3 + $0x110] sm:$0xff]   ;;  %v4810_v33 = vld [vmem:[%s6060_s3 + $0xe8] sm:$0xff]  }
  0x94   : > { %4631 = vmatprep.subr.bf16.mxu0 %v4801_v31  ;;  %4589 = vmatprep.subr.bf16.mxu1 %v4802_v32 }
  0x95   : > { %4510 = vmatmul.mubr.msk.bf16.gmra.mxu1 %vm379_vm0, %v5158_v49  ;;  %v1789_v49 = vld [vmem:[#allocation2 + $0x63] sm:$0xff] }
  0x96   : > { %4513 = vmatprep.mubr.msk.bf16.mxu1 %vm379_vm0, %v5181_v62  ;;  %4590 = vmatpush3.bf16.msra.mxu1 %v4802_v32  ;;  %v1790_v62 = vld [vmem:[#allocation2 + $0x6b] sm:$0xff] }
  0x97   : > { %4632 = vmatpush3.bf16.msra.mxu0 %v4801_v31  ;;  %4591 = vmatprep.subr.bf16.mxu1 %v4804_v54  ;;  %v1820_v42 = vpack.c.bf16 %v1790_v62, %v1789_v49  ;;  %v4808_v31 = vld [vmem:[%s6060_s3 + $0xf0] sm:$0xff]   ;;  %v2139_v32 = vld [vmem:[#allocation2 + $0x44] sm:$0xff] }
  0x98   : > { %4633 = vmatprep.subr.bf16.mxu0 %v4803_v35  ;;  %v2144_v49 = vld [vmem:[#allocation2 + $0x6c] sm:$0xff]  ;;  %v2145_v62 = vld [vmem:[#allocation2 + $0x74] sm:$0xff] }
  0x9a   : > { %4554 = vmatmul.mubr.msk.bf16.gmra.mxu0 %vm379_vm0, %v1818_v2  ;;  %4592 = vmatpush3.bf16.msra.mxu1 %v4804_v54  ;;  %v2142_v54 = vld [vmem:[#allocation2 + $0x5c] sm:$0xff] }
  0x9b   : > { %4557 = vmatprep.mubr.msk.bf16.mxu0 %vm379_vm0, %v1819_v60  ;;  %4634 = vmatpush3.bf16.msra.mxu0 %v4803_v35  ;;  %v2172_v35 = vpack.c.bf16 %v2140_v30, %v2139_v32  ;;  %v2173_v2 = vpack.c.bf16 %v2142_v54, %v2141_v46  ;;  %v4812_v60 = vld [vmem:[%s6060_s3 + $0xe0] sm:$0xff]   ;;  %v2160_v32 = vld [vmem:[#allocation2 + $0xec] sm:$0xff]  ;;  %v2161_v46 = vld [vmem:[#allocation2 + $0xf4] sm:$0xff] }
  0x9c   : > { %4635 = vmatprep.subr.bf16.mxu0 %v4805_v36  ;;  %4673 = vmatprep.subr.bf16.mxu1 %v5286_v37  ;;  %v2162_v54 = vld [vmem:[#allocation2 + $0xfc] sm:$0xff] }
  0x9d   : > { %4514 = vmatmul.mubr.msk.bf16.gmra.mxu1 %vm379_vm0, %v5183_v0  ;;  %v1822_v0 = vpack.c.bf16 %v1794_v47, %v1793_v45 }
  0x9e   : > { %4517 = vmatprep.mubr.msk.bf16.mxu1 %vm379_vm0, %v5192_v12  ;;  %v1823_v12 = vpack.c.bf16 %v1796_v50, %v1795_v48  ;;  %v2147_v50 = vld [vmem:[#allocation2 + $0x84] sm:$0xff] }
  0x9f   : > { %4636 = vmatpush3.bf16.msra.mxu0 %v4805_v36  ;;  %v4811_v36 = vld [vmem:[%s6060_s3 + $0x108] sm:$0xff]  }
  0xa0   : > { %4717 = vmatprep.subr.bf16.mxu0 %v5294_v41 }
  0xa2   : > { %4558 = vmatmul.mubr.msk.bf16.gmra.mxu0 %vm379_vm0, %v1820_v42 }
  0xa3   : > { %4561 = vmatprep.mubr.msk.bf16.mxu0 %vm379_vm0, %v1821_v43  ;;  %v2175_v43 = vpack.c.bf16 %v2146_v38, %v2145_v62 }
  0xa5   : > { %4518 = vmatmul.mubr.msk.bf16.gmra.mxu1 %vm379_vm0, %v5195_v17  ;;  %v1824_v17 = vpack.c.bf16 %v1798_v52, %v1797_v51  ;;  %v2149_v51 = vld [vmem:[#allocation2 + $0x94] sm:$0xff]  ;;  %v2150_v52 = vld [vmem:[#allocation2 + $0x9c] sm:$0xff] }
  0xa6   : > { %4521 = vmatprep.mubr.msk.bf16.mxu1 %vm379_vm0, %v5206_v6  ;;  %v1801_v6 = vld [vmem:[#allocation2 + $0xc3] sm:$0xff] }
  0xaa   : > { %4562 = vmatmul.mubr.msk.bf16.gmra.mxu0 %vm379_vm0, %v1822_v0  ;;  %v2148_v0 = vld [vmem:[#allocation2 + $0x8c] sm:$0xff] }
  0xab   : > { %4565 = vmatprep.mubr.msk.bf16.mxu0 %vm379_vm0, %v1823_v12 }
  0xad   : > { %4522 = vmatmul.mubr.msk.bf16.gmra.mxu1 %vm379_vm0, %v5208_v34  ;;  %v1826_v34 = vpack.c.bf16 %v1802_v58, %v1801_v6  ;;  %v2177_v6 = vpack.c.bf16 %v2150_v52, %v2149_v51 }
  0xae   : > { %4525 = vmatprep.mubr.msk.bf16.mxu1 %vm379_vm0, %v5216_v39  ;;  %v1805_v39 = vld [vmem:[#allocation2 + $0xe3] sm:$0xff] }
  0xb2   : > { %4566 = vmatmul.mubr.msk.bf16.gmra.mxu0 %vm379_vm0, %v1824_v17  ;;  %v2176_v17 = vpack.c.bf16 %v2148_v0, %v2147_v50  ;;  %v2165_v50 = vld [vmem:[#allocation2 + $0x114] sm:$0xff]  ;;  %v2166_v0 = vld [vmem:[#allocation2 + $0x11c] sm:$0xff] }
  0xb3   : > { %4569 = vmatprep.mubr.msk.bf16.mxu0 %vm379_vm0, %v1825_v57 }
  0xb5   : > { %4526 = vmatmul.mubr.msk.bf16.gmra.mxu1 %vm379_vm0, %v5218_v44  ;;  %v1828_v44 = vpack.c.bf16 %v1806_v1, %v1805_v39  ;;  %v2152_v39 = vld [vmem:[#allocation2 + $0xac] sm:$0xff] }
  0xb6   : > { %4529 = vmatprep.mubr.msk.bf16.mxu1 %vm379_vm0, %v5226_v56  ;;  %v1809_v56 = vld [vmem:[#allocation2 + $0x103] sm:$0xff] }
  0xba   : > { %4570 = vmatmul.mubr.msk.bf16.gmra.mxu0 %vm379_vm0, %v1826_v34 }
  0xbb   : > { %4573 = vmatprep.mubr.msk.bf16.mxu0 %vm379_vm0, %v1827_v63  ;;  %v2151_v63 = vld [vmem:[#allocation2 + $0xa4] sm:$0xff] }
  0xbd   : > { %4530 = vmatmul.mubr.msk.bf16.gmra.mxu1 %vm379_vm0, %v5228_v21  ;;  %v1830_v21 = vpack.c.bf16 %v1810_v8, %v1809_v56  ;;  %v2178_v56 = vpack.c.bf16 %v2152_v39, %v2151_v63 }
  0xbe   : > { %4533 = vmatprep.mubr.msk.bf16.mxu1 %vm379_vm0, %v5236_v9  ;;  %v1831_v9 = vpack.c.bf16 %v1812_v11, %v1811_v10  ;;  %v2179_v10 = vpack.c.bf16 %v2154_v5, %v2153_v3 }
  0xc2   : > { %4574 = vmatmul.mubr.msk.bf16.gmra.mxu0 %vm379_vm0, %v1828_v44 }
  0xc3   : > { %4577 = vmatprep.mubr.msk.bf16.mxu0 %vm379_vm0, %v1829_v7 }
  0xc5   : > { %4534 = vmatmul.mubr.msk.bf16.gmra.mxu1 %vm379_vm0, %v5238_v13  ;;  %v1832_v13 = vpack.c.bf16 %v1814_v24, %v1813_v23 }
  0xc6   : > { %4537 = vmatprep.mubr.msk.bf16.mxu1 %vm379_vm0, %v5245_v20  ;;  %v2135_v20 = vld [vmem:[#allocation2 + $0x24] sm:$0xff] }
  0xc7   : > { %v2170_v28 = vpack.c.bf16 %v2136_v26, %v2135_v20 }
  0xca   : > { %4578 = vmatmul.mubr.msk.bf16.gmra.mxu0 %vm379_vm0, %v1830_v21 }
  0xcb   : > { %4581 = vmatprep.mubr.msk.bf16.mxu0 %vm379_vm0, %v1831_v9  ;;  %v2155_v9 = vld [vmem:[#allocation2 + $0xc4] sm:$0xff] }
  0xcd   : > { %4538 = vmatmul.mubr.msk.bf16.gmra.mxu1 %vm379_vm0, %v1478_v25  ;;  %v2157_v25 = vld [vmem:[#allocation2 + $0xd4] sm:$0xff] }
  0xce   : > { %4593 = vmatprep.mubr.msk.bf16.mxu1 %vm379_vm0, %v2169_v22  ;;  %v2158_v22 = vld [vmem:[#allocation2 + $0xdc] sm:$0xff] }
  0xcf   : > { %v2181_v26 = vpack.c.bf16 %v2158_v22, %v2157_v25  ;;  %v2167_v25 = vld [vmem:[#allocation2 + $0x124] sm:$0xff]  ;;  %v2168_v22 = vld [vmem:[#allocation2 + $0x12c] sm:$0xff] }
  0xd2   : > { %4582 = vmatmul.mubr.msk.bf16.gmra.mxu0 %vm379_vm0, %v1832_v13  ;;  %v2180_v13 = vpack.c.bf16 %v2156_v18, %v2155_v9 }
  0xd3   : > { %4637 = vmatprep.mubr.msk.bf16.mxu0 %vm379_vm0, %v2170_v28 }
  0xd5   : > { %4594 = vmatmul.mubr.msk.bf16.vlgmr.msra.gmra.mxu1 %vm379_vm0, %v2170_v28 }
  0xd6   : > { %4674 = vmatpush3.bf16.msra.mxu1 %v5286_v37  ;;  %4597 = vmatprep.mubr.msk.bf16.mxu1 %vm379_vm0, %v2171_v29  ;;  %v2143_v37 = vld [vmem:[#allocation2 + $0x64] sm:$0xff] }
  0xd7   : > { %4675 = vmatprep.subr.bf16.mxu1 %v4808_v31 }
  0xda   : > { %4638 = vmatmul.mubr.msk.bf16.vlgmr.msra.gmra.mxu0 %vm379_vm0, %v2171_v29  ;;  %4676 = vmatpush3.bf16.msra.mxu1 %v4808_v31  ;;  %v2159_v31 = vld [vmem:[#allocation2 + $0xe4] sm:$0xff] }
  0xdb   : > { %4718 = vmatpush3.bf16.msra.mxu0 %v5294_v41  ;;  %4641 = vmatprep.mubr.msk.bf16.mxu0 %vm379_vm0, %v2172_v35  ;;  %v2174_v41 = vpack.c.bf16 %v2144_v49, %v2143_v37 }
  0xdc   : > { %4719 = vmatprep.subr.bf16.mxu0 %v4809_v4  ;;  %4677 = vmatprep.subr.bf16.mxu1 %v4810_v33 }
  0xdd   : > { %4598 = vmatmul.mubr.msk.bf16.gmra.mxu1 %vm379_vm0, %v2172_v35  ;;  %v2182_v35 = vpack.c.bf16 %v2160_v32, %v2159_v31  ;;  %v2841_v31 = vld [vmem:[#allocation2 + $0x25] sm:$0xff]  ;;  %v2842_v32 = vld [vmem:[#allocation2 + $0x2d] sm:$0xff] }
  0xde   : > { %4601 = vmatprep.mubr.msk.bf16.mxu1 %vm379_vm0, %v2173_v2  ;;  %4678 = vmatpush3.bf16.msra.mxu1 %v4810_v33 }
  0xdf   : > { %4720 = vmatpush3.bf16.msra.mxu0 %v4809_v4  ;;  %4679 = vmatprep.subr.bf16.mxu1 %v4812_v60 }
  0xe0   : > { %4721 = vmatprep.subr.bf16.mxu0 %v4811_v36 }
  0xe2   : > { %v5363_v42 = vpop.f32.mrf.mxu0  ;;  %4642 = vmatmul.mubr.msk.bf16.gmra.mxu0 %vm379_vm0, %v2173_v2  ;;  %4680 = vmatpush3.bf16.msra.mxu1 %v4812_v60  ;;  %v2183_v60 = vpack.c.bf16 %v2162_v54, %v2161_v46 }
  0xe3   : > { %4645 = vmatprep.mubr.msk.bf16.mxu0 %vm379_vm0, %v2174_v41  ;;  %4722 = vmatpush3.bf16.msra.mxu0 %v4811_v36 }
  0xe4   : > { %v5367_v45 = vpop.f32.mrf.mxu0  ;;  %4723 = vmatprep.subr.bf16.mxu0 %v4813_v40 }
  0xe5   : > { %v5369_v47 = vpop.f32.mrf.mxu1  ;;  %4602 = vmatmul.mubr.msk.bf16.gmra.mxu1 %vm379_vm0, %v2174_v41  ;;  %v2164_v41 = vld [vmem:[#allocation2 + $0x10c] sm:$0xff] }
  0xe6   : > { %v5372_v48 = vpop.f32.mrf.mxu0  ;;  %4605 = vmatprep.mubr.msk.bf16.mxu1 %vm379_vm0, %v2175_v43 }
  0xe7   : > { %v5375_v12 = vpop.f32.mrf.mxu1  ;;  %4724 = vmatpush3.bf16.msra.mxu0 %v4813_v40  ;;  %v2163_v40 = vld [vmem:[#allocation2 + $0x104] sm:$0xff] }
  0xe8   : > { %v5377_v53 = vpop.f32.mrf.mxu0 }
  0xe9   : > { %v5379_v55 = vpop.f32.mrf.mxu1 }
  0xea   : > { %v5381_v57 = vpop.f32.mrf.mxu0  ;;  %4646 = vmatmul.mubr.msk.bf16.gmra.mxu0 %vm379_vm0, %v2175_v43 }
  0xeb   : > { %v5384_v58 = vpop.f32.mrf.mxu1  ;;  %4649 = vmatprep.mubr.msk.bf16.mxu0 %vm379_vm0, %v2176_v17 }
  0xec   : > { %v5387_v59 = vpop.f32.mrf.mxu0 }
  0xed   : > { %v5389_v61 = vpop.f32.mrf.mxu1  ;;  %4606 = vmatmul.mubr.msk.bf16.gmra.mxu1 %vm379_vm0, %v2176_v17 }
  0xee   : > { %v5392_v34 = vpop.f32.mrf.mxu0  ;;  %4609 = vmatprep.mubr.msk.bf16.mxu1 %vm379_vm0, %v2177_v6 }
  0xef   : > { %v5395_v1 = vpop.f32.mrf.mxu1 }
  0xf0   : > { %v5397_v44 = vpop.f32.mrf.mxu0 }
  0xf1   : > { %v5399_v7 = vpop.f32.mrf.mxu1 }
  0xf2   : > { %v5401_v8 = vpop.f32.mrf.mxu0  ;;  %4650 = vmatmul.mubr.msk.bf16.gmra.mxu0 %vm379_vm0, %v2177_v6  ;;  %v2184_v6 = vpack.c.bf16 %v2164_v41, %v2163_v40 }
  0xf3   : > { %v5404_v11 = vpop.f32.mrf.mxu1  ;;  %4653 = vmatprep.mubr.msk.bf16.mxu0 %vm379_vm0, %v2178_v56 }
  0xf4   : > { %v5407_v21 = vpop.f32.mrf.mxu0 }
  0xf5   : > { %v5409_v14 = vpop.f32.mrf.mxu1  ;;  %4610 = vmatmul.mubr.msk.bf16.gmra.mxu1 %vm379_vm0, %v2178_v56 }
  0xf6   : > { %v5412_v15 = vpop.f32.mrf.mxu0  ;;  %4613 = vmatprep.mubr.msk.bf16.mxu1 %vm379_vm0, %v2179_v10 }
  0xf7   : > { %v5415_v19 = vpop.f32.mrf.mxu1 }
  0xf8   : > { %v5417_v23 = vpop.f32.mrf.mxu0 }
  0xf9   : > { %v5419_v24 = vpop.f32.mrf.mxu1 }
  0xfa   : > { %v5421_v20 = vpop.f32.mrf.mxu0  ;;  %4654 = vmatmul.mubr.msk.bf16.gmra.mxu0 %vm379_vm0, %v2179_v10 }
  0xfb   : > { %v5424_v16 = vpop.f32.mrf.mxu1  ;;  %4657 = vmatprep.mubr.msk.bf16.mxu0 %vm379_vm0, %v2180_v13 }
  0xfc   : > { %v5427_v27 = vpop.f32.mrf.mxu0 }
  0xfd   : > { %v5429_v28 = vpop.f32.mrf.mxu1  ;;  %4614 = vmatmul.mubr.msk.bf16.gmra.mxu1 %vm379_vm0, %v2180_v13 }
  0xfe   : > { %v5432_v29 = vpop.f32.mrf.mxu0  ;;  %4617 = vmatprep.mubr.msk.bf16.mxu1 %vm379_vm0, %v2181_v26 }
  0xff   : > { %v5435_v30 = vpop.f32.mrf.mxu1 }
 0x100   : > { %v5437_v4 = vpop.f32.mrf.mxu0 }
 0x101   : > { %v5439_v33 = vpop.f32.mrf.mxu1 }
 0x102   : > { %v5441_v2 = vpop.f32.mrf.mxu0  ;;  %4658 = vmatmul.mubr.msk.bf16.gmra.mxu0 %vm379_vm0, %v2181_v26 }
 0x103   : > { %v5444_v36 = vpop.f32.mrf.mxu1  ;;  %4661 = vmatprep.mubr.msk.bf16.mxu0 %vm379_vm0, %v2182_v35 }
 0x104   : > { %v5447_v37 = vpop.f32.mrf.mxu0 }
 0x105   : > { %v4419_v49 = vpop.f32.mrf.mxu1  ;;  %4618 = vmatmul.mubr.msk.bf16.gmra.mxu1 %vm379_vm0, %v2182_v35 }
 0x106   : > { %v937_v62 = vadd.f32 %v4419_v49, %v5363_v42  ;;  %v5451_v38 = vpop.f32.mrf.mxu0  ;;  %4621 = vmatprep.mubr.msk.bf16.mxu1 %vm379_vm0, %v2183_v60  ;;  %v2185_v42 = vpack.c.bf16 %v2166_v0, %v2165_v50  ;;  %v2522_v50 = vld [vmem:[#allocation2 + $0x13c] sm:$0xff] }
 0x107   : > { %v928_v43 = vpop.f32.mrf.mxu1 }
 0x108   : > { %v929_v51 = vadd.f32 %v928_v43, %v5367_v45  ;;  %v5455_v52 = vpop.f32.mrf.mxu0  ;;  %v2521_v43 = vld [vmem:[#allocation2 + $0x134] sm:$0xff] }
 0x109   : > { %v4420_v17 = vpop.f32.mrf.mxu1 }
 0x10a   : > { %v940_v63 = vadd.f32 %v4420_v17, %v5372_v48  ;;  %v4463_v39 = vpop.f32.mrf.mxu0  ;;  %4662 = vmatmul.mubr.msk.bf16.gmra.mxu0 %vm379_vm0, %v2183_v60  ;;  %v2186_v60 = vpack.c.bf16 %v2168_v22, %v2167_v25  ;;  %v3196_v17 = vld [vmem:[#allocation2 + $0x2e] sm:$0xff] }
 0x10b   : > { %v931_v3 = vpop.f32.mrf.mxu1  ;;  %v5459_v5 = vadd.f32 %v4463_v39, %v937_v62  ;;  %4665 = vmatprep.mubr.msk.bf16.mxu0 %vm379_vm0, %v2184_v6  ;;  %v2877_v62 = vpack.c.bf16 %v2842_v32, %v2841_v31 }
 0x10c   : > { %v932_v56 = vadd.f32 %v931_v3, %v5377_v53  ;;  %v1246_v10 = vpop.f32.mrf.mxu0  ;;  %v2843_v3 = vld [vmem:[#allocation2 + $0x35] sm:$0xff] }
 0x10d   : > { %v4423_v9 = vpop.f32.mrf.mxu1  ;;  %4622 = vmatmul.mubr.msk.bf16.gmra.mxu1 %vm379_vm0, %v2184_v6  ;;  %v5464_v45 = vadd.f32 %v1246_v10, %v929_v51  ;;  %v3195_v51 = vld [vmem:[#allocation2 + $0x26] sm:$0xff] }
 0x10e   : > { %v953_v18 = vadd.f32 %v4423_v9, %v5381_v57  ;;  %v4464_v48 = vpop.f32.mrf.mxu0  ;;  %4625 = vmatprep.mubr.msk.bf16.mxu1 %vm379_vm0, %v2185_v42 }
 0x10f   : > { %v944_v13 = vpop.f32.mrf.mxu1  ;;  %v5468_v26 = vadd.f32 %v4464_v48, %v940_v63  ;;  %v2846_v48 = vld [vmem:[#allocation2 + $0x4d] sm:$0xff] }
 0x110   : > { %v945_v53 = vadd.f32 %v944_v13, %v5387_v59  ;;  %v1249_v46 = vpop.f32.mrf.mxu0 }
 0x111   : > { %v4424_v54 = vpop.f32.mrf.mxu1  ;;  %v5471_v35 = vadd.f32 %v1249_v46, %v932_v56  ;;  %v2844_v56 = vld [vmem:[#allocation2 + $0x3d] sm:$0xff] }
 0x112   : > { %v956_v49 = vadd.f32 %v4424_v54, %v5392_v34  ;;  %v4467_v57 = vpop.f32.mrf.mxu0  ;;  %4666 = vmatmul.mubr.msk.bf16.gmra.mxu0 %vm379_vm0, %v2185_v42  ;;  %v2540_v42 = vpack.c.bf16 %v2522_v50, %v2521_v43  ;;  %v2878_v32 = vpack.c.bf16 %v2844_v56, %v2843_v3  ;;  %v3200_v43 = vld [vmem:[#allocation2 + $0x4e] sm:$0xff] }
 0x113   : > { %v947_v40 = vpop.f32.mrf.mxu1  ;;  %v5475_v41 = vadd.f32 %v4467_v57, %v953_v18  ;;  %4669 = vmatprep.mubr.msk.bf16.mxu0 %vm379_vm0, %v2186_v60  ;;  %v2845_v18 = vld [vmem:[#allocation2 + $0x45] sm:$0xff]  ;;  %v2850_v3 = vld [vmem:[#allocation2 + $0x6d] sm:$0xff] }
 0x114   : > { %v948_v59 = vadd.f32 %v947_v40, %v5397_v44  ;;  %v1262_v0 = vpop.f32.mrf.mxu0  ;;  %v3231_v44 = vpack.c.bf16 %v3196_v17, %v3195_v51  ;;  %v2879_v46 = vpack.c.bf16 %v2846_v48, %v2845_v18  ;;  %v3198_v57 = vld [vmem:[#allocation2 + $0x3e] sm:$0xff]  ;;  %v3199_v40 = vld [vmem:[#allocation2 + $0x46] sm:$0xff]  ;;  %v2847_v17 = vld [vmem:[#allocation2 + $0x55] sm:$0xff] }
 0x115   : > { %v4427_v6 = vpop.f32.mrf.mxu1  ;;  %4626 = vmatmul.mubr.msk.bf16.gmra.mxu1 %vm379_vm0, %v2186_v60  ;;  %v5480_v34 = vadd.f32 %v1262_v0, %v945_v53 }
 0x116   : > { %v969_v63 = vadd.f32 %v4427_v6, %v5401_v8  ;;  %v4468_v39 = vpop.f32.mrf.mxu0  ;;  %4681 = vmatprep.mubr.msk.bf16.mxu1 %vm379_vm0, %v2877_v62  ;;  %v2848_v6 = vld [vmem:[#allocation2 + $0x5d] sm:$0xff] }
 0x117   : > { %v960_v10 = vpop.f32.mrf.mxu1  ;;  %v5484_v9 = vadd.f32 %v4468_v39, %v956_v49  ;;  %v3197_v49 = vld [vmem:[#allocation2 + $0x36] sm:$0xff]  ;;  %v2880_v48 = vpack.c.bf16 %v2848_v6, %v2847_v17  ;;  %v2854_v17 = vld [vmem:[#allocation2 + $0x8d] sm:$0xff] }
 0x118   : > { %v961_v25 = vadd.f32 %v960_v10, %v5407_v21  ;;  %v1265_v22 = vpop.f32.mrf.mxu0  ;;  %v3232_v51 = vpack.c.bf16 %v3198_v57, %v3197_v49  ;;  %v3204_v49 = vld [vmem:[#allocation2 + $0x6e] sm:$0xff] }
 0x119   : > { %v4428_v13 = vpop.f32.mrf.mxu1  ;;  %v5487_v31 = vadd.f32 %v1265_v22, %v948_v59 }
 0x11a   : > { %v972_v8 = vadd.f32 %v4428_v13, %v5412_v15  ;;  %v4471_v53 = vpop.f32.mrf.mxu0  ;;  %4670 = vmatmul.mubr.msk.bf16.gmra.mxu0 %vm379_vm0, %v2540_v42  ;;  %v2849_v42 = vld [vmem:[#allocation2 + $0x65] sm:$0xff] }
 0x11b   : > { %v963_v54 = vpop.f32.mrf.mxu1  ;;  %v5491_v60 = vadd.f32 %v4471_v53, %v969_v63  ;;  %4725 = vmatprep.mubr.msk.bf16.mxu0 %vm379_vm0, %v3231_v44  ;;  %v2881_v22 = vpack.c.bf16 %v2850_v3, %v2849_v42  ;;  %v3202_v53 = vld [vmem:[#allocation2 + $0x5e] sm:$0xff] }
 0x11c   : > { %v964_v21 = vadd.f32 %v963_v54, %v5417_v23  ;;  %v1278_v62 = vpop.f32.mrf.mxu0  ;;  %v3233_v23 = vpack.c.bf16 %v3200_v43, %v3199_v40  ;;  %v3203_v54 = vld [vmem:[#allocation2 + $0x66] sm:$0xff]  ;;  %v2851_v43 = vld [vmem:[#allocation2 + $0x75] sm:$0xff] }
 0x11d   : > { %v4431_v50 = vpop.f32.mrf.mxu1  ;;  %4682 = vmatmul.mubr.msk.bf16.vlgmr.msra.gmra.mxu1 %vm379_vm0, %v2878_v32  ;;  %v5496_v15 = vadd.f32 %v1278_v62, %v961_v25 }
 0x11e   : > { %v985_v59 = vadd.f32 %v4431_v50, %v5421_v20  ;;  %v4472_v0 = vpop.f32.mrf.mxu0  ;;  %4685 = vmatprep.mubr.msk.bf16.mxu1 %vm379_vm0, %v2879_v46  ;;  %v2852_v50 = vld [vmem:[#allocation2 + $0x7d] sm:$0xff] }
 0x11f   : > { %v976_v63 = vpop.f32.mrf.mxu1  ;;  %v5500_v39 = vadd.f32 %v4472_v0, %v972_v8  ;;  %v3201_v8 = vld [vmem:[#allocation2 + $0x56] sm:$0xff]  ;;  %v2882_v3 = vpack.c.bf16 %v2852_v50, %v2851_v43 }
 0x120   : > { %v977_v56 = vadd.f32 %v976_v63, %v5427_v27  ;;  %v1281_v10 = vpop.f32.mrf.mxu0  ;;  %v3234_v40 = vpack.c.bf16 %v3202_v53, %v3201_v8  ;;  %v3208_v8 = vld [vmem:[#allocation2 + $0x8e] sm:$0xff] }
 0x121   : > { %v4432_v44 = vpop.f32.mrf.mxu1  ;;  %v5503_v18 = vadd.f32 %v1281_v10, %v964_v21 }
 0x122   : > { %v988_v20 = vadd.f32 %v4432_v44, %v5432_v29  ;;  %v4475_v25 = vpop.f32.mrf.mxu0  ;;  %4726 = vmatmul.mubr.msk.bf16.vlgmr.msra.gmra.mxu0 %vm379_vm0, %v3232_v51  ;;  %v2853_v51 = vld [vmem:[#allocation2 + $0x85] sm:$0xff] }
 0x123   : > { %v979_v13 = vpop.f32.mrf.mxu1  ;;  %v5507_v32 = vadd.f32 %v4475_v25, %v985_v59  ;;  %4729 = vmatprep.mubr.msk.bf16.mxu0 %vm379_vm0, %v3233_v23  ;;  %v2883_v10 = vpack.c.bf16 %v2854_v17, %v2853_v51  ;;  %v3206_v25 = vld [vmem:[#allocation2 + $0x7e] sm:$0xff] }
 0x124   : > { %v980_v27 = vadd.f32 %v979_v13, %v5437_v4  ;;  %v1294_v46 = vpop.f32.mrf.mxu0  ;;  %v3235_v4 = vpack.c.bf16 %v3204_v49, %v3203_v54  ;;  %v3207_v13 = vld [vmem:[#allocation2 + $0x86] sm:$0xff]  ;;  %v2855_v54 = vld [vmem:[#allocation2 + $0x95] sm:$0xff]  ;;  %v2856_v49 = vld [vmem:[#allocation2 + $0x9d] sm:$0xff] }
 0x125   : > { %v4435_v57 = vpop.f32.mrf.mxu1  ;;  %4686 = vmatmul.mubr.msk.bf16.gmra.mxu1 %vm379_vm0, %v2880_v48  ;;  %v5512_v29 = vadd.f32 %v1294_v46, %v977_v56  ;;  %v2884_v51 = vpack.c.bf16 %v2856_v49, %v2855_v54  ;;  %v2861_v49 = vld [vmem:[#allocation2 + $0xc5] sm:$0xff] }
 0x126   : > { %v1001_v21 = vadd.f32 %v4435_v57, %v5441_v2  ;;  %v4476_v62 = vpop.f32.mrf.mxu0  ;;  %4689 = vmatprep.mubr.msk.bf16.mxu1 %vm379_vm0, %v2881_v22 }
 0x127   : > { %v992_v59 = vpop.f32.mrf.mxu1  ;;  %v5516_v0 = vadd.f32 %v4476_v62, %v988_v20  ;;  %v3205_v20 = vld [vmem:[#allocation2 + $0x76] sm:$0xff]  ;;  %v3237_v62 = vpack.c.bf16 %v3208_v8, %v3207_v13 }
 0x128   : > { %v993_v6 = vadd.f32 %v992_v59, %v5447_v37  ;;  %v1297_v63 = vpop.f32.mrf.mxu0  ;;  %v3236_v46 = vpack.c.bf16 %v3206_v25, %v3205_v20  ;;  %v2859_v13 = vld [vmem:[#allocation2 + $0xb5] sm:$0xff]  ;;  %v2860_v8 = vld [vmem:[#allocation2 + $0xbd] sm:$0xff] }
 0x129   : > { %v4436_v23 = vpop.f32.mrf.mxu1  ;;  %v5519_v42 = vadd.f32 %v1297_v63, %v980_v27 }
 0x12a   : > { %v1004_v2 = vadd.f32 %v4436_v23, %v5451_v38  ;;  %v4479_v56 = vpop.f32.mrf.mxu0  ;;  %4730 = vmatmul.mubr.msk.bf16.gmra.mxu0 %vm379_vm0, %v3234_v40  ;;  %v2857_v40 = vld [vmem:[#allocation2 + $0xa5] sm:$0xff] }
 0x12b   : > { %v995_v44 = vpop.f32.mrf.mxu1  ;;  %v5523_v48 = vadd.f32 %v4479_v56, %v1001_v21  ;;  %4733 = vmatprep.mubr.msk.bf16.mxu0 %vm379_vm0, %v3235_v4  ;;  %v3210_v56 = vld [vmem:[#allocation2 + $0x9e] sm:$0xff] }
 0x12c   : > { %v996_v37 = vadd.f32 %v995_v44, %v5455_v52  ;;  %v1310_v22 = vpop.f32.mrf.mxu0  ;;  %v2858_v52 = vld [vmem:[#allocation2 + $0xad] sm:$0xff] }
 0x12d   : > { %v4439_v53 = vpop.f32.mrf.mxu1  ;;  %4690 = vmatmul.mubr.msk.bf16.gmra.mxu1 %vm379_vm0, %v2882_v3  ;;  %v5528_v38 = vadd.f32 %v1310_v22, %v993_v6  ;;  %v2885_v6 = vpack.c.bf16 %v2858_v52, %v2857_v40  ;;  %v3211_v44 = vld [vmem:[#allocation2 + $0xa6] sm:$0xff] }
 0x12e   : > { %v4480_v27 = vpop.f32.mrf.mxu0  ;;  %4693 = vmatprep.mubr.msk.bf16.mxu1 %vm379_vm0, %v2883_v10  ;;  %v1017_v50 = vadd.f32 %v4439_v53, %v5369_v47  ;;  %v3212_v47 = vld [vmem:[#allocation2 + $0xae] sm:$0xff] }
 0x12f   : > { %v1008_v57 = vpop.f32.mrf.mxu1  ;;  %v5531_v21 = vadd.f32 %v4480_v27, %v1004_v2  ;;  %v3209_v2 = vld [vmem:[#allocation2 + $0x96] sm:$0xff]  ;;  %v3239_v54 = vpack.c.bf16 %v3212_v47, %v3211_v44 }
 0x130   : > { %v1313_v43 = vpop.f32.mrf.mxu0  ;;  %v1009_v63 = vadd.f32 %v1008_v57, %v5375_v12  ;;  %v3238_v12 = vpack.c.bf16 %v3210_v56, %v3209_v2  ;;  %v2862_v57 = vld [vmem:[#allocation2 + $0xcd] sm:$0xff] }
 0x131   : > { %v4440_v59 = vpop.f32.mrf.mxu1  ;;  %v5534_v4 = vadd.f32 %v1313_v43, %v996_v37  ;;  %v2886_v43 = vpack.c.bf16 %v2860_v8, %v2859_v13  ;;  %v3215_v2 = vld [vmem:[#allocation2 + $0xc6] sm:$0xff] }
 0x132   : > { %v4483_v17 = vpop.f32.mrf.mxu0  ;;  %4734 = vmatmul.mubr.msk.bf16.gmra.mxu0 %vm379_vm0, %v3236_v46  ;;  %v1020_v20 = vadd.f32 %v4440_v59, %v5379_v55  ;;  %v2887_v59 = vpack.c.bf16 %v2862_v57, %v2861_v49 }
 0x133   : > { %v1011_v23 = vpop.f32.mrf.mxu1  ;;  %v5538_v3 = vadd.f32 %v4483_v17, %v1017_v50  ;;  %4737 = vmatprep.mubr.msk.bf16.mxu0 %vm379_vm0, %v3237_v62 }
 0x134   : > { %v1326_v10 = vpop.f32.mrf.mxu0  ;;  %v1012_v53 = vadd.f32 %v1011_v23, %v5384_v58 }
 0x135   : > { %v4443_v25 = vpop.f32.mrf.mxu1  ;;  %4694 = vmatmul.mubr.msk.bf16.gmra.mxu1 %vm379_vm0, %v2884_v51  ;;  %v5543_v37 = vadd.f32 %v1326_v10, %v1009_v63  ;;  %v3214_v63 = vld [vmem:[#allocation2 + $0xbe] sm:$0xff] }
 0x136   : > { %v4484_v22 = vpop.f32.mrf.mxu0  ;;  %4697 = vmatprep.mubr.msk.bf16.mxu1 %vm379_vm0, %v2885_v6  ;;  %v1033_v62 = vadd.f32 %v4443_v25, %v5389_v61  ;;  %v3213_v6 = vld [vmem:[#allocation2 + $0xb6] sm:$0xff]  ;;  %v3216_v61 = vld [vmem:[#allocation2 + $0xce] sm:$0xff] }
 0x137   : > { %v1024_v27 = vpop.f32.mrf.mxu1  ;;  %v5547_v46 = vadd.f32 %v4484_v22, %v1020_v20  ;;  %v2863_v20 = vld [vmem:[#allocation2 + $0xd5] sm:$0xff]  ;;  %v2864_v25 = vld [vmem:[#allocation2 + $0xdd] sm:$0xff]  ;;  %v3241_v8 = vpack.c.bf16 %v3216_v61, %v3215_v2 }
 0x138   : > { %v1329_v55 = vpop.f32.mrf.mxu0  ;;  %v1025_v51 = vadd.f32 %v1024_v27, %v5395_v1  ;;  %v3240_v1 = vpack.c.bf16 %v3214_v63, %v3213_v6  ;;  %v2866_v27 = vld [vmem:[#allocation2 + $0xed] sm:$0xff] }
 0x139   : > { %v4444_v40 = vpop.f32.mrf.mxu1  ;;  %v5550_v52 = vadd.f32 %v1329_v55, %v1012_v53  ;;  %v2865_v53 = vld [vmem:[#allocation2 + $0xe5] sm:$0xff]  ;;  %v2888_v55 = vpack.c.bf16 %v2864_v25, %v2863_v20 }
 0x13a   : > { %v4487_v50 = vpop.f32.mrf.mxu0  ;;  %4738 = vmatmul.mubr.msk.bf16.gmra.mxu0 %vm379_vm0, %v3238_v12  ;;  %v1036_v56 = vadd.f32 %v4444_v40, %v5399_v7  ;;  %v2889_v40 = vpack.c.bf16 %v2866_v27, %v2865_v53  ;;  %v3219_v6 = vld [vmem:[#allocation2 + $0xe6] sm:$0xff] }
 0x13b   : > { %v1027_v58 = vpop.f32.mrf.mxu1  ;;  %v5554_v17 = vadd.f32 %v4487_v50, %v1033_v62  ;;  %4741 = vmatprep.mubr.msk.bf16.mxu0 %vm379_vm0, %v3239_v54 }
 0x13c   : > { %v1342_v23 = vpop.f32.mrf.mxu0  ;;  %v1028_v22 = vadd.f32 %v1027_v58, %v5404_v11 }
 0x13d   : > { %v4447_v10 = vpop.f32.mrf.mxu1  ;;  %4698 = vmatmul.mubr.msk.bf16.gmra.mxu1 %vm379_vm0, %v2886_v43  ;;  %v5559_v44 = vadd.f32 %v1342_v23, %v1025_v51  ;;  %v3218_v51 = vld [vmem:[#allocation2 + $0xde] sm:$0xff] }
 0x13e   : > { %v4488_v47 = vpop.f32.mrf.mxu0  ;;  %4701 = vmatprep.mubr.msk.bf16.mxu1 %vm379_vm0, %v2887_v59  ;;  %v1049_v54 = vadd.f32 %v4447_v10, %v5409_v14  ;;  %v3217_v59 = vld [vmem:[#allocation2 + $0xd6] sm:$0xff]  ;;  %v3220_v14 = vld [vmem:[#allocation2 + $0xee] sm:$0xff] }
 0x13f   : > { %v1040_v12 = vpop.f32.mrf.mxu1  ;;  %v5563_v13 = vadd.f32 %v4488_v47, %v1036_v56  ;;  %v2867_v56 = vld [vmem:[#allocation2 + $0xf5] sm:$0xff]  ;;  %v2868_v10 = vld [vmem:[#allocation2 + $0xfd] sm:$0xff]  ;;  %v3243_v25 = vpack.c.bf16 %v3220_v14, %v3219_v6 }
 0x140   : > { %v1345_v7 = vpop.f32.mrf.mxu0  ;;  %v1041_v43 = vadd.f32 %v1040_v12, %v5415_v19  ;;  %v3242_v19 = vpack.c.bf16 %v3218_v51, %v3217_v59  ;;  %v2870_v12 = vld [vmem:[#allocation2 + $0x10d] sm:$0xff] }
 0x141   : > { %v4448_v49 = vpop.f32.mrf.mxu1  ;;  %v5566_v57 = vadd.f32 %v1345_v7, %v1028_v22  ;;  %v2869_v22 = vld [vmem:[#allocation2 + $0x105] sm:$0xff]  ;;  %v2890_v7 = vpack.c.bf16 %v2868_v10, %v2867_v56 }
 0x142   : > { %v4491_v62 = vpop.f32.mrf.mxu0  ;;  %4742 = vmatmul.mubr.msk.bf16.gmra.mxu0 %vm379_vm0, %v3240_v1  ;;  %v1052_v63 = vadd.f32 %v4448_v49, %v5419_v24  ;;  %v2891_v49 = vpack.c.bf16 %v2870_v12, %v2869_v22  ;;  %v3223_v59 = vld [vmem:[#allocation2 + $0x106] sm:$0xff] }
 0x143   : > { %v1043_v11 = vpop.f32.mrf.mxu1  ;;  %v5570_v50 = vadd.f32 %v4491_v62, %v1049_v54  ;;  %4745 = vmatprep.mubr.msk.bf16.mxu0 %vm379_vm0, %v3241_v8 }
 0x144   : > { %v1358_v58 = vpop.f32.mrf.mxu0  ;;  %v1044_v47 = vadd.f32 %v1043_v11, %v5424_v16 }
 0x145   : > { %v4451_v23 = vpop.f32.mrf.mxu1  ;;  %4702 = vmatmul.mubr.msk.bf16.gmra.mxu1 %vm379_vm0, %v2888_v55  ;;  %v5575_v2 = vadd.f32 %v1358_v58, %v1041_v43  ;;  %v3222_v43 = vld [vmem:[#allocation2 + $0xfe] sm:$0xff] }
 0x146   : > { %v4492_v61 = vpop.f32.mrf.mxu0  ;;  %4705 = vmatprep.mubr.msk.bf16.mxu1 %vm379_vm0, %v2889_v40  ;;  %v1065_v8 = vadd.f32 %v4451_v23, %v5429_v28  ;;  %v3221_v40 = vld [vmem:[#allocation2 + $0xf6] sm:$0xff]  ;;  %v3224_v28 = vld [vmem:[#allocation2 + $0x10e] sm:$0xff] }
 0x147   : > { %v1056_v1 = vpop.f32.mrf.mxu1  ;;  %v5579_v20 = vadd.f32 %v4492_v61, %v1052_v63  ;;  %v3244_v63 = vpack.c.bf16 %v3222_v43, %v3221_v40  ;;  %v2871_v23 = vld [vmem:[#allocation2 + $0x115] sm:$0xff]  ;;  %v2872_v61 = vld [vmem:[#allocation2 + $0x11d] sm:$0xff]  ;;  %v3227_v40 = vld [vmem:[#allocation2 + $0x126] sm:$0xff] }
 0x148   : > { %v1361_v24 = vpop.f32.mrf.mxu0  ;;  %v1057_v55 = vadd.f32 %v1056_v1, %v5435_v30  ;;  %v2874_v1 = vld [vmem:[#allocation2 + $0x12d] sm:$0xff] }
 0x149   : > { %v4452_v53 = vpop.f32.mrf.mxu1  ;;  %v5582_v27 = vadd.f32 %v1361_v24, %v1044_v47  ;;  %v3245_v47 = vpack.c.bf16 %v3224_v28, %v3223_v59  ;;  %v3228_v43 = vld [vmem:[#allocation2 + $0x12e] sm:$0xff] }
 0x14a   : > { %v4495_v54 = vpop.f32.mrf.mxu0  ;;  %4746 = vmatmul.mubr.msk.bf16.gmra.mxu0 %vm379_vm0, %v3242_v19  ;;  %v1068_v51 = vadd.f32 %v4452_v53, %v5439_v33  ;;  %v2873_v33 = vld [vmem:[#allocation2 + $0x125] sm:$0xff] }
 0x14b   : > { %v1059_v16 = vpop.f32.mrf.mxu1  ;;  %v5586_v62 = vadd.f32 %v4495_v54, %v1065_v8  ;;  %4749 = vmatprep.mubr.msk.bf16.mxu0 %vm379_vm0, %v3243_v25 }
 0x14c   : > { %v1374_v11 = vpop.f32.mrf.mxu0  ;;  %v1060_v19 = vadd.f32 %v1059_v16, %v5444_v36 }
 0x14d   : > { %v4507_v58 = vpop.f32.mrf.mxu1  ;;  %4706 = vmatmul.mubr.msk.bf16.gmra.mxu1 %vm379_vm0, %v2890_v7  ;;  %v5591_v6 = vadd.f32 %v1374_v11, %v1057_v55  ;;  %v2893_v7 = vpack.c.bf16 %v2874_v1, %v2873_v33  ;;  %v3226_v55 = vld [vmem:[#allocation2 + $0x11e] sm:$0xff] }
 0x14e   : > { %v1745_v14 = vadd.f32 %v4507_v58, %v5459_v5  ;;  %v4496_v30 = vpop.f32.mrf.mxu0  ;;  %4709 = vmatprep.mubr.msk.bf16.mxu1 %vm379_vm0, %v2891_v49  ;;  %v2892_v5 = vpack.c.bf16 %v2872_v61, %v2871_v23  ;;  %v3225_v49 = vld [vmem:[#allocation2 + $0x116] sm:$0xff] }
 0x14f   : > { %v1600_v56 = vpop.f32.mrf.mxu1  ;;  %v5596_v10 = vadd.f32 %v4496_v30, %v1068_v51  ;;  %v3246_v51 = vpack.c.bf16 %v3226_v55, %v3225_v49  ;;  %v2875_v58 = vld [vmem:[#allocation2 + $0x135] sm:$0xff] }
 0x150   : > { %v1743_v25 = vadd.f32 %v1600_v56, %v5464_v45  ;;  %v1377_v22 = vpop.f32.mrf.mxu0 }
 0x151   : > { %v4508_v12 = vpop.f32.mrf.mxu1  ;;  %v5599_v24 = vadd.f32 %v1377_v22, %v1060_v19  ;;  %v3229_v22 = vld [vmem:[#allocation2 + $0x136] sm:$0xff] }
 0x152   : > { %v1746_v8 = vadd.f32 %v4508_v12, %v5468_v26  ;;  %v4551_v53 = vpop.f32.mrf.mxu0  ;;  %4750 = vmatmul.mubr.msk.bf16.gmra.mxu0 %vm379_vm0, %v3244_v63  ;;  %v3230_v12 = vld [vmem:[#allocation2 + $0x13e] sm:$0xff] }
 0x153   : > { %v1603_v36 = vpop.f32.mrf.mxu1  ;;  %v5603_v54 = vadd.f32 %v4551_v53, %v1745_v14  ;;  %4753 = vmatprep.mubr.msk.bf16.mxu0 %vm379_vm0, %v3245_v47  ;;  %v2876_v14 = vld [vmem:[#allocation2 + $0x13d] sm:$0xff] }
 0x154   : > { %v1744_v45 = vadd.f32 %v1603_v36, %v5471_v35  ;;  %v1954_v16 = vpop.f32.mrf.mxu0  ;;  %v3247_v35 = vpack.c.bf16 %v3228_v43, %v3227_v40  ;;  %v2894_v47 = vpack.c.bf16 %v2876_v14, %v2875_v58  ;;  %v3248_v36 = vpack.c.bf16 %v3230_v12, %v3229_v22 }
 0x155   : > { %v4511_v11 = vpop.f32.mrf.mxu1  ;;  %4710 = vmatmul.mubr.msk.bf16.gmra.mxu1 %vm379_vm0, %v2892_v5  ;;  %v5608_v26 = vadd.f32 %v1954_v16, %v1743_v25 }
 0x156   : > { %v1749_v59 = vadd.f32 %v4511_v11, %v5475_v41  ;;  %v4552_v28 = vpop.f32.mrf.mxu0  ;;  %4713 = vmatprep.mubr.msk.bf16.mxu1 %vm379_vm0, %v2893_v7 }
 0x157   : > { %v1616_v30 = vpop.f32.mrf.mxu1  ;;  %v5612_v63 = vadd.f32 %v4552_v28, %v1746_v8 }
 0x158   : > { %v1747_v23 = vadd.f32 %v1616_v30, %v5480_v34  ;;  %v1957_v61 = vpop.f32.mrf.mxu0 }
 0x159   : > { %v4512_v19 = vpop.f32.mrf.mxu1  ;;  %v5615_v56 = vadd.f32 %v1957_v61, %v1744_v45 }
 0x15a   : > { %v1750_v33 = vadd.f32 %v4512_v19, %v5484_v9  ;;  %v4555_v41 = vpop.f32.mrf.mxu0  ;;  %4754 = vmatmul.mubr.msk.bf16.gmra.mxu0 %vm379_vm0, %v3246_v51 }
 0x15b   : > { %v1619_v1 = vpop.f32.mrf.mxu1  ;;  %v5619_v25 = vadd.f32 %v4555_v41, %v1749_v59  ;;  %4757 = vmatprep.mubr.msk.bf16.mxu0 %vm379_vm0, %v3247_v35 }
 0x15c   : > { %v1748_v5 = vadd.f32 %v1619_v1, %v5487_v31  ;;  %v1970_v34 = vpop.f32.mrf.mxu0 }
 0x15d   : > { %v4515_v8 = vpop.f32.mrf.mxu1  ;;  %4714 = vmatmul.mubr.msk.bf16.gmra.mxu1 %vm379_vm0, %v2894_v47  ;;  %v5624_v53 = vadd.f32 %v1970_v34, %v1747_v23 }
 0x15e   : > { %v1753_v9 = vadd.f32 %v4515_v8, %v5491_v60  ;;  %v4556_v7 = vpop.f32.mrf.mxu0 }
 0x15f   : > { %v1632_v49 = vpop.f32.mrf.mxu1  ;;  %v5627_v55 = vadd.f32 %v4556_v7, %v1750_v33 }
 0x160   : > { %v1751_v45 = vadd.f32 %v1632_v49, %v5496_v15  ;;  %v1973_v16 = vpop.f32.mrf.mxu0 }
 0x161   : > { %v4516_v40 = vpop.f32.mrf.mxu1  ;;  %v5630_v43 = vadd.f32 %v1973_v16, %v1748_v5 }
 0x162   : > { %v1754_v31 = vadd.f32 %v4516_v40, %v5500_v39  ;;  %v4559_v11 = vpop.f32.mrf.mxu0  ;;  %4758 = vmatmul.mubr.msk.bf16.gmra.mxu0 %vm379_vm0, %v3248_v36 }
 0x163   : > { %v1635_v59 = vpop.f32.mrf.mxu1  ;;  %v5634_v28 = vadd.f32 %v4559_v11, %v1753_v9 }
 0x164   : > { %v1752_v60 = vadd.f32 %v1635_v59, %v5503_v18  ;;  %v1986_v51 = vpop.f32.mrf.mxu0 }
 0x165   : > { %v4519_v58 = vpop.f32.mrf.mxu1  ;;  %v5637_v14 = vadd.f32 %v1986_v51, %v1751_v45 }
 0x166   : > { %v1757_v15 = vadd.f32 %v4519_v58, %v5507_v32  ;;  %v4560_v30 = vpop.f32.mrf.mxu0 }
 0x167   : > { %v1648_v35 = vpop.f32.mrf.mxu1  ;;  %v5640_v23 = vadd.f32 %v4560_v30, %v1754_v31 }
 0x168   : > { %v1755_v39 = vadd.f32 %v1648_v35, %v5512_v29  ;;  %v1989_v61 = vpop.f32.mrf.mxu0 }
 0x169   : > { %v4520_v19 = vpop.f32.mrf.mxu1  ;;  %v5643_v47 = vadd.f32 %v1989_v61, %v1752_v60 }
 0x16a   : > { %v1758_v33 = vadd.f32 %v4520_v19, %v5516_v0  ;;  %v4563_v41 = vpop.f32.mrf.mxu0 }
 0x16b   : > { %v1651_v18 = vpop.f32.mrf.mxu1  ;;  %v5646_v1 = vadd.f32 %v4563_v41, %v1757_v15 }
 0x16c   : > { %v1756_v22 = vadd.f32 %v1651_v18, %v5519_v42  ;;  %v2002_v12 = vpop.f32.mrf.mxu0 }
 0x16d   : > { %v4523_v32 = vpop.f32.mrf.mxu1  ;;  %v5649_v5 = vadd.f32 %v2002_v12, %v1755_v39 }
 0x16e   : > { %v1761_v34 = vadd.f32 %v4523_v32, %v5523_v48  ;;  %v4564_v8 = vpop.f32.mrf.mxu0 }
 0x16f   : > { %v1664_v29 = vpop.f32.mrf.mxu1  ;;  %v5652_v9 = vadd.f32 %v4564_v8, %v1758_v33 }
 0x170   : > { %v1759_v7 = vadd.f32 %v1664_v29, %v5528_v38  ;;  %v2005_v36 = vpop.f32.mrf.mxu0 }
 0x171   : > { %v4524_v0 = vpop.f32.mrf.mxu1  ;;  %v5655_v49 = vadd.f32 %v2005_v36, %v1756_v22 }
 0x172   : > { %v1762_v45 = vadd.f32 %v4524_v0, %v5531_v21  ;;  %v4567_v16 = vpop.f32.mrf.mxu0 }
 0x173   : > { %v1667_v42 = vpop.f32.mrf.mxu1  ;;  %v5658_v40 = vadd.f32 %v4567_v16, %v1761_v34 }
 0x174   : > { %v1760_v31 = vadd.f32 %v1667_v42, %v5534_v4  ;;  %v2018_v11 = vpop.f32.mrf.mxu0 }
 0x175   : > { %v4527_v48 = vpop.f32.mrf.mxu1  ;;  %v5661_v59 = vadd.f32 %v2018_v11, %v1759_v7 }
 0x176   : > { %v1765_v60 = vadd.f32 %v4527_v48, %v5538_v3  ;;  %v4568_v51 = vpop.f32.mrf.mxu0 }
 0x177   : > { %v1680_v38 = vpop.f32.mrf.mxu1  ;;  %v5664_v58 = vadd.f32 %v4568_v51, %v1762_v45 }
 0x178   : > { %v1763_v15 = vadd.f32 %v1680_v38, %v5543_v37  ;;  %v2021_v30 = vpop.f32.mrf.mxu0 }
 0x179   : > { %v4528_v21 = vpop.f32.mrf.mxu1  ;;  %v5667_v35 = vadd.f32 %v2021_v30, %v1760_v31 }
 0x17a   : > { %v1766_v39 = vadd.f32 %v4528_v21, %v5547_v46  ;;  %v4571_v61 = vpop.f32.mrf.mxu0 }
 0x17b   : > { %v1683_v4 = vpop.f32.mrf.mxu1  ;;  %v5670_v19 = vadd.f32 %v4571_v61, %v1765_v60 }
 0x17c   : > { %v1764_v33 = vadd.f32 %v1683_v4, %v5550_v52  ;;  %v2034_v41 = vpop.f32.mrf.mxu0 }
 0x17d   : > { %v4531_v3 = vpop.f32.mrf.mxu1  ;;  %v5673_v18 = vadd.f32 %v2034_v41, %v1763_v15 }
 0x17e   : > { %v1769_v22 = vadd.f32 %v4531_v3, %v5554_v17  ;;  %v4572_v12 = vpop.f32.mrf.mxu0 }
 0x17f   : > { %v1696_v37 = vpop.f32.mrf.mxu1  ;;  %v5676_v32 = vadd.f32 %v4572_v12, %v1766_v39 }
 0x180   : > { %v1767_v34 = vadd.f32 %v1696_v37, %v5559_v44  ;;  %v2037_v8 = vpop.f32.mrf.mxu0 }
 0x181   : > { %v4532_v46 = vpop.f32.mrf.mxu1  ;;  %v5679_v29 = vadd.f32 %v2037_v8, %v1764_v33 }
 0x182   : > { %v1770_v7 = vadd.f32 %v4532_v46, %v5563_v13  ;;  %v4575_v36 = vpop.f32.mrf.mxu0 }
 0x183   : > { %v1699_v52 = vpop.f32.mrf.mxu1  ;;  %v5682_v0 = vadd.f32 %v4575_v36, %v1769_v22 }
 0x184   : > { %v1768_v45 = vadd.f32 %v1699_v52, %v5566_v57  ;;  %v2050_v16 = vpop.f32.mrf.mxu0 }
 0x185   : > { %v4535_v17 = vpop.f32.mrf.mxu1  ;;  %v5685_v42 = vadd.f32 %v2050_v16, %v1767_v34 }
 0x186   : > { %v1773_v31 = vadd.f32 %v4535_v17, %v5570_v50  ;;  %v4576_v11 = vpop.f32.mrf.mxu0 }
 0x187   : > { %v1712_v44 = vpop.f32.mrf.mxu1  ;;  %v5688_v48 = vadd.f32 %v4576_v11, %v1770_v7 }
 0x188   : > { %v1771_v60 = vadd.f32 %v1712_v44, %v5575_v2  ;;  %v2053_v51 = vpop.f32.mrf.mxu0 }
 0x189   : > { %v4536_v13 = vpop.f32.mrf.mxu1  ;;  %v5691_v38 = vadd.f32 %v2053_v51, %v1768_v45 }
 0x18a   : > { %v1774_v15 = vadd.f32 %v4536_v13, %v5579_v20  ;;  %v4579_v30 = vpop.f32.mrf.mxu0 }
 0x18b   : > { %v1715_v57 = vpop.f32.mrf.mxu1  ;;  %v5694_v21 = vadd.f32 %v4579_v30, %v1773_v31 }
 0x18c   : > { %v1772_v39 = vadd.f32 %v1715_v57, %v5582_v27  ;;  %v2066_v61 = vpop.f32.mrf.mxu0 }
 0x18d   : > { %v4539_v50 = vpop.f32.mrf.mxu1  ;;  %v5697_v4 = vadd.f32 %v2066_v61, %v1771_v60 }
 0x18e   : > { %v1777_v33 = vadd.f32 %v4539_v50, %v5586_v62  ;;  %v4580_v41 = vpop.f32.mrf.mxu0 }
 0x18f   : > { %v1728_v2 = vpop.f32.mrf.mxu1  ;;  %v5700_v3 = vadd.f32 %v4580_v41, %v1774_v15 }
 0x190   : > { %v1775_v22 = vadd.f32 %v1728_v2, %v5591_v6  ;;  %v2069_v12 = vpop.f32.mrf.mxu0 }
 0x191   : > { %v4540_v20 = vpop.f32.mrf.mxu1  ;;  %v5703_v37 = vadd.f32 %v2069_v12, %v1772_v39 }
 0x192   : > { %v1778_v34 = vadd.f32 %v4540_v20, %v5596_v10  ;;  %v4583_v8 = vpop.f32.mrf.mxu0 }
 0x193   : > { %v1731_v27 = vpop.f32.mrf.mxu1  ;;  %v5706_v46 = vadd.f32 %v4583_v8, %v1777_v33 }
 0x194   : > { %v1776_v7 = vadd.f32 %v1731_v27, %v5599_v24  ;;  %v2082_v36 = vpop.f32.mrf.mxu0 }
 0x195   : > { %v4595_v62 = vpop.f32.mrf.mxu1  ;;  %v5709_v52 = vadd.f32 %v2082_v36, %v1775_v22 }
 0x196   : > { %v2453_v45 = vadd.f32 %v4595_v62, %v5603_v54  ;;  %v4584_v16 = vpop.f32.mrf.mxu0 }
 0x197   : > { %v2308_v6 = vpop.f32.mrf.mxu1  ;;  %v5712_v17 = vadd.f32 %v4584_v16, %v1778_v34 }
 0x198   : > { %v2451_v31 = vadd.f32 %v2308_v6, %v5608_v26  ;;  %v2085_v11 = vpop.f32.mrf.mxu0 }
 0x199   : > { %v4596_v10 = vpop.f32.mrf.mxu1  ;;  %v5715_v44 = vadd.f32 %v2085_v11, %v1776_v7 }
 0x19a   : > { %v2454_v60 = vadd.f32 %v4596_v10, %v5612_v63  ;;  %v4639_v51 = vpop.f32.mrf.mxu0 }
 0x19b   : > { %v2311_v24 = vpop.f32.mrf.mxu1  ;;  %v5718_v13 = vadd.f32 %v4639_v51, %v2453_v45 }
 0x19c   : > { %v2452_v15 = vadd.f32 %v2311_v24, %v5615_v56  ;;  %v2662_v30 = vpop.f32.mrf.mxu0 }
 0x19d   : > { %v4599_v54 = vpop.f32.mrf.mxu1  ;;  %v5721_v57 = vadd.f32 %v2662_v30, %v2451_v31 }
 0x19e   : > { %v2457_v39 = vadd.f32 %v4599_v54, %v5619_v25  ;;  %v4640_v61 = vpop.f32.mrf.mxu0 }
 0x19f   : > { %v2324_v26 = vpop.f32.mrf.mxu1  ;;  %v5724_v50 = vadd.f32 %v4640_v61, %v2454_v60 }
 0x1a0   : > { %v2455_v33 = vadd.f32 %v2324_v26, %v5624_v53  ;;  %v2665_v41 = vpop.f32.mrf.mxu0 }
 0x1a1   : > { %v4600_v63 = vpop.f32.mrf.mxu1  ;;  %v5727_v2 = vadd.f32 %v2665_v41, %v2452_v15 }
 0x1a2   : > { %v2458_v22 = vadd.f32 %v4600_v63, %v5627_v55  ;;  %v4643_v12 = vpop.f32.mrf.mxu0 }
 0x1a3   : > { %v2327_v56 = vpop.f32.mrf.mxu1  ;;  %v5730_v20 = vadd.f32 %v4643_v12, %v2457_v39 }
 0x1a4   : > { %v2456_v34 = vadd.f32 %v2327_v56, %v5630_v43  ;;  %v2678_v8 = vpop.f32.mrf.mxu0 }
 0x1a5   : > { %v4603_v25 = vpop.f32.mrf.mxu1  ;;  %v5733_v27 = vadd.f32 %v2678_v8, %v2455_v33 }
 0x1a6   : > { %v2461_v7 = vadd.f32 %v4603_v25, %v5634_v28  ;;  %v4644_v36 = vpop.f32.mrf.mxu0 }
 0x1a7   : > { %v2340_v53 = vpop.f32.mrf.mxu1  ;;  %v5736_v62 = vadd.f32 %v4644_v36, %v2458_v22 }
 0x1a8   : > { %v2459_v45 = vadd.f32 %v2340_v53, %v5637_v14  ;;  %v2681_v16 = vpop.f32.mrf.mxu0 }
 0x1a9   : > { %v4604_v55 = vpop.f32.mrf.mxu1  ;;  %v5739_v6 = vadd.f32 %v2681_v16, %v2456_v34 }
 0x1aa   : > { %v2462_v31 = vadd.f32 %v4604_v55, %v5640_v23  ;;  %v4647_v11 = vpop.f32.mrf.mxu0 }
 0x1ab   : > { %v2343_v43 = vpop.f32.mrf.mxu1  ;;  %v5742_v10 = vadd.f32 %v4647_v11, %v2461_v7 }
 0x1ac   : > { %v2460_v60 = vadd.f32 %v2343_v43, %v5643_v47  ;;  %v2694_v51 = vpop.f32.mrf.mxu0 }
 0x1ad   : > { %v4607_v28 = vpop.f32.mrf.mxu1  ;;  %v5745_v24 = vadd.f32 %v2694_v51, %v2459_v45 }
 0x1ae   : > { %v2465_v15 = vadd.f32 %v4607_v28, %v5646_v1  ;;  %v4648_v30 = vpop.f32.mrf.mxu0 }
 0x1af   : > { %v2356_v14 = vpop.f32.mrf.mxu1  ;;  %v5748_v54 = vadd.f32 %v4648_v30, %v2462_v31 }
 0x1b0   : > { %v2463_v39 = vadd.f32 %v2356_v14, %v5649_v5  ;;  %v2697_v61 = vpop.f32.mrf.mxu0 }
 0x1b1   : > { %v4608_v23 = vpop.f32.mrf.mxu1  ;;  %v5751_v26 = vadd.f32 %v2697_v61, %v2460_v60 }
 0x1b2   : > { %v2466_v33 = vadd.f32 %v4608_v23, %v5652_v9  ;;  %v4651_v41 = vpop.f32.mrf.mxu0 }
 0x1b3   : > { %v2359_v47 = vpop.f32.mrf.mxu1  ;;  %v5754_v63 = vadd.f32 %v4651_v41, %v2465_v15 }
 0x1b4   : > { %v2464_v22 = vadd.f32 %v2359_v47, %v5655_v49  ;;  %v2710_v12 = vpop.f32.mrf.mxu0 }
 0x1b5   : > { %v4611_v1 = vpop.f32.mrf.mxu1  ;;  %v5757_v56 = vadd.f32 %v2710_v12, %v2463_v39 }
 0x1b6   : > { %v2469_v34 = vadd.f32 %v4611_v1, %v5658_v40  ;;  %v4652_v8 = vpop.f32.mrf.mxu0 }
 0x1b7   : > { %v2372_v5 = vpop.f32.mrf.mxu1  ;;  %v5760_v25 = vadd.f32 %v4652_v8, %v2466_v33 }
 0x1b8   : > { %v2467_v7 = vadd.f32 %v2372_v5, %v5661_v59  ;;  %v2713_v36 = vpop.f32.mrf.mxu0 }
 0x1b9   : > { %v4612_v9 = vpop.f32.mrf.mxu1  ;;  %v5763_v53 = vadd.f32 %v2713_v36, %v2464_v22 }
 0x1ba   : > { %v2470_v45 = vadd.f32 %v4612_v9, %v5664_v58  ;;  %v4655_v16 = vpop.f32.mrf.mxu0 }
 0x1bb   : > { %v2375_v49 = vpop.f32.mrf.mxu1  ;;  %v5766_v55 = vadd.f32 %v4655_v16, %v2469_v34 }
 0x1bc   : > { %v2468_v31 = vadd.f32 %v2375_v49, %v5667_v35  ;;  %v2726_v11 = vpop.f32.mrf.mxu0 }
 0x1bd   : > { %v4615_v40 = vpop.f32.mrf.mxu1  ;;  %v5769_v43 = vadd.f32 %v2726_v11, %v2467_v7 }
 0x1be   : > { %v2473_v60 = vadd.f32 %v4615_v40, %v5670_v19  ;;  %v4656_v51 = vpop.f32.mrf.mxu0 }
 0x1bf   : > { %v2388_v59 = vpop.f32.mrf.mxu1  ;;  %v5772_v28 = vadd.f32 %v4656_v51, %v2470_v45 }
 0x1c0   : > { %v2471_v15 = vadd.f32 %v2388_v59, %v5673_v18  ;;  %v2729_v30 = vpop.f32.mrf.mxu0 }
 0x1c1   : > { %v4616_v58 = vpop.f32.mrf.mxu1  ;;  %v5775_v14 = vadd.f32 %v2729_v30, %v2468_v31 }
 0x1c2   : > { %v2474_v39 = vadd.f32 %v4616_v58, %v5676_v32  ;;  %v4659_v61 = vpop.f32.mrf.mxu0 }
 0x1c3   : > { %v2391_v35 = vpop.f32.mrf.mxu1  ;;  %v5778_v23 = vadd.f32 %v4659_v61, %v2473_v60 }
 0x1c4   : > { %v2472_v33 = vadd.f32 %v2391_v35, %v5679_v29  ;;  %v2742_v41 = vpop.f32.mrf.mxu0 }
 0x1c5   : > { %v4619_v19 = vpop.f32.mrf.mxu1  ;;  %v5781_v47 = vadd.f32 %v2742_v41, %v2471_v15 }
 0x1c6   : > { %v2477_v22 = vadd.f32 %v4619_v19, %v5682_v0  ;;  %v4660_v12 = vpop.f32.mrf.mxu0 }
 0x1c7   : > { %v2404_v18 = vpop.f32.mrf.mxu1  ;;  %v5784_v1 = vadd.f32 %v4660_v12, %v2474_v39 }
 0x1c8   : > { %v2475_v34 = vadd.f32 %v2404_v18, %v5685_v42  ;;  %v2745_v8 = vpop.f32.mrf.mxu0 }
 0x1c9   : > { %v4620_v32 = vpop.f32.mrf.mxu1  ;;  %v5787_v5 = vadd.f32 %v2745_v8, %v2472_v33 }
 0x1ca   : > { %v2478_v7 = vadd.f32 %v4620_v32, %v5688_v48  ;;  %v4663_v36 = vpop.f32.mrf.mxu0 }
 0x1cb   : > { %v2407_v29 = vpop.f32.mrf.mxu1  ;;  %v5790_v9 = vadd.f32 %v4663_v36, %v2477_v22 }
 0x1cc   : > { %v2476_v45 = vadd.f32 %v2407_v29, %v5691_v38  ;;  %v2758_v16 = vpop.f32.mrf.mxu0 }
 0x1cd   : > { %v4623_v0 = vpop.f32.mrf.mxu1  ;;  %v5793_v49 = vadd.f32 %v2758_v16, %v2475_v34 }
 0x1ce   : > { %v2481_v31 = vadd.f32 %v4623_v0, %v5694_v21  ;;  %v4664_v11 = vpop.f32.mrf.mxu0 }
 0x1cf   : > { %v2420_v42 = vpop.f32.mrf.mxu1  ;;  %v5796_v40 = vadd.f32 %v4664_v11, %v2478_v7 }
 0x1d0   : > { %v2479_v60 = vadd.f32 %v2420_v42, %v5697_v4  ;;  %v2761_v51 = vpop.f32.mrf.mxu0 }
 0x1d1   : > { %v4624_v48 = vpop.f32.mrf.mxu1  ;;  %v5799_v59 = vadd.f32 %v2761_v51, %v2476_v45 }
 0x1d2   : > { %v2482_v15 = vadd.f32 %v4624_v48, %v5700_v3  ;;  %v4667_v30 = vpop.f32.mrf.mxu0 }
 0x1d3   : > { %v2423_v38 = vpop.f32.mrf.mxu1  ;;  %v5802_v58 = vadd.f32 %v4667_v30, %v2481_v31 }
 0x1d4   : > { %v2480_v39 = vadd.f32 %v2423_v38, %v5703_v37  ;;  %v2774_v61 = vpop.f32.mrf.mxu0 }
 0x1d5   : > { %v4627_v21 = vpop.f32.mrf.mxu1  ;;  %v5805_v35 = vadd.f32 %v2774_v61, %v2479_v60 }
 0x1d6   : > { %v2485_v33 = vadd.f32 %v4627_v21, %v5706_v46  ;;  %v4668_v41 = vpop.f32.mrf.mxu0 }
 0x1d7   : > { %v2436_v4 = vpop.f32.mrf.mxu1  ;;  %v5808_v19 = vadd.f32 %v4668_v41, %v2482_v15 }
 0x1d8   : > { %v2483_v22 = vadd.f32 %v2436_v4, %v5709_v52  ;;  %v2777_v12 = vpop.f32.mrf.mxu0 }
 0x1d9   : > { %v4628_v3 = vpop.f32.mrf.mxu1  ;;  %v5811_v18 = vadd.f32 %v2777_v12, %v2480_v39 }
 0x1da   : > { %v2486_v34 = vadd.f32 %v4628_v3, %v5712_v17  ;;  %v4671_v37 = vpop.f32.mrf.mxu0 }
 0x1db   : > { %v2439_v8 = vpop.f32.mrf.mxu1  ;;  %v5814_v32 = vadd.f32 %v4671_v37, %v2485_v33 }
 0x1dc   : > { %v2484_v7 = vadd.f32 %v2439_v8, %v5715_v44  ;;  %v2790_v46 = vpop.f32.mrf.mxu0 }
 0x1dd   : > { %v4683_v36 = vpop.f32.mrf.mxu1  ;;  %v5817_v29 = vadd.f32 %v2790_v46, %v2483_v22 }
 0x1de   : > { %v4672_v45 = vpop.f32.mrf.mxu0  ;;  %v3161_v31 = vadd.f32 %v4683_v36, %v5718_v13 }
 0x1df   : > { %v3016_v16 = vpop.f32.mrf.mxu1  ;;  %v5819_v52 = vadd.f32 %v4672_v45, %v2486_v34 }
 0x1e0   : > { %v2793_v0 = vpop.f32.mrf.mxu0  ;;  %v3159_v44 = vadd.f32 %v3016_v16, %v5721_v57 }
 0x1e1   : > { %v4684_v11 = vpop.f32.mrf.mxu1  ;;  %v5822_v42 = vadd.f32 %v2793_v0, %v2484_v7 }
 0x1e2   : > { %v4727_v17 = vpop.f32.mrf.mxu0  ;;  %v3162_v13 = vadd.f32 %v4684_v11, %v5724_v50 }
 0x1e3   : > { %v3019_v60 = vpop.f32.mrf.mxu1  ;;  %v3515_v51 = vadd.f32 %v4727_v17, %v3161_v31 }
 0x1e4   : > { %v3370_v48 = vpop.f32.mrf.mxu0  ;;  %v3160_v39 = vadd.f32 %v3019_v60, %v5727_v2 }
 0x1e5   : > { %3552 = vst.msk [vmem:[%s5829_s12 + $0xe] sm:$0xfc] %vm3551_vm4, %v3515_v51  ;;  %v4687_v15 = vpop.f32.mrf.mxu1  ;;  %v3513_v30 = vadd.f32 %v3370_v48, %v3159_v44 }
 0x1e6   : > { %v4728_v38 = vpop.f32.mrf.mxu0  ;;  %v3165_v57 = vadd.f32 %v4687_v15, %v5730_v20 }
 0x1e7   : > { %3549 = vst.msk [vmem:[%s5829_s12] sm:$0xff] %vm379_vm0, %v3513_v30  ;;  %v3032_v61 = vpop.f32.mrf.mxu1  ;;  %v3516_v21 = vadd.f32 %v4728_v38, %v3162_v13 }
 0x1e8   : > { %v3373_v33 = vpop.f32.mrf.mxu0  ;;  %v3163_v2 = vadd.f32 %v3032_v61, %v5733_v27 }
 0x1e9   : > { %3553 = vst.msk [vmem:[%s5829_s12 + $0x16] sm:$0xff] %vm379_vm0, %v3516_v21  ;;  %v4688_v50 = vpop.f32.mrf.mxu1  ;;  %v3514_v41 = vadd.f32 %v3373_v33, %v3160_v39 }
 0x1ea   : > { %v4731_v4 = vpop.f32.mrf.mxu0  ;;  %v3166_v20 = vadd.f32 %v4688_v50, %v5736_v62 }
 0x1eb   : > { %3550 = vst.msk [vmem:[%s5829_s12 + $0x8] sm:$0xff] %vm379_vm0, %v3514_v41  ;;  %v3035_v22 = vpop.f32.mrf.mxu1  ;;  %v3519_v12 = vadd.f32 %v4731_v4, %v3165_v57 }
 0x1ec   : > { %v3386_v3 = vpop.f32.mrf.mxu0  ;;  %v3164_v27 = vadd.f32 %v3035_v22, %v5739_v6 }
 0x1ed   : > { %3559 = vst.msk [vmem:[%s5829_s12 + $0x2c] sm:$0xf] %vm3558_vm5, %v3519_v12  ;;  %v4691_v34 = vpop.f32.mrf.mxu1  ;;  %v3517_v37 = vadd.f32 %v3386_v3, %v3163_v2 }
 0x1ee   : > { %3561 = vst.msk [vmem:[%s5829_s12 + $0x2a] sm:$0xc0] %vm3560_vm6, %v3519_v12  ;;  %v3598_v8 = vld [vmem:[%s5829_s12] sm:$0xff]  ;;  %v4732_v7 = vpop.f32.mrf.mxu0  ;;  %v3169_v0 = vadd.f32 %v4691_v34, %v5742_v10 }
 0x1ef   : > { %3554 = vst.msk [vmem:[%s5829_s12 + $0x1e] sm:$0x3] %vm384_vm2, %v3517_v37  ;;  %v3048_v46 = vpop.f32.mrf.mxu1  ;;  %v3520_v36 = vadd.f32 %v4732_v7, %v3166_v20  ;;  %v3701_v62 = vmul.f32 %v3598_v8, %v3598_v8  ;;  %v3630_v17 = vsel %vm379_vm0, %v3598_v8, 0.0 }
 0x1f0   : > { %3556 = vst.msk [vmem:[%s5829_s12 + $0x1c] sm:$0xf0] %vm3555_vm7, %v3517_v37  ;;  %v3600_v45 = vld [vmem:[%s5829_s12 + $0x10] sm:$0xff]  ;;  %v3389_v16 = vpop.f32.mrf.mxu0  ;;  %v3167_v13 = vadd.f32 %v3048_v46, %v5745_v24 }
 0x1f1   : > { %3562 = vst.msk [vmem:[%s5829_s12 + $0x32] sm:$0xff] %vm379_vm0, %v3520_v36  ;;  %v4692_v31 = vpop.f32.mrf.mxu1  ;;  %v3518_v11 = vadd.f32 %v3389_v16, %v3164_v27  ;;  %v3703_v44 = vmul.f32 %v3600_v45, %v3600_v45  ;;  %v3733_v30 = vsel %vm379_vm0, %v3701_v62, 0.0  ;;  %v3633_v61 = vsel %vm379_vm0, %v3600_v45, 0.0 }
 0x1f2   : > { %v3599_v6 = vld [vmem:[%s5829_s12 + $0x8] sm:$0xff]  ;;  %v4735_v60 = vpop.f32.mrf.mxu0  ;;  %v3170_v33 = vadd.f32 %v4692_v31, %v5748_v54 }
 0x1f3   : > { %v3631_v51 = vsel %vm379_vm0, %v3599_v6, 0.0  ;;  %v3702_v48 = vmul.f32 %v3599_v6, %v3599_v6  ;;  %3557 = vst.msk [vmem:[%s5829_s12 + $0x24] sm:$0xff] %vm379_vm0, %v3518_v11  ;;  %v3051_v15 = vpop.f32.mrf.mxu1  ;;  %v3523_v10 = vadd.f32 %v4735_v60, %v3169_v0  ;;  %v3736_v50 = vsel %vm379_vm0, %v3703_v44, 0.0 }
 0x1f4   : > { %v3632_v38 = vadd.f32 %v3631_v51, %v3630_v17  ;;  %v3402_v39 = vpop.f32.mrf.mxu0  ;;  %v3168_v20 = vadd.f32 %v3051_v15, %v5751_v26 }
 0x1f5   : > { %v3734_v21 = vsel %vm379_vm0, %v3702_v48, 0.0  ;;  %3566 = vst.msk [vmem:[%s5829_s12 + $0x48] sm:$0xff] %vm379_vm0, %v3523_v10  ;;  %v4695_v24 = vpop.f32.mrf.mxu1  ;;  %v3521_v57 = vadd.f32 %v3402_v39, %v3167_v13 }
 0x1f6   : > { %v3735_v41 = vadd.f32 %v3734_v21, %v3733_v30  ;;  %v3601_v4 = vld [vmem:[%s5829_s12 + $0x18] sm:$0xff]  ;;  %v3634_v2 = vadd.f32 %v3633_v61, %v3632_v38  ;;  %v4736_v22 = vpop.f32.mrf.mxu0  ;;  %v3173_v0 = vadd.f32 %v4695_v24, %v5754_v63 }
 0x1f7   : > { %v3635_v12 = vsel %vm379_vm0, %v3601_v4, 0.0  ;;  %v3704_v3 = vmul.f32 %v3601_v4, %v3601_v4  ;;  %3564 = vst.msk [vmem:[%s5829_s12 + $0x3a] sm:$0x3f] %vm3563_vm8, %v3521_v57  ;;  %v3064_v54 = vpop.f32.mrf.mxu1  ;;  %v3524_v34 = vadd.f32 %v4736_v22, %v3170_v33 }
 0x1f8   : > { %v3737_v37 = vadd.f32 %v3736_v50, %v3735_v41  ;;  %v3604_v8 = vld [vmem:[%s5829_s12 + $0x30] sm:$0xff]  ;;  %v3405_v7 = vpop.f32.mrf.mxu0  ;;  %v3636_v62 = vadd.f32 %v3635_v12, %v3634_v2  ;;  %v3171_v44 = vadd.f32 %v3064_v54, %v5757_v56 }
 0x1f9   : > { %v3738_v27 = vsel %vm379_vm0, %v3704_v3, 0.0  ;;  %3567 = vst.msk [vmem:[%s5829_s12 + $0x4e] sm:$0xfc] %vm3551_vm4, %v3524_v34  ;;  %v4696_v46 = vpop.f32.mrf.mxu1  ;;  %v3522_v36 = vadd.f32 %v3405_v7, %v3168_v20  ;;  %v3707_v31 = vmul.f32 %v3604_v8, %v3604_v8  ;;  %v3641_v39 = vsel %vm379_vm0, %v3604_v8, 0.0 }
 0x1fa   : > { %v3602_v45 = vld [vmem:[%s5829_s12 + $0x20] sm:$0xff]  ;;  %v3603_v16 = vld [vmem:[%s5829_s12 + $0x28] sm:$0xff]  ;;  %v4739_v26 = vpop.f32.mrf.mxu0  ;;  %v3739_v60 = vadd.f32 %v3738_v27, %v3737_v37  ;;  %v3174_v30 = vadd.f32 %v4696_v46, %v5760_v25 }
 0x1fb   : > { %v3637_v11 = vsel %vm379_vm0, %v3602_v45, 0.0  ;;  %v3705_v17 = vmul.f32 %v3602_v45, %v3602_v45  ;;  %3565 = vst.msk [vmem:[%s5829_s12 + $0x40] sm:$0xff] %vm379_vm0, %v3522_v36  ;;  %v3067_v6 = vpop.f32.mrf.mxu1  ;;  %v3706_v48 = vmul.f32 %v3603_v16, %v3603_v16  ;;  %v3527_v13 = vadd.f32 %v4739_v26, %v3173_v0 }
 0x1fc   : > { %v3638_v51 = vadd.f32 %v3637_v11, %v3636_v62  ;;  %v3418_v15 = vpop.f32.mrf.mxu0  ;;  %v3639_v63 = vsel %vm379_vm0, %v3603_v16, 0.0  ;;  %v3607_v50 = vld [vmem:[%s5829_s12 + $0x48] sm:$0xff]  ;;  %v3172_v4 = vadd.f32 %v3067_v6, %v5763_v53  ;;  %v3744_v20 = vsel %vm379_vm0, %v3707_v31, 0.0 }
 0x1fd   : > { %v3740_v10 = vsel %vm379_vm0, %v3705_v17, 0.0  ;;  %v4699_v38 = vpop.f32.mrf.mxu1  ;;  %v3525_v56 = vadd.f32 %v3418_v15, %v3171_v44  ;;  %3571 = vst.msk [vmem:[%s5829_s12 + $0x64] sm:$0xff] %vm379_vm0, %v3527_v13  ;;  %v3742_v57 = vsel %vm379_vm0, %v3706_v48, 0.0  ;;  %v3710_v8 = vmul.f32 %v3607_v50, %v3607_v50 }
 0x1fe   : > { %v3640_v61 = vadd.f32 %v3639_v63, %v3638_v51  ;;  %v3741_v21 = vadd.f32 %v3740_v10, %v3739_v60  ;;  %v3605_v33 = vld [vmem:[%s5829_s12 + $0x38] sm:$0xff]  ;;  %v4740_v24 = vpop.f32.mrf.mxu0  ;;  %v3177_v34 = vadd.f32 %v4699_v38, %v5766_v55  ;;  %v3647_v44 = vsel %vm379_vm0, %v3607_v50, 0.0 }
 0x1ff   : > { %v3708_v41 = vmul.f32 %v3605_v33, %v3605_v33  ;;  %3568 = vst.msk [vmem:[%s5829_s12 + $0x56] sm:$0xff] %vm379_vm0, %v3525_v56  ;;  %v3080_v25 = vpop.f32.mrf.mxu1  ;;  %v3528_v2 = vadd.f32 %v4740_v24, %v3174_v30  ;;  %v3643_v54 = vsel %vm379_vm0, %v3605_v33, 0.0  ;;  %v3750_v48 = vsel %vm379_vm0, %v3710_v8, 0.0 }
 0x200   : > { %v3743_v22 = vadd.f32 %v3742_v57, %v3741_v21  ;;  %v3642_v12 = vadd.f32 %v3641_v39, %v3640_v61  ;;  %v3421_v3 = vpop.f32.mrf.mxu0  ;;  %v3175_v36 = vadd.f32 %v3080_v25, %v5769_v43 }
 0x201   : > { %3572 = vst.msk [vmem:[%s5829_s12 + $0x6c] sm:$0xf] %vm3558_vm5, %v3528_v2  ;;  %v4700_v53 = vpop.f32.mrf.mxu1  ;;  %v3526_v37 = vadd.f32 %v3421_v3, %v3172_v4  ;;  %v3746_v45 = vsel %vm379_vm0, %v3708_v41, 0.0 }
 0x202   : > { %3573 = vst.msk [vmem:[%s5829_s12 + $0x6a] sm:$0xc0] %vm3560_vm6, %v3528_v2  ;;  %v3644_v7 = vadd.f32 %v3643_v54, %v3642_v12  ;;  %v3745_v27 = vadd.f32 %v3744_v20, %v3743_v22  ;;  %v3606_v46 = vld [vmem:[%s5829_s12 + $0x40] sm:$0xff]  ;;  %v4743_v62 = vpop.f32.mrf.mxu0  ;;  %v3178_v6 = vadd.f32 %v4700_v53, %v5772_v28 }
 0x203   : > { %v3645_v16 = vsel %vm379_vm0, %v3606_v46, 0.0  ;;  %v3709_v0 = vmul.f32 %v3606_v46, %v3606_v46  ;;  %3569 = vst.msk [vmem:[%s5829_s12 + $0x5e] sm:$0x3] %vm384_vm2, %v3526_v37  ;;  %v3083_v55 = vpop.f32.mrf.mxu1  ;;  %v3531_v26 = vadd.f32 %v4743_v62, %v3177_v34 }
 0x204   : > { %3570 = vst.msk [vmem:[%s5829_s12 + $0x5c] sm:$0xf0] %vm3555_vm7, %v3526_v37  ;;  %v3747_v31 = vadd.f32 %v3746_v45, %v3745_v27  ;;  %v3646_v11 = vadd.f32 %v3645_v16, %v3644_v7  ;;  %v3434_v17 = vpop.f32.mrf.mxu0  ;;  %v3176_v56 = vadd.f32 %v3083_v55, %v5775_v14 }
 0x205   : > { %v3748_v43 = vsel %vm379_vm0, %v3709_v0, 0.0  ;;  %3576 = vst.msk [vmem:[%s5829_s12 + $0x80] sm:$0xff] %vm379_vm0, %v3531_v26  ;;  %v4703_v60 = vpop.f32.mrf.mxu1  ;;  %v3529_v51 = vadd.f32 %v3434_v17, %v3175_v36 }
 0x206   : > { %v3749_v13 = vadd.f32 %v3748_v43, %v3747_v31  ;;  %v3608_v15 = vld [vmem:[%s5829_s12 + $0x50] sm:$0xff]  ;;  %v3648_v63 = vadd.f32 %v3647_v44, %v3646_v11  ;;  %v4744_v10 = vpop.f32.mrf.mxu0  ;;  %v3181_v2 = vadd.f32 %v4703_v60, %v5778_v23 }
 0x207   : > { %v3649_v30 = vsel %vm379_vm0, %v3608_v15, 0.0  ;;  %v3711_v38 = vmul.f32 %v3608_v15, %v3608_v15  ;;  %3574 = vst.msk [vmem:[%s5829_s12 + $0x72] sm:$0xff] %vm379_vm0, %v3529_v51  ;;  %v3096_v28 = vpop.f32.mrf.mxu1  ;;  %v3532_v39 = vadd.f32 %v4744_v10, %v3178_v6 }
 0x208   : > { %v3751_v61 = vadd.f32 %v3750_v48, %v3749_v13  ;;  %v3611_v21 = vld [vmem:[%s5829_s12 + $0x68] sm:$0xff]  ;;  %v3437_v33 = vpop.f32.mrf.mxu0  ;;  %v3650_v41 = vadd.f32 %v3649_v30, %v3648_v63  ;;  %v3179_v20 = vadd.f32 %v3096_v28, %v5781_v47 }
 0x209   : > { %v3752_v24 = vsel %vm379_vm0, %v3711_v38, 0.0  ;;  %3577 = vst.msk [vmem:[%s5829_s12 + $0x88] sm:$0xff] %vm379_vm0, %v3532_v39  ;;  %v4704_v57 = vpop.f32.mrf.mxu1  ;;  %v3530_v50 = vadd.f32 %v3437_v33, %v3176_v56  ;;  %v3714_v22 = vmul.f32 %v3611_v21, %v3611_v21  ;;  %v3655_v62 = vsel %vm379_vm0, %v3611_v21, 0.0 }
 0x20a   : > { %v3609_v4 = vld [vmem:[%s5829_s12 + $0x58] sm:$0xff]  ;;  %v4747_v14 = vpop.f32.mrf.mxu0  ;;  %v3753_v34 = vadd.f32 %v3752_v24, %v3751_v61  ;;  %v3182_v46 = vadd.f32 %v4704_v57, %v5784_v1 }
 0x20b   : > { %v3610_v25 = vld [vmem:[%s5829_s12 + $0x60] sm:$0xff]  ;;  %v3651_v12 = vsel %vm379_vm0, %v3609_v4, 0.0  ;;  %v3712_v3 = vmul.f32 %v3609_v4, %v3609_v4  ;;  %3575 = vst.msk [vmem:[%s5829_s12 + $0x7a] sm:$0x3f] %vm3563_vm8, %v3530_v50  ;;  %v3099_v54 = vpop.f32.mrf.mxu1  ;;  %v3535_v8 = vadd.f32 %v4747_v14, %v3181_v2  ;;  %v3758_v51 = vsel %vm379_vm0, %v3714_v22, 0.0 }
 0x20c   : > { %v3652_v53 = vadd.f32 %v3651_v12, %v3650_v41  ;;  %v3713_v37 = vmul.f32 %v3610_v25, %v3610_v25  ;;  %v3450_v7 = vpop.f32.mrf.mxu0  ;;  %v3653_v23 = vsel %vm379_vm0, %v3610_v25, 0.0  ;;  %v3614_v31 = vld [vmem:[%s5829_s12 + $0x80] sm:$0xff]  ;;  %v3180_v17 = vadd.f32 %v3099_v54, %v5787_v5 }
 0x20d   : > { %v3754_v27 = vsel %vm379_vm0, %v3712_v3, 0.0  ;;  %v4707_v47 = vpop.f32.mrf.mxu1  ;;  %v3533_v36 = vadd.f32 %v3450_v7, %v3179_v20  ;;  %3580 = vst.msk [vmem:[%s5829_s12 + $0x9e] sm:$0x3] %vm384_vm2, %v3535_v8  ;;  %v3717_v63 = vmul.f32 %v3614_v31, %v3614_v31  ;;  %v3661_v4 = vsel %vm379_vm0, %v3614_v31, 0.0 }
 0x20e   : > { %v3654_v45 = vadd.f32 %v3653_v23, %v3652_v53  ;;  %v3755_v16 = vadd.f32 %v3754_v27, %v3753_v34  ;;  %v3612_v0 = vld [vmem:[%s5829_s12 + $0x70] sm:$0xff]  ;;  %3581 = vst.msk [vmem:[%s5829_s12 + $0x9c] sm:$0xf0] %vm3555_vm7, %v3535_v8  ;;  %v4748_v55 = vpop.f32.mrf.mxu0  ;;  %v3756_v26 = vsel %vm379_vm0, %v3713_v37, 0.0  ;;  %v3185_v13 = vadd.f32 %v4707_v47, %v5790_v9 }
 0x20f   : > { %v3715_v11 = vmul.f32 %v3612_v0, %v3612_v0  ;;  %3578 = vst.msk [vmem:[%s5829_s12 + $0x8e] sm:$0xfc] %vm3551_vm4, %v3533_v36  ;;  %v3112_v1 = vpop.f32.mrf.mxu1  ;;  %v3536_v44 = vadd.f32 %v4748_v55, %v3182_v46  ;;  %v3657_v48 = vsel %vm379_vm0, %v3612_v0, 0.0  ;;  %v3764_v54 = vsel %vm379_vm0, %v3717_v63, 0.0 }
 0x210   : > { %v3757_v43 = vadd.f32 %v3756_v26, %v3755_v16  ;;  %v3656_v6 = vadd.f32 %v3655_v62, %v3654_v45  ;;  %v3453_v60 = vpop.f32.mrf.mxu0  ;;  %v3183_v56 = vadd.f32 %v3112_v1, %v5793_v49  ;;  %v3615_v61 = vld [vmem:[%s5829_s12 + $0x88] sm:$0xff] }
 0x211   : > { %3582 = vst.msk [vmem:[%s5829_s12 + $0xa4] sm:$0xff] %vm379_vm0, %v3536_v44  ;;  %v4708_v15 = vpop.f32.mrf.mxu1  ;;  %v3534_v5 = vadd.f32 %v3453_v60, %v3180_v17  ;;  %v3760_v39 = vsel %vm379_vm0, %v3715_v11, 0.0  ;;  %v3718_v22 = vmul.f32 %v3615_v61, %v3615_v61  ;;  %v3663_v23 = vsel %vm379_vm0, %v3615_v61, 0.0 }
 0x212   : > { %v3658_v10 = vadd.f32 %v3657_v48, %v3656_v6  ;;  %v3759_v30 = vadd.f32 %v3758_v51, %v3757_v43  ;;  %v3613_v38 = vld [vmem:[%s5829_s12 + $0x78] sm:$0xff]  ;;  %v4751_v28 = vpop.f32.mrf.mxu0  ;;  %v3186_v25 = vadd.f32 %v4708_v15, %v5796_v40 }
 0x213   : > { %v3659_v21 = vsel %vm379_vm0, %v3613_v38, 0.0  ;;  %v3716_v33 = vmul.f32 %v3613_v38, %v3613_v38  ;;  %3579 = vst.msk [vmem:[%s5829_s12 + $0x96] sm:$0xff] %vm379_vm0, %v3534_v5  ;;  %v3115_v9 = vpop.f32.mrf.mxu1  ;;  %v3539_v24 = vadd.f32 %v4751_v28, %v3185_v13  ;;  %v3766_v47 = vsel %vm379_vm0, %v3718_v22, 0.0 }
 0x214   : > { %v3761_v57 = vadd.f32 %v3760_v39, %v3759_v30  ;;  %v3660_v50 = vadd.f32 %v3659_v21, %v3658_v10  ;;  %v3466_v41 = vpop.f32.mrf.mxu0  ;;  %v3184_v34 = vadd.f32 %v3115_v9, %v5799_v59 }
 0x215   : > { %v3762_v49 = vsel %vm379_vm0, %v3716_v33, 0.0  ;;  %3586 = vst.msk [vmem:[%s5829_s12 + $0xba] sm:$0x3f] %vm3563_vm8, %v3539_v24  ;;  %v4711_v2 = vpop.f32.mrf.mxu1  ;;  %v3537_v14 = vadd.f32 %v3466_v41, %v3183_v56 }
 0x216   : > { %v3662_v12 = vadd.f32 %v3661_v4, %v3660_v50  ;;  %v3763_v3 = vadd.f32 %v3762_v49, %v3761_v57  ;;  %v4752_v20 = vpop.f32.mrf.mxu0  ;;  %v3189_v45 = vadd.f32 %v4711_v2, %v5802_v58 }
 0x217   : > { %3583 = vst.msk [vmem:[%s5829_s12 + $0xac] sm:$0xf] %vm3558_vm5, %v3537_v14  ;;  %v3128_v40 = vpop.f32.mrf.mxu1  ;;  %v3540_v53 = vadd.f32 %v4752_v20, %v3186_v25 }
 0x218   : > { %3584 = vst.msk [vmem:[%s5829_s12 + $0xaa] sm:$0xc0] %vm3560_vm6, %v3537_v14  ;;  %v3765_v37 = vadd.f32 %v3764_v54, %v3763_v3  ;;  %v3618_v8 = vld [vmem:[%s5829_s12 + $0xa0] sm:$0xff]  ;;  %v3469_v7 = vpop.f32.mrf.mxu0  ;;  %v3664_v62 = vadd.f32 %v3663_v23, %v3662_v12  ;;  %v3187_v31 = vadd.f32 %v3128_v40, %v5805_v35 }
 0x219   : > { %3587 = vst.msk [vmem:[%s5829_s12 + $0xc0] sm:$0xff] %vm379_vm0, %v3540_v53  ;;  %v4712_v27 = vpop.f32.mrf.mxu1  ;;  %v3538_v46 = vadd.f32 %v3469_v7, %v3184_v34  ;;  %v3721_v0 = vmul.f32 %v3618_v8, %v3618_v8  ;;  %v3669_v13 = vsel %vm379_vm0, %v3618_v8, 0.0 }
 0x21a   : > { %v3616_v36 = vld [vmem:[%s5829_s12 + $0x90] sm:$0xff]  ;;  %v3617_v59 = vld [vmem:[%s5829_s12 + $0x98] sm:$0xff]  ;;  %v4755_v16 = vpop.f32.mrf.mxu0  ;;  %v3767_v44 = vadd.f32 %v3766_v47, %v3765_v37  ;;  %v3190_v51 = vadd.f32 %v4712_v27, %v5808_v19 }
 0x21b   : > { %v3665_v55 = vsel %vm379_vm0, %v3616_v36, 0.0  ;;  %v3719_v26 = vmul.f32 %v3616_v36, %v3616_v36  ;;  %3585 = vst.msk [vmem:[%s5829_s12 + $0xb2] sm:$0xff] %vm379_vm0, %v3538_v46  ;;  %v3131_v11 = vpop.f32.mrf.mxu1  ;;  %v3720_v1 = vmul.f32 %v3617_v59, %v3617_v59  ;;  %v3543_v43 = vadd.f32 %v4755_v16, %v3189_v45 }
 0x21c   : > { %v3666_v17 = vadd.f32 %v3665_v55, %v3664_v62  ;;  %v3482_v6 = vpop.f32.mrf.mxu0  ;;  %v3667_v58 = vsel %vm379_vm0, %v3617_v59, 0.0  ;;  %v3188_v56 = vadd.f32 %v3131_v11, %v5811_v18  ;;  %v3772_v9 = vsel %vm379_vm0, %v3721_v0, 0.0 }
 0x21d   : > { %v3768_v60 = vsel %vm379_vm0, %v3719_v26, 0.0  ;;  %v4715_v48 = vpop.f32.mrf.mxu1  ;;  %v3541_v35 = vadd.f32 %v3482_v6, %v3187_v31  ;;  %3590 = vst.msk [vmem:[%s5829_s12 + $0xd6] sm:$0xff] %vm379_vm0, %v3543_v43  ;;  %v3770_v30 = vsel %vm379_vm0, %v3720_v1, 0.0 }
 0x21e   : > { %v3668_v15 = vadd.f32 %v3667_v58, %v3666_v17  ;;  %v3769_v5 = vadd.f32 %v3768_v60, %v3767_v44  ;;  %v3619_v63 = vld [vmem:[%s5829_s12 + $0xa8] sm:$0xff]  ;;  %v4756_v10 = vpop.f32.mrf.mxu0  ;;  %v3193_v25 = vadd.f32 %v4715_v48, %v5814_v32 }
 0x21f   : > { %v3722_v38 = vmul.f32 %v3619_v63, %v3619_v63  ;;  %3588 = vst.msk [vmem:[%s5829_s12 + $0xc8] sm:$0xff] %vm379_vm0, %v3541_v35  ;;  %v3144_v19 = vpop.f32.mrf.mxu1  ;;  %v3544_v28 = vadd.f32 %v4756_v10, %v3190_v51  ;;  %v3671_v24 = vsel %vm379_vm0, %v3619_v63, 0.0 }
 0x220   : > { %v3771_v39 = vadd.f32 %v3770_v30, %v3769_v5  ;;  %v3670_v61 = vadd.f32 %v3669_v13, %v3668_v15  ;;  %v3622_v21 = vld [vmem:[%s5829_s12 + $0xc0] sm:$0xff]  ;;  %v3485_v33 = vpop.f32.mrf.mxu0  ;;  %v3191_v2 = vadd.f32 %v3144_v19, %v5817_v29 }
 0x221   : > { %3591 = vst.msk [vmem:[%s5829_s12 + $0xde] sm:$0x3] %vm384_vm2, %v3544_v28  ;;  %v4716_v18 = vpop.f32.mrf.mxu1  ;;  %v3542_v57 = vadd.f32 %v3485_v33, %v3188_v56  ;;  %v3774_v22 = vsel %vm379_vm0, %v3722_v38, 0.0  ;;  %v3725_v12 = vmul.f32 %v3622_v21, %v3622_v21  ;;  %v3677_v27 = vsel %vm379_vm0, %v3622_v21, 0.0 }
 0x222   : > { %3592 = vst.msk [vmem:[%s5829_s12 + $0xdc] sm:$0xf0] %vm3555_vm7, %v3544_v28  ;;  %v3672_v50 = vadd.f32 %v3671_v24, %v3670_v61  ;;  %v3773_v41 = vadd.f32 %v3772_v9, %v3771_v39  ;;  %v3620_v4 = vld [vmem:[%s5829_s12 + $0xb0] sm:$0xff]  ;;  %v3621_v49 = vld [vmem:[%s5829_s12 + $0xb8] sm:$0xff]  ;;  %v4759_v14 = vpop.f32.mrf.mxu0  ;;  %v3194_v53 = vadd.f32 %v4716_v18, %v5819_v52 }
 0x223   : > { %v3673_v3 = vsel %vm379_vm0, %v3620_v4, 0.0  ;;  %v3723_v20 = vmul.f32 %v3620_v4, %v3620_v4  ;;  %3589 = vst.msk [vmem:[%s5829_s12 + $0xce] sm:$0xfc] %vm3551_vm4, %v3542_v57  ;;  %v3724_v40 = vmul.f32 %v3621_v49, %v3621_v49  ;;  %v3147_v32 = vpop.f32.mrf.mxu1  ;;  %v3675_v29 = vsel %vm379_vm0, %v3621_v49, 0.0 }
 0x224   : > { %v3775_v54 = vadd.f32 %v3774_v22, %v3773_v41  ;;  %v3674_v34 = vadd.f32 %v3673_v3, %v3672_v50  ;;  %v3498_v37 = vpop.f32.mrf.mxu0  ;;  %v3547_v7 = vadd.f32 %v4759_v14, %v3193_v25  ;;  %v3192_v45 = vadd.f32 %v3147_v32, %v5822_v42 }
 0x225   : > { %v3776_v8 = vsel %vm379_vm0, %v3723_v20, 0.0  ;;  %v3545_v23 = vadd.f32 %v3498_v37, %v3191_v2  ;;  %v3778_v62 = vsel %vm379_vm0, %v3724_v40, 0.0  ;;  %v3780_v11 = vsel %vm379_vm0, %v3725_v12, 0.0 }
 0x226   : > { %v3676_v46 = vadd.f32 %v3675_v29, %v3674_v34  ;;  %v3777_v47 = vadd.f32 %v3776_v8, %v3775_v54  ;;  %v3623_v36 = vld [vmem:[%s5829_s12 + $0xc8] sm:$0xff]  ;;  %v4760_v59 = vpop.f32.mrf.mxu0  ;;  %3596 = vst.msk [vmem:[%s5829_s12 + $0xf2] sm:$0xff] %vm379_vm0, %v3547_v7 }
 0x227   : > { %v3726_v52 = vmul.f32 %v3623_v36, %v3623_v36  ;;  %3593 = vst.msk [vmem:[%s5829_s12 + $0xe4] sm:$0xff] %vm379_vm0, %v3545_v23  ;;  %v3548_v16 = vadd.f32 %v4760_v59, %v3194_v53  ;;  %v3679_v17 = vsel %vm379_vm0, %v3623_v36, 0.0 }
 0x228   : > { %v3779_v0 = vadd.f32 %v3778_v62, %v3777_v47  ;;  %v3678_v55 = vadd.f32 %v3677_v27, %v3676_v46  ;;  %v3625_v26 = vld [vmem:[%s5829_s12 + $0xd8] sm:$0xff]  ;;  %v3501_v31 = vpop.f32.mrf.mxu0 }
 0x229   : > { %3597 = vst.msk [vmem:[%s5829_s12 + $0xfa] sm:$0x3f] %vm3563_vm8, %v3548_v16  ;;  %v3546_v1 = vadd.f32 %v3501_v31, %v3192_v45  ;;  %v3782_v6 = vsel %vm379_vm0, %v3726_v52, 0.0  ;;  %v3728_v58 = vmul.f32 %v3625_v26, %v3625_v26  ;;  %v3683_v13 = vsel %vm379_vm0, %v3625_v26, 0.0 }
 0x22a   : > { %v3680_v42 = vadd.f32 %v3679_v17, %v3678_v55  ;;  %v3781_v44 = vadd.f32 %v3780_v11, %v3779_v0  ;;  %v3624_v43 = vld [vmem:[%s5829_s12 + $0xd0] sm:$0xff] }
 0x22b   : > { %v3681_v60 = vsel %vm379_vm0, %v3624_v43, 0.0  ;;  %v3727_v51 = vmul.f32 %v3624_v43, %v3624_v43  ;;  %3594 = vst.msk [vmem:[%s5829_s12 + $0xec] sm:$0xf] %vm3558_vm5, %v3546_v1  ;;  %v3786_v30 = vsel %vm379_vm0, %v3728_v58, 0.0 }
 0x22c   : > { %3595 = vst.msk [vmem:[%s5829_s12 + $0xea] sm:$0xc0] %vm3560_vm6, %v3546_v1  ;;  %v3783_v48 = vadd.f32 %v3782_v6, %v3781_v44  ;;  %v3682_v35 = vadd.f32 %v3681_v60, %v3680_v42 }
 0x22d   : > { %v3784_v15 = vsel %vm379_vm0, %v3727_v51, 0.0 }
 0x22e   : > { %v3785_v5 = vadd.f32 %v3784_v15, %v3783_v48  ;;  %v3626_v63 = vld [vmem:[%s5829_s12 + $0xe0] sm:$0xff]  ;;  %v3684_v10 = vadd.f32 %v3683_v13, %v3682_v35 }
 0x22f   : > { %v3685_v38 = vsel %vm379_vm0, %v3626_v63, 0.0  ;;  %v3729_v56 = vmul.f32 %v3626_v63, %v3626_v63 }
 0x230   : > { %v3787_v19 = vadd.f32 %v3786_v30, %v3785_v5  ;;  %v3686_v39 = vadd.f32 %v3685_v38, %v3684_v10  ;;  %v3629_v61 = vld [vmem:[%s5829_s12 + $0xf8] sm:$0xff] }
 0x231   : > { %v3788_v28 = vsel %vm379_vm0, %v3729_v56, 0.0  ;;  %v3732_v41 = vmul.f32 %v3629_v61, %v3629_v61  ;;  %v3691_v14 = vsel %vm379_vm0, %v3629_v61, 0.0 }
 0x232   : > { %v3627_v21 = vld [vmem:[%s5829_s12 + $0xe8] sm:$0xff]  ;;  %v3789_v18 = vadd.f32 %v3788_v28, %v3787_v19 }
 0x233   : > { %v3628_v33 = vld [vmem:[%s5829_s12 + $0xf0] sm:$0xff]  ;;  %v3687_v9 = vsel %vm379_vm0, %v3627_v21, 0.0  ;;  %v3730_v24 = vmul.f32 %v3627_v21, %v3627_v21  ;;  %v3794_v20 = vsel %vm379_vm0, %v3732_v41, 0.0 }
 0x234   : > { %v3688_v57 = vadd.f32 %v3687_v9, %v3686_v39  ;;  %v3731_v50 = vmul.f32 %v3628_v33, %v3628_v33  ;;  %v3689_v4 = vsel %vm379_vm0, %v3628_v33, 0.0 }
 0x235   : > { %v3790_v49 = vsel %vm379_vm0, %v3730_v24, 0.0 }
 0x236   : > { %v3690_v25 = vadd.f32 %v3689_v4, %v3688_v57  ;;  %v3791_v2 = vadd.f32 %v3790_v49, %v3789_v18  ;;  %v3792_v22 = vsel %vm379_vm0, %v3731_v50, 0.0 }
 0x238   : > { %v3692_v12 = vadd.f32 %v3691_v14, %v3690_v25  ;;  %v3793_v3 = vadd.f32 %v3792_v22, %v3791_v2 }
 0x23a   : > { %v3693_v54 = vrot.slane %v3692_v12, 4  ;;  %v3795_v34 = vadd.f32 %v3794_v20, %v3793_v3 }
 0x23c   : > { %v3694_v40 = vadd.f32 %v3693_v54, %v3692_v12  ;;  %v3796_v53 = vrot.slane %v3795_v34, 4 }
 0x23e   : > { %v3695_v32 = vrot.slane %v3694_v40, 2  ;;  %v3797_v37 = vadd.f32 %v3796_v53, %v3795_v34 }
 0x240   : > { %v3696_v29 = vadd.f32 %v3695_v32, %v3694_v40  ;;  %v3798_v8 = vrot.slane %v3797_v37, 2 }
 0x242   : > { %v3697_v7 = vrot.slane %v3696_v29, 1  ;;  %v3799_v23 = vadd.f32 %v3798_v8, %v3797_v37 }
 0x244   : > { %v3698_v27 = vadd.f32 %v3697_v7, %v3696_v29  ;;  %v3800_v46 = vrot.slane %v3799_v23, 1 }
 0x246   : > { %3700 = vst.msk [vmem:[%s235_s15] sm:$0x1] %vm3699_vm9, %v3698_v27  ;;  %v3801_v47 = vadd.f32 %v3800_v46, %v3799_v23 }
 0x248   : > { %3802 = vst.msk [vmem:[%s235_s15 + $0x1] sm:$0x1] %vm3699_vm9, %v3801_v47 }
 0x249 PF: > { %s16_s18 = sadd.s32 1, %s4820_s18  }
 0x24a   : > { %p13_p4 = scmp.ge.s32.totalorder %s16_s18, 6  }
 0x24c   :  { %15 = sbr.rel (!%p13_p4) target bundleno = 1 (0x1), region = 86 }

</bundles_post_ra>
